<compile_context>
chip_gen: v7x
topology: tpu7x:2x2x1
jax: 0.10.0
libtpu: 0.0.40
codegen_flags: <defaults>
</compile_context>

<pallas_src>
import functools

import jax
import jax.numpy as jnp
from jax import lax
from jax.experimental import pallas as pl
from jax.experimental.pallas import tpu as pltpu

BN_EPS = 1e-5
LANE = 128
PADL = 16   # left halo offset in the scratch W (sublane) dim -> aligned stores


def _round_up(x, m):
    return (x + m - 1) // m * m


# ---------------------------------------------------------------------------
# Kernel A: [optional folded-BN + relu] -> 3x3 conv -> bf16 output
#           + per-image BN partial statistics (mean, centered M2)
# ---------------------------------------------------------------------------
def _conv3x3_stats_kernel(x_ref, w_ref, scale_ref, shift_ref,
                          out_ref, mu_ref, m2_ref, xpad_ref, slab_ref,
                          *, apply_bn_relu):
    """One image per grid step (grid axis fully parallel).

    x_ref:     (H, W, C)        input tile (f32 for pass 1, bf16 c1 for pass 2)
    w_ref:     (9*Cp, Cp)  bf16 conv weights, (kh, kw, ci)-major, channel padded
    scale_ref: (1, C)      f32  folded bn1 scale (used only when apply_bn_relu)
    shift_ref: (1, C)      f32  folded bn1 shift
    out_ref:   (H, W, Co)  bf16 raw conv output (pre-BN, unpadded channels)
    mu_ref:    (1, Cp)     f32  per-image channel mean of the conv output
    m2_ref:    (1, Cp)     f32  per-image centered sum of squares
    xpad_ref:  (H+2, PADL+W+8, Cp) bf16 zero-halo scratch
    slab_ref:  (H*W, 9*Cp) bf16 im2col slab
    """
    H, W, C = x_ref.shape
    HW = H * W
    Cp = xpad_ref.shape[-1]
    Co = out_ref.shape[-1]

    # Re-zero the halo scratch every step: required for correctness under a
    # "parallel" grid (a second TensorCore never sees step 0) and it also
    # zero-fills the C..Cp channel tail so the padded weights see zeros.
    xpad_ref[...] = jnp.zeros(xpad_ref.shape, xpad_ref.dtype)

    x = x_ref[...]
    if apply_bn_relu:          # fused bn1 + relu on the conv2 input (f32 math)
        x = jnp.maximum(x.astype(jnp.float32) * scale_ref[...].reshape(1, 1, C)
                        + shift_ref[...].reshape(1, 1, C), 0.0)
    xpad_ref[1:H + 1, PADL:PADL + W, :C] = x.astype(xpad_ref.dtype)

    # im2col-in-VMEM: nine shifted window copies, lane offsets multiple of 128.
    for dh in range(3):
        for dw in range(3):
            t = dh * 3 + dw
            win = xpad_ref[dh:dh + H, PADL - 1 + dw:PADL - 1 + dw + W, :]
            slab_ref[:, t * Cp:(t + 1) * Cp] = win.reshape(HW, Cp)

    # Single big-K matmul: accumulation stays inside the MXU.
    acc = jnp.dot(slab_ref[...], w_ref[...],
                  preferred_element_type=jnp.float32)

    # Per-image centered BN partials; combined in the wrapper (Chan's algo).
    mu = jnp.sum(acc, axis=0, keepdims=True) * (1.0 / HW)
    m2_ref[...] = jnp.sum((acc - mu) ** 2, axis=0, keepdims=True)
    mu_ref[...] = mu

    out_ref[...] = acc.reshape(H, W, Cp)[:, :, :Co].astype(out_ref.dtype)


def _conv3x3_stats(x, w_flat, scale, shift, *, planes, cp, apply_bn_relu):
    N, H, W, C = x.shape
    kernel = functools.partial(_conv3x3_stats_kernel,
                               apply_bn_relu=apply_bn_relu)

    x_bytes = H * W * C * jnp.dtype(x.dtype).itemsize
    working_set = (2 * x_bytes                          # double-buffered input
                   + 2 * 9 * cp * cp * 2                # weights (bf16)
                   + 2 * H * W * planes * 2             # double-buffered output
                   + (H + 2) * (PADL + W + 8) * cp * 2  # halo scratch
                   + H * W * 9 * cp * 2)                # im2col slab
    # Cap at 40 MiB: v7x only has 64 MiB physical VMEM.
    vmem_limit = int(min(max(working_set * 3 // 2 + (4 << 20), 24 << 20),
                         40 << 20))

    cost = pl.CostEstimate(
        flops=2 * N * H * W * 9 * cp * cp,
        transcendentals=0,
        bytes_accessed=(N * x_bytes + 9 * cp * cp * 2
                        + N * H * W * planes * 2 + 2 * N * cp * 4))

    return pl.pallas_call(
        kernel,
        out_shape=(jax.ShapeDtypeStruct((N, H, W, planes), jnp.bfloat16),
                   jax.ShapeDtypeStruct((N, 1, cp), jnp.float32),
                   jax.ShapeDtypeStruct((N, 1, cp), jnp.float32)),
        grid_spec=pltpu.PrefetchScalarGridSpec(
            num_scalar_prefetch=0,
            grid=(N,),
            in_specs=[
                pl.BlockSpec((None, H, W, C), lambda n: (n, 0, 0, 0)),
                pl.BlockSpec((9 * cp, cp), lambda n: (0, 0)),
                pl.BlockSpec((1, C), lambda n: (0, 0)),
                pl.BlockSpec((1, C), lambda n: (0, 0)),
            ],
            out_specs=(
                pl.BlockSpec((None, H, W, planes), lambda n: (n, 0, 0, 0)),
                pl.BlockSpec((None, 1, cp), lambda n: (n, 0, 0)),
                pl.BlockSpec((None, 1, cp), lambda n: (n, 0, 0)),
            ),
            scratch_shapes=[
                pltpu.VMEM((H + 2, PADL + W + 8, cp), jnp.bfloat16),
                pltpu.VMEM((H * W, 9 * cp), jnp.bfloat16),
            ],
        ),
        compiler_params=pltpu.CompilerParams(
            dimension_semantics=("parallel",),   # per-image partial stats
            vmem_limit_bytes=vmem_limit),
        cost_estimate=cost,
    )(x, w_flat, scale, shift)


# ---------------------------------------------------------------------------
# Kernel B: bn2 affine + identity residual + relu (fully parallel, mem-bound)
# ---------------------------------------------------------------------------
def _bn_add_relu_kernel(c_ref, scale_ref, shift_ref, res_ref, o_ref):
    C = c_ref.shape[-1]
    y = (c_ref[...].astype(jnp.float32) * scale_ref[...].reshape(1, 1, C)
         + shift_ref[...].reshape(1, 1, C) + res_ref[...])
    o_ref[...] = jnp.maximum(y, 0.0)


def _bn_add_relu(c, scale, shift, res):
    N, H, W, C = c.shape
    working_set = 2 * (H * W * C * 2 + H * W * C * 4 + H * W * C * 4)
    vmem_limit = int(min(max(working_set * 3 // 2 + (4 << 20), 24 << 20),
                         40 << 20))
    cost = pl.CostEstimate(flops=4 * N * H * W * C, transcendentals=0,
                           bytes_accessed=N * H * W * C * (2 + 4 + 4))
    return pl.pallas_call(
        _bn_add_relu_kernel,
        out_shape=jax.ShapeDtypeStruct((N, H, W, C), jnp.float32),
        grid_spec=pltpu.PrefetchScalarGridSpec(
            num_scalar_prefetch=0,
            grid=(N,),
            in_specs=[
                pl.BlockSpec((None, H, W, C), lambda n: (n, 0, 0, 0)),
                pl.BlockSpec((1, C), lambda n: (0, 0)),
                pl.BlockSpec((1, C), lambda n: (0, 0)),
                pl.BlockSpec((None, H, W, C), lambda n: (n, 0, 0, 0)),
            ],
            out_specs=pl.BlockSpec((None, H, W, C), lambda n: (n, 0, 0, 0)),
        ),
        compiler_params=pltpu.CompilerParams(
            dimension_semantics=("parallel",),
            vmem_limit_bytes=vmem_limit),
        cost_estimate=cost,
    )(c, scale, shift, res)


# ---------------------------------------------------------------------------
# Wrapper glue (layout plumbing + O(C) BN folding between passes)
# ---------------------------------------------------------------------------
def _torch_w_to_flat(w_oihw, cp):
    """PyTorch (Cout, Cin, 3, 3) -> ((3*3*Cin_p), Cout_p) bf16, (kh,kw,ci)-major."""
    co, ci, kh, kw = w_oihw.shape
    w = jnp.transpose(w_oihw, (2, 3, 1, 0))                       # (3, 3, ci, co)
    w = jnp.pad(w, ((0, 0), (0, 0), (0, cp - ci), (0, cp - co)))
    return w.reshape(kh * kw * cp, cp).astype(jnp.bfloat16)


def _fold_bn(mu, m2, gamma, beta, planes, cnt):
    """Combine per-image partials (Chan's parallel variance) and fold gamma/beta."""
    mu = mu[:, 0, :planes]              # (N, planes)
    m2 = m2[:, 0, :planes]
    n_img = mu.shape[0]
    mean = jnp.mean(mu, axis=0)
    m2_tot = (jnp.sum(m2, axis=0)
              + cnt * jnp.sum((mu - mean[None, :]) ** 2, axis=0))
    var = m2_tot / (n_img * cnt)        # biased variance (PyTorch train-mode BN)
    scale = gamma.astype(jnp.float32) * lax.rsqrt(var + BN_EPS)
    shift = beta.astype(jnp.float32) - mean * scale
    return scale.reshape(1, planes), shift.reshape(1, planes)


def basic_block_forward(x_nchw, params):
    """BasicBlock(inplanes, planes, stride=1, downsample=None).forward(x)."""
    n, c, h, w = x_nchw.shape
    planes = params["w1"].shape[0]
    # TODO(synk): stride > 1 / downsample shortcut not implemented (module defaults).
    assert planes == c and params["w1"].shape[1] == c
    cp = _round_up(max(c, planes, LANE), LANE)
    cnt = h * w

    x_nhwc = jnp.transpose(x_nchw, (0, 2, 3, 1)).astype(jnp.float32)

    w1 = _torch_w_to_flat(params["w1"], cp)
    w2 = _torch_w_to_flat(params["w2"], cp)
    ones = jnp.ones((1, c), jnp.float32)
    zeros = jnp.zeros((1, c), jnp.float32)

    # pass 1: conv1 (raw, bf16 out) + per-image bn1 partial stats
    c1, mu1, m21 = _conv3x3_stats(x_nhwc, w1, ones, zeros,
                                  planes=planes, cp=cp, apply_bn_relu=False)
    scale1, shift1 = _fold_bn(mu1, m21, params["g1"], params["b1"], planes, cnt)

    # pass 2: bn1+relu fused into conv2's input path + per-image bn2 stats
    c2, mu2, m22 = _conv3x3_stats(c1, w2, scale1, shift1,
                                  planes=planes, cp=cp, apply_bn_relu=True)
    scale2, shift2 = _fold_bn(mu2, m22, params["g2"], params["b2"], planes, cnt)

    # pass 3: bn2 affine + identity residual + relu
    out_nhwc = _bn_add_relu(c2, scale2, shift2, x_nhwc)
    return jnp.transpose(out_nhwc, (0, 3, 1, 2))  # back to NCHW


# ---------------------------------------------------------------------------
# Pure-JAX reference, matching the kernels' precision policy (bf16 conv
# operands, f32 accumulation, bf16-stored conv intermediates, f32 BN math).
# ---------------------------------------------------------------------------
def _ref_forward(x_nchw, params):
    def conv_bf16(x, wt):
        return lax.conv_general_dilated(
            x.astype(jnp.bfloat16), wt.astype(jnp.bfloat16),
            (1, 1), ((1, 1), (1, 1)),
            dimension_numbers=("NCHW", "OIHW", "NCHW"),
            preferred_element_type=jnp.float32)

    def bn(stats_src, x, g, b):
        mean = jnp.mean(stats_src, axis=(0, 2, 3), keepdims=True)
        var = jnp.mean((stats_src - mean) ** 2, axis=(0, 2, 3), keepdims=True)
        scale = g.reshape(1, -1, 1, 1) * lax.rsqrt(var + BN_EPS)
        return x * scale + (b.reshape(1, -1, 1, 1) - mean * scale)

    c1 = conv_bf16(x_nchw, params["w1"])                       # f32 conv output
    c1b = c1.astype(jnp.bfloat16).astype(jnp.float32)          # stored as bf16
    h1 = jax.nn.relu(bn(c1, c1b, params["g1"], params["b1"]))
    c2 = conv_bf16(h1, params["w2"])
    c2b = c2.astype(jnp.bfloat16).astype(jnp.float32)
    out = bn(c2, c2b, params["g2"], params["b2"]) + x_nchw
    return jax.nn.relu(out)


if __name__ == "__main__":
    key = jax.random.PRNGKey(0)
    kx, k1, k2 = jax.random.split(key, 3)

    N, C, H, W = 2, 4, 16, 16          # inplanes == planes == 4, stride 1
    planes = C

    x = jax.random.normal(kx, (N, C, H, W), jnp.float32)
    params = {
        "w1": jax.random.normal(k1, (planes, C, 3, 3), jnp.float32) * 0.1,
        "w2": jax.random.normal(k2, (planes, planes, 3, 3), jnp.float32) * 0.1,
        "g1": jnp.ones((planes,), jnp.float32),
        "b1": jnp.zeros((planes,), jnp.float32),
        "g2": jnp.ones((planes,), jnp.float32),
        "b2": jnp.zeros((planes,), jnp.float32),
    }

    out = jax.jit(basic_block_forward)(x, params)
    jax.block_until_ready(out)

    ref = _ref_forward(x, params)
    assert out.shape == (N, planes, H, W), out.shape
    max_err = float(jnp.max(jnp.abs(out - ref)))
    mean_err = float(jnp.mean(jnp.abs(out - ref)))
    # bf16-stored conv intermediates: a single bf16 ulp disagreement amplified
    # through BN normalization can reach ~1e-2 on an isolated element; the
    # mean error stays tiny when the math is correct.
    assert max_err < 3e-2, (max_err, mean_err)
    assert mean_err < 2e-3, (max_err, mean_err)
    print("KERNEL_OK")
</pallas_src>

<mosaic_0001>
module attributes {stable_mosaic.version = 11 : i64} {
  func.func @_conv3x3_stats_kernel(%arg0: i32, %arg1: memref<1x16x16x4xf32, #tpu.memory_space<vmem>>, %arg2: memref<1152x128xbf16, #tpu.memory_space<vmem>>, %arg3: memref<1x4xf32, #tpu.memory_space<vmem>>, %arg4: memref<1x4xf32, #tpu.memory_space<vmem>>, %arg5: memref<1x16x16x4xbf16, #tpu.memory_space<vmem>>, %arg6: memref<1x1x128xf32, #tpu.memory_space<vmem>>, %arg7: memref<1x1x128xf32, #tpu.memory_space<vmem>>, %arg8: memref<18x40x128xbf16, #tpu.memory_space<vmem>>, %arg9: memref<256x1152xbf16, #tpu.memory_space<vmem>>) attributes {dimension_semantics = [#tpu.dimension_semantics<parallel>], iteration_bounds = array<i64: 2>, scalar_prefetch = 0 : i64, scratch_operands = 2 : i64, tpu.core_type = #tpu.core_type<tc>, window_params = [{transform_indices = @transform_0, window_bounds = array<i64: 1, 16, 16, 4>}, {pipeline_mode = #tpu.pipeline_mode<synchronous>, transform_indices = @transform_1, window_bounds = array<i64: 1152, 128>}, {pipeline_mode = #tpu.pipeline_mode<synchronous>, transform_indices = @transform_2, window_bounds = array<i64: 1, 4>}, {pipeline_mode = #tpu.pipeline_mode<synchronous>, transform_indices = @transform_3, window_bounds = array<i64: 1, 4>}, {transform_indices = @transform_4, window_bounds = array<i64: 1, 16, 16, 4>}, {transform_indices = @transform_5, window_bounds = array<i64: 1, 1, 128>}, {transform_indices = @transform_6, window_bounds = array<i64: 1, 1, 128>}]} {
    %cst = arith.constant 0.000000e+00 : bf16
    %0 = vector.broadcast %cst : bf16 to vector<18x40x128xbf16>
    %c0 = arith.constant 0 : index
    %c0_0 = arith.constant 0 : index
    %c0_1 = arith.constant 0 : index
    %1 = vector.load %arg8[%c0, %c0_0, %c0_1] : memref<18x40x128xbf16, #tpu.memory_space<vmem>>, vector<18x40x128xbf16>
    tpu.vector_store %arg8[%c0, %c0_0, %c0_1], %0 {strides = array<i32>} : memref<18x40x128xbf16, #tpu.memory_space<vmem>>, vector<18x40x128xbf16>,
    %c0_2 = arith.constant 0 : index
    %c0_3 = arith.constant 0 : index
    %c0_4 = arith.constant 0 : index
    %c0_5 = arith.constant 0 : index
    %2 = vector.load %arg1[%c0_2, %c0_3, %c0_4, %c0_5] : memref<1x16x16x4xf32, #tpu.memory_space<vmem>>, vector<1x16x16x4xf32>
    %3 = vector.shape_cast %2 : vector<1x16x16x4xf32> to vector<16x16x4xf32>
    %4 = arith.truncf %3 : vector<16x16x4xf32> to vector<16x16x4xbf16>
    %c1 = arith.constant 1 : index
    %c16 = arith.constant 16 : index
    %c0_6 = arith.constant 0 : index
    %5 = vector.load %arg8[%c1, %c16, %c0_6] : memref<18x40x128xbf16, #tpu.memory_space<vmem>>, vector<16x16x4xbf16>
    tpu.vector_store %arg8[%c1, %c16, %c0_6], %4 {strides = array<i32>} : memref<18x40x128xbf16, #tpu.memory_space<vmem>>, vector<16x16x4xbf16>,
    %c0_7 = arith.constant 0 : index
    %c15 = arith.constant 15 : index
    %c0_8 = arith.constant 0 : index
    %6 = vector.load %arg8[%c0_7, %c15, %c0_8] : memref<18x40x128xbf16, #tpu.memory_space<vmem>>, vector<16x16x128xbf16>
    %7 = vector.shape_cast %6 : vector<16x16x128xbf16> to vector<256x128xbf16>
    %c0_9 = arith.constant 0 : index
    %c0_10 = arith.constant 0 : index
    %8 = vector.load %arg9[%c0_9, %c0_10] : memref<256x1152xbf16, #tpu.memory_space<vmem>>, vector<256x128xbf16>
    tpu.vector_store %arg9[%c0_9, %c0_10], %7 {strides = array<i32>} : memref<256x1152xbf16, #tpu.memory_space<vmem>>, vector<256x128xbf16>,
    %c0_11 = arith.constant 0 : index
    %c16_12 = arith.constant 16 : index
    %c0_13 = arith.constant 0 : index
    %9 = vector.load %arg8[%c0_11, %c16_12, %c0_13] : memref<18x40x128xbf16, #tpu.memory_space<vmem>>, vector<16x16x128xbf16>
    %10 = vector.shape_cast %9 : vector<16x16x128xbf16> to vector<256x128xbf16>
    %c0_14 = arith.constant 0 : index
    %c128 = arith.constant 128 : index
    %11 = vector.load %arg9[%c0_14, %c128] : memref<256x1152xbf16, #tpu.memory_space<vmem>>, vector<256x128xbf16>
    tpu.vector_store %arg9[%c0_14, %c128], %10 {strides = array<i32>} : memref<256x1152xbf16, #tpu.memory_space<vmem>>, vector<256x128xbf16>,
    %c0_15 = arith.constant 0 : index
    %c17 = arith.constant 17 : index
    %c0_16 = arith.constant 0 : index
    %12 = vector.load %arg8[%c0_15, %c17, %c0_16] : memref<18x40x128xbf16, #tpu.memory_space<vmem>>, vector<16x16x128xbf16>
    %13 = vector.shape_cast %12 : vector<16x16x128xbf16> to vector<256x128xbf16>
    %c0_17 = arith.constant 0 : index
    %c256 = arith.constant 256 : index
    %14 = vector.load %arg9[%c0_17, %c256] : memref<256x1152xbf16, #tpu.memory_space<vmem>>, vector<256x128xbf16>
    tpu.vector_store %arg9[%c0_17, %c256], %13 {strides = array<i32>} : memref<256x1152xbf16, #tpu.memory_space<vmem>>, vector<256x128xbf16>,
    %c1_18 = arith.constant 1 : index
    %c15_19 = arith.constant 15 : index
    %c0_20 = arith.constant 0 : index
    %15 = vector.load %arg8[%c1_18, %c15_19, %c0_20] : memref<18x40x128xbf16, #tpu.memory_space<vmem>>, vector<16x16x128xbf16>
    %16 = vector.shape_cast %15 : vector<16x16x128xbf16> to vector<256x128xbf16>
    %c0_21 = arith.constant 0 : index
    %c384 = arith.constant 384 : index
    %17 = vector.load %arg9[%c0_21, %c384] : memref<256x1152xbf16, #tpu.memory_space<vmem>>, vector<256x128xbf16>
    tpu.vector_store %arg9[%c0_21, %c384], %16 {strides = array<i32>} : memref<256x1152xbf16, #tpu.memory_space<vmem>>, vector<256x128xbf16>,
    %c1_22 = arith.constant 1 : index
    %c16_23 = arith.constant 16 : index
    %c0_24 = arith.constant 0 : index
    %18 = vector.load %arg8[%c1_22, %c16_23, %c0_24] : memref<18x40x128xbf16, #tpu.memory_space<vmem>>, vector<16x16x128xbf16>
    %19 = vector.shape_cast %18 : vector<16x16x128xbf16> to vector<256x128xbf16>
    %c0_25 = arith.constant 0 : index
    %c512 = arith.constant 512 : index
    %20 = vector.load %arg9[%c0_25, %c512] : memref<256x1152xbf16, #tpu.memory_space<vmem>>, vector<256x128xbf16>
    tpu.vector_store %arg9[%c0_25, %c512], %19 {strides = array<i32>} : memref<256x1152xbf16, #tpu.memory_space<vmem>>, vector<256x128xbf16>,
    %c1_26 = arith.constant 1 : index
    %c17_27 = arith.constant 17 : index
    %c0_28 = arith.constant 0 : index
    %21 = vector.load %arg8[%c1_26, %c17_27, %c0_28] : memref<18x40x128xbf16, #tpu.memory_space<vmem>>, vector<16x16x128xbf16>
    %22 = vector.shape_cast %21 : vector<16x16x128xbf16> to vector<256x128xbf16>
    %c0_29 = arith.constant 0 : index
    %c640 = arith.constant 640 : index
    %23 = vector.load %arg9[%c0_29, %c640] : memref<256x1152xbf16, #tpu.memory_space<vmem>>, vector<256x128xbf16>
    tpu.vector_store %arg9[%c0_29, %c640], %22 {strides = array<i32>} : memref<256x1152xbf16, #tpu.memory_space<vmem>>, vector<256x128xbf16>,
    %c2 = arith.constant 2 : index
    %c15_30 = arith.constant 15 : index
    %c0_31 = arith.constant 0 : index
    %24 = vector.load %arg8[%c2, %c15_30, %c0_31] : memref<18x40x128xbf16, #tpu.memory_space<vmem>>, vector<16x16x128xbf16>
    %25 = vector.shape_cast %24 : vector<16x16x128xbf16> to vector<256x128xbf16>
    %c0_32 = arith.constant 0 : index
    %c768 = arith.constant 768 : index
    %26 = vector.load %arg9[%c0_32, %c768] : memref<256x1152xbf16, #tpu.memory_space<vmem>>, vector<256x128xbf16>
    tpu.vector_store %arg9[%c0_32, %c768], %25 {strides = array<i32>} : memref<256x1152xbf16, #tpu.memory_space<vmem>>, vector<256x128xbf16>,
    %c2_33 = arith.constant 2 : index
    %c16_34 = arith.constant 16 : index
    %c0_35 = arith.constant 0 : index
    %27 = vector.load %arg8[%c2_33, %c16_34, %c0_35] : memref<18x40x128xbf16, #tpu.memory_space<vmem>>, vector<16x16x128xbf16>
    %28 = vector.shape_cast %27 : vector<16x16x128xbf16> to vector<256x128xbf16>
    %c0_36 = arith.constant 0 : index
    %c896 = arith.constant 896 : index
    %29 = vector.load %arg9[%c0_36, %c896] : memref<256x1152xbf16, #tpu.memory_space<vmem>>, vector<256x128xbf16>
    tpu.vector_store %arg9[%c0_36, %c896], %28 {strides = array<i32>} : memref<256x1152xbf16, #tpu.memory_space<vmem>>, vector<256x128xbf16>,
    %c2_37 = arith.constant 2 : index
    %c17_38 = arith.constant 17 : index
    %c0_39 = arith.constant 0 : index
    %30 = vector.load %arg8[%c2_37, %c17_38, %c0_39] : memref<18x40x128xbf16, #tpu.memory_space<vmem>>, vector<16x16x128xbf16>
    %31 = vector.shape_cast %30 : vector<16x16x128xbf16> to vector<256x128xbf16>
    %c0_40 = arith.constant 0 : index
    %c1024 = arith.constant 1024 : index
    %32 = vector.load %arg9[%c0_40, %c1024] : memref<256x1152xbf16, #tpu.memory_space<vmem>>, vector<256x128xbf16>
    tpu.vector_store %arg9[%c0_40, %c1024], %31 {strides = array<i32>} : memref<256x1152xbf16, #tpu.memory_space<vmem>>, vector<256x128xbf16>,
    %c0_41 = arith.constant 0 : index
    %c0_42 = arith.constant 0 : index
    %33 = vector.load %arg9[%c0_41, %c0_42] : memref<256x1152xbf16, #tpu.memory_space<vmem>>, vector<256x1152xbf16>
    %c0_43 = arith.constant 0 : index
    %c0_44 = arith.constant 0 : index
    %34 = vector.load %arg2[%c0_43, %c0_44] : memref<1152x128xbf16, #tpu.memory_space<vmem>>, vector<1152x128xbf16>
    %cst_45 = arith.constant dense<0.000000e+00> : vector<256x128xf32>
    %35 = tpu.matmul %33, %34, %cst_45 {dimension_numbers = #tpu.dot_dimension_numbers<[1], [0], [0], [1], [0, 0, 1, 1], [], []>} : vector<256x1152xbf16>, vector<1152x128xbf16>, vector<256x128xf32> -> vector<256x128xf32>
    %cst_46 = arith.constant dense<0.000000e+00> : vector<128xf32>
    %36 = vector.multi_reduction <add>, %35, %cst_46 [0] : vector<256x128xf32> to vector<128xf32>
    %37 = vector.shape_cast %36 : vector<128xf32> to vector<1x128xf32>
    %cst_47 = arith.constant 3.906250e-03 : f32
    %38 = vector.broadcast %cst_47 : f32 to vector<1x128xf32>
    %39 = arith.mulf %37, %38 : vector<1x128xf32>
    %40 = vector.broadcast %39 : vector<1x128xf32> to vector<256x128xf32>
    %41 = arith.subf %35, %40 : vector<256x128xf32>
    %42 = arith.mulf %41, %41 : vector<256x128xf32>
    %cst_48 = arith.constant dense<0.000000e+00> : vector<128xf32>
    %43 = vector.multi_reduction <add>, %42, %cst_48 [0] : vector<256x128xf32> to vector<128xf32>
    %44 = vector.shape_cast %43 : vector<128xf32> to vector<1x128xf32>
    %c0_49 = arith.constant 0 : index
    %c0_50 = arith.constant 0 : index
    %c0_51 = arith.constant 0 : index
    %45 = vector.load %arg7[%c0_49, %c0_50, %c0_51] : memref<1x1x128xf32, #tpu.memory_space<vmem>>, vector<1x1x128xf32>
    %46 = vector.shape_cast %45 : vector<1x1x128xf32> to vector<1x128xf32>
    %47 = vector.shape_cast %44 : vector<1x128xf32> to vector<1x1x128xf32>
    tpu.vector_store %arg7[%c0_49, %c0_50, %c0_51], %47 {strides = array<i32>} : memref<1x1x128xf32, #tpu.memory_space<vmem>>, vector<1x1x128xf32>,
    %c0_52 = arith.constant 0 : index
    %c0_53 = arith.constant 0 : index
    %c0_54 = arith.constant 0 : index
    %48 = vector.load %arg6[%c0_52, %c0_53, %c0_54] : memref<1x1x128xf32, #tpu.memory_space<vmem>>, vector<1x1x128xf32>
    %49 = vector.shape_cast %48 : vector<1x1x128xf32> to vector<1x128xf32>
    %50 = vector.shape_cast %39 : vector<1x128xf32> to vector<1x1x128xf32>
    tpu.vector_store %arg6[%c0_52, %c0_53, %c0_54], %50 {strides = array<i32>} : memref<1x1x128xf32, #tpu.memory_space<vmem>>, vector<1x1x128xf32>,
    %51 = vector.shape_cast %35 : vector<256x128xf32> to vector<16x16x128xf32>
    %52 = vector.extract_strided_slice %51 {offsets = [0, 0, 0], sizes = [16, 16, 4], strides = [1, 1, 1]} : vector<16x16x128xf32> to vector<16x16x4xf32>
    %53 = arith.truncf %52 : vector<16x16x4xf32> to vector<16x16x4xbf16>
    %c0_55 = arith.constant 0 : index
    %c0_56 = arith.constant 0 : index
    %c0_57 = arith.constant 0 : index
    %c0_58 = arith.constant 0 : index
    %54 = vector.load %arg5[%c0_55, %c0_56, %c0_57, %c0_58] : memref<1x16x16x4xbf16, #tpu.memory_space<vmem>>, vector<1x16x16x4xbf16>
    %55 = vector.shape_cast %54 : vector<1x16x16x4xbf16> to vector<16x16x4xbf16>
    %56 = vector.shape_cast %53 : vector<16x16x4xbf16> to vector<1x16x16x4xbf16>
    tpu.vector_store %arg5[%c0_55, %c0_56, %c0_57, %c0_58], %56 {strides = array<i32>} : memref<1x16x16x4xbf16, #tpu.memory_space<vmem>>, vector<1x16x16x4xbf16>,
    return
  }
  func.func @transform_0(%arg0: i32) -> (i32, i32, i32, i32) {
    %c0_i32 = arith.constant 0 : i32
    %c0_i32_0 = arith.constant 0 : i32
    %c0_i32_1 = arith.constant 0 : i32
    %c0_i32_2 = arith.constant 0 : i32
    return %arg0, %c0_i32, %c0_i32_0, %c0_i32_1 : i32, i32, i32, i32
  }
  func.func @transform_1(%arg0: i32) -> (i32, i32) {
    %c0_i32 = arith.constant 0 : i32
    %c0_i32_0 = arith.constant 0 : i32
    %c0_i32_1 = arith.constant 0 : i32
    return %c0_i32, %c0_i32_0 : i32, i32
  }
  func.func @transform_2(%arg0: i32) -> (i32, i32) {
    %c0_i32 = arith.constant 0 : i32
    %c0_i32_0 = arith.constant 0 : i32
    %c0_i32_1 = arith.constant 0 : i32
    return %c0_i32, %c0_i32_0 : i32, i32
  }
  func.func @transform_3(%arg0: i32) -> (i32, i32) {
    %c0_i32 = arith.constant 0 : i32
    %c0_i32_0 = arith.constant 0 : i32
    %c0_i32_1 = arith.constant 0 : i32
    return %c0_i32, %c0_i32_0 : i32, i32
  }
  func.func @transform_4(%arg0: i32) -> (i32, i32, i32, i32) {
    %c0_i32 = arith.constant 0 : i32
    %c0_i32_0 = arith.constant 0 : i32
    %c0_i32_1 = arith.constant 0 : i32
    %c0_i32_2 = arith.constant 0 : i32
    return %arg0, %c0_i32, %c0_i32_0, %c0_i32_1 : i32, i32, i32, i32
  }
  func.func @transform_5(%arg0: i32) -> (i32, i32, i32) {
    %c0_i32 = arith.constant 0 : i32
    %c0_i32_0 = arith.constant 0 : i32
    %c0_i32_1 = arith.constant 0 : i32
    return %arg0, %c0_i32, %c0_i32_0 : i32, i32, i32
  }
  func.func @transform_6(%arg0: i32) -> (i32, i32, i32) {
    %c0_i32 = arith.constant 0 : i32
    %c0_i32_0 = arith.constant 0 : i32
    %c0_i32_1 = arith.constant 0 : i32
    return %arg0, %c0_i32, %c0_i32_0 : i32, i32, i32
  }
}

module attributes {stable_mosaic.version = 11 : i64} {
  func.func @_conv3x3_stats_kernel(%arg0: i32, %arg1: memref<1x16x16x4xbf16, #tpu.memory_space<vmem>>, %arg2: memref<1152x128xbf16, #tpu.memory_space<vmem>>, %arg3: memref<1x4xf32, #tpu.memory_space<vmem>>, %arg4: memref<1x4xf32, #tpu.memory_space<vmem>>, %arg5: memref<1x16x16x4xbf16, #tpu.memory_space<vmem>>, %arg6: memref<1x1x128xf32, #tpu.memory_space<vmem>>, %arg7: memref<1x1x128xf32, #tpu.memory_space<vmem>>, %arg8: memref<18x40x128xbf16, #tpu.memory_space<vmem>>, %arg9: memref<256x1152xbf16, #tpu.memory_space<vmem>>) attributes {dimension_semantics = [#tpu.dimension_semantics<parallel>], iteration_bounds = array<i64: 2>, scalar_prefetch = 0 : i64, scratch_operands = 2 : i64, tpu.core_type = #tpu.core_type<tc>, window_params = [{transform_indices = @transform_0, window_bounds = array<i64: 1, 16, 16, 4>}, {pipeline_mode = #tpu.pipeline_mode<synchronous>, transform_indices = @transform_1, window_bounds = array<i64: 1152, 128>}, {pipeline_mode = #tpu.pipeline_mode<synchronous>, transform_indices = @transform_2, window_bounds = array<i64: 1, 4>}, {pipeline_mode = #tpu.pipeline_mode<synchronous>, transform_indices = @transform_3, window_bounds = array<i64: 1, 4>}, {transform_indices = @transform_4, window_bounds = array<i64: 1, 16, 16, 4>}, {transform_indices = @transform_5, window_bounds = array<i64: 1, 1, 128>}, {transform_indices = @transform_6, window_bounds = array<i64: 1, 1, 128>}]} {
    %cst = arith.constant 0.000000e+00 : bf16
    %0 = vector.broadcast %cst : bf16 to vector<18x40x128xbf16>
    %c0 = arith.constant 0 : index
    %c0_0 = arith.constant 0 : index
    %c0_1 = arith.constant 0 : index
    %1 = vector.load %arg8[%c0, %c0_0, %c0_1] : memref<18x40x128xbf16, #tpu.memory_space<vmem>>, vector<18x40x128xbf16>
    tpu.vector_store %arg8[%c0, %c0_0, %c0_1], %0 {strides = array<i32>} : memref<18x40x128xbf16, #tpu.memory_space<vmem>>, vector<18x40x128xbf16>,
    %c0_2 = arith.constant 0 : index
    %c0_3 = arith.constant 0 : index
    %c0_4 = arith.constant 0 : index
    %c0_5 = arith.constant 0 : index
    %2 = vector.load %arg1[%c0_2, %c0_3, %c0_4, %c0_5] : memref<1x16x16x4xbf16, #tpu.memory_space<vmem>>, vector<1x16x16x4xbf16>
    %3 = vector.shape_cast %2 : vector<1x16x16x4xbf16> to vector<16x16x4xbf16>
    %4 = arith.extf %3 : vector<16x16x4xbf16> to vector<16x16x4xf32>
    %c0_6 = arith.constant 0 : index
    %c0_7 = arith.constant 0 : index
    %5 = vector.load %arg3[%c0_6, %c0_7] : memref<1x4xf32, #tpu.memory_space<vmem>>, vector<1x4xf32>
    %6 = vector.shape_cast %5 : vector<1x4xf32> to vector<1x1x4xf32>
    %7 = vector.broadcast %6 : vector<1x1x4xf32> to vector<16x16x4xf32>
    %8 = arith.mulf %4, %7 : vector<16x16x4xf32>
    %c0_8 = arith.constant 0 : index
    %c0_9 = arith.constant 0 : index
    %9 = vector.load %arg4[%c0_8, %c0_9] : memref<1x4xf32, #tpu.memory_space<vmem>>, vector<1x4xf32>
    %10 = vector.shape_cast %9 : vector<1x4xf32> to vector<1x1x4xf32>
    %11 = vector.broadcast %10 : vector<1x1x4xf32> to vector<16x16x4xf32>
    %12 = arith.addf %8, %11 : vector<16x16x4xf32>
    %cst_10 = arith.constant 0.000000e+00 : f32
    %13 = vector.broadcast %cst_10 : f32 to vector<16x16x4xf32>
    %14 = arith.maximumf %12, %13 : vector<16x16x4xf32>
    %15 = arith.truncf %14 : vector<16x16x4xf32> to vector<16x16x4xbf16>
    %c1 = arith.constant 1 : index
    %c16 = arith.constant 16 : index
    %c0_11 = arith.constant 0 : index
    %16 = vector.load %arg8[%c1, %c16, %c0_11] : memref<18x40x128xbf16, #tpu.memory_space<vmem>>, vector<16x16x4xbf16>
    tpu.vector_store %arg8[%c1, %c16, %c0_11], %15 {strides = array<i32>} : memref<18x40x128xbf16, #tpu.memory_space<vmem>>, vector<16x16x4xbf16>,
    %c0_12 = arith.constant 0 : index
    %c15 = arith.constant 15 : index
    %c0_13 = arith.constant 0 : index
    %17 = vector.load %arg8[%c0_12, %c15, %c0_13] : memref<18x40x128xbf16, #tpu.memory_space<vmem>>, vector<16x16x128xbf16>
    %18 = vector.shape_cast %17 : vector<16x16x128xbf16> to vector<256x128xbf16>
    %c0_14 = arith.constant 0 : index
    %c0_15 = arith.constant 0 : index
    %19 = vector.load %arg9[%c0_14, %c0_15] : memref<256x1152xbf16, #tpu.memory_space<vmem>>, vector<256x128xbf16>
    tpu.vector_store %arg9[%c0_14, %c0_15], %18 {strides = array<i32>} : memref<256x1152xbf16, #tpu.memory_space<vmem>>, vector<256x128xbf16>,
    %c0_16 = arith.constant 0 : index
    %c16_17 = arith.constant 16 : index
    %c0_18 = arith.constant 0 : index
    %20 = vector.load %arg8[%c0_16, %c16_17, %c0_18] : memref<18x40x128xbf16, #tpu.memory_space<vmem>>, vector<16x16x128xbf16>
    %21 = vector.shape_cast %20 : vector<16x16x128xbf16> to vector<256x128xbf16>
    %c0_19 = arith.constant 0 : index
    %c128 = arith.constant 128 : index
    %22 = vector.load %arg9[%c0_19, %c128] : memref<256x1152xbf16, #tpu.memory_space<vmem>>, vector<256x128xbf16>
    tpu.vector_store %arg9[%c0_19, %c128], %21 {strides = array<i32>} : memref<256x1152xbf16, #tpu.memory_space<vmem>>, vector<256x128xbf16>,
    %c0_20 = arith.constant 0 : index
    %c17 = arith.constant 17 : index
    %c0_21 = arith.constant 0 : index
    %23 = vector.load %arg8[%c0_20, %c17, %c0_21] : memref<18x40x128xbf16, #tpu.memory_space<vmem>>, vector<16x16x128xbf16>
    %24 = vector.shape_cast %23 : vector<16x16x128xbf16> to vector<256x128xbf16>
    %c0_22 = arith.constant 0 : index
    %c256 = arith.constant 256 : index
    %25 = vector.load %arg9[%c0_22, %c256] : memref<256x1152xbf16, #tpu.memory_space<vmem>>, vector<256x128xbf16>
    tpu.vector_store %arg9[%c0_22, %c256], %24 {strides = array<i32>} : memref<256x1152xbf16, #tpu.memory_space<vmem>>, vector<256x128xbf16>,
    %c1_23 = arith.constant 1 : index
    %c15_24 = arith.constant 15 : index
    %c0_25 = arith.constant 0 : index
    %26 = vector.load %arg8[%c1_23, %c15_24, %c0_25] : memref<18x40x128xbf16, #tpu.memory_space<vmem>>, vector<16x16x128xbf16>
    %27 = vector.shape_cast %26 : vector<16x16x128xbf16> to vector<256x128xbf16>
    %c0_26 = arith.constant 0 : index
    %c384 = arith.constant 384 : index
    %28 = vector.load %arg9[%c0_26, %c384] : memref<256x1152xbf16, #tpu.memory_space<vmem>>, vector<256x128xbf16>
    tpu.vector_store %arg9[%c0_26, %c384], %27 {strides = array<i32>} : memref<256x1152xbf16, #tpu.memory_space<vmem>>, vector<256x128xbf16>,
    %c1_27 = arith.constant 1 : index
    %c16_28 = arith.constant 16 : index
    %c0_29 = arith.constant 0 : index
    %29 = vector.load %arg8[%c1_27, %c16_28, %c0_29] : memref<18x40x128xbf16, #tpu.memory_space<vmem>>, vector<16x16x128xbf16>
    %30 = vector.shape_cast %29 : vector<16x16x128xbf16> to vector<256x128xbf16>
    %c0_30 = arith.constant 0 : index
    %c512 = arith.constant 512 : index
    %31 = vector.load %arg9[%c0_30, %c512] : memref<256x1152xbf16, #tpu.memory_space<vmem>>, vector<256x128xbf16>
    tpu.vector_store %arg9[%c0_30, %c512], %30 {strides = array<i32>} : memref<256x1152xbf16, #tpu.memory_space<vmem>>, vector<256x128xbf16>,
    %c1_31 = arith.constant 1 : index
    %c17_32 = arith.constant 17 : index
    %c0_33 = arith.constant 0 : index
    %32 = vector.load %arg8[%c1_31, %c17_32, %c0_33] : memref<18x40x128xbf16, #tpu.memory_space<vmem>>, vector<16x16x128xbf16>
    %33 = vector.shape_cast %32 : vector<16x16x128xbf16> to vector<256x128xbf16>
    %c0_34 = arith.constant 0 : index
    %c640 = arith.constant 640 : index
    %34 = vector.load %arg9[%c0_34, %c640] : memref<256x1152xbf16, #tpu.memory_space<vmem>>, vector<256x128xbf16>
    tpu.vector_store %arg9[%c0_34, %c640], %33 {strides = array<i32>} : memref<256x1152xbf16, #tpu.memory_space<vmem>>, vector<256x128xbf16>,
    %c2 = arith.constant 2 : index
    %c15_35 = arith.constant 15 : index
    %c0_36 = arith.constant 0 : index
    %35 = vector.load %arg8[%c2, %c15_35, %c0_36] : memref<18x40x128xbf16, #tpu.memory_space<vmem>>, vector<16x16x128xbf16>
    %36 = vector.shape_cast %35 : vector<16x16x128xbf16> to vector<256x128xbf16>
    %c0_37 = arith.constant 0 : index
    %c768 = arith.constant 768 : index
    %37 = vector.load %arg9[%c0_37, %c768] : memref<256x1152xbf16, #tpu.memory_space<vmem>>, vector<256x128xbf16>
    tpu.vector_store %arg9[%c0_37, %c768], %36 {strides = array<i32>} : memref<256x1152xbf16, #tpu.memory_space<vmem>>, vector<256x128xbf16>,
    %c2_38 = arith.constant 2 : index
    %c16_39 = arith.constant 16 : index
    %c0_40 = arith.constant 0 : index
    %38 = vector.load %arg8[%c2_38, %c16_39, %c0_40] : memref<18x40x128xbf16, #tpu.memory_space<vmem>>, vector<16x16x128xbf16>
    %39 = vector.shape_cast %38 : vector<16x16x128xbf16> to vector<256x128xbf16>
    %c0_41 = arith.constant 0 : index
    %c896 = arith.constant 896 : index
    %40 = vector.load %arg9[%c0_41, %c896] : memref<256x1152xbf16, #tpu.memory_space<vmem>>, vector<256x128xbf16>
    tpu.vector_store %arg9[%c0_41, %c896], %39 {strides = array<i32>} : memref<256x1152xbf16, #tpu.memory_space<vmem>>, vector<256x128xbf16>,
    %c2_42 = arith.constant 2 : index
    %c17_43 = arith.constant 17 : index
    %c0_44 = arith.constant 0 : index
    %41 = vector.load %arg8[%c2_42, %c17_43, %c0_44] : memref<18x40x128xbf16, #tpu.memory_space<vmem>>, vector<16x16x128xbf16>
    %42 = vector.shape_cast %41 : vector<16x16x128xbf16> to vector<256x128xbf16>
    %c0_45 = arith.constant 0 : index
    %c1024 = arith.constant 1024 : index
    %43 = vector.load %arg9[%c0_45, %c1024] : memref<256x1152xbf16, #tpu.memory_space<vmem>>, vector<256x128xbf16>
    tpu.vector_store %arg9[%c0_45, %c1024], %42 {strides = array<i32>} : memref<256x1152xbf16, #tpu.memory_space<vmem>>, vector<256x128xbf16>,
    %c0_46 = arith.constant 0 : index
    %c0_47 = arith.constant 0 : index
    %44 = vector.load %arg9[%c0_46, %c0_47] : memref<256x1152xbf16, #tpu.memory_space<vmem>>, vector<256x1152xbf16>
    %c0_48 = arith.constant 0 : index
    %c0_49 = arith.constant 0 : index
    %45 = vector.load %arg2[%c0_48, %c0_49] : memref<1152x128xbf16, #tpu.memory_space<vmem>>, vector<1152x128xbf16>
    %cst_50 = arith.constant dense<0.000000e+00> : vector<256x128xf32>
    %46 = tpu.matmul %44, %45, %cst_50 {dimension_numbers = #tpu.dot_dimension_numbers<[1], [0], [0], [1], [0, 0, 1, 1], [], []>} : vector<256x1152xbf16>, vector<1152x128xbf16>, vector<256x128xf32> -> vector<256x128xf32>
    %cst_51 = arith.constant dense<0.000000e+00> : vector<128xf32>
    %47 = vector.multi_reduction <add>, %46, %cst_51 [0] : vector<256x128xf32> to vector<128xf32>
    %48 = vector.shape_cast %47 : vector<128xf32> to vector<1x128xf32>
    %cst_52 = arith.constant 3.906250e-03 : f32
    %49 = vector.broadcast %cst_52 : f32 to vector<1x128xf32>
    %50 = arith.mulf %48, %49 : vector<1x128xf32>
    %51 = vector.broadcast %50 : vector<1x128xf32> to vector<256x128xf32>
    %52 = arith.subf %46, %51 : vector<256x128xf32>
    %53 = arith.mulf %52, %52 : vector<256x128xf32>
    %cst_53 = arith.constant dense<0.000000e+00> : vector<128xf32>
    %54 = vector.multi_reduction <add>, %53, %cst_53 [0] : vector<256x128xf32> to vector<128xf32>
    %55 = vector.shape_cast %54 : vector<128xf32> to vector<1x128xf32>
    %c0_54 = arith.constant 0 : index
    %c0_55 = arith.constant 0 : index
    %c0_56 = arith.constant 0 : index
    %56 = vector.load %arg7[%c0_54, %c0_55, %c0_56] : memref<1x1x128xf32, #tpu.memory_space<vmem>>, vector<1x1x128xf32>
    %57 = vector.shape_cast %56 : vector<1x1x128xf32> to vector<1x128xf32>
    %58 = vector.shape_cast %55 : vector<1x128xf32> to vector<1x1x128xf32>
    tpu.vector_store %arg7[%c0_54, %c0_55, %c0_56], %58 {strides = array<i32>} : memref<1x1x128xf32, #tpu.memory_space<vmem>>, vector<1x1x128xf32>,
    %c0_57 = arith.constant 0 : index
    %c0_58 = arith.constant 0 : index
    %c0_59 = arith.constant 0 : index
    %59 = vector.load %arg6[%c0_57, %c0_58, %c0_59] : memref<1x1x128xf32, #tpu.memory_space<vmem>>, vector<1x1x128xf32>
    %60 = vector.shape_cast %59 : vector<1x1x128xf32> to vector<1x128xf32>
    %61 = vector.shape_cast %50 : vector<1x128xf32> to vector<1x1x128xf32>
    tpu.vector_store %arg6[%c0_57, %c0_58, %c0_59], %61 {strides = array<i32>} : memref<1x1x128xf32, #tpu.memory_space<vmem>>, vector<1x1x128xf32>,
    %62 = vector.shape_cast %46 : vector<256x128xf32> to vector<16x16x128xf32>
    %63 = vector.extract_strided_slice %62 {offsets = [0, 0, 0], sizes = [16, 16, 4], strides = [1, 1, 1]} : vector<16x16x128xf32> to vector<16x16x4xf32>
    %64 = arith.truncf %63 : vector<16x16x4xf32> to vector<16x16x4xbf16>
    %c0_60 = arith.constant 0 : index
    %c0_61 = arith.constant 0 : index
    %c0_62 = arith.constant 0 : index
    %c0_63 = arith.constant 0 : index
    %65 = vector.load %arg5[%c0_60, %c0_61, %c0_62, %c0_63] : memref<1x16x16x4xbf16, #tpu.memory_space<vmem>>, vector<1x16x16x4xbf16>
    %66 = vector.shape_cast %65 : vector<1x16x16x4xbf16> to vector<16x16x4xbf16>
    %67 = vector.shape_cast %64 : vector<16x16x4xbf16> to vector<1x16x16x4xbf16>
    tpu.vector_store %arg5[%c0_60, %c0_61, %c0_62, %c0_63], %67 {strides = array<i32>} : memref<1x16x16x4xbf16, #tpu.memory_space<vmem>>, vector<1x16x16x4xbf16>,
    return
  }
  func.func @transform_0(%arg0: i32) -> (i32, i32, i32, i32) {
    %c0_i32 = arith.constant 0 : i32
    %c0_i32_0 = arith.constant 0 : i32
    %c0_i32_1 = arith.constant 0 : i32
    %c0_i32_2 = arith.constant 0 : i32
    return %arg0, %c0_i32, %c0_i32_0, %c0_i32_1 : i32, i32, i32, i32
  }
  func.func @transform_1(%arg0: i32) -> (i32, i32) {
    %c0_i32 = arith.constant 0 : i32
    %c0_i32_0 = arith.constant 0 : i32
    %c0_i32_1 = arith.constant 0 : i32
    return %c0_i32, %c0_i32_0 : i32, i32
  }
  func.func @transform_2(%arg0: i32) -> (i32, i32) {
    %c0_i32 = arith.constant 0 : i32
    %c0_i32_0 = arith.constant 0 : i32
    %c0_i32_1 = arith.constant 0 : i32
    return %c0_i32, %c0_i32_0 : i32, i32
  }
  func.func @transform_3(%arg0: i32) -> (i32, i32) {
    %c0_i32 = arith.constant 0 : i32
    %c0_i32_0 = arith.constant 0 : i32
    %c0_i32_1 = arith.constant 0 : i32
    return %c0_i32, %c0_i32_0 : i32, i32
  }
  func.func @transform_4(%arg0: i32) -> (i32, i32, i32, i32) {
    %c0_i32 = arith.constant 0 : i32
    %c0_i32_0 = arith.constant 0 : i32
    %c0_i32_1 = arith.constant 0 : i32
    %c0_i32_2 = arith.constant 0 : i32
    return %arg0, %c0_i32, %c0_i32_0, %c0_i32_1 : i32, i32, i32, i32
  }
  func.func @transform_5(%arg0: i32) -> (i32, i32, i32) {
    %c0_i32 = arith.constant 0 : i32
    %c0_i32_0 = arith.constant 0 : i32
    %c0_i32_1 = arith.constant 0 : i32
    return %arg0, %c0_i32, %c0_i32_0 : i32, i32, i32
  }
  func.func @transform_6(%arg0: i32) -> (i32, i32, i32) {
    %c0_i32 = arith.constant 0 : i32
    %c0_i32_0 = arith.constant 0 : i32
    %c0_i32_1 = arith.constant 0 : i32
    return %arg0, %c0_i32, %c0_i32_0 : i32, i32, i32
  }
}

module attributes {stable_mosaic.version = 11 : i64} {
  func.func @_bn_add_relu_kernel(%arg0: i32, %arg1: memref<1x16x16x4xbf16, #tpu.memory_space<vmem>>, %arg2: memref<1x4xf32, #tpu.memory_space<vmem>>, %arg3: memref<1x4xf32, #tpu.memory_space<vmem>>, %arg4: memref<1x16x16x4xf32, #tpu.memory_space<vmem>>, %arg5: memref<1x16x16x4xf32, #tpu.memory_space<vmem>>) attributes {dimension_semantics = [#tpu.dimension_semantics<parallel>], iteration_bounds = array<i64: 2>, scalar_prefetch = 0 : i64, scratch_operands = 0 : i64, tpu.core_type = #tpu.core_type<tc>, window_params = [{transform_indices = @transform_0, window_bounds = array<i64: 1, 16, 16, 4>}, {pipeline_mode = #tpu.pipeline_mode<synchronous>, transform_indices = @transform_1, window_bounds = array<i64: 1, 4>}, {pipeline_mode = #tpu.pipeline_mode<synchronous>, transform_indices = @transform_2, window_bounds = array<i64: 1, 4>}, {transform_indices = @transform_3, window_bounds = array<i64: 1, 16, 16, 4>}, {transform_indices = @transform_4, window_bounds = array<i64: 1, 16, 16, 4>}]} {
    %c0 = arith.constant 0 : index
    %c0_0 = arith.constant 0 : index
    %c0_1 = arith.constant 0 : index
    %c0_2 = arith.constant 0 : index
    %0 = vector.load %arg1[%c0, %c0_0, %c0_1, %c0_2] : memref<1x16x16x4xbf16, #tpu.memory_space<vmem>>, vector<1x16x16x4xbf16>
    %1 = vector.shape_cast %0 : vector<1x16x16x4xbf16> to vector<16x16x4xbf16>
    %2 = arith.extf %1 : vector<16x16x4xbf16> to vector<16x16x4xf32>
    %c0_3 = arith.constant 0 : index
    %c0_4 = arith.constant 0 : index
    %3 = vector.load %arg2[%c0_3, %c0_4] : memref<1x4xf32, #tpu.memory_space<vmem>>, vector<1x4xf32>
    %4 = vector.shape_cast %3 : vector<1x4xf32> to vector<1x1x4xf32>
    %5 = vector.broadcast %4 : vector<1x1x4xf32> to vector<16x16x4xf32>
    %6 = arith.mulf %2, %5 : vector<16x16x4xf32>
    %c0_5 = arith.constant 0 : index
    %c0_6 = arith.constant 0 : index
    %7 = vector.load %arg3[%c0_5, %c0_6] : memref<1x4xf32, #tpu.memory_space<vmem>>, vector<1x4xf32>
    %8 = vector.shape_cast %7 : vector<1x4xf32> to vector<1x1x4xf32>
    %9 = vector.broadcast %8 : vector<1x1x4xf32> to vector<16x16x4xf32>
    %10 = arith.addf %6, %9 : vector<16x16x4xf32>
    %c0_7 = arith.constant 0 : index
    %c0_8 = arith.constant 0 : index
    %c0_9 = arith.constant 0 : index
    %c0_10 = arith.constant 0 : index
    %11 = vector.load %arg4[%c0_7, %c0_8, %c0_9, %c0_10] : memref<1x16x16x4xf32, #tpu.memory_space<vmem>>, vector<1x16x16x4xf32>
    %12 = vector.shape_cast %11 : vector<1x16x16x4xf32> to vector<16x16x4xf32>
    %13 = arith.addf %10, %12 : vector<16x16x4xf32>
    %cst = arith.constant 0.000000e+00 : f32
    %14 = vector.broadcast %cst : f32 to vector<16x16x4xf32>
    %15 = arith.maximumf %13, %14 : vector<16x16x4xf32>
    %c0_11 = arith.constant 0 : index
    %c0_12 = arith.constant 0 : index
    %c0_13 = arith.constant 0 : index
    %c0_14 = arith.constant 0 : index
    %16 = vector.load %arg5[%c0_11, %c0_12, %c0_13, %c0_14] : memref<1x16x16x4xf32, #tpu.memory_space<vmem>>, vector<1x16x16x4xf32>
    %17 = vector.shape_cast %16 : vector<1x16x16x4xf32> to vector<16x16x4xf32>
    %18 = vector.shape_cast %15 : vector<16x16x4xf32> to vector<1x16x16x4xf32>
    tpu.vector_store %arg5[%c0_11, %c0_12, %c0_13, %c0_14], %18 {strides = array<i32>} : memref<1x16x16x4xf32, #tpu.memory_space<vmem>>, vector<1x16x16x4xf32>,
    return
  }
  func.func @transform_0(%arg0: i32) -> (i32, i32, i32, i32) {
    %c0_i32 = arith.constant 0 : i32
    %c0_i32_0 = arith.constant 0 : i32
    %c0_i32_1 = arith.constant 0 : i32
    %c0_i32_2 = arith.constant 0 : i32
    return %arg0, %c0_i32, %c0_i32_0, %c0_i32_1 : i32, i32, i32, i32
  }
  func.func @transform_1(%arg0: i32) -> (i32, i32) {
    %c0_i32 = arith.constant 0 : i32
    %c0_i32_0 = arith.constant 0 : i32
    %c0_i32_1 = arith.constant 0 : i32
    return %c0_i32, %c0_i32_0 : i32, i32
  }
  func.func @transform_2(%arg0: i32) -> (i32, i32) {
    %c0_i32 = arith.constant 0 : i32
    %c0_i32_0 = arith.constant 0 : i32
    %c0_i32_1 = arith.constant 0 : i32
    return %c0_i32, %c0_i32_0 : i32, i32
  }
  func.func @transform_3(%arg0: i32) -> (i32, i32, i32, i32) {
    %c0_i32 = arith.constant 0 : i32
    %c0_i32_0 = arith.constant 0 : i32
    %c0_i32_1 = arith.constant 0 : i32
    %c0_i32_2 = arith.constant 0 : i32
    return %arg0, %c0_i32, %c0_i32_0, %c0_i32_1 : i32, i32, i32, i32
  }
  func.func @transform_4(%arg0: i32) -> (i32, i32, i32, i32) {
    %c0_i32 = arith.constant 0 : i32
    %c0_i32_0 = arith.constant 0 : i32
    %c0_i32_1 = arith.constant 0 : i32
    %c0_i32_2 = arith.constant 0 : i32
    return %arg0, %c0_i32, %c0_i32_0, %c0_i32_1 : i32, i32, i32, i32
  }
}

</mosaic_0001>

<bundles_post_ra>
// kernel: basic_block_forward.5
= control target key start
LH: loop header
LB: loop body
LE: loop exit
PB: predicated region body
PF: predicated region fallthrough
CT: control target
= control target key end

     0   :  { %s694_s15 = smov 0   ;;  %s914_s0 = inlined_call_operand.vmem [shape: bf16[2,16,16,4], index: 0, kind: input, shape index: {}]   ;;  %s915_s1 = inlined_call_operand.vmem [shape: f32[1,4], index: 1, kind: input, shape index: {}]   ;;  %s916_s2 = inlined_call_operand.vmem [shape: f32[1,4], index: 2, kind: input, shape index: {}]   ;;  %s917_s3 = inlined_call_operand.vmem [shape: f32[2,16,16,4], index: 3, kind: input, shape index: {}]   ;;  %s918_s4 = inlined_call_operand.vmem [shape: f32[2,16,16,4], index: 4, kind: output, shape index: {}]  }
   0x1 LB: > { %s556_s16 = sadd.s32 4294967295, %s667_s15   ;;  %p560_p0 = scmp.ge.s32.totalorder %s667_s15, 1  ;;  %s667_s15 = sphi %s694_s15, %s14_s15  }
   0x2   : > { %p172_p1 = scmp.lt.s32.totalorder %s667_s15, 3 }
   0x4   : > { %p173_p2 = pnand %p560_p0, %p172_p1 }
   0x5   : > { %p203_p3 = scmp.lt.s32.totalorder (!%p173_p2), %s556_s16, 1  ;;  %v715_v1 = vld [vmem:[%s915_s1] ss:$0 sm:$0xff] (!%p173_p2)  ;;  %vm456_vm0 = vcmask (!%p173_p2), 31744  }
   0x6   : > { %176 = sbr.rel (%p173_p2) target bundleno = 60 (0x3c), region = 36  ;;  %v728_v5 = vld [vmem:[%s916_s2] ss:$0 sm:$0xff] (!%p173_p2) }
   0xd   : > { %s920_s16 = smov (!%p203_p3, %s556_s16), 1 }
   0xe   : > { %s571_s17 = sshll.u32 %s920_s16, 7  ;;  %s572_s18 = sshll.u32 %s920_s16, 8 }
   0xf   : > { %s709_s21 = scalar_lea.vmem %s914_s0, %s571_s17  ;;  %s722_s26 = scalar_lea.vmem %s917_s3, %s572_s18 }
  0x10   : > { %v575_v0 = vld [vmem:[%s709_s21] sm:$0xff]   ;;  %v638_v4 = vld [vmem:[%s709_s21 + $0x8] sm:$0xff]   ;;  %v639_v8 = vld [vmem:[%s709_s21 + $0x10] sm:$0xff]   ;;  %s759_s5 = scalar_lea.vmem %s918_s4, %s572_s18 }
  0x11   : > { %v576_v2 = vunpack.c.l.bf16 %v575_v0  ;;  %v577_v3 = vunpack.c.h.bf16 %v575_v0  ;;  %v580_v6 = vunpack.c.l.bf16 %v638_v4  ;;  %v581_v7 = vunpack.c.h.bf16 %v638_v4  ;;  %v640_v13 = vld [vmem:[%s709_s21 + $0x18] sm:$0xff]   ;;  %v360_v14 = vld [vmem:[%s722_s26] sm:$0xff]  ;;  %v361_v15 = vld [vmem:[%s722_s26 + $0x8] sm:$0xff] }
  0x12   : > { %v584_v11 = vunpack.c.l.bf16 %v639_v8  ;;  %v585_v12 = vunpack.c.h.bf16 %v639_v8  ;;  %v588_v18 = vunpack.c.l.bf16 %v640_v13  ;;  %v589_v19 = vunpack.c.h.bf16 %v640_v13  ;;  %v362_v22 = vld [vmem:[%s722_s26 + $0x10] sm:$0xff]  ;;  %v363_v23 = vld [vmem:[%s722_s26 + $0x18] sm:$0xff]  ;;  %v364_v28 = vld [vmem:[%s722_s26 + $0x20] sm:$0xff] }
  0x13   : > { %v289_v9 = vmul.f32 %v576_v2, %v715_v1  ;;  %v290_v10 = vmul.f32 %v577_v3, %v715_v1  ;;  %v291_v16 = vmul.f32 %v580_v6, %v715_v1  ;;  %v292_v17 = vmul.f32 %v581_v7, %v715_v1  ;;  %v365_v29 = vld [vmem:[%s722_s26 + $0x28] sm:$0xff]  ;;  %v366_v36 = vld [vmem:[%s722_s26 + $0x30] sm:$0xff]  ;;  %v367_v37 = vld [vmem:[%s722_s26 + $0x38] sm:$0xff] }
  0x14   : > { %v293_v24 = vmul.f32 %v584_v11, %v715_v1  ;;  %v294_v25 = vmul.f32 %v585_v12, %v715_v1  ;;  %v295_v30 = vmul.f32 %v588_v18, %v715_v1  ;;  %v296_v31 = vmul.f32 %v589_v19, %v715_v1  ;;  %v641_v42 = vld [vmem:[%s709_s21 + $0x20] sm:$0xff]   ;;  %v642_v47 = vld [vmem:[%s709_s21 + $0x28] sm:$0xff]   ;;  %v643_v52 = vld [vmem:[%s709_s21 + $0x30] sm:$0xff]  }
  0x15   : > { %v328_v20 = vadd.f32 %v728_v5, %v289_v9  ;;  %v329_v21 = vadd.f32 %v728_v5, %v290_v10  ;;  %v330_v26 = vadd.f32 %v728_v5, %v291_v16  ;;  %v331_v27 = vadd.f32 %v728_v5, %v292_v17  ;;  %v644_v57 = vld [vmem:[%s709_s21 + $0x38] sm:$0xff]   ;;  %v368_v3 = vld [vmem:[%s722_s26 + $0x40] sm:$0xff]  ;;  %v369_v4 = vld [vmem:[%s722_s26 + $0x48] sm:$0xff] }
  0x16   : > { %v332_v34 = vadd.f32 %v728_v5, %v293_v24  ;;  %v333_v35 = vadd.f32 %v728_v5, %v294_v25  ;;  %v334_v40 = vadd.f32 %v728_v5, %v295_v30  ;;  %v335_v41 = vadd.f32 %v728_v5, %v296_v31  ;;  %v370_v12 = vld [vmem:[%s722_s26 + $0x50] sm:$0xff]  ;;  %v371_v13 = vld [vmem:[%s722_s26 + $0x58] sm:$0xff]  ;;  %v372_v18 = vld [vmem:[%s722_s26 + $0x60] sm:$0xff] }
  0x17   : > { %v392_v32 = vadd.f32 %v360_v14, %v328_v20  ;;  %v393_v33 = vadd.f32 %v361_v15, %v329_v21  ;;  %v394_v38 = vadd.f32 %v362_v22, %v330_v26  ;;  %v395_v39 = vadd.f32 %v363_v23, %v331_v27  ;;  %v373_v19 = vld [vmem:[%s722_s26 + $0x68] sm:$0xff]  ;;  %v374_v26 = vld [vmem:[%s722_s26 + $0x70] sm:$0xff]  ;;  %v375_v27 = vld [vmem:[%s722_s26 + $0x78] sm:$0xff] }
  0x18   : > { %v396_v45 = vadd.f32 %v364_v28, %v332_v34  ;;  %v397_v46 = vadd.f32 %v365_v29, %v333_v35  ;;  %v398_v50 = vadd.f32 %v366_v36, %v334_v40  ;;  %v399_v51 = vadd.f32 %v367_v37, %v335_v41  ;;  %v646_v37 = vld [vmem:[%s709_s21 + $0x48] sm:$0xff]  }
  0x19   : > { %v424_v43 = vmax.f32 %v392_v32, 0.0  ;;  %v425_v44 = vmax.f32 %v393_v33, 0.0  ;;  %v426_v48 = vmax.f32 %v394_v38, 0.0  ;;  %v427_v49 = vmax.f32 %v395_v39, 0.0  ;;  %v645_v32 = vld [vmem:[%s709_s21 + $0x40] sm:$0xff]  }
  0x1a   : > { %v428_v53 = vmax.f32 %v396_v45, 0.0  ;;  %v429_v54 = vmax.f32 %v397_v46, 0.0  ;;  %v592_v55 = vunpack.c.l.bf16 %v641_v42  ;;  %v593_v56 = vunpack.c.h.bf16 %v641_v42  ;;  %v647_v42 = vld [vmem:[%s709_s21 + $0x50] sm:$0xff]  }
  0x1b   : > { %457 = vst.msk [vmem:[%s759_s5] sm:$0xff] %vm456_vm0, %v424_v43  ;;  %458 = vst.msk [vmem:[%s759_s5 + $0x8] sm:$0xff] %vm456_vm0, %v425_v44  ;;  %v430_v58 = vmax.f32 %v398_v50, 0.0  ;;  %v431_v59 = vmax.f32 %v399_v51, 0.0  ;;  %v596_v60 = vunpack.c.l.bf16 %v642_v47  ;;  %v597_v61 = vunpack.c.h.bf16 %v642_v47  ;;  %v648_v47 = vld [vmem:[%s709_s21 + $0x58] sm:$0xff]  }
  0x1c   : > { %459 = vst.msk [vmem:[%s759_s5 + $0x10] sm:$0xff] %vm456_vm0, %v426_v48  ;;  %460 = vst.msk [vmem:[%s759_s5 + $0x18] sm:$0xff] %vm456_vm0, %v427_v49  ;;  %v297_v62 = vmul.f32 %v592_v55, %v715_v1  ;;  %v298_v63 = vmul.f32 %v593_v56, %v715_v1  ;;  %v600_v0 = vunpack.c.l.bf16 %v643_v52  ;;  %v601_v2 = vunpack.c.h.bf16 %v643_v52  ;;  %v376_v56 = vld [vmem:[%s722_s26 + $0x80] sm:$0xff] }
  0x1d   : > { %461 = vst.msk [vmem:[%s759_s5 + $0x20] sm:$0xff] %vm456_vm0, %v428_v53  ;;  %462 = vst.msk [vmem:[%s759_s5 + $0x28] sm:$0xff] %vm456_vm0, %v429_v54  ;;  %v299_v6 = vmul.f32 %v596_v60, %v715_v1  ;;  %v300_v7 = vmul.f32 %v597_v61, %v715_v1  ;;  %v604_v8 = vunpack.c.l.bf16 %v644_v57  ;;  %v605_v9 = vunpack.c.h.bf16 %v644_v57  ;;  %v377_v57 = vld [vmem:[%s722_s26 + $0x88] sm:$0xff] }
  0x1e   : > { %463 = vst.msk [vmem:[%s759_s5 + $0x30] sm:$0xff] %vm456_vm0, %v430_v58  ;;  %464 = vst.msk [vmem:[%s759_s5 + $0x38] sm:$0xff] %vm456_vm0, %v431_v59  ;;  %v336_v10 = vadd.f32 %v728_v5, %v297_v62  ;;  %v337_v11 = vadd.f32 %v728_v5, %v298_v63  ;;  %v301_v14 = vmul.f32 %v600_v0, %v715_v1  ;;  %v608_v45 = vunpack.c.l.bf16 %v645_v32  ;;  %v378_v0 = vld [vmem:[%s722_s26 + $0x90] sm:$0xff] }
  0x1f   : > { %v302_v15 = vmul.f32 %v601_v2, %v715_v1  ;;  %v338_v16 = vadd.f32 %v728_v5, %v299_v6  ;;  %v339_v17 = vadd.f32 %v728_v5, %v300_v7  ;;  %v303_v20 = vmul.f32 %v604_v8, %v715_v1  ;;  %v379_v2 = vld [vmem:[%s722_s26 + $0x98] sm:$0xff]  ;;  %v380_v8 = vld [vmem:[%s722_s26 + $0xa0] sm:$0xff] }
  0x20   : > { %v304_v21 = vmul.f32 %v605_v9, %v715_v1  ;;  %v400_v22 = vadd.f32 %v368_v3, %v336_v10  ;;  %v401_v23 = vadd.f32 %v369_v4, %v337_v11  ;;  %v340_v24 = vadd.f32 %v728_v5, %v301_v14  ;;  %v381_v9 = vld [vmem:[%s722_s26 + $0xa8] sm:$0xff] }
  0x21   : > { %v341_v25 = vadd.f32 %v728_v5, %v302_v15  ;;  %v402_v28 = vadd.f32 %v370_v12, %v338_v16  ;;  %v403_v29 = vadd.f32 %v371_v13, %v339_v17  ;;  %v342_v30 = vadd.f32 %v728_v5, %v303_v20  ;;  %v382_v16 = vld [vmem:[%s722_s26 + $0xb0] sm:$0xff]  ;;  %v383_v17 = vld [vmem:[%s722_s26 + $0xb8] sm:$0xff] }
  0x22   : > { %v343_v31 = vadd.f32 %v728_v5, %v304_v21  ;;  %v432_v33 = vmax.f32 %v400_v22, 0.0  ;;  %v433_v34 = vmax.f32 %v401_v23, 0.0  ;;  %v404_v35 = vadd.f32 %v372_v18, %v340_v24  ;;  %v649_v22 = vld [vmem:[%s709_s21 + $0x60] sm:$0xff]  }
  0x23   : > { %v405_v36 = vadd.f32 %v373_v19, %v341_v25  ;;  %v434_v38 = vmax.f32 %v402_v28, 0.0  ;;  %v435_v39 = vmax.f32 %v403_v29, 0.0  ;;  %v406_v40 = vadd.f32 %v374_v26, %v342_v30 }
  0x24   : > { %v407_v41 = vadd.f32 %v375_v27, %v343_v31  ;;  %465 = vst.msk [vmem:[%s759_s5 + $0x40] sm:$0xff] %vm456_vm0, %v432_v33  ;;  %466 = vst.msk [vmem:[%s759_s5 + $0x48] sm:$0xff] %vm456_vm0, %v433_v34  ;;  %v436_v43 = vmax.f32 %v404_v35, 0.0  ;;  %v609_v46 = vunpack.c.h.bf16 %v645_v32  ;;  %v612_v50 = vunpack.c.l.bf16 %v646_v37  ;;  %v650_v27 = vld [vmem:[%s709_s21 + $0x68] sm:$0xff]   ;;  %v651_v32 = vld [vmem:[%s709_s21 + $0x70] sm:$0xff]  }
  0x25   : > { %v437_v44 = vmax.f32 %v405_v36, 0.0  ;;  %467 = vst.msk [vmem:[%s759_s5 + $0x50] sm:$0xff] %vm456_vm0, %v434_v38  ;;  %468 = vst.msk [vmem:[%s759_s5 + $0x58] sm:$0xff] %vm456_vm0, %v435_v39  ;;  %v438_v48 = vmax.f32 %v406_v40, 0.0  ;;  %v613_v51 = vunpack.c.h.bf16 %v646_v37  ;;  %v305_v52 = vmul.f32 %v608_v45, %v715_v1  ;;  %v652_v37 = vld [vmem:[%s709_s21 + $0x78] sm:$0xff]  }
  0x26   : > { %v439_v49 = vmax.f32 %v407_v41, 0.0  ;;  %469 = vst.msk [vmem:[%s759_s5 + $0x60] sm:$0xff] %vm456_vm0, %v436_v43  ;;  %v306_v53 = vmul.f32 %v609_v46, %v715_v1  ;;  %v616_v54 = vunpack.c.l.bf16 %v647_v42  ;;  %v617_v55 = vunpack.c.h.bf16 %v647_v42  ;;  %v384_v46 = vld [vmem:[%s722_s26 + $0xc0] sm:$0xff] }
  0x27   : > { %470 = vst.msk [vmem:[%s759_s5 + $0x68] sm:$0xff] %vm456_vm0, %v437_v44  ;;  %471 = vst.msk [vmem:[%s759_s5 + $0x70] sm:$0xff] %vm456_vm0, %v438_v48  ;;  %v307_v58 = vmul.f32 %v612_v50, %v715_v1  ;;  %v308_v59 = vmul.f32 %v613_v51, %v715_v1  ;;  %v620_v60 = vunpack.c.l.bf16 %v648_v47  ;;  %v621_v61 = vunpack.c.h.bf16 %v648_v47  ;;  %v385_v47 = vld [vmem:[%s722_s26 + $0xc8] sm:$0xff] }
  0x28   : > { %472 = vst.msk [vmem:[%s759_s5 + $0x78] sm:$0xff] %vm456_vm0, %v439_v49  ;;  %v344_v62 = vadd.f32 %v728_v5, %v305_v52  ;;  %v345_v63 = vadd.f32 %v728_v5, %v306_v53  ;;  %v309_v3 = vmul.f32 %v616_v54, %v715_v1  ;;  %v310_v4 = vmul.f32 %v617_v55, %v715_v1  ;;  %v386_v54 = vld [vmem:[%s722_s26 + $0xd0] sm:$0xff]  ;;  %v387_v55 = vld [vmem:[%s722_s26 + $0xd8] sm:$0xff] }
  0x29   : > { %v346_v6 = vadd.f32 %v728_v5, %v307_v58  ;;  %v347_v7 = vadd.f32 %v728_v5, %v308_v59  ;;  %v311_v10 = vmul.f32 %v620_v60, %v715_v1  ;;  %v312_v11 = vmul.f32 %v621_v61, %v715_v1  ;;  %v388_v60 = vld [vmem:[%s722_s26 + $0xe0] sm:$0xff]  ;;  %v389_v61 = vld [vmem:[%s722_s26 + $0xe8] sm:$0xff] }
  0x2a   : > { %v408_v12 = vadd.f32 %v376_v56, %v344_v62  ;;  %v409_v13 = vadd.f32 %v377_v57, %v345_v63  ;;  %v348_v14 = vadd.f32 %v728_v5, %v309_v3  ;;  %v349_v15 = vadd.f32 %v728_v5, %v310_v4 }
  0x2b   : > { %v410_v18 = vadd.f32 %v378_v0, %v346_v6  ;;  %v411_v19 = vadd.f32 %v379_v2, %v347_v7  ;;  %v350_v20 = vadd.f32 %v728_v5, %v311_v10  ;;  %v351_v21 = vadd.f32 %v728_v5, %v312_v11  ;;  %v390_v6 = vld [vmem:[%s722_s26 + $0xf0] sm:$0xff]  ;;  %v391_v7 = vld [vmem:[%s722_s26 + $0xf8] sm:$0xff] }
  0x2c   : > { %v440_v23 = vmax.f32 %v408_v12, 0.0  ;;  %v441_v24 = vmax.f32 %v409_v13, 0.0  ;;  %v412_v25 = vadd.f32 %v380_v8, %v348_v14  ;;  %v413_v26 = vadd.f32 %v381_v9, %v349_v15 }
  0x2d   : > { %v442_v28 = vmax.f32 %v410_v18, 0.0  ;;  %v443_v29 = vmax.f32 %v411_v19, 0.0  ;;  %v414_v30 = vadd.f32 %v382_v16, %v350_v20  ;;  %v415_v31 = vadd.f32 %v383_v17, %v351_v21 }
  0x2e   : > { %473 = vst.msk [vmem:[%s759_s5 + $0x80] sm:$0xff] %vm456_vm0, %v440_v23  ;;  %474 = vst.msk [vmem:[%s759_s5 + $0x88] sm:$0xff] %vm456_vm0, %v441_v24  ;;  %v444_v33 = vmax.f32 %v412_v25, 0.0  ;;  %v445_v34 = vmax.f32 %v413_v26, 0.0  ;;  %v624_v35 = vunpack.c.l.bf16 %v649_v22  ;;  %v625_v36 = vunpack.c.h.bf16 %v649_v22 }
  0x2f   : > { %475 = vst.msk [vmem:[%s759_s5 + $0x90] sm:$0xff] %vm456_vm0, %v442_v28  ;;  %476 = vst.msk [vmem:[%s759_s5 + $0x98] sm:$0xff] %vm456_vm0, %v443_v29  ;;  %v446_v38 = vmax.f32 %v414_v30, 0.0  ;;  %v447_v39 = vmax.f32 %v415_v31, 0.0  ;;  %v628_v40 = vunpack.c.l.bf16 %v650_v27  ;;  %v629_v41 = vunpack.c.h.bf16 %v650_v27 }
  0x30   : > { %477 = vst.msk [vmem:[%s759_s5 + $0xa0] sm:$0xff] %vm456_vm0, %v444_v33  ;;  %478 = vst.msk [vmem:[%s759_s5 + $0xa8] sm:$0xff] %vm456_vm0, %v445_v34  ;;  %v313_v42 = vmul.f32 %v624_v35, %v715_v1  ;;  %v314_v43 = vmul.f32 %v625_v36, %v715_v1  ;;  %v632_v44 = vunpack.c.l.bf16 %v651_v32  ;;  %v633_v45 = vunpack.c.h.bf16 %v651_v32 }
  0x31   : > { %479 = vst.msk [vmem:[%s759_s5 + $0xb0] sm:$0xff] %vm456_vm0, %v446_v38  ;;  %480 = vst.msk [vmem:[%s759_s5 + $0xb8] sm:$0xff] %vm456_vm0, %v447_v39  ;;  %v315_v48 = vmul.f32 %v628_v40, %v715_v1  ;;  %v316_v49 = vmul.f32 %v629_v41, %v715_v1  ;;  %v636_v50 = vunpack.c.l.bf16 %v652_v37  ;;  %v637_v51 = vunpack.c.h.bf16 %v652_v37 }
  0x32   : > { %v352_v52 = vadd.f32 %v728_v5, %v313_v42  ;;  %v353_v53 = vadd.f32 %v728_v5, %v314_v43  ;;  %v317_v56 = vmul.f32 %v632_v44, %v715_v1  ;;  %v318_v57 = vmul.f32 %v633_v45, %v715_v1 }
  0x33   : > { %v354_v58 = vadd.f32 %v728_v5, %v315_v48  ;;  %v355_v59 = vadd.f32 %v728_v5, %v316_v49  ;;  %v319_v62 = vmul.f32 %v636_v50, %v715_v1  ;;  %v320_v63 = vmul.f32 %v637_v51, %v715_v1 }
  0x34   : > { %v416_v0 = vadd.f32 %v384_v46, %v352_v52  ;;  %v417_v2 = vadd.f32 %v385_v47, %v353_v53  ;;  %v356_v3 = vadd.f32 %v728_v5, %v317_v56  ;;  %v357_v4 = vadd.f32 %v728_v5, %v318_v57 }
  0x35   : > { %v418_v8 = vadd.f32 %v386_v54, %v354_v58  ;;  %v419_v9 = vadd.f32 %v387_v55, %v355_v59  ;;  %v358_v10 = vadd.f32 %v728_v5, %v319_v62  ;;  %v359_v11 = vadd.f32 %v728_v5, %v320_v63 }
  0x36   : > { %v448_v12 = vmax.f32 %v416_v0, 0.0  ;;  %v449_v1 = vmax.f32 %v417_v2, 0.0  ;;  %v420_v13 = vadd.f32 %v388_v60, %v356_v3  ;;  %v421_v14 = vadd.f32 %v389_v61, %v357_v4 }
  0x37   : > { %v450_v15 = vmax.f32 %v418_v8, 0.0  ;;  %v451_v16 = vmax.f32 %v419_v9, 0.0  ;;  %v422_v17 = vadd.f32 %v390_v6, %v358_v10  ;;  %v423_v18 = vadd.f32 %v391_v7, %v359_v11 }
  0x38   : > { %481 = vst.msk [vmem:[%s759_s5 + $0xc0] sm:$0xff] %vm456_vm0, %v448_v12  ;;  %482 = vst.msk [vmem:[%s759_s5 + $0xc8] sm:$0xff] %vm456_vm0, %v449_v1  ;;  %v452_v19 = vmax.f32 %v420_v13, 0.0  ;;  %v453_v20 = vmax.f32 %v421_v14, 0.0 }
  0x39   : > { %483 = vst.msk [vmem:[%s759_s5 + $0xd0] sm:$0xff] %vm456_vm0, %v450_v15  ;;  %484 = vst.msk [vmem:[%s759_s5 + $0xd8] sm:$0xff] %vm456_vm0, %v451_v16  ;;  %v454_v5 = vmax.f32 %v422_v17, 0.0  ;;  %v455_v21 = vmax.f32 %v423_v18, 0.0 }
  0x3a   : > { %485 = vst.msk [vmem:[%s759_s5 + $0xe0] sm:$0xff] %vm456_vm0, %v452_v19  ;;  %486 = vst.msk [vmem:[%s759_s5 + $0xe8] sm:$0xff] %vm456_vm0, %v453_v20 }
  0x3b   : > { %487 = vst.msk [vmem:[%s759_s5 + $0xf0] sm:$0xff] %vm456_vm0, %v454_v5  ;;  %488 = vst.msk [vmem:[%s759_s5 + $0xf8] sm:$0xff] %vm456_vm0, %v455_v21 }
  0x3c PF: > { %s14_s15 = sadd.s32 1, %s667_s15  }
  0x3d   : > { %p11_p4 = scmp.ge.s32.totalorder %s14_s15, 4  }
  0x3f   :  { %13 = sbr.rel (!%p11_p4) target bundleno = 1 (0x1), region = 69 }

// kernel: basic_block_forward.4
= control target key start
LH: loop header
LB: loop body
LE: loop exit
PB: predicated region body
PF: predicated region fallthrough
CT: control target
= control target key end

     0   :  { %s7241_s21 = smov 0   ;;  %s9231_s0 = inlined_call_operand.vmem [shape: bf16[2,16,16,4], index: 0, kind: input, shape index: {}]   ;;  %s9232_s1 = inlined_call_operand.vmem [shape: bf16[1152,128], index: 1, kind: input, shape index: {}]   ;;  %s9233_s2 = inlined_call_operand.vmem [shape: f32[1,4], index: 2, kind: input, shape index: {}]   ;;  %s9234_s3 = inlined_call_operand.vmem [shape: f32[1,4], index: 3, kind: input, shape index: {}]   ;;  %s9235_s4 = inlined_call_operand.vmem [shape: bf16[2,16,16,4], index: 4, kind: output, shape index: {0}]   ;;  %s9236_s5 = inlined_call_operand.vmem [shape: f32[2,1,128], index: 5, kind: output, shape index: {1}]   ;;  %s9237_s6 = inlined_call_operand.vmem [shape: f32[2,1,128], index: 6, kind: output, shape index: {2}]  }
   0x1 LB: > { %s6042_s22 = sadd.s32 4294967295, %s7203_s21   ;;  %p6046_p0 = scmp.ge.s32.totalorder %s7203_s21, 1  ;;  %s7203_s21 = sphi %s7241_s21, %s17_s21  }
   0x2   : > { %p217_p1 = scmp.lt.s32.totalorder %s7203_s21, 3 }
   0x4   : > { %p218_p2 = pnand %p6046_p0, %p217_p1 }
   0x6   : > { %221 = sbr.rel (%p218_p2) target bundleno = 790 (0x316), region = 36 }
   0xd   : > { %v7252_v0 = vld [vmem:[%s9232_s1 + $0x40] sm:$0xff]   ;;  %v7205_v2 = vmov 0   ;;  %v7075_v3 = vld [vmem:[%s9232_s1 + $0x48] sm:$0xff]   ;;  %p253_p3 = scmp.lt.s32.totalorder %s6042_s22, 1  ;;  %v7077_v5 = vld [vmem:[%s9232_s1 + $0x50] sm:$0xff]   ;;  %vm663_vm3 = vcmask 27648  }
   0xe   : > { %v7257_v1 = vld [vmem:[%s9232_s1] sm:$0xff]   ;;  %272 = vst [vmem:[#allocation2 + $0x8] sm:$0xf] %v7205_v2  ;;  %273 = vst [vmem:[#allocation2 + $0xc] sm:$0xf] %v7205_v2  ;;  %6528 = vmatprep.subr.bf16.mxu0 %v7252_v0  ;;  %7048 = vmatprep.subr.bf16.mxu1 %v7252_v0  ;;  %v7076_v4 = vld [vmem:[%s9232_s1 + $0x8] sm:$0xff]  }
   0xf   : > { %271 = vst [vmem:[#allocation2 + $0x4] sm:$0xf] %v7205_v2  ;;  %274 = vst [vmem:[#allocation2 + $0x10] sm:$0xf] %v7205_v2  ;;  %6529 = vmatpush3.bf16.msra.mxu0 %v7257_v1  ;;  %7056 = vmatpush3.bf16.msra.mxu1 %v7257_v1  ;;  %v7078_v6 = vld [vmem:[%s9232_s1 + $0x10] sm:$0xff]   ;;  %s9373_s22 = smov (!%p253_p3, %s6042_s22), 1 }
  0x10   : > { %276 = vst [vmem:[#allocation2 + $0x18] sm:$0xf] %v7205_v2  ;;  %277 = vst [vmem:[#allocation2 + $0x1c] sm:$0xf] %v7205_v2  ;;  %6530 = vmatprep.subr.bf16.mxu0 %v7075_v3  ;;  %7049 = vmatprep.subr.bf16.mxu1 %v7075_v3  ;;  %v7079_v7 = vld [vmem:[%s9232_s1 + $0x58] sm:$0xff]   ;;  %s6383_s15 = sshll.u32 %s9373_s22, 7  ;;  %s265_s20 = scalar_lea.vmem %s9236_s5, %s9373_s22 }
  0x11   : > { %278 = vst [vmem:[#allocation2 + $0x20] sm:$0xf] %v7205_v2  ;;  %279 = vst [vmem:[#allocation2 + $0x24] sm:$0xf] %v7205_v2  ;;  %v7080_v8 = vld [vmem:[%s9232_s1 + $0x18] sm:$0xff]   ;;  %v7081_v9 = vld [vmem:[%s9232_s1 + $0x60] sm:$0xff]   ;;  %s7371_s24 = scalar_lea.vmem %s9231_s0, %s6383_s15  ;;  %s8867_s19 = scalar_lea.vmem %s9235_s4, %s6383_s15 }
  0x12   : > { %281 = vst [vmem:[#allocation2 + $0x2c] sm:$0xf] %v7205_v2  ;;  %282 = vst [vmem:[#allocation2 + $0x30] sm:$0xf] %v7205_v2  ;;  %v7082_v10 = vld [vmem:[%s9232_s1 + $0x20] sm:$0xff]   ;;  %v7083_v11 = vld [vmem:[%s9232_s1 + $0x68] sm:$0xff]   ;;  %s268_s26 = scalar_lea.vmem %s9237_s6, %s9373_s22 }
  0x13   : > { %283 = vst [vmem:[#allocation2 + $0x34] sm:$0xf] %v7205_v2  ;;  %284 = vst [vmem:[#allocation2 + $0x38] sm:$0xf] %v7205_v2  ;;  %6531 = vmatpush3.bf16.msra.mxu0 %v7076_v4  ;;  %7057 = vmatpush3.bf16.msra.mxu1 %v7076_v4  ;;  %v7084_v13 = vld [vmem:[%s9232_s1 + $0x28] sm:$0xff]   ;;  %v6523_v14 = vld [vmem:[%s7371_s24 + $0x58] sm:$0xff]  }
  0x14   : > { %286 = vst [vmem:[#allocation2 + $0x40] sm:$0xf] %v7205_v2  ;;  %287 = vst [vmem:[#allocation2 + $0x44] sm:$0xf] %v7205_v2  ;;  %6532 = vmatprep.subr.bf16.mxu0 %v7077_v5  ;;  %7050 = vmatprep.subr.bf16.mxu1 %v7077_v5  ;;  %v7383_v15 = vld [vmem:[%s9233_s2] ss:$0 sm:$0xff]  ;;  %v6495_v16 = vunpack.c.l.bf16 %v6523_v14  ;;  %v6496_v17 = vunpack.c.h.bf16 %v6523_v14 }
  0x15   : > { %288 = vst [vmem:[#allocation2 + $0x48] sm:$0xf] %v7205_v2  ;;  %289 = vst [vmem:[#allocation2 + $0x4c] sm:$0xf] %v7205_v2  ;;  %v7089_v12 = vld [vmem:[#allocation2 + $0x8] sm:$0xff]   ;;  %v7085_v24 = vld [vmem:[%s9232_s1 + $0x70] sm:$0xff]  }
  0x16   : > { %291 = vst [vmem:[#allocation2 + $0x54] sm:$0xf] %v7205_v2  ;;  %292 = vst [vmem:[#allocation2 + $0x58] sm:$0xf] %v7205_v2  ;;  %4863 = vmatprep.mubr.bf16.mxu0 %v7089_v12  ;;  %v696_v18 = vld [vmem:[#allocation2 + $0x4] sm:$0x8]  ;;  %v453_v25 = vmul.f32 %v6495_v16, %v7383_v15  ;;  %v454_v26 = vmul.f32 %v6496_v17, %v7383_v15 }
  0x17   : > { %293 = vst [vmem:[#allocation2 + $0x5c] sm:$0xf] %v7205_v2  ;;  %294 = vst [vmem:[#allocation2 + $0x60] sm:$0xf] %v7205_v2  ;;  %6533 = vmatpush3.bf16.msra.mxu0 %v7078_v6  ;;  %7058 = vmatpush3.bf16.msra.mxu1 %v7078_v6  ;;  %v697_v19 = vld [vmem:[#allocation2 + $0x8] sm:$0xf] }
  0x18   : > { %296 = vst [vmem:[#allocation2 + $0x68] sm:$0xf] %v7205_v2  ;;  %297 = vst [vmem:[#allocation2 + $0x6c] sm:$0xf] %v7205_v2  ;;  %6534 = vmatprep.subr.bf16.mxu0 %v7079_v7  ;;  %7051 = vmatprep.subr.bf16.mxu1 %v7079_v7  ;;  %v698_v20 = vld [vmem:[#allocation2 + $0xc] sm:$0xf] }
  0x19   : > { %298 = vst [vmem:[#allocation2 + $0x70] sm:$0xf] %v7205_v2  ;;  %299 = vst [vmem:[#allocation2 + $0x74] sm:$0xf] %v7205_v2  ;;  %v7388_v21 = vld [vmem:[%s9234_s3] ss:$0 sm:$0xff] }
  0x1a   : > { %301 = vst [vmem:[#allocation2 + $0x7c] sm:$0xf] %v7205_v2  ;;  %302 = vst [vmem:[#allocation2 + $0x80] sm:$0xf] %v7205_v2  ;;  %vm744_vm0 = vsmask.f32 256  ;;  %v492_v33 = vadd.f32 %v7388_v21, %v453_v25  ;;  %v493_v34 = vadd.f32 %v7388_v21, %v454_v26 }
  0x1b   : > { %303 = vst [vmem:[#allocation2 + $0x84] sm:$0xf] %v7205_v2  ;;  %304 = vst [vmem:[#allocation2 + $0x88] sm:$0xf] %v7205_v2  ;;  %6535 = vmatpush3.bf16.msra.mxu0 %v7080_v8  ;;  %7059 = vmatpush3.bf16.msra.mxu1 %v7080_v8  ;;  %v748_v22 = vshrl.u32 %v696_v18, 16  ;;  %v753_v23 = vshrl.u32 %v697_v19, 16 }
  0x1c   : > { %306 = vst [vmem:[#allocation2 + $0x90] sm:$0xf] %v7205_v2  ;;  %307 = vst [vmem:[#allocation2 + $0x94] sm:$0xf] %v7205_v2  ;;  %6536 = vmatprep.subr.bf16.mxu0 %v7081_v9  ;;  %7052 = vmatprep.subr.bf16.mxu1 %v7081_v9  ;;  %v756_v27 = vshll.u32 %v697_v19, 16  ;;  %v762_v28 = vshrl.u32 %v698_v20, 16 }
  0x1d   : > { %308 = vst [vmem:[#allocation2 + $0x98] sm:$0xf] %v7205_v2  ;;  %309 = vst [vmem:[#allocation2 + $0x9c] sm:$0xf] %v7205_v2  ;;  %v7086_v29 = vld [vmem:[%s9232_s1 + $0x30] sm:$0xff]   ;;  %v755_v30 = vrot.slane %v753_v23, 7 }
  0x1e   : > { %311 = vst [vmem:[#allocation2 + $0xa4] sm:$0xf] %v7205_v2  ;;  %312 = vst [vmem:[#allocation2 + $0xa8] sm:$0xf] %v7205_v2  ;;  %vm745_vm1 = vsmask.f32 4368 }
  0x1f   : > { %313 = vst [vmem:[#allocation2 + $0xac] sm:$0xf] %v7205_v2  ;;  %314 = vst [vmem:[#allocation2 + $0xb0] sm:$0xf] %v7205_v2  ;;  %6537 = vmatpush3.bf16.msra.mxu0 %v7082_v10  ;;  %7060 = vmatpush3.bf16.msra.mxu1 %v7082_v10  ;;  %v765_v31 = vshll.u32 %v698_v20, 16  ;;  %v7087_v32 = vld [vmem:[%s9232_s1 + $0x78] sm:$0xff]   ;;  %v758_v37 = vor.u32 %v756_v27, %v755_v30 }
  0x20   : > { %316 = vst [vmem:[#allocation2 + $0xb8] sm:$0xf] %v7205_v2  ;;  %317 = vst [vmem:[#allocation2 + $0xbc] sm:$0xf] %v7205_v2  ;;  %6538 = vmatprep.subr.bf16.mxu0 %v7083_v11  ;;  %7053 = vmatprep.subr.bf16.mxu1 %v7083_v11  ;;  %v764_v35 = vrot.slane %v762_v28, 7  ;;  %v6085_v36 = vrot.slane %v748_v22, 11 }
  0x21   : > { %318 = vst [vmem:[#allocation2 + $0xc0] sm:$0xf] %v7205_v2  ;;  %319 = vst [vmem:[#allocation2 + $0xc4] sm:$0xf] %v7205_v2  ;;  %v760_v38 = vrot.slane %v755_v30, 4  ;;  %v524_v40 = vmax.f32 %v492_v33, 0.0 }
  0x22   : > { %321 = vst [vmem:[#allocation2 + $0xcc] sm:$0xf] %v7205_v2  ;;  %322 = vst [vmem:[#allocation2 + $0xd0] sm:$0xf] %v7205_v2  ;;  %v525_v41 = vmax.f32 %v493_v34, 0.0  ;;  %v767_v43 = vor.u32 %v765_v31, %v764_v35  ;;  %v7088_v44 = vld [vmem:[%s9232_s1 + $0x38] sm:$0xff]  }
  0x23   : > { %323 = vst [vmem:[#allocation2 + $0xd4] sm:$0xf] %v7205_v2  ;;  %324 = vst [vmem:[#allocation2 + $0xd8] sm:$0xf] %v7205_v2  ;;  %6539 = vmatpush3.bf16.msra.mxu0 %v7084_v13  ;;  %7061 = vmatpush3.bf16.msra.mxu1 %v7084_v13  ;;  %v6407_v45 = vpack.c.bf16 %v524_v40, %v524_v40  ;;  %v7091_v47 = vld [vmem:[%s9232_s1 + $0xc0] sm:$0xff]   ;;  %v7102_v10 = vld [vmem:[%s9232_s1 + $0x148] sm:$0xff]  }
  0x24   : > { %326 = vst [vmem:[#allocation2 + $0xe0] sm:$0xf] %v7205_v2  ;;  %327 = vst [vmem:[#allocation2 + $0xe4] sm:$0xf] %v7205_v2  ;;  %6540 = vmatprep.subr.bf16.mxu0 %v7085_v24  ;;  %7054 = vmatprep.subr.bf16.mxu1 %v7085_v24  ;;  %v6408_v46 = vpack.c.bf16 %v525_v41, %v525_v41  ;;  %v7092_v51 = vld [vmem:[%s9232_s1 + $0x140] sm:$0xff]   ;;  %v7104_v14 = vld [vmem:[%s9232_s1 + $0x108] sm:$0xff]  }
  0x25   : > { %328 = vst [vmem:[#allocation2 + $0xe8] sm:$0xf] %v7205_v2  ;;  %329 = vst [vmem:[#allocation2 + $0xec] sm:$0xf] %v7205_v2  ;;  %v6450_v52 = vld [vmem:[%s7371_s24] sm:$0xff]   ;;  %v6513_v24 = vld [vmem:[%s7371_s24 + $0x8] sm:$0xff]  }
  0x26   : > { %331 = vst [vmem:[#allocation2 + $0xf4] sm:$0xf] %v7205_v2  ;;  %332 = vst [vmem:[#allocation2 + $0xf8] sm:$0xf] %v7205_v2  ;;  %v6451_v53 = vunpack.c.l.bf16 %v6450_v52  ;;  %v6452_v54 = vunpack.c.h.bf16 %v6450_v52  ;;  %v6524_v55 = vld [vmem:[%s7371_s24 + $0x60] sm:$0xff]   ;;  %v6455_v31 = vunpack.c.l.bf16 %v6513_v24  ;;  %v6525_v33 = vld [vmem:[%s7371_s24 + $0x68] sm:$0xff]  }
  0x27   : > { %333 = vst [vmem:[#allocation2 + $0xfc] sm:$0xf] %v7205_v2  ;;  %334 = vst [vmem:[#allocation2 + $0x100] sm:$0xf] %v7205_v2  ;;  %6541 = vmatpush3.bf16.msra.mxu0 %v7086_v29  ;;  %7062 = vmatpush3.bf16.msra.mxu1 %v7086_v29  ;;  %v699_v56 = vld [vmem:[#allocation2 + $0x18] sm:$0x8]  ;;  %v6499_v58 = vunpack.c.l.bf16 %v6524_v55  ;;  %v6500_v59 = vunpack.c.h.bf16 %v6524_v55 }
  0x28   : > { %336 = vst [vmem:[#allocation2 + $0x108] sm:$0xf] %v7205_v2  ;;  %337 = vst [vmem:[#allocation2 + $0x10c] sm:$0xf] %v7205_v2  ;;  %6542 = vmatprep.subr.bf16.mxu0 %v7087_v32  ;;  %7055 = vmatprep.subr.bf16.mxu1 %v7087_v32  ;;  %v770_v60 = vshrl.u32 %v699_v56, 16  ;;  %v431_v62 = vmul.f32 %v6451_v53, %v7383_v15  ;;  %v432_v63 = vmul.f32 %v6452_v54, %v7383_v15 }
  0x29   : > { %338 = vst [vmem:[#allocation2 + $0x110] sm:$0xf] %v7205_v2  ;;  %339 = vst [vmem:[#allocation2 + $0x114] sm:$0xf] %v7205_v2  ;;  %v455_v3 = vmul.f32 %v6499_v58, %v7383_v15  ;;  %v456_v4 = vmul.f32 %v6500_v59, %v7383_v15  ;;  %v6456_v32 = vunpack.c.h.bf16 %v6513_v24  ;;  %v702_v34 = vld [vmem:[#allocation2 + $0x2c] sm:$0x8]  ;;  %v433_v40 = vmul.f32 %v6455_v31, %v7383_v15 }
  0x2a   : > { %341 = vst [vmem:[#allocation2 + $0x11c] sm:$0xf] %v7205_v2  ;;  %342 = vst [vmem:[#allocation2 + $0x120] sm:$0xf] %v7205_v2  ;;  %v470_v5 = vadd.f32 %v7388_v21, %v431_v62  ;;  %v471_v6 = vadd.f32 %v7388_v21, %v432_v63  ;;  %v7439_v9 = vrot.slane %v770_v60, 11  ;;  %v6514_v58 = vld [vmem:[%s7371_s24 + $0x10] sm:$0xff]  }
  0x2b   : > { %343 = vst [vmem:[#allocation2 + $0x124] sm:$0xf] %v7205_v2  ;;  %344 = vst [vmem:[#allocation2 + $0x128] sm:$0xf] %v7205_v2  ;;  %6543 = vmatpush3.bf16.msra.mxu0 %v7088_v44  ;;  %7063 = vmatpush3.bf16.msra.mxu1 %v7088_v44  ;;  %v494_v7 = vadd.f32 %v7388_v21, %v455_v3  ;;  %v495_v8 = vadd.f32 %v7388_v21, %v456_v4  ;;  %v7476_v59 = vld [vmem:[%s7371_s24 + $0x70] sm:$0xff]   ;;  %v6459_v4 = vunpack.c.l.bf16 %v6514_v58 }
  0x2c   : > { %346 = vst [vmem:[#allocation2 + $0x130] sm:$0xf] %v7205_v2  ;;  %347 = vst [vmem:[#allocation2 + $0x134] sm:$0xf] %v7205_v2  ;;  %6640 = vmatprep.subr.bf16.mxu1 %v7091_v47  ;;  %6752 = vmatprep.subr.bf16.mxu0 %v7092_v51  ;;  %v502_v11 = vmax.f32 %v470_v5, 0.0  ;;  %v503_v12 = vmax.f32 %v471_v6, 0.0  ;;  %v434_v41 = vmul.f32 %v6456_v32, %v7383_v15  ;;  %v6460_v5 = vunpack.c.h.bf16 %v6514_v58 }
  0x2d   : > { %348 = vst [vmem:[#allocation2 + $0x138] sm:$0xf] %v7205_v2  ;;  %349 = vst [vmem:[#allocation2 + $0x13c] sm:$0xf] %v7205_v2  ;;  %v732_v39 = vld [vmem:[#allocation2 + $0xf4] sm:$0x8]  ;;  %v6507_v6 = vunpack.c.l.bf16 %v7476_v59 }
  0x2e   : > { %351 = vst [vmem:[#allocation2 + $0x144] sm:$0xf] %v7205_v2  ;;  %352 = vst [vmem:[#allocation2 + $0x148] sm:$0xf] %v7205_v2  ;;  %v1012_v50 = vshrl.u32 %v732_v39, 16  ;;  %v526_v17 = vmax.f32 %v494_v7, 0.0  ;;  %v6385_v20 = vpack.c.bf16 %v502_v11, %v502_v11  ;;  %v6386_v22 = vpack.c.bf16 %v503_v12, %v503_v12 }
  0x2f   : > { %353 = vst [vmem:[#allocation2 + $0x14c] sm:$0xf] %v7205_v2  ;;  %354 = vst [vmem:[#allocation2 + $0x150] sm:$0xf] %v7205_v2  ;;  %v735_v57 = vld [vmem:[#allocation2 + $0x108] sm:$0x8]  ;;  %v6504_v39 = vunpack.c.h.bf16 %v6525_v33  ;;  %v473_v51 = vadd.f32 %v7388_v21, %v434_v41 }
  0x30   : > { %356 = vst [vmem:[#allocation2 + $0x158] sm:$0xf] %v7205_v2  ;;  %357 = vst [vmem:[#allocation2 + $0x15c] sm:$0xf] %v7205_v2  ;;  %v1034_v0 = vshrl.u32 %v735_v57, 16  ;;  %v7428_v1 = vrot.slane %v1012_v50, 11  ;;  %v6409_v29 = vpack.c.bf16 %v526_v17, %v526_v17  ;;  %v472_v50 = vadd.f32 %v7388_v21, %v433_v40 }
  0x31   : > { %358 = vst [vmem:[#allocation2 + $0x160] sm:$0xf] %v7205_v2  ;;  %359 = vst [vmem:[#allocation2 + $0x164] sm:$0xf] %v7205_v2  ;;  %v7094_v2 = vld [vmem:[%s9232_s1 + $0x100] sm:$0xff]   ;;  %v527_v23 = vmax.f32 %v495_v8, 0.0  ;;  %v458_v52 = vmul.f32 %v6504_v39, %v7383_v15 }
  0x32   : > { %vm7405_vm2 = vmor %vm744_vm0, %vm745_vm1  ;;  %686 = vst.msk [vmem:[#allocation2 + $0xf8] sm:$0xf] %vm663_vm3, %v6407_v45  ;;  %v7444_v13 = vrot.slane %v1034_v0, 11  ;;  %v738_v35 = vld [vmem:[#allocation2 + $0x11c] sm:$0x8]  ;;  %v504_v62 = vmax.f32 %v472_v50, 0.0  ;;  %v459_v50 = vmul.f32 %v6507_v6, %v7383_v15 }
  0x33   : > { %v759_v48 = vsel %vm7405_vm2, %v6085_v36, %v758_v37  ;;  %v768_v49 = vsel %vm7405_vm2, %v760_v38, %v767_v43  ;;  %687 = vst.msk [vmem:[#allocation2 + $0xfc] sm:$0xf] %vm663_vm3, %v6408_v46  ;;  %664 = vst.msk [vmem:[#allocation2 + $0x1c] sm:$0xf] %vm663_vm3, %v6385_v20  ;;  %v6410_v30 = vpack.c.bf16 %v527_v23, %v527_v23  ;;  %v6503_v38 = vunpack.c.l.bf16 %v6525_v33  ;;  %v7100_v33 = vld [vmem:[%s9232_s1 + $0x90] sm:$0xff]  }
  0x34   : > { %v6101_v61 = vcombine.low %v759_v48, %v768_v49  ;;  %665 = vst.msk [vmem:[#allocation2 + $0x20] sm:$0xf] %vm663_vm3, %v6386_v22  ;;  %688 = vst.msk [vmem:[#allocation2 + $0x10c] sm:$0xf] %vm663_vm3, %v6409_v29  ;;  %v792_v43 = vshrl.u32 %v702_v34, 16  ;;  %v1056_v44 = vshrl.u32 %v738_v35, 16  ;;  %v497_v0 = vadd.f32 %v7388_v21, %v458_v52 }
  0x35   : > { %689 = vst.msk [vmem:[#allocation2 + $0x110] sm:$0xf] %vm663_vm3, %v6410_v30  ;;  %v457_v48 = vmul.f32 %v6503_v38, %v7383_v15  ;;  %v7093_v49 = vld [vmem:[%s9232_s1 + $0x80] sm:$0xff]   ;;  %v505_v63 = vmax.f32 %v473_v51, 0.0  ;;  %v6387_v11 = vpack.c.bf16 %v504_v62, %v504_v62  ;;  %v435_v20 = vmul.f32 %v6459_v4, %v7383_v15  ;;  %v7116_v40 = vld [vmem:[%s9232_s1 + $0x110] sm:$0xff]  }
  0x36   : > { %4864 = vmatmul.mubr.bf16.vlgmr.msra.gmra.mrb[0].mxu0 %v6101_v61  ;;  %v7464_v53 = vrot.slane %v792_v43, 11  ;;  %v7472_v57 = vrot.slane %v1056_v44, 11  ;;  %v7095_v61 = vld [vmem:[%s9232_s1 + $0xc8] sm:$0xff]   ;;  %v436_v22 = vmul.f32 %v6460_v5, %v7383_v15  ;;  %v7504_v39 = vld [vmem:[#allocation2 + $0x40] sm:$0x8] }
  0x37   : > { %6753 = vmatpush3.bf16.msra.mxu0 %v7094_v2  ;;  %v496_v56 = vadd.f32 %v7388_v21, %v457_v48  ;;  %v6388_v12 = vpack.c.bf16 %v505_v63, %v505_v63  ;;  %666 = vst.msk [vmem:[#allocation2 + $0x30] sm:$0xf] %vm663_vm3, %v6387_v11  ;;  %v474_v34 = vadd.f32 %v7388_v21, %v435_v20  ;;  %vm1371_vm4 = vsmask.f32 3328 }
  0x38   : > { %6754 = vmatprep.subr.bf16.mxu0 %v7102_v10  ;;  %v7099_v10 = vld [vmem:[%s9232_s1 + $0xd0] sm:$0xff]   ;;  %v475_v38 = vadd.f32 %v7388_v21, %v436_v22  ;;  %vm1372_vm5 = vsmask.f32 7440 }
  0x39   : > { %v733_v18 = vld [vmem:[#allocation2 + $0xf8] sm:$0xf]  ;;  %v528_v3 = vmax.f32 %v496_v56, 0.0  ;;  %667 = vst.msk [vmem:[#allocation2 + $0x34] sm:$0xf] %vm663_vm3, %v6388_v12  ;;  %vm7616_vm6 = vmor %vm1371_vm4, %vm1372_vm5 }
  0x3a   : > { %v7090_v16 = vld [vmem:[#allocation2 + $0xf8] sm:$0xff]   ;;  %v1017_v25 = vshrl.u32 %v733_v18, 16  ;;  %v1020_v26 = vshll.u32 %v733_v18, 16 }
  0x3b   : > { %v734_v19 = vld [vmem:[#allocation2 + $0xfc] sm:$0xf]  ;;  %4959 = vmatprep.mubr.bf16.mxu1 %v7090_v16  ;;  %6755 = vmatpush3.bf16.msra.mxu0 %v7104_v14  ;;  %v701_v8 = vld [vmem:[#allocation2 + $0x20] sm:$0xf]  ;;  %v529_v14 = vmax.f32 %v497_v0, 0.0  ;;  %v6508_v16 = vunpack.c.h.bf16 %v7476_v59 }
  0x3c   : > { %v1026_v27 = vshrl.u32 %v734_v19, 16  ;;  %v1029_v28 = vshll.u32 %v734_v19, 16  ;;  %v1019_v36 = vrot.slane %v1017_v25, 7  ;;  %v7097_v2 = vld [vmem:[#allocation2 + $0x1c] sm:$0xff]   ;;  %v7098_v17 = vld [vmem:[#allocation2 + $0x10c] sm:$0xff]   ;;  %v6411_v19 = vpack.c.bf16 %v528_v3, %v528_v3 }
  0x3d   : > { %v700_v7 = vld [vmem:[#allocation2 + $0x1c] sm:$0xf]  ;;  %4871 = vmatprep.mubr.bf16.mxu0 %v7097_v2  ;;  %v784_v24 = vshrl.u32 %v701_v8, 16  ;;  %v787_v25 = vshll.u32 %v701_v8, 16  ;;  %v737_v30 = vld [vmem:[#allocation2 + $0x110] sm:$0xf] }
  0x3e   : > { %v1028_v37 = vrot.slane %v1026_v27, 7  ;;  %v1022_v45 = vor.u32 %v1020_v26, %v1019_v36  ;;  %v1024_v46 = vrot.slane %v1019_v36, 4  ;;  %v775_v18 = vshrl.u32 %v700_v7, 16  ;;  %v736_v26 = vld [vmem:[#allocation2 + $0x10c] sm:$0xf]  ;;  %v7103_v59 = vld [vmem:[%s9232_s1 + $0x98] sm:$0xff]  }
  0x3f   : > { %v778_v23 = vshll.u32 %v700_v7, 16  ;;  %v6412_v27 = vpack.c.bf16 %v529_v14, %v529_v14  ;;  %v1039_v31 = vshrl.u32 %v736_v26, 16  ;;  %v1042_v32 = vshll.u32 %v736_v26, 16  ;;  %690 = vst.msk [vmem:[#allocation2 + $0x120] sm:$0xf] %vm663_vm3, %v6411_v19  ;;  %v7107_v0 = vld [vmem:[%s9232_s1 + $0xe0] sm:$0xff]  }
  0x40   : > { %v1031_v47 = vor.u32 %v1029_v28, %v1028_v37  ;;  %v1023_v54 = vsel %vm7405_vm2, %v7428_v1, %v1022_v45  ;;  %v7096_v1 = vld [vmem:[%s9232_s1 + $0x88] sm:$0xff]   ;;  %v7114_v28 = vld [vmem:[%s9232_s1 + $0x150] sm:$0xff]   ;;  %v777_v29 = vrot.slane %v775_v18, 7  ;;  %v786_v35 = vrot.slane %v784_v24, 7  ;;  %v7101_v45 = vld [vmem:[%s9232_s1 + $0xd8] sm:$0xff]  }
  0x41   : > { %v1048_v36 = vshrl.u32 %v737_v30, 16  ;;  %v1051_v37 = vshll.u32 %v737_v30, 16  ;;  %691 = vst.msk [vmem:[#allocation2 + $0x124] sm:$0xf] %vm663_vm3, %v6412_v27  ;;  %6756 = vmatprep.subr.bf16.mxu0 %v7114_v28  ;;  %v1041_v44 = vrot.slane %v1039_v31, 7  ;;  %v814_v2 = vshrl.u32 %v7504_v39, 16 }
  0x42   : > { %v1032_v55 = vsel %vm7405_vm2, %v1024_v46, %v1031_v47  ;;  %v780_v41 = vor.u32 %v778_v23, %v777_v29  ;;  %v782_v43 = vrot.slane %v777_v29, 4  ;;  %v506_v46 = vmax.f32 %v474_v34, 0.0  ;;  %6757 = vmatpush3.bf16.msra.mxu0 %v7116_v40  ;;  %v703_v4 = vld [vmem:[#allocation2 + $0x30] sm:$0xf]  ;;  %v704_v5 = vld [vmem:[#allocation2 + $0x34] sm:$0xf] }
  0x43   : > { %v6113_v60 = vcombine.low %v1023_v54, %v1032_v55  ;;  %v789_v47 = vor.u32 %v787_v25, %v786_v35  ;;  %v1050_v48 = vrot.slane %v1048_v36, 7  ;;  %v1044_v52 = vor.u32 %v1042_v32, %v1041_v44  ;;  %v7109_v24 = vld [vmem:[%s9232_s1 + $0xe8] sm:$0xff]   ;;  %v6515_v29 = vld [vmem:[%s7371_s24 + $0x18] sm:$0xff]   ;;  %v741_v34 = vld [vmem:[#allocation2 + $0x130] sm:$0x8] }
  0x44   : > { %v781_v51 = vsel %vm7405_vm2, %v7439_v9, %v780_v41  ;;  %v1046_v54 = vrot.slane %v1041_v44, 4  ;;  %v6389_v55 = vpack.c.bf16 %v506_v46, %v506_v46  ;;  %v7105_v9 = vld [vmem:[#allocation2 + $0x30] sm:$0xff]   ;;  %v797_v8 = vshrl.u32 %v703_v4, 16 }
  0x45   : > { %4960 = vmatmul.mubr.bf16.vlgmr.msra.gmra.mrb[0].mxu1 %v6113_v60  ;;  %v790_v56 = vsel %vm7405_vm2, %v782_v43, %v789_v47  ;;  %v1053_v58 = vor.u32 %v1051_v37, %v1050_v48  ;;  %v1045_v63 = vsel %vm7405_vm2, %v7444_v13, %v1044_v52  ;;  %v806_v11 = vshrl.u32 %v704_v5, 16  ;;  %v1838_v52 = vld [vmem:[#allocation2 + $0x18] sm:$0x8] }
  0x46   : > { %6641 = vmatpush3.bf16.msra.mxu1 %v7093_v49  ;;  %4967 = vmatprep.mubr.bf16.mxu1 %v7098_v17  ;;  %v507_v49 = vmax.f32 %v475_v38, 0.0  ;;  %v6102_v62 = vcombine.low %v781_v51, %v790_v56  ;;  %668 = vst.msk [vmem:[#allocation2 + $0x44] sm:$0xf] %vm663_vm3, %v6389_v55  ;;  %v809_v12 = vshll.u32 %v704_v5, 16  ;;  %v739_v14 = vld [vmem:[#allocation2 + $0x120] sm:$0xf]  ;;  %v6463_v39 = vunpack.c.l.bf16 %v6515_v29 }
  0x47   : > { %6642 = vmatprep.subr.bf16.mxu1 %v7095_v61  ;;  %v460_v61 = vmul.f32 %v6508_v16, %v7383_v15  ;;  %v1054_v3 = vsel %vm7405_vm2, %v1046_v54, %v1053_v58  ;;  %v7108_v17 = vld [vmem:[%s9232_s1 + $0xa0] sm:$0xff]   ;;  %v799_v19 = vrot.slane %v797_v8, 7  ;;  %v808_v20 = vrot.slane %v806_v11, 7  ;;  %v7113_v58 = vld [vmem:[%s9232_s1 + $0xf0] sm:$0xff]   ;;  %v7123_v8 = vld [vmem:[%s9232_s1 + $0x118] sm:$0xff]  }
  0x48   : > { %v6390_v60 = vpack.c.bf16 %v507_v49, %v507_v49  ;;  %4872 = vmatmul.mubr.bf16.gmra.mrb[4].mxu0 %v6102_v62  ;;  %v6114_v6 = vcombine.low %v1045_v63, %v1054_v3  ;;  %v7106_v7 = vld [vmem:[#allocation2 + $0x120] sm:$0xff]   ;;  %v1061_v22 = vshrl.u32 %v739_v14, 16  ;;  %v1064_v23 = vshll.u32 %v739_v14, 16  ;;  %v7110_v49 = vld [vmem:[%s9232_s1 + $0xa8] sm:$0xff]   ;;  %v1839_v63 = vld [vmem:[#allocation2 + $0x1c] sm:$0xf] }
  0x49   : > { %v499_v13 = vadd.f32 %v7388_v21, %v460_v61  ;;  %4879 = vmatprep.mubr.bf16.mxu0 %v7105_v9  ;;  %v740_v16 = vld [vmem:[#allocation2 + $0x124] sm:$0xf]  ;;  %v804_v31 = vrot.slane %v799_v19, 4  ;;  %v811_v32 = vor.u32 %v809_v12, %v808_v20  ;;  %v6088_v38 = vrot.slane %v814_v2, 11  ;;  %v7117_v2 = vld [vmem:[%s9232_s1 + $0xf8] sm:$0xff]  }
  0x4a   : > { %6643 = vmatpush3.bf16.msra.mxu1 %v7096_v1  ;;  %v498_v1 = vadd.f32 %v7388_v21, %v459_v50  ;;  %669 = vst.msk [vmem:[#allocation2 + $0x48] sm:$0xf] %vm663_vm3, %v6390_v60  ;;  %v1070_v25 = vshrl.u32 %v740_v16, 16  ;;  %v1073_v26 = vshll.u32 %v740_v16, 16  ;;  %v1078_v56 = vshrl.u32 %v741_v34, 16 }
  0x4b   : > { %6644 = vmatprep.subr.bf16.mxu1 %v7099_v10  ;;  %v800_v10 = vshll.u32 %v703_v4, 16  ;;  %v531_v27 = vmax.f32 %v499_v13, 0.0  ;;  %v812_v41 = vsel %vm7405_vm2, %v804_v31, %v811_v32  ;;  %v6464_v61 = vunpack.c.h.bf16 %v6515_v29  ;;  %v7122_v4 = vld [vmem:[%s9232_s1 + $0x158] sm:$0xff]   ;;  %v1840_v12 = vld [vmem:[#allocation2 + $0x20] sm:$0xf] }
  0x4c   : > { %v530_v18 = vmax.f32 %v498_v1, 0.0  ;;  %v1072_v35 = vrot.slane %v1070_v25, 7  ;;  %v437_v62 = vmul.f32 %v6463_v39, %v7383_v15  ;;  %v7115_v1 = vld [vmem:[%s9232_s1 + $0xb0] sm:$0xff]   ;;  %v1887_v3 = vshrl.u32 %v1838_v52, 16  ;;  %6758 = vmatprep.subr.bf16.mxu0 %v7122_v4  ;;  %v7118_v31 = vld [vmem:[%s9232_s1 + $0xb8] sm:$0xff]  }
  0x4d   : > { %4968 = vmatmul.mubr.bf16.gmra.mrb[4].mxu1 %v6114_v6  ;;  %v802_v30 = vor.u32 %v800_v10, %v799_v19  ;;  %v6414_v36 = vpack.c.bf16 %v531_v27, %v531_v27  ;;  %v706_v37 = vld [vmem:[#allocation2 + $0x44] sm:$0xf]  ;;  %v438_v6 = vmul.f32 %v6464_v61, %v7383_v15  ;;  %v1892_v16 = vshrl.u32 %v1839_v63, 16  ;;  %6759 = vmatpush3.bf16.msra.mxu0 %v7123_v8  ;;  %v1323_v32 = vld [vmem:[#allocation2 + $0x8] sm:$0xf] }
  0x4e   : > { %6645 = vmatpush3.bf16.msra.mxu1 %v7100_v33  ;;  %4975 = vmatprep.mubr.bf16.mxu1 %v7106_v7  ;;  %v6413_v28 = vpack.c.bf16 %v530_v18, %v530_v18  ;;  %v1063_v33 = vrot.slane %v1061_v22, 7  ;;  %v1075_v48 = vor.u32 %v1073_v26, %v1072_v35  ;;  %v819_v50 = vshrl.u32 %v706_v37, 16  ;;  %v708_v26 = vld [vmem:[#allocation2 + $0x54] sm:$0x8] }
  0x4f   : > { %6646 = vmatprep.subr.bf16.mxu1 %v7101_v45  ;;  %v803_v40 = vsel %vm7405_vm2, %v7464_v53, %v802_v30  ;;  %693 = vst.msk [vmem:[#allocation2 + $0x138] sm:$0xf] %vm663_vm3, %v6414_v36  ;;  %v822_v51 = vshll.u32 %v706_v37, 16  ;;  %v476_v7 = vadd.f32 %v7388_v21, %v437_v62  ;;  %v7577_v14 = vrot.slane %v1887_v3, 11  ;;  %v7120_v37 = vld [vmem:[%s9232_s1 + $0x1c0] sm:$0xff]  }
  0x50   : > { %692 = vst.msk [vmem:[#allocation2 + $0x134] sm:$0xf] %vm663_vm3, %v6413_v28  ;;  %v1066_v43 = vor.u32 %v1064_v23, %v1063_v33  ;;  %v1068_v44 = vrot.slane %v1063_v33, 4  ;;  %v6103_v47 = vcombine.low %v803_v40, %v812_v41  ;;  %v821_v60 = vrot.slane %v819_v50, 7 }
  0x51   : > { %v7111_v45 = vld [vmem:[#allocation2 + $0x44] sm:$0xff]   ;;  %v477_v20 = vadd.f32 %v7388_v21, %v438_v6  ;;  %v508_v25 = vmax.f32 %v476_v7, 0.0  ;;  %v1894_v35 = vrot.slane %v1892_v16, 7  ;;  %v1895_v36 = vshll.u32 %v1839_v63, 16 }
  0x52   : > { %6647 = vmatpush3.bf16.msra.mxu1 %v7103_v59  ;;  %v707_v46 = vld [vmem:[#allocation2 + $0x48] sm:$0xf]  ;;  %v1067_v53 = vsel %vm7405_vm2, %v7472_v57, %v1066_v43  ;;  %4880 = vmatmul.mubr.bf16.gmra.mrb[8].mxu0 %v6103_v47  ;;  %v1076_v59 = vsel %vm7405_vm2, %v1068_v44, %v1075_v48  ;;  %v824_v5 = vor.u32 %v822_v51, %v821_v60  ;;  %v826_v13 = vrot.slane %v821_v60, 4  ;;  %v7126_v43 = vld [vmem:[%s9232_s1 + $0x160] sm:$0xff]   ;;  %v1324_v48 = vld [vmem:[#allocation2 + $0xc] sm:$0xf] }
  0x53   : > { %6648 = vmatprep.subr.bf16.mxu1 %v7107_v0  ;;  %v828_v54 = vshrl.u32 %v707_v46, 16  ;;  %v831_v55 = vshll.u32 %v707_v46, 16  ;;  %v6115_v9 = vcombine.low %v1067_v53, %v1076_v59  ;;  %4887 = vmatprep.mubr.bf16.mxu0 %v7111_v45  ;;  %v7561_v0 = vrot.slane %v1078_v56, 11  ;;  %v1325_v53 = vld [vmem:[#allocation2 + $0x10] sm:$0x1] }
  0x54   : > { %v509_v33 = vmax.f32 %v477_v20, 0.0  ;;  %v6391_v34 = vpack.c.bf16 %v508_v25, %v508_v25  ;;  %v1901_v41 = vshrl.u32 %v1840_v12, 16  ;;  %v1897_v45 = vor.u32 %v1895_v36, %v1894_v35  ;;  %6760 = vmatprep.subr.bf16.mxu0 %v7126_v43  ;;  %v1842_v25 = vld [vmem:[#allocation2 + $0x30] sm:$0xf]  ;;  %v1843_v36 = vld [vmem:[#allocation2 + $0x34] sm:$0xf] }
  0x55   : > { %v830_v57 = vrot.slane %v828_v54, 7  ;;  %4976 = vmatmul.mubr.bf16.gmra.mrb[8].mxu1 %v6115_v9  ;;  %v1899_v46 = vrot.slane %v1894_v35, 4  ;;  %v1904_v47 = vshll.u32 %v1840_v12, 16  ;;  %v836_v52 = vshrl.u32 %v708_v26, 16  ;;  %v1326_v43 = vld [vmem:[#allocation2 + $0x1c] sm:$0xf] }
  0x56   : > { %6649 = vmatpush3.bf16.msra.mxu1 %v7108_v17  ;;  %v825_v17 = vsel %vm7405_vm2, %v6088_v38, %v824_v5  ;;  %v6392_v44 = vpack.c.bf16 %v509_v33, %v509_v33  ;;  %670 = vst.msk [vmem:[#allocation2 + $0x58] sm:$0xf] %vm663_vm3, %v6391_v34  ;;  %v1903_v51 = vrot.slane %v1901_v41, 7  ;;  %v1898_v54 = vsel %vm7405_vm2, %v7577_v14, %v1897_v45  ;;  %v711_v41 = vld [vmem:[#allocation2 + $0x68] sm:$0x8] }
  0x57   : > { %6650 = vmatprep.subr.bf16.mxu1 %v7109_v24  ;;  %v833_v10 = vor.u32 %v831_v55, %v830_v57  ;;  %v742_v11 = vld [vmem:[#allocation2 + $0x134] sm:$0xf]  ;;  %v743_v24 = vld [vmem:[#allocation2 + $0x138] sm:$0xf]  ;;  %v1375_v55 = vshrl.u32 %v1323_v32, 16  ;;  %v1378_v56 = vshll.u32 %v1323_v32, 16 }
  0x58   : > { %v1083_v18 = vshrl.u32 %v742_v11, 16  ;;  %v1086_v19 = vshll.u32 %v742_v11, 16  ;;  %v7112_v22 = vld [vmem:[#allocation2 + $0x134] sm:$0xff]   ;;  %v1092_v29 = vshrl.u32 %v743_v24, 16  ;;  %v1095_v30 = vshll.u32 %v743_v24, 16  ;;  %v7128_v11 = vld [vmem:[%s9232_s1 + $0x120] sm:$0xff]  }
  0x59   : > { %v834_v23 = vsel %vm7405_vm2, %v826_v13, %v833_v10  ;;  %4983 = vmatprep.mubr.bf16.mxu1 %v7112_v22  ;;  %671 = vst.msk [vmem:[#allocation2 + $0x5c] sm:$0xf] %vm663_vm3, %v6392_v44  ;;  %v1906_v60 = vor.u32 %v1904_v47, %v1903_v51  ;;  %v7604_v61 = vrot.slane %v836_v52, 11  ;;  %v1384_v62 = vshll.u32 %v1324_v48, 16  ;;  %6761 = vmatpush3.bf16.msra.mxu0 %v7128_v11  ;;  %v7131_v44 = vld [vmem:[%s9232_s1 + $0x168] sm:$0xff]  }
  0x5a   : > { %6651 = vmatpush3.bf16.msra.mxu1 %v7110_v49  ;;  %v6104_v27 = vcombine.low %v825_v17, %v834_v23  ;;  %v1085_v28 = vrot.slane %v1083_v18, 7  ;;  %v1094_v40 = vrot.slane %v1092_v29, 7  ;;  %v1377_v9 = vrot.slane %v1375_v55, 4  ;;  %6762 = vmatprep.subr.bf16.mxu0 %v7131_v44 }
  0x5b   : > { %6652 = vmatprep.subr.bf16.mxu1 %v7113_v58  ;;  %v6516_v58 = vld [vmem:[%s7371_s24 + $0x20] sm:$0xff]   ;;  %v1380_v57 = vrot.slane %v1378_v56, 5  ;;  %v1907_v3 = vsel %vm7405_vm2, %v1899_v46, %v1906_v60  ;;  %v1386_v4 = vrot.slane %v1384_v62, 5  ;;  %v1394_v5 = vshll.u32 %v1325_v53, 16  ;;  %v7127_v60 = vld [vmem:[%s9232_s1 + $0x1c8] sm:$0xff]  }
  0x5c   : > { %4888 = vmatmul.mubr.bf16.gmra.mrb[12].mxu0 %v6104_v27  ;;  %v1088_v38 = vor.u32 %v1086_v19, %v1085_v28  ;;  %v1090_v39 = vrot.slane %v1085_v28, 4  ;;  %v1097_v50 = vor.u32 %v1095_v30, %v1094_v40  ;;  %v6467_v13 = vunpack.c.l.bf16 %v6516_v58 }
  0x5d   : > { %v6165_v6 = vcombine.low %v1898_v54, %v1907_v3  ;;  %v1381_v7 = vor.u32 %v1380_v57, %v1377_v9  ;;  %v6468_v10 = vunpack.c.h.bf16 %v6516_v58  ;;  %v709_v12 = vld [vmem:[#allocation2 + $0x58] sm:$0xf]  ;;  %v1396_v16 = vrot.slane %v1394_v5, 5 }
  0x5e   : > { %6653 = vmatpush3.bf16.msra.mxu1 %v7115_v1  ;;  %v1089_v49 = vsel %vm7405_vm2, %v7561_v0, %v1088_v38  ;;  %v1098_v59 = vsel %vm7405_vm2, %v1090_v39, %v1097_v50  ;;  %v1388_v0 = vshrl.u32 %v1324_v48, 16  ;;  %v1841_v1 = vld [vmem:[#allocation2 + $0x2c] sm:$0x8]  ;;  %v439_v17 = vmul.f32 %v6467_v13, %v7383_v15  ;;  %v7121_v38 = vld [vmem:[%s9232_s1 + $0x180] sm:$0xff]  }
  0x5f   : > { %6654 = vmatprep.subr.bf16.mxu1 %v7117_v2  ;;  %v6116_v63 = vcombine.low %v1089_v49, %v1098_v59  ;;  %v7607_v2 = vld [vmem:[%s7371_s24 + $0x28] sm:$0xff]   ;;  %v1909_v18 = vshrl.u32 %v1841_v1, 16  ;;  %v841_v20 = vshrl.u32 %v709_v12, 16  ;;  %v844_v22 = vshll.u32 %v709_v12, 16  ;;  %v1327_v49 = vld [vmem:[#allocation2 + $0x20] sm:$0xf] }
  0x60   : > { %v1390_v8 = vrot.slane %v1388_v0, 4  ;;  %v6471_v19 = vunpack.c.l.bf16 %v7607_v2  ;;  %v1382_v23 = vrot.slane %v1381_v7, 4  ;;  %v7119_v26 = vld [vmem:[#allocation2 + $0x58] sm:$0xff]   ;;  %v440_v28 = vmul.f32 %v6468_v10, %v7383_v15  ;;  %v7132_v50 = vld [vmem:[%s9232_s1 + $0x128] sm:$0xff]   ;;  %v1328_v59 = vld [vmem:[#allocation2 + $0x24] sm:$0x1] }
  0x61   : > { %4984 = vmatmul.mubr.bf16.gmra.mrb[12].mxu1 %v6116_v63  ;;  %v710_v27 = vld [vmem:[#allocation2 + $0x5c] sm:$0xf]  ;;  %v478_v29 = vadd.f32 %v7388_v21, %v439_v17  ;;  %v7624_v30 = vrot.slane %v1909_v18, 11  ;;  %v843_v32 = vrot.slane %v841_v20, 7  ;;  %4895 = vmatprep.mubr.bf16.mxu0 %v7119_v26  ;;  %v1914_v40 = vshrl.u32 %v1842_v25, 16  ;;  %v7134_v17 = vld [vmem:[%s9232_s1 + $0x1d0] sm:$0xff]  }
  0x62   : > { %6655 = vmatpush3.bf16.msra.mxu1 %v7118_v31  ;;  %5024 = vmatprep.mubr.bf16.mxu1 %v6165_v6  ;;  %v1391_v24 = vor.u32 %v1390_v8, %v1386_v4  ;;  %v6472_v31 = vunpack.c.h.bf16 %v7607_v2  ;;  %v850_v33 = vshrl.u32 %v710_v27, 16  ;;  %v853_v34 = vshll.u32 %v710_v27, 16  ;;  %v1844_v7 = vld [vmem:[#allocation2 + $0x40] sm:$0x8]  ;;  %v7129_v8 = vld [vmem:[%s9232_s1 + $0x188] sm:$0xff]   ;;  %v7135_v2 = vld [vmem:[%s9232_s1 + $0x190] sm:$0xff]  }
  0x63   : > { %6864 = vmatprep.subr.bf16.mxu1 %v7120_v37  ;;  %v1387_v35 = vsel %vm7616_vm6, %v1382_v23, %v1386_v4  ;;  %v479_v15 = vadd.f32 %v7388_v21, %v440_v28  ;;  %v510_v39 = vmax.f32 %v478_v29, 0.0  ;;  %v846_v45 = vor.u32 %v844_v22, %v843_v32  ;;  %6763 = vmatpush3.bf16.msra.mxu0 %v7132_v50  ;;  %v7665_v23 = vld [vmem:[%s9233_s2] ss:$0 sm:$0xff] }
  0x64   : > { %v1392_v37 = vrot.slane %v1391_v24, 4  ;;  %v848_v46 = vrot.slane %v843_v32, 4  ;;  %v852_v47 = vrot.slane %v850_v33, 7  ;;  %v1917_v48 = vshll.u32 %v1842_v25, 16  ;;  %v7670_v25 = vld [vmem:[#allocation2 + $0x44] sm:$0xf] }
  0x65   : > { %v511_v51 = vmax.f32 %v479_v15, 0.0  ;;  %v6393_v52 = vpack.c.bf16 %v510_v39, %v510_v39  ;;  %v1916_v53 = vrot.slane %v1914_v40, 7  ;;  %v847_v54 = vsel %vm7405_vm2, %v7604_v61, %v846_v45  ;;  %v7681_v32 = vld [vmem:[%s7371_s24 + $0x38] sm:$0xff]  }
  0x66   : > { %v1397_v21 = vsel %vm7616_vm6, %v1392_v37, %v1396_v16  ;;  %v855_v55 = vor.u32 %v853_v34, %v852_v47  ;;  %v1923_v58 = vshrl.u32 %v1843_v36, 16  ;;  %v1926_v57 = vshll.u32 %v1843_v36, 16 }
  0x67   : > { %v6133_v56 = vcombine.low %v1387_v35, %v1397_v21  ;;  %v6394_v62 = vpack.c.bf16 %v511_v51, %v511_v51  ;;  %672 = vst.msk [vmem:[#allocation2 + $0x6c] sm:$0xf] %vm663_vm3, %v6393_v52  ;;  %v1919_v63 = vor.u32 %v1917_v48, %v1916_v53  ;;  %v1921_v9 = vrot.slane %v1916_v53, 4 }
  0x68   : > { %v856_v0 = vsel %vm7405_vm2, %v848_v46, %v855_v55  ;;  %v1925_v61 = vrot.slane %v1923_v58, 7  ;;  %v858_v1 = vshrl.u32 %v711_v41, 16  ;;  %v1399_v3 = vshrl.u32 %v1326_v43, 16  ;;  %v1846_v46 = vld [vmem:[#allocation2 + $0x48] sm:$0xf] }
  0x69   : > { %5025 = vmatmul.mubr.bf16.vlgmr.msra.gmra.mrb[16].mxu1 %v6133_v56  ;;  %v6105_v4 = vcombine.low %v847_v54, %v856_v0  ;;  %673 = vst.msk [vmem:[#allocation2 + $0x70] sm:$0xf] %vm663_vm3, %v6394_v62  ;;  %v1920_v5 = vsel %vm7405_vm2, %v7624_v30, %v1919_v63  ;;  %v1402_v13 = vshll.u32 %v1326_v43, 16  ;;  %v1408_v6 = vshll.u32 %v1327_v49, 16  ;;  %v7678_v30 = vld [vmem:[%s7371_s24 + $0x30] sm:$0xff]  }
  0x6a   : > { %6865 = vmatpush3.bf16.msra.mxu1 %v7121_v38  ;;  %v1928_v10 = vor.u32 %v1926_v57, %v1925_v61  ;;  %v7657_v11 = vrot.slane %v858_v1, 11  ;;  %v1401_v12 = vrot.slane %v1399_v3, 4  ;;  %v1412_v16 = vshrl.u32 %v1327_v49, 16  ;;  %v7138_v56 = vld [vmem:[%s9232_s1 + $0x130] sm:$0xff]   ;;  %v714_v63 = vld [vmem:[#allocation2 + $0x7c] sm:$0x8] }
  0x6b   : > { %6866 = vmatprep.subr.bf16.mxu1 %v7127_v60  ;;  %4896 = vmatmul.mubr.bf16.gmra.mrb[16].mxu0 %v6105_v4  ;;  %v1404_v18 = vrot.slane %v1402_v13, 5  ;;  %v1410_v20 = vrot.slane %v1408_v6, 5  ;;  %v1418_v22 = vshll.u32 %v1328_v59, 16  ;;  %v441_v24 = vmul.f32 %v7665_v23, %v6471_v19  ;;  %v7686_v19 = vld [vmem:[%s9234_s3] ss:$0 sm:$0xff] }
  0x6c   : > { %v1929_v26 = vsel %vm7405_vm2, %v1921_v9, %v1928_v10  ;;  %v1414_v27 = vrot.slane %v1412_v16, 4  ;;  %v442_v28 = vmul.f32 %v7665_v23, %v6472_v31  ;;  %v1931_v29 = vshrl.u32 %v1844_v7, 16  ;;  %v7137_v31 = vld [vmem:[%s9232_s1 + $0x170] sm:$0xff]   ;;  %v1331_v16 = vld [vmem:[#allocation2 + $0x38] sm:$0x1] }
  0x6d   : > { %v6166_v33 = vcombine.low %v1920_v5, %v1929_v26  ;;  %v1405_v34 = vor.u32 %v1404_v18, %v1401_v12  ;;  %v1420_v35 = vrot.slane %v1418_v22, 5  ;;  %v480_v36 = vadd.f32 %v7686_v19, %v441_v24  ;;  %6764 = vmatprep.subr.bf16.mxu0 %v7137_v31  ;;  %v1329_v1 = vld [vmem:[#allocation2 + $0x30] sm:$0xf]  ;;  %v1330_v6 = vld [vmem:[#allocation2 + $0x34] sm:$0xf] }
  0x6e   : > { %6867 = vmatpush3.bf16.msra.mxu1 %v7129_v8  ;;  %v712_v37 = vld [vmem:[#allocation2 + $0x6c] sm:$0xf]  ;;  %v1415_v38 = vor.u32 %v1414_v27, %v1410_v20  ;;  %v481_v15 = vadd.f32 %v7686_v19, %v442_v28  ;;  %v7696_v39 = vrot.slane %v1931_v29, 11  ;;  %v1936_v40 = vshrl.u32 %v7670_v25, 16  ;;  %6765 = vmatpush3.bf16.msra.mxu0 %v7138_v56  ;;  %v1847_v24 = vld [vmem:[#allocation2 + $0x54] sm:$0x8] }
  0x6f   : > { %6868 = vmatprep.subr.bf16.mxu1 %v7134_v17  ;;  %5032 = vmatprep.mubr.bf16.mxu1 %v6166_v33  ;;  %v863_v41 = vshrl.u32 %v712_v37, 16  ;;  %v866_v43 = vshll.u32 %v712_v37, 16  ;;  %v1406_v44 = vrot.slane %v1405_v34, 4  ;;  %v512_v45 = vmax.f32 %v480_v36, 0.0  ;;  %v7141_v29 = vld [vmem:[%s9232_s1 + $0x198] sm:$0xff]  }
  0x70   : > { %v7124_v47 = vld [vmem:[#allocation2 + $0x6c] sm:$0xff]   ;;  %v1416_v49 = vrot.slane %v1415_v38, 4  ;;  %v6475_v50 = vunpack.c.l.bf16 %v7678_v30  ;;  %v6476_v21 = vunpack.c.h.bf16 %v7678_v30  ;;  %v6479_v51 = vunpack.c.l.bf16 %v7681_v32  ;;  %v7142_v36 = vld [vmem:[%s9232_s1 + $0x178] sm:$0xff]  }
  0x71   : > { %v713_v48 = vld [vmem:[#allocation2 + $0x70] sm:$0xf]  ;;  %v865_v52 = vrot.slane %v863_v41, 7  ;;  %v1411_v55 = vsel %vm7616_vm6, %v1406_v44, %v1410_v20  ;;  %4903 = vmatprep.mubr.bf16.mxu0 %v7124_v47  ;;  %v513_v59 = vmax.f32 %v481_v15, 0.0  ;;  %v6395_v60 = vpack.c.bf16 %v512_v45, %v512_v45  ;;  %6766 = vmatprep.subr.bf16.mxu0 %v7142_v36  ;;  %v7143_v44 = vld [vmem:[%s9232_s1 + $0x138] sm:$0xff]  }
  0x72   : > { %v872_v53 = vshrl.u32 %v713_v48, 16  ;;  %v875_v54 = vshll.u32 %v713_v48, 16  ;;  %6869 = vmatpush3.bf16.msra.mxu1 %v7135_v2  ;;  %v1421_v58 = vsel %vm7616_vm6, %v1416_v49, %v1420_v35  ;;  %v1938_v62 = vrot.slane %v1936_v40, 7  ;;  %6767 = vmatpush3.bf16.msra.mxu0 %v7143_v44 }
  0x73   : > { %v868_v9 = vor.u32 %v866_v43, %v865_v52  ;;  %v870_v57 = vrot.slane %v865_v52, 4  ;;  %v6134_v61 = vcombine.low %v1411_v55, %v1421_v58  ;;  %v6396_v3 = vpack.c.bf16 %v513_v59, %v513_v59  ;;  %674 = vst.msk [vmem:[#allocation2 + $0x80] sm:$0xf] %vm663_vm3, %v6395_v60  ;;  %v7736_v43 = vld [vmem:[%s7371_s24 + $0x40] sm:$0xff]   ;;  %v1849_v59 = vld [vmem:[#allocation2 + $0x5c] sm:$0xf] }
  0x74   : > { %v874_v0 = vrot.slane %v872_v53, 7  ;;  %v1939_v4 = vshll.u32 %v7670_v25, 16  ;;  %v1943_v5 = vrot.slane %v1938_v62, 4  ;;  %v1945_v13 = vshrl.u32 %v1846_v46, 16  ;;  %v7140_v25 = vld [vmem:[%s9232_s1 + $0x1d8] sm:$0xff]  }
  0x75   : > { %v869_v7 = vsel %vm7405_vm2, %v7657_v11, %v868_v9  ;;  %5033 = vmatmul.mubr.bf16.gmra.mrb[20].mxu1 %v6134_v61  ;;  %v1948_v10 = vshll.u32 %v1846_v46, 16  ;;  %v880_v12 = vshrl.u32 %v714_v63, 16  ;;  %675 = vst.msk [vmem:[#allocation2 + $0x84] sm:$0xf] %vm663_vm3, %v6396_v3  ;;  %v1423_v20 = vshrl.u32 %v1329_v1, 16  ;;  %6870 = vmatprep.subr.bf16.mxu1 %v7140_v25 }
  0x76   : > { %v877_v8 = vor.u32 %v875_v54, %v874_v0  ;;  %v1941_v17 = vor.u32 %v1939_v4, %v1938_v62  ;;  %v1947_v18 = vrot.slane %v1945_v13, 7  ;;  %v1426_v22 = vshll.u32 %v1329_v1, 16  ;;  %6871 = vmatpush3.bf16.msra.mxu1 %v7141_v29  ;;  %v717_v1 = vld [vmem:[#allocation2 + $0x90] sm:$0x8] }
  0x77   : > { %v7720_v11 = vrot.slane %v880_v12, 11  ;;  %v1432_v27 = vshll.u32 %v1330_v6, 16  ;;  %v1436_v28 = vshrl.u32 %v1330_v6, 16  ;;  %v1425_v35 = vrot.slane %v1423_v20, 4  ;;  %v1332_v6 = vld [vmem:[#allocation2 + $0x44] sm:$0xf] }
  0x78   : > { %v878_v26 = vsel %vm7405_vm2, %v870_v57, %v877_v8  ;;  %v1942_v33 = vsel %vm7405_vm2, %v7696_v39, %v1941_v17  ;;  %v1950_v34 = vor.u32 %v1948_v10, %v1947_v18  ;;  %v1428_v2 = vrot.slane %v1426_v22, 5  ;;  %v1333_v10 = vld [vmem:[#allocation2 + $0x48] sm:$0xf]  ;;  %v7146_v20 = vld [vmem:[%s9232_s1 + $0x1e0] sm:$0xff]  }
  0x79   : > { %v6106_v30 = vcombine.low %v869_v7, %v878_v26  ;;  %v1434_v31 = vrot.slane %v1432_v27, 5  ;;  %v1438_v37 = vrot.slane %v1436_v28, 4  ;;  %v1442_v38 = vshll.u32 %v1331_v16, 16  ;;  %6872 = vmatprep.subr.bf16.mxu1 %v7146_v20  ;;  %v720_v20 = vld [vmem:[#allocation2 + $0xa4] sm:$0x8] }
  0x7a   : > { %v1951_v15 = vsel %vm7405_vm2, %v1943_v5, %v1950_v34  ;;  %v443_v40 = vmul.f32 %v7665_v23, %v6475_v50  ;;  %v444_v39 = vmul.f32 %v7665_v23, %v6476_v21  ;;  %v1953_v41 = vshrl.u32 %v1847_v24, 16  ;;  %v715_v46 = vld [vmem:[#allocation2 + $0x80] sm:$0xf]  ;;  %v1848_v21 = vld [vmem:[#allocation2 + $0x58] sm:$0xf] }
  0x7b   : > { %4904 = vmatmul.mubr.bf16.gmra.mrb[20].mxu0 %v6106_v30  ;;  %v6167_v45 = vcombine.low %v1942_v33, %v1951_v15  ;;  %v1429_v47 = vor.u32 %v1428_v2, %v1425_v35  ;;  %v1439_v48 = vor.u32 %v1438_v37, %v1434_v31  ;;  %v1444_v49 = vrot.slane %v1442_v38, 5  ;;  %v1334_v35 = vld [vmem:[#allocation2 + $0x4c] sm:$0x1]  ;;  %v7765_v2 = vld [vmem:[%s9232_s1 + $0x200] sm:$0xff]  }
  0x7c   : > { %v885_v52 = vshrl.u32 %v715_v46, 16  ;;  %v888_v53 = vshll.u32 %v715_v46, 16  ;;  %v482_v54 = vadd.f32 %v7686_v19, %v443_v40  ;;  %v483_v50 = vadd.f32 %v7686_v19, %v444_v39  ;;  %v7125_v55 = vld [vmem:[#allocation2 + $0x80] sm:$0xff]   ;;  %v1850_v40 = vld [vmem:[#allocation2 + $0x68] sm:$0x8]  ;;  %7000 = vmatprep.subr.bf16.mxu0 %v7765_v2 }
  0x7d   : > { %5040 = vmatprep.mubr.bf16.mxu1 %v6167_v45  ;;  %v716_v56 = vld [vmem:[#allocation2 + $0x84] sm:$0xf]  ;;  %v1430_v58 = vrot.slane %v1429_v47, 4  ;;  %v6480_v60 = vunpack.c.h.bf16 %v7681_v32  ;;  %v445_v62 = vmul.f32 %v7665_v23, %v6479_v51  ;;  %v6483_v63 = vunpack.c.l.bf16 %v7736_v43  ;;  %4911 = vmatprep.mubr.bf16.mxu0 %v7125_v55  ;;  %v7770_v39 = vld [vmem:[%s7371_s24 + $0x48] sm:$0xff]  }
  0x7e   : > { %v887_v9 = vrot.slane %v885_v52, 7  ;;  %v894_v57 = vshrl.u32 %v716_v56, 16  ;;  %v897_v0 = vshll.u32 %v716_v56, 16  ;;  %v1440_v61 = vrot.slane %v1439_v48, 4  ;;  %v7148_v47 = vld [vmem:[%s9232_s1 + $0x1a0] sm:$0xff]  }
  0x7f   : > { %v1435_v3 = vsel %vm7616_vm6, %v1430_v58, %v1434_v31  ;;  %v514_v4 = vmax.f32 %v482_v54, 0.0  ;;  %v515_v5 = vmax.f32 %v483_v50, 0.0  ;;  %v6152_v13 = vrot.slane %v1953_v41, 11  ;;  %6873 = vmatpush3.bf16.msra.mxu1 %v7148_v47  ;;  %v1337_v47 = vld [vmem:[#allocation2 + $0x60] sm:$0x1] }
  0x80   : > { %v890_v7 = vor.u32 %v888_v53, %v887_v9  ;;  %v892_v8 = vrot.slane %v887_v9, 4  ;;  %v896_v32 = vrot.slane %v894_v57, 7  ;;  %v1445_v51 = vsel %vm7616_vm6, %v1440_v61, %v1444_v49  ;;  %v1851_v57 = vld [vmem:[#allocation2 + $0x6c] sm:$0xf] }
  0x81   : > { %v6135_v12 = vcombine.low %v1435_v3, %v1445_v51  ;;  %v6397_v16 = vpack.c.bf16 %v514_v4, %v514_v4  ;;  %v6398_v17 = vpack.c.bf16 %v515_v5, %v515_v5  ;;  %v1958_v18 = vshrl.u32 %v1848_v21, 16 }
  0x82   : > { %v891_v22 = vsel %vm7405_vm2, %v7720_v11, %v890_v7  ;;  %v899_v24 = vor.u32 %v897_v0, %v896_v32  ;;  %v1961_v25 = vshll.u32 %v1848_v21, 16  ;;  %v1967_v26 = vshrl.u32 %v1849_v59, 16 }
  0x83   : > { %5041 = vmatmul.mubr.bf16.gmra.mrb[24].mxu1 %v6135_v12  ;;  %676 = vst.msk [vmem:[#allocation2 + $0x94] sm:$0xf] %vm663_vm3, %v6397_v16  ;;  %677 = vst.msk [vmem:[#allocation2 + $0x98] sm:$0xf] %vm663_vm3, %v6398_v17  ;;  %v1960_v27 = vrot.slane %v1958_v18, 7  ;;  %v1970_v28 = vshll.u32 %v1849_v59, 16  ;;  %v446_v53 = vmul.f32 %v7665_v23, %v6480_v60  ;;  %v484_v21 = vadd.f32 %v7686_v19, %v445_v62 }
  0x84   : > { %v902_v29 = vshrl.u32 %v717_v1, 16  ;;  %v1447_v30 = vshrl.u32 %v1332_v6, 16  ;;  %v900_v33 = vsel %vm7405_vm2, %v892_v8, %v899_v24  ;;  %v1969_v34 = vrot.slane %v1967_v26, 7  ;;  %v1852_v12 = vld [vmem:[#allocation2 + $0x70] sm:$0xf] }
  0x85   : > { %v1450_v11 = vshll.u32 %v1332_v6, 16  ;;  %v1456_v36 = vshll.u32 %v1333_v10, 16  ;;  %v6107_v31 = vcombine.low %v891_v22, %v900_v33  ;;  %v1963_v37 = vor.u32 %v1961_v25, %v1960_v27 }
  0x86   : > { %v1965_v38 = vrot.slane %v1960_v27, 4  ;;  %v7767_v15 = vrot.slane %v902_v29, 11  ;;  %v1972_v41 = vor.u32 %v1970_v28, %v1969_v34  ;;  %v1449_v44 = vrot.slane %v1447_v30, 4  ;;  %v1335_v27 = vld [vmem:[#allocation2 + $0x58] sm:$0xf] }
  0x87   : > { %v1452_v45 = vrot.slane %v1450_v11, 5  ;;  %v1458_v46 = vrot.slane %v1456_v36, 5  ;;  %4912 = vmatmul.mubr.bf16.gmra.mrb[24].mxu0 %v6107_v31  ;;  %v1964_v48 = vsel %vm7405_vm2, %v6152_v13, %v1963_v37  ;;  %v1460_v49 = vshrl.u32 %v1333_v10, 16  ;;  %v1336_v34 = vld [vmem:[#allocation2 + $0x5c] sm:$0xf] }
  0x88   : > { %v1466_v52 = vshll.u32 %v1334_v35, 16  ;;  %v1973_v54 = vsel %vm7405_vm2, %v1965_v38, %v1972_v41  ;;  %v1975_v55 = vshrl.u32 %v1850_v40, 16  ;;  %v485_v9 = vadd.f32 %v7686_v19, %v446_v53  ;;  %v7151_v35 = vld [vmem:[%s9232_s1 + $0x1e8] sm:$0xff]  }
  0x89   : > { %v1453_v50 = vor.u32 %v1452_v45, %v1449_v44  ;;  %v6168_v56 = vcombine.low %v1964_v48, %v1973_v54  ;;  %v1462_v58 = vrot.slane %v1460_v49, 4  ;;  %v6484_v1 = vunpack.c.h.bf16 %v7736_v43  ;;  %6874 = vmatprep.subr.bf16.mxu1 %v7151_v35 }
  0x8a   : > { %v1468_v59 = vrot.slane %v1466_v52, 5  ;;  %v7130_v0 = vld [vmem:[#allocation2 + $0x94] sm:$0xff]   ;;  %v7787_v60 = vmul.f32 %v7665_v23, %v6483_v63  ;;  %v6487_v3 = vunpack.c.l.bf16 %v7770_v39  ;;  %v516_v13 = vmax.f32 %v484_v21, 0.0  ;;  %v7153_v21 = vld [vmem:[%s9232_s1 + $0x1a8] sm:$0xff]  }
  0x8b   : > { %v1454_v61 = vrot.slane %v1453_v50, 4  ;;  %5048 = vmatprep.mubr.bf16.mxu1 %v6168_v56  ;;  %v718_v62 = vld [vmem:[#allocation2 + $0x94] sm:$0xf]  ;;  %v719_v4 = vld [vmem:[#allocation2 + $0x98] sm:$0xf]  ;;  %v1463_v5 = vor.u32 %v1462_v58, %v1458_v46  ;;  %v517_v6 = vmax.f32 %v485_v9, 0.0  ;;  %v6488_v7 = vunpack.c.h.bf16 %v7770_v39  ;;  %4919 = vmatprep.mubr.bf16.mxu0 %v7130_v0 }
  0x8c   : > { %v907_v8 = vshrl.u32 %v718_v62, 16  ;;  %v910_v32 = vshll.u32 %v718_v62, 16  ;;  %v916_v51 = vshrl.u32 %v719_v4, 16  ;;  %v919_v10 = vshll.u32 %v719_v4, 16  ;;  %v1854_v62 = vld [vmem:[#allocation2 + $0x80] sm:$0xf]  ;;  %6875 = vmatpush3.bf16.msra.mxu1 %v7153_v21 }
  0x8d   : > { %v1459_v63 = vsel %vm7616_vm6, %v1454_v61, %v1458_v46  ;;  %v1464_v16 = vrot.slane %v1463_v5, 4  ;;  %v6399_v17 = vpack.c.bf16 %v516_v13, %v516_v13  ;;  %v6400_v18 = vpack.c.bf16 %v517_v6, %v517_v6  ;;  %v1853_v61 = vld [vmem:[#allocation2 + $0x7c] sm:$0x8] }
  0x8e   : > { %v909_v22 = vrot.slane %v907_v8, 7  ;;  %v918_v24 = vrot.slane %v916_v51, 7  ;;  %v6153_v25 = vrot.slane %v1975_v55, 11  ;;  %v1980_v26 = vshrl.u32 %v1851_v57, 16 }
  0x8f   : > { %v1469_v28 = vsel %vm7616_vm6, %v1464_v16, %v1468_v59  ;;  %678 = vst.msk [vmem:[#allocation2 + $0xa8] sm:$0xf] %vm663_vm3, %v6399_v17  ;;  %679 = vst.msk [vmem:[#allocation2 + $0xac] sm:$0xf] %vm663_vm3, %v6400_v18  ;;  %v1983_v29 = vshll.u32 %v1851_v57, 16  ;;  %v1989_v30 = vshrl.u32 %v1852_v12, 16  ;;  %v448_v6 = vmul.f32 %v7665_v23, %v6484_v1 }
  0x90   : > { %v1992_v33 = vshll.u32 %v1852_v12, 16  ;;  %v912_v11 = vor.u32 %v910_v32, %v909_v22  ;;  %v914_v36 = vrot.slane %v909_v22, 4  ;;  %v921_v31 = vor.u32 %v919_v10, %v918_v24 }
  0x91   : > { %v6136_v37 = vcombine.low %v1459_v63, %v1469_v28  ;;  %v1982_v38 = vrot.slane %v1980_v26, 7  ;;  %v1991_v40 = vrot.slane %v1989_v30, 7  ;;  %v924_v41 = vshrl.u32 %v720_v20, 16 }
  0x92   : > { %v1471_v44 = vshrl.u32 %v1335_v27, 16  ;;  %v913_v45 = vsel %vm7405_vm2, %v7767_v15, %v912_v11  ;;  %v922_v46 = vsel %vm7405_vm2, %v914_v36, %v921_v31  ;;  %v1474_v48 = vshll.u32 %v1335_v27, 16  ;;  %v1855_v27 = vld [vmem:[#allocation2 + $0x84] sm:$0xf] }
  0x93   : > { %5049 = vmatmul.mubr.bf16.gmra.mrb[28].mxu1 %v6136_v37  ;;  %v1480_v49 = vshll.u32 %v1336_v34, 16  ;;  %v6108_v52 = vcombine.low %v913_v45, %v922_v46  ;;  %v1985_v53 = vor.u32 %v1983_v29, %v1982_v38  ;;  %v1987_v54 = vrot.slane %v1982_v38, 4 }
  0x94   : > { %v1994_v50 = vor.u32 %v1992_v33, %v1991_v40  ;;  %v6093_v55 = vrot.slane %v924_v41, 11  ;;  %v1473_v56 = vrot.slane %v1471_v44, 4  ;;  %v1476_v58 = vrot.slane %v1474_v48, 5  ;;  %v723_v33 = vld [vmem:[#allocation2 + $0xb8] sm:$0x8] }
  0x95   : > { %v1482_v59 = vrot.slane %v1480_v49, 5  ;;  %4920 = vmatmul.mubr.bf16.gmra.mrb[28].mxu0 %v6108_v52  ;;  %v1986_v15 = vsel %vm7405_vm2, %v6153_v25, %v1985_v53  ;;  %v1484_v57 = vshrl.u32 %v1336_v34, 16  ;;  %v1490_v0 = vshll.u32 %v1337_v47, 16  ;;  %v1338_v34 = vld [vmem:[#allocation2 + $0x6c] sm:$0xf] }
  0x96   : > { %v1995_v9 = vsel %vm7405_vm2, %v1987_v54, %v1994_v50  ;;  %v7133_v4 = vld [vmem:[#allocation2 + $0xa8] sm:$0xff]   ;;  %v1477_v13 = vor.u32 %v1476_v58, %v1473_v56  ;;  %v486_v8 = vadd.f32 %v7686_v19, %v7787_v60  ;;  %v449_v63 = vmul.f32 %v7665_v23, %v6487_v3  ;;  %v1339_v48 = vld [vmem:[#allocation2 + $0x70] sm:$0xf]  ;;  %v1340_v49 = vld [vmem:[#allocation2 + $0x74] sm:$0x1] }
  0x97   : > { %v6169_v5 = vcombine.low %v1986_v15, %v1995_v9  ;;  %v721_v32 = vld [vmem:[#allocation2 + $0xa8] sm:$0xf]  ;;  %v722_v51 = vld [vmem:[#allocation2 + $0xac] sm:$0xf]  ;;  %v1486_v10 = vrot.slane %v1484_v57, 4  ;;  %v1492_v12 = vrot.slane %v1490_v0, 5  ;;  %v7823_v16 = vmul.f32 %v7665_v23, %v6488_v7  ;;  %4927 = vmatprep.mubr.bf16.mxu0 %v7133_v4 }
  0x98   : > { %v929_v43 = vshrl.u32 %v721_v32, 16  ;;  %v932_v1 = vshll.u32 %v721_v32, 16  ;;  %v938_v17 = vshrl.u32 %v722_v51, 16  ;;  %v941_v18 = vshll.u32 %v722_v51, 16 }
  0x99   : > { %5056 = vmatprep.mubr.bf16.mxu1 %v6169_v5  ;;  %v1478_v60 = vrot.slane %v1477_v13, 4  ;;  %v1487_v20 = vor.u32 %v1486_v10, %v1482_v59  ;;  %v487_v22 = vadd.f32 %v7686_v19, %v448_v6  ;;  %v518_v24 = vmax.f32 %v486_v8, 0.0  ;;  %v7156_v13 = vld [vmem:[%s9232_s1 + $0x1f0] sm:$0xff]  }
  0x9a   : > { %v931_v25 = vrot.slane %v929_v43, 7  ;;  %v940_v26 = vrot.slane %v938_v17, 7  ;;  %v1997_v3 = vshrl.u32 %v1853_v61, 16  ;;  %v2002_v28 = vshrl.u32 %v1854_v62, 16  ;;  %v7845_v10 = vld [vmem:[%s7371_s24 + $0x50] sm:$0xff]   ;;  %6876 = vmatprep.subr.bf16.mxu1 %v7156_v13 }
  0x9b   : > { %v1483_v39 = vsel %vm7616_vm6, %v1478_v60, %v1482_v59  ;;  %v1488_v7 = vrot.slane %v1487_v20, 4  ;;  %v519_v29 = vmax.f32 %v487_v22, 0.0  ;;  %v6401_v30 = vpack.c.bf16 %v518_v24, %v518_v24  ;;  %v7158_v60 = vld [vmem:[%s9232_s1 + $0x1b0] sm:$0xff]  }
  0x9c   : > { %v934_v35 = vor.u32 %v932_v1, %v931_v25  ;;  %v936_v11 = vrot.slane %v931_v25, 4  ;;  %v943_v36 = vor.u32 %v941_v18, %v940_v26  ;;  %v6154_v31 = vrot.slane %v1997_v3, 11  ;;  %6877 = vmatpush3.bf16.msra.mxu1 %v7158_v60 }
  0x9d   : > { %v1493_v37 = vsel %vm7616_vm6, %v1488_v7, %v1492_v12  ;;  %v6402_v38 = vpack.c.bf16 %v519_v29, %v519_v29  ;;  %680 = vst.msk [vmem:[#allocation2 + $0xbc] sm:$0xf] %vm663_vm3, %v6401_v30  ;;  %v2004_v40 = vrot.slane %v2002_v28, 7  ;;  %v2005_v41 = vshll.u32 %v1854_v62, 16  ;;  %v1857_v30 = vld [vmem:[#allocation2 + $0x94] sm:$0xf] }
  0x9e   : > { %v935_v44 = vsel %vm7405_vm2, %v6093_v55, %v934_v35  ;;  %v944_v45 = vsel %vm7405_vm2, %v936_v11, %v943_v36  ;;  %v6137_v46 = vcombine.low %v1483_v39, %v1493_v37  ;;  %v2011_v47 = vshrl.u32 %v1855_v27, 16  ;;  %v1856_v55 = vld [vmem:[#allocation2 + $0x90] sm:$0x8]  ;;  %v1858_v11 = vld [vmem:[#allocation2 + $0x98] sm:$0xf] }
  0x9f   : > { %v6109_v52 = vcombine.low %v935_v44, %v944_v45  ;;  %681 = vst.msk [vmem:[#allocation2 + $0xc0] sm:$0xf] %vm663_vm3, %v6402_v38  ;;  %v2007_v53 = vor.u32 %v2005_v41, %v2004_v40  ;;  %v2009_v54 = vrot.slane %v2004_v40, 4  ;;  %v2014_v50 = vshll.u32 %v1855_v27, 16  ;;  %v726_v41 = vld [vmem:[#allocation2 + $0xcc] sm:$0x8] }
  0xa0   : > { %5057 = vmatmul.mubr.bf16.gmra.mrb[32].mxu1 %v6137_v46  ;;  %v2013_v21 = vrot.slane %v2011_v47, 7  ;;  %v946_v56 = vshrl.u32 %v723_v33, 16  ;;  %v1495_v58 = vshrl.u32 %v1338_v34, 16  ;;  %v1498_v59 = vshll.u32 %v1338_v34, 16  ;;  %v1341_v44 = vld [vmem:[#allocation2 + $0x80] sm:$0xf] }
  0xa1   : > { %4928 = vmatmul.mubr.bf16.gmra.mrb[32].mxu0 %v6109_v52  ;;  %v2008_v15 = vsel %vm7405_vm2, %v6154_v31, %v2007_v53  ;;  %v1504_v9 = vshll.u32 %v1339_v48, 16  ;;  %v1508_v57 = vshrl.u32 %v1339_v48, 16  ;;  %v1514_v0 = vshll.u32 %v1340_v49, 16  ;;  %v1342_v49 = vld [vmem:[#allocation2 + $0x84] sm:$0xf] }
  0xa2   : > { %v2016_v61 = vor.u32 %v2014_v50, %v2013_v21  ;;  %v7838_v62 = vrot.slane %v946_v56, 11  ;;  %v1497_v4 = vrot.slane %v1495_v58, 4  ;;  %v1500_v5 = vrot.slane %v1498_v59, 5  ;;  %v1343_v21 = vld [vmem:[#allocation2 + $0x88] sm:$0x1] }
  0xa3   : > { %v1506_v6 = vrot.slane %v1504_v9, 5  ;;  %v1510_v8 = vrot.slane %v1508_v57, 4  ;;  %v1516_v32 = vrot.slane %v1514_v0, 5  ;;  %v488_v51 = vadd.f32 %v7686_v19, %v449_v63 }
  0xa4   : > { %v2017_v12 = vsel %vm7405_vm2, %v2009_v54, %v2016_v61  ;;  %v724_v43 = vld [vmem:[#allocation2 + $0xbc] sm:$0xf]  ;;  %v1501_v1 = vor.u32 %v1500_v5, %v1497_v4  ;;  %v489_v17 = vadd.f32 %v7686_v19, %v7823_v16  ;;  %v2019_v18 = vshrl.u32 %v1856_v55, 16 }
  0xa5   : > { %v6170_v20 = vcombine.low %v2008_v15, %v2017_v12  ;;  %v951_v22 = vshrl.u32 %v724_v43, 16  ;;  %v954_v24 = vshll.u32 %v724_v43, 16  ;;  %v1511_v63 = vor.u32 %v1510_v8, %v1506_v6  ;;  %v1859_v15 = vld [vmem:[#allocation2 + $0xa4] sm:$0x8] }
  0xa6   : > { %v7136_v25 = vld [vmem:[#allocation2 + $0xbc] sm:$0xff]   ;;  %v1502_v27 = vrot.slane %v1501_v1, 4  ;;  %v6491_v3 = vunpack.c.l.bf16 %v7845_v10  ;;  %v6492_v28 = vunpack.c.h.bf16 %v7845_v10  ;;  %v520_v34 = vmax.f32 %v488_v51, 0.0 }
  0xa7   : > { %v725_v26 = vld [vmem:[#allocation2 + $0xc0] sm:$0xf]  ;;  %5064 = vmatprep.mubr.bf16.mxu1 %v6170_v20  ;;  %v953_v16 = vrot.slane %v951_v22, 7  ;;  %v1512_v29 = vrot.slane %v1511_v63, 4  ;;  %4935 = vmatprep.mubr.bf16.mxu0 %v7136_v25  ;;  %v521_v35 = vmax.f32 %v489_v17, 0.0  ;;  %v6155_v36 = vrot.slane %v2019_v18, 11 }
  0xa8   : > { %v960_v39 = vshrl.u32 %v725_v26, 16  ;;  %v963_v7 = vshll.u32 %v725_v26, 16  ;;  %v1507_v33 = vsel %vm7616_vm6, %v1502_v27, %v1506_v6  ;;  %v6403_v46 = vpack.c.bf16 %v520_v34, %v520_v34 }
  0xa9   : > { %v956_v31 = vor.u32 %v954_v24, %v953_v16  ;;  %v958_v37 = vrot.slane %v953_v16, 4  ;;  %v1517_v40 = vsel %vm7616_vm6, %v1512_v29, %v1516_v32  ;;  %v6404_v47 = vpack.c.bf16 %v521_v35, %v521_v35  ;;  %v7163_v24 = vld [vmem:[%s9232_s1 + $0x1b8] sm:$0xff]   ;;  %v1860_v16 = vld [vmem:[#allocation2 + $0xa8] sm:$0xf] }
  0xaa   : > { %v962_v38 = vrot.slane %v960_v39, 7  ;;  %v6138_v45 = vcombine.low %v1507_v33, %v1517_v40  ;;  %v2024_v48 = vshrl.u32 %v1857_v30, 16  ;;  %v2027_v54 = vshll.u32 %v1857_v30, 16  ;;  %682 = vst.msk [vmem:[#allocation2 + $0xd0] sm:$0xf] %vm663_vm3, %v6403_v46 }
  0xab   : > { %v957_v52 = vsel %vm7405_vm2, %v7838_v62, %v956_v31  ;;  %v2033_v50 = vshrl.u32 %v1858_v11, 16  ;;  %683 = vst.msk [vmem:[#allocation2 + $0xd4] sm:$0xf] %vm663_vm3, %v6404_v47  ;;  %v2036_v58 = vshll.u32 %v1858_v11, 16  ;;  %v968_v59 = vshrl.u32 %v726_v41, 16  ;;  %v7161_v62 = vld [vmem:[%s9232_s1 + $0x1f8] sm:$0xff]  }
  0xac   : > { %v965_v53 = vor.u32 %v963_v7, %v962_v38  ;;  %5065 = vmatmul.mubr.bf16.gmra.mrb[36].mxu1 %v6138_v45  ;;  %v2026_v56 = vrot.slane %v2024_v48, 7  ;;  %v1519_v55 = vshrl.u32 %v1341_v44, 16  ;;  %v1522_v0 = vshll.u32 %v1341_v44, 16  ;;  %6878 = vmatprep.subr.bf16.mxu1 %v7161_v62  ;;  %v1861_v31 = vld [vmem:[#allocation2 + $0xac] sm:$0xf] }
  0xad   : > { %v2035_v57 = vrot.slane %v2033_v50, 7  ;;  %v1528_v61 = vshll.u32 %v1342_v49, 16  ;;  %v7870_v6 = vrot.slane %v968_v59, 11  ;;  %v1532_v43 = vshrl.u32 %v1342_v49, 16  ;;  %6879 = vmatpush3.bf16.msra.mxu1 %v7163_v24  ;;  %v1344_v48 = vld [vmem:[#allocation2 + $0x94] sm:$0xf] }
  0xae   : > { %v966_v9 = vsel %vm7405_vm2, %v958_v37, %v965_v53  ;;  %v2029_v5 = vor.u32 %v2027_v54, %v2026_v56  ;;  %v2031_v13 = vrot.slane %v2026_v56, 4  ;;  %v1521_v32 = vrot.slane %v1519_v55, 4  ;;  %v1345_v50 = vld [vmem:[#allocation2 + $0x98] sm:$0xf]  ;;  %v1346_v62 = vld [vmem:[#allocation2 + $0x9c] sm:$0x1] }
  0xaf   : > { %v6110_v4 = vcombine.low %v957_v52, %v966_v9  ;;  %v2038_v8 = vor.u32 %v2036_v58, %v2035_v57  ;;  %v1524_v51 = vrot.slane %v1522_v0, 5  ;;  %v1530_v10 = vrot.slane %v1528_v61, 5  ;;  %v7899_v24 = vld [vmem:[%s7371_s24 + $0x78] sm:$0xff]  }
  0xb0   : > { %v2030_v12 = vsel %vm7405_vm2, %v6155_v36, %v2029_v5  ;;  %v1538_v1 = vshll.u32 %v1343_v21, 16  ;;  %v451_v17 = vmul.f32 %v7665_v23, %v6491_v3  ;;  %v452_v20 = vmul.f32 %v7665_v23, %v6492_v28 }
  0xb1   : > { %4936 = vmatmul.mubr.bf16.gmra.mrb[36].mxu0 %v6110_v4  ;;  %v2039_v18 = vsel %vm7405_vm2, %v2031_v13, %v2038_v8  ;;  %v1525_v60 = vor.u32 %v1524_v51, %v1521_v32  ;;  %v2041_v22 = vshrl.u32 %v1859_v15, 16  ;;  %v1534_v25 = vrot.slane %v1532_v43, 4  ;;  %v727_v29 = vld [vmem:[#allocation2 + $0xd0] sm:$0xf] }
  0xb2   : > { %v6171_v63 = vcombine.low %v2030_v12, %v2039_v18  ;;  %v1540_v26 = vrot.slane %v1538_v1, 5  ;;  %v490_v27 = vadd.f32 %v7686_v19, %v451_v17  ;;  %v7139_v39 = vld [vmem:[#allocation2 + $0xd0] sm:$0xff]   ;;  %v491_v3 = vadd.f32 %v7686_v19, %v452_v20  ;;  %v729_v19 = vld [vmem:[#allocation2 + $0xe0] sm:$0x8]  ;;  %v1863_v12 = vld [vmem:[#allocation2 + $0xbc] sm:$0xf] }
  0xb3   : > { %v1526_v7 = vrot.slane %v1525_v60, 4  ;;  %v728_v30 = vld [vmem:[#allocation2 + $0xd4] sm:$0xf]  ;;  %v1535_v23 = vor.u32 %v1534_v25, %v1530_v10  ;;  %v6156_v33 = vrot.slane %v2041_v22, 11  ;;  %4943 = vmatprep.mubr.bf16.mxu0 %v7139_v39  ;;  %v973_v34 = vshrl.u32 %v727_v29, 16 }
  0xb4   : > { %5072 = vmatprep.mubr.bf16.mxu1 %v6171_v63  ;;  %v522_v28 = vmax.f32 %v490_v27, 0.0  ;;  %v976_v35 = vshll.u32 %v727_v29, 16  ;;  %v982_v11 = vshrl.u32 %v728_v30, 16  ;;  %v985_v36 = vshll.u32 %v728_v30, 16 }
  0xb5   : > { %v1531_v37 = vsel %vm7616_vm6, %v1526_v7, %v1530_v10  ;;  %v1536_v38 = vrot.slane %v1535_v23, 4  ;;  %v523_v40 = vmax.f32 %v491_v3, 0.0  ;;  %v975_v44 = vrot.slane %v973_v34, 7  ;;  %v1862_v10 = vld [vmem:[#allocation2 + $0xb8] sm:$0x8] }
  0xb6   : > { %v6405_v41 = vpack.c.bf16 %v522_v28, %v522_v28  ;;  %v984_v45 = vrot.slane %v982_v11, 7  ;;  %v2046_v46 = vshrl.u32 %v1860_v16, 16  ;;  %v2049_v47 = vshll.u32 %v1860_v16, 16 }
  0xb7   : > { %v1541_v49 = vsel %vm7616_vm6, %v1536_v38, %v1540_v26  ;;  %v6406_v52 = vpack.c.bf16 %v523_v40, %v523_v40  ;;  %v2055_v53 = vshrl.u32 %v1861_v31, 16  ;;  %v2058_v54 = vshll.u32 %v1861_v31, 16  ;;  %v1864_v38 = vld [vmem:[#allocation2 + $0xc0] sm:$0xf] }
  0xb8   : > { %684 = vst.msk [vmem:[#allocation2 + $0xe4] sm:$0xf] %vm663_vm3, %v6405_v41  ;;  %v978_v21 = vor.u32 %v976_v35, %v975_v44  ;;  %v980_v56 = vrot.slane %v975_v44, 4  ;;  %v987_v58 = vor.u32 %v985_v36, %v984_v45  ;;  %v6139_v59 = vcombine.low %v1531_v37, %v1541_v49  ;;  %v2463_v45 = vld [vmem:[#allocation2 + $0x20] sm:$0xf] }
  0xb9   : > { %685 = vst.msk [vmem:[#allocation2 + $0xe8] sm:$0xf] %vm663_vm3, %v6406_v52  ;;  %v2048_v55 = vrot.slane %v2046_v46, 7  ;;  %v2057_v15 = vrot.slane %v2055_v53, 7  ;;  %v990_v9 = vshrl.u32 %v729_v19, 16  ;;  %v1543_v57 = vshrl.u32 %v1344_v48, 16 }
  0xba   : > { %v979_v0 = vsel %vm7405_vm2, %v7870_v6, %v978_v21  ;;  %v988_v61 = vsel %vm7405_vm2, %v980_v56, %v987_v58  ;;  %5073 = vmatmul.mubr.bf16.gmra.mrb[40].mxu1 %v6139_v59  ;;  %v1546_v4 = vshll.u32 %v1344_v48, 16  ;;  %v1552_v5 = vshll.u32 %v1345_v50, 16  ;;  %v2464_v52 = vld [vmem:[#allocation2 + $0x24] sm:$0x1]  ;;  %v1347_v56 = vld [vmem:[#allocation2 + $0xa8] sm:$0xf] }
  0xbb   : > { %v6111_v13 = vcombine.low %v979_v0, %v988_v61  ;;  %v2051_v8 = vor.u32 %v2049_v47, %v2048_v55  ;;  %v2053_v32 = vrot.slane %v2048_v55, 4  ;;  %v2060_v51 = vor.u32 %v2058_v54, %v2057_v15 }
  0xbc   : > { %v6096_v43 = vrot.slane %v990_v9, 11  ;;  %v1545_v1 = vrot.slane %v1543_v57, 4  ;;  %v1548_v17 = vrot.slane %v1546_v4, 5  ;;  %v1554_v18 = vrot.slane %v1552_v5, 5  ;;  %v1348_v9 = vld [vmem:[#allocation2 + $0xac] sm:$0xf] }
  0xbd   : > { %4944 = vmatmul.mubr.bf16.gmra.mrb[40].mxu0 %v6111_v13  ;;  %v2052_v6 = vsel %vm7405_vm2, %v6156_v33, %v2051_v8  ;;  %v2061_v60 = vsel %vm7405_vm2, %v2053_v32, %v2060_v51  ;;  %v1556_v20 = vshrl.u32 %v1345_v50, 16  ;;  %v1562_v22 = vshll.u32 %v1346_v62, 16  ;;  %v2462_v33 = vld [vmem:[#allocation2 + $0x1c] sm:$0xf]  ;;  %v1349_v32 = vld [vmem:[#allocation2 + $0xb0] sm:$0x1] }
  0xbe   : > { %v6172_v63 = vcombine.low %v2052_v6, %v2061_v60  ;;  %v1549_v26 = vor.u32 %v1548_v17, %v1545_v1  ;;  %v2063_v27 = vshrl.u32 %v1862_v10, 16  ;;  %v2068_v16 = vshrl.u32 %v1863_v12, 16 }
  0xbf   : > { %v730_v25 = vld [vmem:[#allocation2 + $0xe4] sm:$0xf]  ;;  %v1558_v3 = vrot.slane %v1556_v20, 4  ;;  %v1564_v29 = vrot.slane %v1562_v22, 5  ;;  %v6511_v34 = vunpack.c.l.bf16 %v7899_v24  ;;  %v6512_v35 = vunpack.c.h.bf16 %v7899_v24 }
  0xc0   : > { %v995_v39 = vshrl.u32 %v730_v25, 16  ;;  %v998_v7 = vshll.u32 %v730_v25, 16  ;;  %v7144_v30 = vld [vmem:[#allocation2 + $0xe4] sm:$0xff]   ;;  %5080 = vmatprep.mubr.bf16.mxu1 %v6172_v63  ;;  %v1550_v28 = vrot.slane %v1549_v26, 4  ;;  %v6157_v41 = vrot.slane %v2063_v27, 11 }
  0xc1   : > { %v731_v23 = vld [vmem:[#allocation2 + $0xe8] sm:$0xf]  ;;  %v1559_v37 = vor.u32 %v1558_v3, %v1554_v18  ;;  %4951 = vmatprep.mubr.bf16.mxu0 %v7144_v30  ;;  %v2070_v19 = vrot.slane %v2068_v16, 7  ;;  %v2071_v44 = vshll.u32 %v1863_v12, 16  ;;  %v2077_v50 = vshrl.u32 %v1864_v38, 16 }
  0xc2   : > { %v997_v11 = vrot.slane %v995_v39, 7  ;;  %v1004_v36 = vshrl.u32 %v731_v23, 16  ;;  %v1007_v31 = vshll.u32 %v731_v23, 16  ;;  %v1555_v40 = vsel %vm7616_vm6, %v1550_v28, %v1554_v18  ;;  %v1865_v25 = vld [vmem:[#allocation2 + $0xcc] sm:$0x8] }
  0xc3   : > { %v1560_v49 = vrot.slane %v1559_v37, 4  ;;  %v2073_v53 = vor.u32 %v2071_v44, %v2070_v19  ;;  %v2075_v54 = vrot.slane %v2070_v19, 4  ;;  %v2080_v21 = vshll.u32 %v1864_v38, 16  ;;  %v1866_v26 = vld [vmem:[#allocation2 + $0xd0] sm:$0xf] }
  0xc4   : > { %v1000_v46 = vor.u32 %v998_v7, %v997_v11  ;;  %v1002_v47 = vrot.slane %v997_v11, 4  ;;  %v1006_v48 = vrot.slane %v1004_v36, 7  ;;  %v2511_v15 = vshrl.u32 %v2462_v33, 16  ;;  %v1867_v11 = vld [vmem:[#allocation2 + $0xd4] sm:$0xf] }
  0xc5   : > { %v1565_v55 = vsel %vm7616_vm6, %v1560_v49, %v1564_v29  ;;  %v2074_v0 = vsel %vm7405_vm2, %v6157_v41, %v2073_v53  ;;  %v2079_v61 = vrot.slane %v2077_v50, 7  ;;  %v2514_v62 = vshll.u32 %v2462_v33, 16  ;;  %v2465_v19 = vld [vmem:[#allocation2 + $0x30] sm:$0xf]  ;;  %v2466_v49 = vld [vmem:[#allocation2 + $0x34] sm:$0xf] }
  0xc6   : > { %v1001_v58 = vsel %vm7405_vm2, %v6096_v43, %v1000_v46  ;;  %v1009_v59 = vor.u32 %v1007_v31, %v1006_v48  ;;  %v6140_v57 = vcombine.low %v1555_v40, %v1565_v55  ;;  %v2513_v5 = vrot.slane %v2511_v15, 4  ;;  %v7145_v46 = vld [vmem:[#allocation2 + $0x1c] sm:$0xff]   ;;  %v7152_v15 = vld [vmem:[%s9232_s1 + $0x208] sm:$0xff]  }
  0xc7   : > { %v2520_v13 = vshll.u32 %v2463_v45, 16  ;;  %v2524_v8 = vshrl.u32 %v2463_v45, 16  ;;  %v2082_v10 = vor.u32 %v2080_v21, %v2079_v61  ;;  %v2516_v12 = vrot.slane %v2514_v62, 5  ;;  %v2467_v21 = vld [vmem:[#allocation2 + $0x38] sm:$0x1] }
  0xc8   : > { %v1010_v4 = vsel %vm7405_vm2, %v1002_v47, %v1009_v59  ;;  %5081 = vmatmul.mubr.bf16.gmra.mrb[44].mxu1 %v6140_v57  ;;  %v2530_v43 = vshll.u32 %v2464_v52, 16  ;;  %v1567_v18 = vshrl.u32 %v1347_v56, 16  ;;  %v1570_v6 = vshll.u32 %v1347_v56, 16  ;;  %v1350_v62 = vld [vmem:[#allocation2 + $0xbc] sm:$0xf] }
  0xc9   : > { %v6112_v51 = vcombine.low %v1001_v58, %v1010_v4  ;;  %v2522_v1 = vrot.slane %v2520_v13, 5  ;;  %v2526_v17 = vrot.slane %v2524_v8, 4  ;;  %v2083_v60 = vsel %vm7405_vm2, %v2075_v54, %v2082_v10 }
  0xca   : > { %v2517_v20 = vor.u32 %v2516_v12, %v2513_v5  ;;  %v2532_v22 = vrot.slane %v2530_v43, 5  ;;  %v1576_v63 = vshll.u32 %v1348_v9, 16  ;;  %v6173_v27 = vcombine.low %v2074_v0, %v2083_v60 }
  0xcb   : > { %4952 = vmatmul.mubr.bf16.gmra.mrb[44].mxu0 %v6112_v51  ;;  %v2527_v16 = vor.u32 %v2526_v17, %v2522_v1  ;;  %v1569_v39 = vrot.slane %v1567_v18, 4  ;;  %v1572_v7 = vrot.slane %v1570_v6, 5  ;;  %v1580_v30 = vshrl.u32 %v1348_v9, 16  ;;  %v1352_v6 = vld [vmem:[#allocation2 + $0xc4] sm:$0x1] }
  0xcc   : > { %v2518_v3 = vrot.slane %v2517_v20, 4  ;;  %v1578_v29 = vrot.slane %v1576_v63, 5  ;;  %v1586_v23 = vshll.u32 %v1349_v32, 16  ;;  %5088 = vmatprep.mubr.bf16.mxu1 %v6173_v27  ;;  %v2085_v36 = vshrl.u32 %v1865_v25, 16  ;;  %v1351_v32 = vld [vmem:[#allocation2 + $0xc0] sm:$0xf] }
  0xcd   : > { %v2528_v28 = vrot.slane %v2527_v16, 4  ;;  %v1573_v33 = vor.u32 %v1572_v7, %v1569_v39  ;;  %v2090_v31 = vshrl.u32 %v1866_v26, 16  ;;  %v1582_v38 = vrot.slane %v1580_v30, 4  ;;  %v7157_v20 = vld [vmem:[%s9232_s1 + $0x210] sm:$0xff]   ;;  %v1869_v27 = vld [vmem:[#allocation2 + $0xe4] sm:$0xf] }
  0xce   : > { %v2523_v37 = vsel %vm7616_vm6, %v2518_v3, %v2522_v1  ;;  %v1588_v40 = vrot.slane %v1586_v23, 5  ;;  %v2093_v41 = vshll.u32 %v1866_v26, 16  ;;  %v6158_v47 = vrot.slane %v2085_v36, 11  ;;  %v7162_v30 = vld [vmem:[%s9232_s1 + $0x218] sm:$0xff]   ;;  %v2468_v36 = vld [vmem:[#allocation2 + $0x44] sm:$0xf] }
  0xcf   : > { %v2533_v44 = vsel %vm7616_vm6, %v2528_v28, %v2532_v22  ;;  %v1574_v45 = vrot.slane %v1573_v33, 4  ;;  %v2092_v48 = vrot.slane %v2090_v31, 7  ;;  %v1583_v53 = vor.u32 %v1582_v38, %v1578_v29  ;;  %v7149_v38 = vld [vmem:[#allocation2 + $0x30] sm:$0xff]  }
  0xd0   : > { %v6197_v52 = vcombine.low %v2523_v37, %v2533_v44  ;;  %v2099_v54 = vshrl.u32 %v1867_v11, 16  ;;  %v2102_v50 = vshll.u32 %v1867_v11, 16  ;;  %v2535_v55 = vshrl.u32 %v2465_v19, 16 }
  0xd1   : > { %v1579_v56 = vsel %vm7616_vm6, %v1574_v45, %v1578_v29  ;;  %v2095_v58 = vor.u32 %v2093_v41, %v2092_v48  ;;  %v2097_v59 = vrot.slane %v2092_v48, 4  ;;  %v1584_v9 = vrot.slane %v1583_v53, 4  ;;  %v1870_v29 = vld [vmem:[#allocation2 + $0xe8] sm:$0xf] }
  0xd2   : > { %5185 = vmatprep.mubr.bf16.mxu0 %v6197_v52  ;;  %v2101_v57 = vrot.slane %v2099_v54, 7  ;;  %v2538_v0 = vshll.u32 %v2465_v19, 16  ;;  %v2544_v61 = vshll.u32 %v2466_v49, 16  ;;  %v2537_v5 = vrot.slane %v2535_v55, 4  ;;  %v2469_v19 = vld [vmem:[#allocation2 + $0x48] sm:$0xf] }
  0xd3   : > { %5186 = vmatmul.mubr.bf16.vlgmr.msra.gmra.mrb[48].mxu0 %v7145_v46  ;;  %v2096_v4 = vsel %vm7405_vm2, %v6158_v47, %v2095_v58  ;;  %v2548_v13 = vshrl.u32 %v2466_v49, 16  ;;  %v2554_v8 = vshll.u32 %v2467_v21, 16  ;;  %v1589_v51 = vsel %vm7616_vm6, %v1584_v9, %v1588_v40 }
  0xd4   : > { %7001 = vmatpush3.bf16.msra.mxu0 %v7765_v2  ;;  %v2104_v10 = vor.u32 %v2102_v50, %v2101_v57  ;;  %v2540_v12 = vrot.slane %v2538_v0, 5  ;;  %v2546_v43 = vrot.slane %v2544_v61, 5  ;;  %v6141_v1 = vcombine.low %v1579_v56, %v1589_v51  ;;  %v1868_v2 = vld [vmem:[#allocation2 + $0xe0] sm:$0x8] }
  0xd5   : > { %v2550_v17 = vrot.slane %v2548_v13, 4  ;;  %v2556_v18 = vrot.slane %v2554_v8, 5  ;;  %v1591_v60 = vshrl.u32 %v1350_v62, 16  ;;  %7002 = vmatprep.subr.bf16.mxu0 %v7152_v15  ;;  %v1594_v25 = vshll.u32 %v1350_v62, 16  ;;  %v7167_v57 = vld [vmem:[%s9232_s1 + $0x220] sm:$0xff]  }
  0xd6   : > { %v2105_v22 = vsel %vm7405_vm2, %v2097_v59, %v2104_v10  ;;  %v2541_v63 = vor.u32 %v2540_v12, %v2537_v5  ;;  %v1600_v26 = vshll.u32 %v1351_v32, 16  ;;  %5089 = vmatmul.mubr.bf16.gmra.mrb[48].mxu1 %v6141_v1  ;;  %v1604_v3 = vshrl.u32 %v1351_v32, 16  ;;  %v1353_v5 = vld [vmem:[#allocation2 + $0xd0] sm:$0xf]  ;;  %v1354_v10 = vld [vmem:[#allocation2 + $0xd4] sm:$0xf] }
  0xd7   : > { %v6174_v16 = vcombine.low %v2096_v4, %v2105_v22  ;;  %v2551_v39 = vor.u32 %v2550_v17, %v2546_v43  ;;  %v1593_v7 = vrot.slane %v1591_v60, 4  ;;  %v1596_v28 = vrot.slane %v1594_v25, 5  ;;  %v1872_v60 = vld [vmem:[#allocation2 + $0xf8] sm:$0xf] }
  0xd8   : > { %v2542_v23 = vrot.slane %v2541_v63, 4  ;;  %v1602_v33 = vrot.slane %v1600_v26, 5  ;;  %v1610_v11 = vshll.u32 %v1352_v6, 16  ;;  %7003 = vmatpush3.bf16.msra.mxu0 %v7152_v15  ;;  %v1606_v37 = vrot.slane %v1604_v3, 4  ;;  %v2470_v15 = vld [vmem:[#allocation2 + $0x4c] sm:$0x1] }
  0xd9   : > { %5096 = vmatprep.mubr.bf16.mxu1 %v6174_v16  ;;  %v2552_v31 = vrot.slane %v2551_v39, 4  ;;  %v2107_v40 = vshrl.u32 %v1868_v2, 16  ;;  %v2112_v41 = vshrl.u32 %v1869_v27, 16  ;;  %7004 = vmatprep.subr.bf16.mxu0 %v7157_v20  ;;  %v1597_v45 = vor.u32 %v1596_v28, %v1593_v7  ;;  %v1871_v6 = vld [vmem:[#allocation2 + $0xf4] sm:$0x8]  ;;  %v7172_v26 = vld [vmem:[%s9232_s1 + $0x228] sm:$0xff]  }
  0xda   : > { %v2547_v44 = vsel %vm7616_vm6, %v2542_v23, %v2546_v43  ;;  %v1612_v46 = vrot.slane %v1610_v11, 5  ;;  %v2115_v47 = vshll.u32 %v1869_v27, 16  ;;  %v1607_v49 = vor.u32 %v1606_v37, %v1602_v33  ;;  %v1873_v23 = vld [vmem:[#allocation2 + $0xfc] sm:$0xf]  ;;  %v7177_v37 = vld [vmem:[%s9232_s1 + $0x230] sm:$0xff]  }
  0xdb   : > { %v2557_v48 = vsel %vm7616_vm6, %v2552_v31, %v2556_v18  ;;  %v6159_v52 = vrot.slane %v2107_v40, 11  ;;  %v2114_v53 = vrot.slane %v2112_v41, 7  ;;  %v1598_v50 = vrot.slane %v1597_v45, 4  ;;  %v1355_v18 = vld [vmem:[#allocation2 + $0xd8] sm:$0x1] }
  0xdc   : > { %v6198_v54 = vcombine.low %v2547_v44, %v2557_v48  ;;  %v2121_v21 = vshrl.u32 %v1870_v29, 16  ;;  %v2124_v56 = vshll.u32 %v1870_v29, 16  ;;  %7005 = vmatpush3.bf16.msra.mxu0 %v7157_v20  ;;  %v1608_v58 = vrot.slane %v1607_v49, 4  ;;  %v2471_v31 = vld [vmem:[#allocation2 + $0x58] sm:$0xf] }
  0xdd   : > { %v2117_v59 = vor.u32 %v2115_v47, %v2114_v53  ;;  %v2119_v55 = vrot.slane %v2114_v53, 4  ;;  %v2559_v9 = vshrl.u32 %v2468_v36, 16  ;;  %7006 = vmatprep.subr.bf16.mxu0 %v7162_v30  ;;  %v1603_v0 = vsel %vm7616_vm6, %v1598_v50, %v1602_v33  ;;  %v2472_v48 = vld [vmem:[#allocation2 + $0x5c] sm:$0xf]  ;;  %v7150_v53 = vld [vmem:[#allocation2 + $0x44] sm:$0xff]  }
  0xde   : > { %5193 = vmatprep.mubr.bf16.mxu0 %v6198_v54  ;;  %v2123_v61 = vrot.slane %v2121_v21, 7  ;;  %v2562_v62 = vshll.u32 %v2468_v36, 16  ;;  %v2568_v4 = vshll.u32 %v2469_v19, 16  ;;  %v1613_v13 = vsel %vm7616_vm6, %v1608_v58, %v1612_v46 }
  0xdf   : > { %5194 = vmatmul.mubr.bf16.gmra.mrb[52].mxu0 %v7149_v38  ;;  %v2118_v8 = vsel %vm7405_vm2, %v6159_v52, %v2117_v59  ;;  %v2561_v32 = vrot.slane %v2559_v9, 4  ;;  %v2572_v51 = vshrl.u32 %v2469_v19, 16  ;;  %v6142_v12 = vcombine.low %v1603_v0, %v1613_v13 }
  0xe0   : > { %v2126_v43 = vor.u32 %v2124_v56, %v2123_v61  ;;  %v2564_v1 = vrot.slane %v2562_v62, 5  ;;  %v2570_v17 = vrot.slane %v2568_v4, 5  ;;  %7007 = vmatpush3.bf16.msra.mxu0 %v7162_v30  ;;  %v2578_v22 = vshll.u32 %v2470_v15, 16  ;;  %v1356_v61 = vld [vmem:[#allocation2 + $0xe4] sm:$0xf]  ;;  %v7182_v62 = vld [vmem:[%s9232_s1 + $0x238] sm:$0xff]  }
  0xe1   : > { %v2574_v20 = vrot.slane %v2572_v51, 4  ;;  %v1615_v63 = vshrl.u32 %v1353_v5, 16  ;;  %v1618_v25 = vshll.u32 %v1353_v5, 16  ;;  %7008 = vmatprep.subr.bf16.mxu0 %v7167_v57  ;;  %5097 = vmatmul.mubr.bf16.gmra.mrb[52].mxu1 %v6142_v12  ;;  %v1624_v16 = vshll.u32 %v1354_v10, 16 }
  0xe2   : > { %v2127_v2 = vsel %vm7405_vm2, %v2119_v55, %v2126_v43  ;;  %v2565_v27 = vor.u32 %v2564_v1, %v2561_v32  ;;  %v1628_v39 = vshrl.u32 %v1354_v10, 16  ;;  %v2580_v29 = vrot.slane %v2578_v22, 5  ;;  %v2473_v55 = vld [vmem:[#allocation2 + $0x60] sm:$0x1]  ;;  %v1357_v32 = vld [vmem:[#allocation2 + $0xe8] sm:$0xf] }
  0xe3   : > { %v6175_v7 = vcombine.low %v2118_v8, %v2127_v2  ;;  %v2575_v3 = vor.u32 %v2574_v20, %v2570_v17  ;;  %v1617_v30 = vrot.slane %v1615_v63, 4  ;;  %v1620_v33 = vrot.slane %v1618_v25, 5  ;;  %v1358_v1 = vld [vmem:[#allocation2 + $0xec] sm:$0x1]  ;;  %v1874_v20 = vld [vmem:[#allocation2 + $0x108] sm:$0x8] }
  0xe4   : > { %v2566_v28 = vrot.slane %v2565_v27, 4  ;;  %v1626_v11 = vrot.slane %v1624_v16, 5  ;;  %v1630_v36 = vrot.slane %v1628_v39, 4  ;;  %7009 = vmatpush3.bf16.msra.mxu0 %v7167_v57  ;;  %v1634_v40 = vshll.u32 %v1355_v18, 16  ;;  %v1875_v2 = vld [vmem:[#allocation2 + $0x10c] sm:$0xf] }
  0xe5   : > { %5104 = vmatprep.mubr.bf16.mxu1 %v6175_v7  ;;  %v2576_v38 = vrot.slane %v2575_v3, 4  ;;  %v2129_v41 = vshrl.u32 %v1871_v6, 16  ;;  %v2134_v19 = vshrl.u32 %v1872_v60, 16  ;;  %7010 = vmatprep.subr.bf16.mxu0 %v7172_v26  ;;  %v1621_v45 = vor.u32 %v1620_v33, %v1617_v30  ;;  %v1876_v3 = vld [vmem:[#allocation2 + $0x110] sm:$0xf] }
  0xe6   : > { %v2571_v44 = vsel %vm7616_vm6, %v2566_v28, %v2570_v17  ;;  %v1631_v46 = vor.u32 %v1630_v36, %v1626_v11  ;;  %v2137_v47 = vshll.u32 %v1872_v60, 16  ;;  %v1636_v52 = vrot.slane %v1634_v40, 5 }
  0xe7   : > { %v2581_v49 = vsel %vm7616_vm6, %v2576_v38, %v2580_v29  ;;  %v6160_v54 = vrot.slane %v2129_v41, 11  ;;  %v2136_v50 = vrot.slane %v2134_v19, 7  ;;  %v1622_v56 = vrot.slane %v1621_v45, 4  ;;  %v2474_v19 = vld [vmem:[#allocation2 + $0x6c] sm:$0xf] }
  0xe8   : > { %v6199_v21 = vcombine.low %v2571_v44, %v2581_v49  ;;  %v1632_v58 = vrot.slane %v1631_v46, 4  ;;  %v2143_v59 = vshrl.u32 %v1873_v23, 16  ;;  %7011 = vmatpush3.bf16.msra.mxu0 %v7172_v26  ;;  %v2146_v57 = vshll.u32 %v1873_v23, 16  ;;  %v7154_v49 = vld [vmem:[#allocation2 + $0x58] sm:$0xff]  }
  0xe9   : > { %v2139_v15 = vor.u32 %v2137_v47, %v2136_v50  ;;  %v2141_v9 = vrot.slane %v2136_v50, 4  ;;  %v2583_v0 = vshrl.u32 %v2471_v31, 16  ;;  %7012 = vmatprep.subr.bf16.mxu0 %v7177_v37  ;;  %v1627_v4 = vsel %vm7616_vm6, %v1622_v56, %v1626_v11 }
  0xea   : > { %5201 = vmatprep.mubr.bf16.mxu0 %v6199_v21  ;;  %v1637_v5 = vsel %vm7616_vm6, %v1632_v58, %v1636_v52  ;;  %v2145_v13 = vrot.slane %v2143_v59, 7  ;;  %v2586_v8 = vshll.u32 %v2471_v31, 16  ;;  %v2592_v43 = vshll.u32 %v2472_v48, 16  ;;  %v2475_v58 = vld [vmem:[#allocation2 + $0x70] sm:$0xf] }
  0xeb   : > { %v6143_v51 = vcombine.low %v1627_v4, %v1637_v5  ;;  %5202 = vmatmul.mubr.bf16.gmra.mrb[56].mxu0 %v7150_v53  ;;  %v2140_v10 = vsel %vm7405_vm2, %v6160_v54, %v2139_v15  ;;  %v2585_v12 = vrot.slane %v2583_v0, 4  ;;  %v2596_v6 = vshrl.u32 %v2472_v48, 16  ;;  %v2476_v59 = vld [vmem:[#allocation2 + $0x74] sm:$0x1] }
  0xec   : > { %v2148_v17 = vor.u32 %v2146_v57, %v2145_v13  ;;  %v2588_v18 = vrot.slane %v2586_v8, 5  ;;  %v2602_v60 = vshll.u32 %v2473_v55, 16  ;;  %7013 = vmatpush3.bf16.msra.mxu0 %v7177_v37  ;;  %v2594_v22 = vrot.slane %v2592_v43, 5  ;;  %v1360_v8 = vld [vmem:[#allocation2 + $0xfc] sm:$0xf] }
  0xed   : > { %5105 = vmatmul.mubr.bf16.gmra.mrb[56].mxu1 %v6143_v51  ;;  %v1639_v63 = vshrl.u32 %v1356_v61, 16  ;;  %v1642_v25 = vshll.u32 %v1356_v61, 16  ;;  %v1648_v26 = vshll.u32 %v1357_v32, 16  ;;  %7014 = vmatprep.subr.bf16.mxu0 %v7182_v62  ;;  %v2598_v39 = vrot.slane %v2596_v6, 4  ;;  %v1359_v61 = vld [vmem:[#allocation2 + $0xf8] sm:$0xf] }
  0xee   : > { %v2149_v27 = vsel %vm7405_vm2, %v2141_v9, %v2148_v17  ;;  %v2589_v16 = vor.u32 %v2588_v18, %v2585_v12  ;;  %v2604_v7 = vrot.slane %v2602_v60, 5  ;;  %v1652_v36 = vshrl.u32 %v1357_v32, 16  ;;  %v1361_v18 = vld [vmem:[#allocation2 + $0x100] sm:$0x1] }
  0xef   : > { %v6176_v29 = vcombine.low %v2140_v10, %v2149_v27  ;;  %v1641_v30 = vrot.slane %v1639_v63, 4  ;;  %v1644_v23 = vrot.slane %v1642_v25, 5  ;;  %v1650_v28 = vrot.slane %v1648_v26, 5  ;;  %v1877_v25 = vld [vmem:[#allocation2 + $0x11c] sm:$0x8] }
  0xf0   : > { %v2590_v33 = vrot.slane %v2589_v16, 4  ;;  %v2599_v11 = vor.u32 %v2598_v39, %v2594_v22  ;;  %v1658_v31 = vshll.u32 %v1358_v1, 16  ;;  %7015 = vmatpush3.bf16.msra.mxu0 %v7182_v62  ;;  %v2151_v38 = vshrl.u32 %v1874_v20, 16  ;;  %v1878_v39 = vld [vmem:[#allocation2 + $0x120] sm:$0xf] }
  0xf1   : > { %5112 = vmatprep.mubr.bf16.mxu1 %v6176_v29  ;;  %v1645_v37 = vor.u32 %v1644_v23, %v1641_v30  ;;  %v2156_v40 = vshrl.u32 %v1875_v2, 16  ;;  %v2159_v41 = vshll.u32 %v1875_v2, 16  ;;  %v1654_v46 = vrot.slane %v1652_v36, 4  ;;  %v1879_v23 = vld [vmem:[#allocation2 + $0x124] sm:$0xf] }
  0xf2   : > { %v2595_v44 = vsel %vm7616_vm6, %v2590_v33, %v2594_v22  ;;  %v2600_v45 = vrot.slane %v2599_v11, 4  ;;  %v1660_v47 = vrot.slane %v1658_v31, 5  ;;  %v6161_v52 = vrot.slane %v2151_v38, 11  ;;  %v2477_v31 = vld [vmem:[#allocation2 + $0x80] sm:$0xf] }
  0xf3   : > { %v1646_v48 = vrot.slane %v1645_v37, 4  ;;  %v2158_v53 = vrot.slane %v2156_v40, 7  ;;  %v2165_v54 = vshrl.u32 %v1876_v3, 16  ;;  %v1655_v21 = vor.u32 %v1654_v46, %v1650_v28 }
  0xf4   : > { %v2605_v50 = vsel %vm7616_vm6, %v2600_v45, %v2604_v7  ;;  %v2168_v56 = vshll.u32 %v1876_v3, 16  ;;  %v2607_v55 = vshrl.u32 %v2474_v19, 16  ;;  %v2610_v13 = vshll.u32 %v2474_v19, 16 }
  0xf5   : > { %v6200_v15 = vcombine.low %v2595_v44, %v2605_v50  ;;  %v1651_v9 = vsel %vm7616_vm6, %v1646_v48, %v1650_v28  ;;  %v2161_v57 = vor.u32 %v2159_v41, %v2158_v53  ;;  %v2163_v0 = vrot.slane %v2158_v53, 4  ;;  %v7155_v41 = vld [vmem:[#allocation2 + $0x6c] sm:$0xff]   ;;  %v2478_v44 = vld [vmem:[#allocation2 + $0x84] sm:$0xf] }
  0xf6   : > { %v1656_v62 = vrot.slane %v1655_v21, 4  ;;  %v2167_v4 = vrot.slane %v2165_v54, 7  ;;  %v2609_v5 = vrot.slane %v2607_v55, 4  ;;  %v2616_v51 = vshll.u32 %v2475_v58, 16 }
  0xf7   : > { %5209 = vmatprep.mubr.bf16.mxu0 %v6200_v15  ;;  %v2162_v32 = vsel %vm7405_vm2, %v6161_v52, %v2161_v57  ;;  %v2620_v10 = vshrl.u32 %v2475_v58, 16  ;;  %v2626_v12 = vshll.u32 %v2476_v59, 16  ;;  %v2612_v17 = vrot.slane %v2610_v13, 5  ;;  %v1362_v13 = vld [vmem:[#allocation2 + $0x10c] sm:$0xf] }
  0xf8   : > { %v1661_v43 = vsel %vm7616_vm6, %v1656_v62, %v1660_v47  ;;  %5210 = vmatmul.mubr.bf16.gmra.mrb[60].mxu0 %v7154_v49  ;;  %v2170_v1 = vor.u32 %v2168_v56, %v2167_v4  ;;  %v1663_v6 = vshrl.u32 %v1359_v61, 16  ;;  %v2618_v20 = vrot.slane %v2616_v51, 5 }
  0xf9   : > { %v6144_v60 = vcombine.low %v1651_v9, %v1661_v43  ;;  %v2622_v22 = vrot.slane %v2620_v10, 4  ;;  %v2628_v63 = vrot.slane %v2626_v12, 5  ;;  %v2613_v2 = vor.u32 %v2612_v17, %v2609_v5  ;;  %v2479_v9 = vld [vmem:[#allocation2 + $0x88] sm:$0x1]  ;;  %v1363_v43 = vld [vmem:[#allocation2 + $0x110] sm:$0xf] }
  0xfa   : > { %v2171_v26 = vsel %vm7405_vm2, %v2163_v0, %v2170_v1  ;;  %v1665_v27 = vrot.slane %v1663_v6, 4  ;;  %v1666_v16 = vshll.u32 %v1359_v61, 16  ;;  %v1672_v29 = vshll.u32 %v1360_v8, 16 }
  0xfb   : > { %5113 = vmatmul.mubr.bf16.gmra.mrb[60].mxu1 %v6144_v60  ;;  %v6177_v7 = vcombine.low %v2162_v32, %v2171_v26  ;;  %v2623_v3 = vor.u32 %v2622_v22, %v2618_v20  ;;  %v1676_v30 = vshrl.u32 %v1360_v8, 16  ;;  %v2614_v28 = vrot.slane %v2613_v2, 4  ;;  %v1364_v60 = vld [vmem:[#allocation2 + $0x114] sm:$0x1] }
  0xfc   : > { %v1668_v33 = vrot.slane %v1666_v16, 5  ;;  %v1682_v11 = vshll.u32 %v1361_v18, 16  ;;  %v2173_v36 = vshrl.u32 %v1877_v25, 16  ;;  %v1674_v38 = vrot.slane %v1672_v29, 5  ;;  %v1881_v22 = vld [vmem:[#allocation2 + $0x134] sm:$0xf] }
  0xfd   : > { %5120 = vmatprep.mubr.bf16.mxu1 %v6177_v7  ;;  %v2624_v37 = vrot.slane %v2623_v3, 4  ;;  %v1678_v40 = vrot.slane %v1676_v30, 4  ;;  %v2178_v19 = vshrl.u32 %v1878_v39, 16  ;;  %v2619_v45 = vsel %vm7616_vm6, %v2614_v28, %v2618_v20  ;;  %v1880_v20 = vld [vmem:[#allocation2 + $0x130] sm:$0x8] }
  0xfe   : > { %v1669_v46 = vor.u32 %v1668_v33, %v1665_v27  ;;  %v1684_v47 = vrot.slane %v1682_v11, 5  ;;  %v6162_v48 = vrot.slane %v2173_v36, 11  ;;  %v2181_v54 = vshll.u32 %v1878_v39, 16  ;;  %v1882_v28 = vld [vmem:[#allocation2 + $0x138] sm:$0xf] }
  0xff   : > { %v2629_v49 = vsel %vm7616_vm6, %v2624_v37, %v2628_v63  ;;  %v1679_v52 = vor.u32 %v1678_v40, %v1674_v38  ;;  %v2180_v53 = vrot.slane %v2178_v19, 7  ;;  %v2187_v56 = vshrl.u32 %v1879_v23, 16  ;;  %v2480_v37 = vld [vmem:[#allocation2 + $0x94] sm:$0xf] }
 0x100   : > { %v6201_v50 = vcombine.low %v2619_v45, %v2629_v49  ;;  %v1670_v21 = vrot.slane %v1669_v46, 4  ;;  %v2190_v58 = vshll.u32 %v1879_v23, 16  ;;  %v2631_v57 = vshrl.u32 %v2477_v31, 16  ;;  %v2481_v49 = vld [vmem:[#allocation2 + $0x98] sm:$0xf] }
 0x101   : > { %v1680_v59 = vrot.slane %v1679_v52, 4  ;;  %v2183_v55 = vor.u32 %v2181_v54, %v2180_v53  ;;  %v2185_v15 = vrot.slane %v2180_v53, 4  ;;  %v2189_v62 = vrot.slane %v2187_v56, 7  ;;  %v2482_v56 = vld [vmem:[#allocation2 + $0x9c] sm:$0x1] }
 0x102   : > { %5217 = vmatprep.mubr.bf16.mxu0 %v6201_v50  ;;  %v1675_v61 = vsel %vm7616_vm6, %v1670_v21, %v1674_v38  ;;  %v2634_v4 = vshll.u32 %v2477_v31, 16  ;;  %v2640_v5 = vshll.u32 %v2478_v44, 16  ;;  %v2633_v10 = vrot.slane %v2631_v57, 4  ;;  %v1365_v57 = vld [vmem:[#allocation2 + $0x120] sm:$0xf] }
 0x103   : > { %v1685_v32 = vsel %vm7616_vm6, %v1680_v59, %v1684_v47  ;;  %5218 = vmatmul.mubr.bf16.gmra.mrb[64].mxu0 %v7155_v41  ;;  %v2184_v51 = vsel %vm7405_vm2, %v6162_v48, %v2183_v55  ;;  %v2644_v12 = vshrl.u32 %v2478_v44, 16  ;;  %v2192_v17 = vor.u32 %v2190_v58, %v2189_v62  ;;  %v7159_v41 = vld [vmem:[#allocation2 + $0x80] sm:$0xff]  }
 0x104   : > { %v6145_v1 = vcombine.low %v1675_v61, %v1685_v32  ;;  %v2636_v18 = vrot.slane %v2634_v4, 5  ;;  %v2642_v6 = vrot.slane %v2640_v5, 5  ;;  %v2650_v25 = vshll.u32 %v2479_v9, 16  ;;  %v1366_v61 = vld [vmem:[#allocation2 + $0x124] sm:$0xf] }
 0x105   : > { %v2646_v63 = vrot.slane %v2644_v12, 4  ;;  %v1687_v26 = vshrl.u32 %v1362_v13, 16  ;;  %v1690_v2 = vshll.u32 %v1362_v13, 16  ;;  %v2193_v27 = vsel %vm7405_vm2, %v2185_v15, %v2192_v17 }
 0x106   : > { %5121 = vmatmul.mubr.bf16.gmra.mrb[64].mxu1 %v6145_v1  ;;  %v2637_v16 = vor.u32 %v2636_v18, %v2633_v10  ;;  %v1696_v39 = vshll.u32 %v1363_v43, 16  ;;  %v1700_v7 = vshrl.u32 %v1363_v43, 16  ;;  %v6178_v3 = vcombine.low %v2184_v51, %v2193_v27 }
 0x107   : > { %v2647_v29 = vor.u32 %v2646_v63, %v2642_v6  ;;  %v2652_v30 = vrot.slane %v2650_v25, 5  ;;  %v1689_v23 = vrot.slane %v1687_v26, 4  ;;  %v1692_v11 = vrot.slane %v1690_v2, 5  ;;  %v1367_v2 = vld [vmem:[#allocation2 + $0x128] sm:$0x1] }
 0x108   : > { %v2638_v33 = vrot.slane %v2637_v16, 4  ;;  %v1698_v36 = vrot.slane %v1696_v39, 5  ;;  %v1702_v31 = vrot.slane %v1700_v7, 4  ;;  %5128 = vmatprep.mubr.bf16.mxu1 %v6178_v3  ;;  %v1706_v40 = vshll.u32 %v1364_v60, 16 }
 0x109   : > { %v7989_v0 = vpop.f32.mrb[0].mxu0  ;;  %v2648_v38 = vrot.slane %v2647_v29, 4  ;;  %v2195_v19 = vshrl.u32 %v1880_v20, 16  ;;  %v2200_v44 = vshrl.u32 %v1881_v22, 16  ;;  %v1693_v46 = vor.u32 %v1692_v11, %v1689_v23  ;;  %v1883_v23 = vld [vmem:[#allocation2 + $0x144] sm:$0x8] }
 0x10a   : > { %v7993_v8 = vpop.f32.mrb[1].mxu0  ;;  %v2643_v45 = vsel %vm7616_vm6, %v2638_v33, %v2642_v6  ;;  %v1703_v47 = vor.u32 %v1702_v31, %v1698_v36  ;;  %v2203_v48 = vshll.u32 %v1881_v22, 16  ;;  %v1708_v54 = vrot.slane %v1706_v40, 5  ;;  %v2483_v31 = vld [vmem:[#allocation2 + $0xa8] sm:$0xf] }
 0x10b   : > { %v8003_v52 = vpop.f32.mrb[2].mxu0  ;;  %v2653_v53 = vsel %vm7616_vm6, %v2648_v38, %v2652_v30  ;;  %v6163_v50 = vrot.slane %v2195_v19, 11  ;;  %v2202_v21 = vrot.slane %v2200_v44, 7  ;;  %v1694_v55 = vrot.slane %v1693_v46, 4  ;;  %v7195_v46 = vld [vmem:[%s9233_s2] ss:$0 sm:$0xff] }
 0x10c   : > { %v8007_v58 = vpop.f32.mrb[3].mxu0  ;;  %v6202_v59 = vcombine.low %v2643_v45, %v2653_v53  ;;  %v1704_v15 = vrot.slane %v1703_v47, 4  ;;  %v2209_v9 = vshrl.u32 %v1882_v28, 16  ;;  %v2212_v5 = vshll.u32 %v1882_v28, 16 }
 0x10d   : > { %v2205_v62 = vor.u32 %v2203_v48, %v2202_v21  ;;  %v2207_v4 = vrot.slane %v2202_v21, 4  ;;  %v2655_v13 = vshrl.u32 %v2480_v37, 16  ;;  %v1699_v51 = vsel %vm7616_vm6, %v1694_v55, %v1698_v36  ;;  %v7196_v55 = vld [vmem:[%s9234_s3] ss:$0 sm:$0xff] }
 0x10e   : > { %5225 = vmatprep.mubr.bf16.mxu0 %v6202_v59  ;;  %v1709_v10 = vsel %vm7616_vm6, %v1704_v15, %v1708_v54  ;;  %v2211_v12 = vrot.slane %v2209_v9, 7  ;;  %v2658_v43 = vshll.u32 %v2480_v37, 16  ;;  %v2664_v6 = vshll.u32 %v2481_v49, 16  ;;  %v7160_v59 = vld [vmem:[#allocation2 + $0x94] sm:$0xff]  }
 0x10f   : > { %v6146_v1 = vcombine.low %v1699_v51, %v1709_v10  ;;  %5226 = vmatmul.mubr.bf16.gmra.mrb[68].mxu0 %v7159_v41  ;;  %v2206_v17 = vsel %vm7405_vm2, %v6163_v50, %v2205_v62  ;;  %v2657_v18 = vrot.slane %v2655_v13, 4  ;;  %v2668_v22 = vshrl.u32 %v2481_v49, 16 }
 0x110   : > { %v2214_v60 = vor.u32 %v2212_v5, %v2211_v12  ;;  %v2660_v20 = vrot.slane %v2658_v43, 5  ;;  %v2674_v63 = vshll.u32 %v2482_v56, 16  ;;  %v2666_v26 = vrot.slane %v2664_v6, 5  ;;  %v1368_v12 = vld [vmem:[#allocation2 + $0x134] sm:$0xf] }
 0x111   : > { %5129 = vmatmul.mubr.bf16.gmra.mrb[68].mxu1 %v6146_v1  ;;  %v1711_v27 = vshrl.u32 %v1365_v57, 16  ;;  %v1714_v16 = vshll.u32 %v1365_v57, 16  ;;  %v1720_v39 = vshll.u32 %v1366_v61, 16  ;;  %v2670_v29 = vrot.slane %v2668_v22, 4 }
 0x112   : > { %v2215_v7 = vsel %vm7405_vm2, %v2207_v4, %v2214_v60  ;;  %v2661_v3 = vor.u32 %v2660_v20, %v2657_v18  ;;  %v2676_v30 = vrot.slane %v2674_v63, 5  ;;  %v1724_v41 = vshrl.u32 %v1366_v61, 16  ;;  %v2485_v61 = vld [vmem:[#allocation2 + $0xb0] sm:$0x1]  ;;  %v1369_v63 = vld [vmem:[#allocation2 + $0x138] sm:$0xf] }
 0x113   : > { %v6179_v28 = vcombine.low %v2206_v17, %v2215_v7  ;;  %v1713_v33 = vrot.slane %v1711_v27, 4  ;;  %v1716_v11 = vrot.slane %v1714_v16, 5  ;;  %v1722_v36 = vrot.slane %v1720_v39, 5  ;;  %v1370_v16 = vld [vmem:[#allocation2 + $0x13c] sm:$0x1] }
 0x114   : > { %v2662_v38 = vrot.slane %v2661_v3, 4  ;;  %v2671_v40 = vor.u32 %v2670_v29, %v2666_v26  ;;  %v1730_v19 = vshll.u32 %v1367_v2, 16  ;;  %v461_v47 = vmul.f32 %v7195_v46, %v6511_v34  ;;  %v2484_v34 = vld [vmem:[#allocation2 + $0xac] sm:$0xf]  ;;  %v2486_v7 = vld [vmem:[#allocation2 + $0xbc] sm:$0xf] }
 0x115   : > { %5136 = vmatprep.mubr.bf16.mxu1 %v6179_v28  ;;  %v1717_v45 = vor.u32 %v1716_v11, %v1713_v33  ;;  %v462_v48 = vmul.f32 %v7195_v46, %v6512_v35  ;;  %v2217_v49 = vshrl.u32 %v1883_v23, 16  ;;  %v1726_v50 = vrot.slane %v1724_v41, 4  ;;  %v2487_v28 = vld [vmem:[#allocation2 + $0xc0] sm:$0xf]  ;;  %v2488_v41 = vld [vmem:[#allocation2 + $0xc4] sm:$0x1] }
 0x116   : > { %v2667_v53 = vsel %vm7616_vm6, %v2662_v38, %v2666_v26  ;;  %v2672_v54 = vrot.slane %v2671_v40, 4  ;;  %v1732_v21 = vrot.slane %v1730_v19, 5  ;;  %v500_v15 = vadd.f32 %v7196_v55, %v461_v47  ;;  %v2975_v19 = vld [vmem:[#allocation2 + $0x2c] sm:$0x8] }
 0x117   : > { %v1718_v56 = vrot.slane %v1717_v45, 4  ;;  %v501_v9 = vadd.f32 %v7196_v55, %v462_v48  ;;  %v8037_v57 = vrot.slane %v2217_v49, 11  ;;  %v1727_v35 = vor.u32 %v1726_v50, %v1722_v36 }
 0x118   : > { %v8009_v32 = vpop.f32.mrb[0].mxu1  ;;  %v2677_v24 = vsel %vm7616_vm6, %v2672_v54, %v2676_v30  ;;  %v2679_v62 = vshrl.u32 %v2483_v31, 16  ;;  %v2682_v4 = vshll.u32 %v2483_v31, 16  ;;  %v532_v51 = vmax.f32 %v500_v15, 0.0 }
 0x119   : > { %v8017_v25 = vpop.f32.mrb[1].mxu1  ;;  %v6203_v5 = vcombine.low %v2667_v53, %v2677_v24  ;;  %v1723_v13 = vsel %vm7616_vm6, %v1718_v56, %v1722_v36  ;;  %v533_v10 = vmax.f32 %v501_v9, 0.0  ;;  %v1728_v43 = vrot.slane %v1727_v35, 4 }
 0x11a   : > { %v8021_v37 = vpop.f32.mrb[2].mxu1  ;;  %v2681_v1 = vrot.slane %v2679_v62, 4  ;;  %v2684_v17 = vrot.slane %v2682_v4, 5  ;;  %v2688_v18 = vshll.u32 %v2484_v34, 16  ;;  %v6415_v6 = vpack.c.bf16 %v532_v51, %v532_v51 }
 0x11b   : > { %v8023_v44 = vpop.f32.mrb[3].mxu1  ;;  %5233 = vmatprep.mubr.bf16.mxu0 %v6203_v5  ;;  %v6416_v60 = vpack.c.bf16 %v533_v10, %v533_v10  ;;  %v2692_v20 = vshrl.u32 %v2484_v34, 16  ;;  %v2698_v22 = vshll.u32 %v2485_v61, 16  ;;  %v1733_v26 = vsel %vm7616_vm6, %v1728_v43, %v1732_v21  ;;  %v8047_v33 = vpop.f32.mrb[4].mxu0 }
 0x11c   : > { %5234 = vmatmul.mubr.bf16.gmra.mrb[72].mxu0 %v7160_v59  ;;  %v2685_v2 = vor.u32 %v2684_v17, %v2681_v1  ;;  %v2690_v27 = vrot.slane %v2688_v18, 5  ;;  %v1735_v39 = vshrl.u32 %v1368_v12, 16  ;;  %v6147_v3 = vcombine.low %v1723_v13, %v1733_v26  ;;  %694 = vst.msk [vmem:[#allocation2 + $0x148] sm:$0xf] %vm663_vm3, %v6415_v6  ;;  %v8051_v45 = vpop.f32.mrb[5].mxu0  ;;  %v7164_v1 = vld [vmem:[#allocation2 + $0xa8] sm:$0xff]  }
 0x11d   : > { %695 = vst.msk [vmem:[#allocation2 + $0x14c] sm:$0xf] %vm663_vm3, %v6416_v60  ;;  %v2694_v29 = vrot.slane %v2692_v20, 4  ;;  %v2700_v30 = vrot.slane %v2698_v22, 5  ;;  %v1738_v23 = vshll.u32 %v1368_v12, 16  ;;  %v1744_v38 = vshll.u32 %v1369_v63, 16 }
 0x11e   : > { %v2686_v36 = vrot.slane %v2685_v2, 4  ;;  %v1737_v31 = vrot.slane %v1735_v39, 4  ;;  %v1748_v40 = vshrl.u32 %v1369_v63, 16  ;;  %5137 = vmatmul.mubr.bf16.gmra.mrb[72].mxu1 %v6147_v3  ;;  %v1754_v49 = vshll.u32 %v1370_v16, 16  ;;  %v8055_v54 = vpop.f32.mrb[6].mxu0 }
 0x11f   : > { %v2695_v47 = vor.u32 %v2694_v29, %v2690_v27  ;;  %v1740_v48 = vrot.slane %v1738_v23, 5  ;;  %v2703_v53 = vshrl.u32 %v2486_v7, 16  ;;  %v1746_v56 = vrot.slane %v1744_v38, 5  ;;  %v8061_v15 = vpop.f32.mrb[7].mxu0  ;;  %v2976_v3 = vld [vmem:[#allocation2 + $0x30] sm:$0xf] }
 0x120   : > { %v8049_v11 = vpop.f32.mrb[4].mxu1  ;;  %v2691_v21 = vsel %vm7616_vm6, %v2686_v36, %v2690_v27  ;;  %v1750_v59 = vrot.slane %v1748_v40, 4  ;;  %v2706_v55 = vshll.u32 %v2486_v7, 16  ;;  %v1756_v35 = vrot.slane %v1754_v49, 5  ;;  %v2977_v36 = vld [vmem:[#allocation2 + $0x34] sm:$0xf] }
 0x121   : > { %v8053_v46 = vpop.f32.mrb[5].mxu1  ;;  %v2696_v34 = vrot.slane %v2695_v47, 4  ;;  %v1741_v24 = vor.u32 %v1740_v48, %v1737_v31  ;;  %v2705_v61 = vrot.slane %v2703_v53, 4  ;;  %v2712_v13 = vshll.u32 %v2487_v28, 16  ;;  %v2489_v53 = vld [vmem:[#allocation2 + $0xd0] sm:$0xf] }
 0x122   : > { %v8057_v50 = vpop.f32.mrb[6].mxu1  ;;  %v1751_v4 = vor.u32 %v1750_v59, %v1746_v56  ;;  %v2708_v5 = vrot.slane %v2706_v55, 5  ;;  %v2716_v51 = vshrl.u32 %v2487_v28, 16  ;;  %v2722_v17 = vshll.u32 %v2488_v41, 16 }
 0x123   : > { %v8063_v9 = vpop.f32.mrb[7].mxu1  ;;  %v2701_v12 = vsel %vm7616_vm6, %v2696_v34, %v2700_v30  ;;  %v1742_v43 = vrot.slane %v1741_v24, 4  ;;  %v3024_v18 = vshrl.u32 %v2975_v19, 16  ;;  %v1884_v60 = vld [vmem:[#allocation2 + $0x148] sm:$0xf]  ;;  %v2714_v2 = vrot.slane %v2712_v13, 5 }
 0x124   : > { %v1885_v20 = vld [vmem:[#allocation2 + $0x14c] sm:$0xf]  ;;  %v6204_v22 = vcombine.low %v2691_v21, %v2701_v12  ;;  %v1752_v63 = vrot.slane %v1751_v4, 4  ;;  %v2709_v26 = vor.u32 %v2708_v5, %v2705_v61  ;;  %v2222_v27 = vshrl.u32 %v1884_v60, 16  ;;  %v7165_v24 = vld [vmem:[#allocation2 + $0x30] sm:$0xff]  }
 0x125   : > { %v8065_v62 = vpop.f32.mrb[8].mxu0  ;;  %v2225_v16 = vshll.u32 %v1884_v60, 16  ;;  %v2231_v39 = vshrl.u32 %v1885_v20, 16  ;;  %v2234_v7 = vshll.u32 %v1885_v20, 16  ;;  %v1747_v29 = vsel %vm7616_vm6, %v1742_v43, %v1746_v56  ;;  %v2490_v5 = vld [vmem:[#allocation2 + $0xd4] sm:$0xf] }
 0x126   : > { %v8067_v10 = vpop.f32.mrb[9].mxu0  ;;  %5241 = vmatprep.mubr.bf16.mxu0 %v6204_v22  ;;  %v1757_v30 = vsel %vm7616_vm6, %v1752_v63, %v1756_v35  ;;  %v2710_v23 = vrot.slane %v2709_v26, 4  ;;  %v2718_v28 = vrot.slane %v2716_v51, 4  ;;  %v2224_v31 = vrot.slane %v2222_v27, 7  ;;  %v2491_v12 = vld [vmem:[#allocation2 + $0xd8] sm:$0x1] }
 0x127   : > { %v8071_v6 = vpop.f32.mrb[10].mxu0  ;;  %v2233_v38 = vrot.slane %v2231_v39, 7  ;;  %v6148_v40 = vcombine.low %v1747_v29, %v1757_v30  ;;  %5242 = vmatmul.mubr.bf16.gmra.mrb[76].mxu0 %v7164_v1  ;;  %v2724_v41 = vrot.slane %v2722_v17, 5  ;;  %v6213_v48 = vrot.slane %v3024_v18, 11  ;;  %v2978_v17 = vld [vmem:[#allocation2 + $0x40] sm:$0x8] }
 0x128   : > { %v2715_v19 = vsel %vm7616_vm6, %v2710_v23, %v2714_v2  ;;  %v2719_v47 = vor.u32 %v2718_v28, %v2714_v2  ;;  %v3029_v49 = vshrl.u32 %v2976_v3, 16  ;;  %v2227_v21 = vor.u32 %v2225_v16, %v2224_v31  ;;  %v7166_v20 = vld [vmem:[#allocation2 + $0xbc] sm:$0xff]   ;;  %v2979_v26 = vld [vmem:[#allocation2 + $0x44] sm:$0xf]  ;;  %v8086_v2 = vpop.f32.mrb[8].mxu1  ;;  %v8088_v27 = vpop.f32.mrb[11].mxu0 }
 0x129   : > { %v2229_v56 = vrot.slane %v2224_v31, 4  ;;  %v2236_v59 = vor.u32 %v2234_v7, %v2233_v38  ;;  %v3032_v55 = vshll.u32 %v2976_v3, 16  ;;  %v3038_v61 = vshrl.u32 %v2977_v36, 16  ;;  %v8090_v3 = vpop.f32.mrb[9].mxu1 }
 0x12a   : > { %v2720_v34 = vrot.slane %v2719_v47, 4  ;;  %v3031_v35 = vrot.slane %v3029_v49, 7  ;;  %v3041_v4 = vshll.u32 %v2977_v36, 16  ;;  %v2228_v13 = vsel %vm7405_vm2, %v8037_v57, %v2227_v21  ;;  %v8094_v36 = vpop.f32.mrb[10].mxu1 }
 0x12b   : > { %v2237_v51 = vsel %vm7405_vm2, %v2229_v56, %v2236_v59  ;;  %v2727_v43 = vshrl.u32 %v2489_v53, 16  ;;  %v2730_v1 = vshll.u32 %v2489_v53, 16  ;;  %v3040_v16 = vrot.slane %v3038_v61, 7  ;;  %v8096_v49 = vpop.f32.mrb[11].mxu1 }
 0x12c   : > { %v6180_v18 = vcombine.low %v2228_v13, %v2237_v51  ;;  %v2725_v60 = vsel %vm7616_vm6, %v2720_v34, %v2724_v41  ;;  %v3034_v22 = vor.u32 %v3032_v55, %v3031_v35  ;;  %v3036_v63 = vrot.slane %v3031_v35, 4  ;;  %v2980_v41 = vld [vmem:[#allocation2 + $0x48] sm:$0xf]  ;;  %v2492_v55 = vld [vmem:[#allocation2 + $0xe4] sm:$0xf] }
 0x12d   : > { %v6205_v57 = vcombine.low %v2715_v19, %v2725_v60  ;;  %v2729_v39 = vrot.slane %v2727_v43, 4  ;;  %v2732_v7 = vrot.slane %v2730_v1, 5  ;;  %v2736_v30 = vshll.u32 %v2490_v5, 16  ;;  %v2494_v1 = vld [vmem:[#allocation2 + $0xec] sm:$0x1] }
 0x12e   : > { %5144 = vmatprep.mubr.bf16.mxu1 %v6180_v18  ;;  %v3035_v29 = vsel %vm7405_vm2, %v6213_v48, %v3034_v22  ;;  %v2740_v23 = vshrl.u32 %v2490_v5, 16  ;;  %v2746_v28 = vshll.u32 %v2491_v12, 16  ;;  %v3043_v31 = vor.u32 %v3041_v4, %v3040_v16  ;;  %v2493_v4 = vld [vmem:[#allocation2 + $0xe8] sm:$0xf]  ;;  %v2981_v22 = vld [vmem:[#allocation2 + $0x54] sm:$0x8] }
 0x12f   : > { %5145 = vmatmul.mubr.bf16.gmra.mrb[76].mxu1 %v6148_v40  ;;  %5249 = vmatprep.mubr.bf16.mxu0 %v6205_v57  ;;  %v2733_v38 = vor.u32 %v2732_v7, %v2729_v39  ;;  %v3046_v19 = vshrl.u32 %v2978_v17, 16  ;;  %v3051_v47 = vshrl.u32 %v2979_v26, 16  ;;  %v8098_v53 = vpop.f32.mrb[12].mxu0  ;;  %v2738_v21 = vrot.slane %v2736_v30, 5  ;;  %v7168_v12 = vld [vmem:[#allocation2 + $0x44] sm:$0xff]   ;;  %v7169_v57 = vld [vmem:[#allocation2 + $0xd0] sm:$0xff]  }
 0x130   : > { %5346 = vmatprep.mubr.bf16.mxu1 %v7165_v24  ;;  %5250 = vmatmul.mubr.bf16.gmra.mrb[80].mxu0 %v7166_v20  ;;  %v2742_v48 = vrot.slane %v2740_v23, 4  ;;  %v2748_v56 = vrot.slane %v2746_v28, 5  ;;  %v3054_v59 = vshll.u32 %v2979_v26, 16  ;;  %v3044_v40 = vsel %vm7405_vm2, %v3036_v63, %v3043_v31  ;;  %v2982_v63 = vld [vmem:[#allocation2 + $0x58] sm:$0xf] }
 0x131   : > { %v2734_v34 = vrot.slane %v2733_v38, 4  ;;  %v6214_v35 = vrot.slane %v3046_v19, 11  ;;  %v3053_v61 = vrot.slane %v3051_v47, 7  ;;  %v6229_v13 = vcombine.low %v3035_v29, %v3044_v40  ;;  %v2983_v30 = vld [vmem:[#allocation2 + $0x5c] sm:$0xf] }
 0x132   : > { %v2743_v51 = vor.u32 %v2742_v48, %v2738_v21  ;;  %v3060_v43 = vshrl.u32 %v2980_v41, 16  ;;  %v3063_v24 = vshll.u32 %v2980_v41, 16  ;;  %v2751_v20 = vshrl.u32 %v2492_v55, 16  ;;  %v2495_v38 = vld [vmem:[#allocation2 + $0xf8] sm:$0xf]  ;;  %v8108_v41 = vpop.f32.mrb[13].mxu0 }
 0x133   : > { %v2739_v17 = vsel %vm7616_vm6, %v2734_v34, %v2738_v21  ;;  %v3056_v18 = vor.u32 %v3054_v59, %v3053_v61  ;;  %v3058_v60 = vrot.slane %v3053_v61, 4  ;;  %v2754_v39 = vshll.u32 %v2492_v55, 16  ;;  %v2496_v59 = vld [vmem:[#allocation2 + $0xfc] sm:$0xf]  ;;  %v8114_v55 = vpop.f32.mrb[14].mxu0 }
 0x134   : > { %v8102_v5 = vpop.f32.mrb[12].mxu1  ;;  %v2744_v26 = vrot.slane %v2743_v51, 4  ;;  %v3062_v16 = vrot.slane %v3060_v43, 7  ;;  %v2760_v7 = vshll.u32 %v2493_v4, 16  ;;  %v2753_v23 = vrot.slane %v2751_v20, 4  ;;  %v8118_v43 = vpop.f32.mrb[15].mxu0 }
 0x135   : > { %v3057_v29 = vsel %vm7405_vm2, %v6214_v35, %v3056_v18  ;;  %v2764_v28 = vshrl.u32 %v2493_v4, 16  ;;  %v2770_v31 = vshll.u32 %v2494_v1, 16  ;;  %v2756_v21 = vrot.slane %v2754_v39, 5  ;;  %v8112_v40 = vpop.f32.mrb[13].mxu1  ;;  %v7170_v39 = vld [vmem:[#allocation2 + $0x58] sm:$0xff]  }
 0x136   : > { %v2749_v19 = vsel %vm7616_vm6, %v2744_v26, %v2748_v56  ;;  %v3065_v47 = vor.u32 %v3063_v24, %v3062_v16  ;;  %v2762_v48 = vrot.slane %v2760_v7, 5  ;;  %v3068_v4 = vshrl.u32 %v2981_v22, 16  ;;  %v8116_v51 = vpop.f32.mrb[14].mxu1 }
 0x137   : > { %5347 = vmatmul.mubr.bf16.vlgmr.msra.gmra.mrb[80].mxu1 %v6229_v13  ;;  %v6206_v34 = vcombine.low %v2739_v17, %v2749_v19  ;;  %v2766_v35 = vrot.slane %v2764_v28, 4  ;;  %v2772_v61 = vrot.slane %v2770_v31, 5  ;;  %9242 = vst [vmem:[#allocation4_spill] sm:$0xff] %v8116_v51  ;;  %v2757_v24 = vor.u32 %v2756_v21, %v2753_v23  ;;  %v8122_v20 = vpop.f32.mrb[15].mxu1  ;;  %v2497_v51 = vld [vmem:[#allocation2 + $0x100] sm:$0x1] }
 0x138   : > { %5354 = vmatprep.mubr.bf16.mxu1 %v7168_v12  ;;  %v3066_v56 = vsel %vm7405_vm2, %v3058_v60, %v3065_v47  ;;  %v3073_v1 = vshrl.u32 %v2982_v63, 16  ;;  %v3076_v18 = vshll.u32 %v2982_v63, 16  ;;  %9243 = vst [vmem:[#allocation5_spill] sm:$0xff] %v8122_v20  ;;  %v6215_v17 = vrot.slane %v3068_v4, 11  ;;  %v7171_v4 = vld [vmem:[#allocation2 + $0xe4] sm:$0xff]  }
 0x139   : > { %5257 = vmatprep.mubr.bf16.mxu0 %v6206_v34  ;;  %v6230_v26 = vcombine.low %v3057_v29, %v3066_v56  ;;  %v2767_v13 = vor.u32 %v2766_v35, %v2762_v48  ;;  %v3082_v16 = vshrl.u32 %v2983_v30, 16  ;;  %v2758_v22 = vrot.slane %v2757_v24, 4  ;;  %v2984_v34 = vld [vmem:[#allocation2 + $0x68] sm:$0x8]  ;;  %v2985_v35 = vld [vmem:[#allocation2 + $0x6c] sm:$0xf] }
 0x13a   : > { %5258 = vmatmul.mubr.bf16.gmra.mrb[84].mxu0 %v7169_v57  ;;  %v3075_v7 = vrot.slane %v3073_v1, 7  ;;  %v3085_v28 = vshll.u32 %v2983_v30, 16  ;;  %v2775_v31 = vshrl.u32 %v2495_v38, 16  ;;  %v2778_v60 = vshll.u32 %v2495_v38, 16  ;;  %v2986_v1 = vld [vmem:[#allocation2 + $0x70] sm:$0xf] }
 0x13b   : > { %v2768_v12 = vrot.slane %v2767_v13, 4  ;;  %v3084_v19 = vrot.slane %v3082_v16, 7  ;;  %v2784_v23 = vshll.u32 %v2496_v59, 16  ;;  %v2763_v63 = vsel %vm7616_vm6, %v2758_v22, %v2762_v48  ;;  %v2498_v48 = vld [vmem:[#allocation2 + $0x10c] sm:$0xf] }
 0x13c   : > { %v3078_v47 = vor.u32 %v3076_v18, %v3075_v7  ;;  %v3080_v21 = vrot.slane %v3075_v7, 4  ;;  %v2777_v29 = vrot.slane %v2775_v31, 4  ;;  %v2780_v30 = vrot.slane %v2778_v60, 5  ;;  %v8132_v22 = vpop.f32.mrb[16].mxu1 }
 0x13d   : > { %v2773_v57 = vsel %vm7616_vm6, %v2768_v12, %v2772_v61  ;;  %v3087_v56 = vor.u32 %v3085_v28, %v3084_v19  ;;  %v2786_v24 = vrot.slane %v2784_v23, 5  ;;  %v2788_v16 = vshrl.u32 %v2496_v59, 16  ;;  %9244 = vst [vmem:[#allocation6_spill] sm:$0xff] %v8132_v22  ;;  %v2499_v12 = vld [vmem:[#allocation2 + $0x110] sm:$0xf]  ;;  %v8138_v60 = vpop.f32.mrb[17].mxu1 }
 0x13e   : > { %v6207_v13 = vcombine.low %v2763_v63, %v2773_v57  ;;  %v3079_v38 = vsel %vm7405_vm2, %v6215_v17, %v3078_v47  ;;  %v2794_v20 = vshll.u32 %v2497_v51, 16  ;;  %v8130_v18 = vpop.f32.mrb[16].mxu0  ;;  %v2781_v7 = vor.u32 %v2780_v30, %v2777_v29  ;;  %9246 = vst [vmem:[#allocation8_spill] sm:$0xff] %v8138_v60  ;;  %v2500_v63 = vld [vmem:[#allocation2 + $0x114] sm:$0x1] }
 0x13f   : > { %5355 = vmatmul.mubr.bf16.gmra.mrb[84].mxu1 %v6230_v26  ;;  %v3088_v61 = vsel %vm7405_vm2, %v3080_v21, %v3087_v56  ;;  %v3090_v28 = vshrl.u32 %v2984_v34, 16  ;;  %v3095_v31 = vshrl.u32 %v2985_v35, 16  ;;  %v8136_v19 = vpop.f32.mrb[17].mxu0  ;;  %v2790_v51 = vrot.slane %v2788_v16, 4  ;;  %v8142_v26 = vpop.f32.mrb[18].mxu1 }
 0x140   : > { %9245 = vst [vmem:[#allocation7_spill] sm:$0xff] %v8136_v19  ;;  %5265 = vmatprep.mubr.bf16.mxu0 %v6207_v13  ;;  %5362 = vmatprep.mubr.bf16.mxu1 %v7170_v39  ;;  %v6231_v59 = vcombine.low %v3079_v38, %v3088_v61  ;;  %v2796_v17 = vrot.slane %v2794_v20, 5  ;;  %v3098_v23 = vshll.u32 %v2985_v35, 16  ;;  %v8140_v47 = vpop.f32.mrb[18].mxu0  ;;  %9248 = vst [vmem:[#allocation10_spill] sm:$0xff] %v8142_v26  ;;  %v2782_v21 = vrot.slane %v2781_v7, 4 }
 0x141   : > { %9247 = vst [vmem:[#allocation9_spill] sm:$0xff] %v8140_v47  ;;  %v6216_v29 = vrot.slane %v3090_v28, 11  ;;  %v3097_v34 = vrot.slane %v3095_v31, 7  ;;  %v3104_v57 = vshrl.u32 %v2986_v1, 16  ;;  %v8144_v56 = vpop.f32.mrb[19].mxu0  ;;  %v8146_v30 = vpop.f32.mrb[19].mxu1  ;;  %v2791_v13 = vor.u32 %v2790_v51, %v2786_v24 }
 0x142   : > { %9249 = vst [vmem:[#allocation11_spill] sm:$0xff] %v8144_v56  ;;  %9250 = vst [vmem:[#allocation12_spill] sm:$0xff] %v8146_v30  ;;  %5266 = vmatmul.mubr.bf16.gmra.mrb[88].mxu0 %v7171_v4  ;;  %v3107_v39 = vshll.u32 %v2986_v1, 16  ;;  %v2799_v38 = vshrl.u32 %v2498_v48, 16  ;;  %v2802_v16 = vshll.u32 %v2498_v48, 16  ;;  %v2787_v20 = vsel %vm7616_vm6, %v2782_v21, %v2786_v24  ;;  %v7173_v28 = vld [vmem:[#allocation2 + $0x6c] sm:$0xff]  }
 0x143   : > { %v3100_v35 = vor.u32 %v3098_v23, %v3097_v34  ;;  %v3102_v61 = vrot.slane %v3097_v34, 4  ;;  %v3106_v47 = vrot.slane %v3104_v57, 7  ;;  %v2987_v26 = vld [vmem:[#allocation2 + $0x7c] sm:$0x8]  ;;  %v2792_v7 = vrot.slane %v2791_v13, 4 }
 0x144   : > { %v2801_v31 = vrot.slane %v2799_v38, 4  ;;  %v2804_v60 = vrot.slane %v2802_v16, 5  ;;  %v2808_v22 = vshll.u32 %v2499_v12, 16  ;;  %v2812_v51 = vshrl.u32 %v2499_v12, 16  ;;  %v2988_v56 = vld [vmem:[#allocation2 + $0x80] sm:$0xf] }
 0x145   : > { %v3101_v30 = vsel %vm7405_vm2, %v6216_v29, %v3100_v35  ;;  %v3109_v4 = vor.u32 %v3107_v39, %v3106_v47  ;;  %v2818_v1 = vshll.u32 %v2500_v63, 16  ;;  %v2797_v48 = vsel %vm7616_vm6, %v2792_v7, %v2796_v17  ;;  %v7174_v24 = vld [vmem:[#allocation2 + $0xf8] sm:$0xff]   ;;  %v2989_v34 = vld [vmem:[#allocation2 + $0x84] sm:$0xf]  ;;  %v2501_v29 = vld [vmem:[#allocation2 + $0x120] sm:$0xf] }
 0x146   : > { %v2805_v23 = vor.u32 %v2804_v60, %v2801_v31  ;;  %v2810_v21 = vrot.slane %v2808_v22, 5  ;;  %v3112_v57 = vshrl.u32 %v2987_v26, 16  ;;  %v6208_v13 = vcombine.low %v2787_v20, %v2797_v48  ;;  %v2502_v47 = vld [vmem:[#allocation2 + $0x124] sm:$0xf]  ;;  %v2503_v20 = vld [vmem:[#allocation2 + $0x128] sm:$0x1] }
 0x147   : > { %5363 = vmatmul.mubr.bf16.gmra.mrb[88].mxu1 %v6231_v59  ;;  %v3110_v38 = vsel %vm7405_vm2, %v3102_v61, %v3109_v4  ;;  %v2814_v16 = vrot.slane %v2812_v51, 4  ;;  %v2820_v19 = vrot.slane %v2818_v1, 5  ;;  %v3117_v35 = vshrl.u32 %v2988_v56, 16  ;;  %v2990_v4 = vld [vmem:[#allocation2 + $0x90] sm:$0x8]  ;;  %v7175_v48 = vld [vmem:[#allocation2 + $0x80] sm:$0xff]  }
 0x148   : > { %5370 = vmatprep.mubr.bf16.mxu1 %v7173_v28  ;;  %v6232_v12 = vcombine.low %v3101_v30, %v3110_v38  ;;  %v2806_v63 = vrot.slane %v2805_v23, 4  ;;  %v6217_v39 = vrot.slane %v3112_v57, 11  ;;  %v8156_v17 = vpop.f32.mrb[20].mxu1  ;;  %5273 = vmatprep.mubr.bf16.mxu0 %v6208_v13  ;;  %v3120_v60 = vshll.u32 %v2988_v56, 16 }
 0x149   : > { %9251 = vst [vmem:[#allocation13_spill] sm:$0xff] %v8156_v17  ;;  %v2815_v22 = vor.u32 %v2814_v16, %v2810_v21  ;;  %v3126_v26 = vshrl.u32 %v2989_v34, 16  ;;  %v3129_v59 = vshll.u32 %v2989_v34, 16  ;;  %v8158_v7 = vpop.f32.mrb[21].mxu1  ;;  %v3119_v31 = vrot.slane %v3117_v35, 7 }
 0x14a   : > { %9252 = vst [vmem:[#allocation14_spill] sm:$0xff] %v8158_v7  ;;  %5274 = vmatmul.mubr.bf16.gmra.mrb[92].mxu0 %v7174_v24  ;;  %v2811_v61 = vsel %vm7616_vm6, %v2806_v63, %v2810_v21  ;;  %v2823_v28 = vshrl.u32 %v2501_v29, 16  ;;  %v2826_v30 = vshll.u32 %v2501_v29, 16  ;;  %v8162_v51 = vpop.f32.mrb[22].mxu1  ;;  %v2832_v57 = vshll.u32 %v2502_v47, 16  ;;  %v7176_v29 = vld [vmem:[#allocation2 + $0x10c] sm:$0xff]  }
 0x14b   : > { %9253 = vst [vmem:[#allocation15_spill] sm:$0xff] %v8162_v51  ;;  %v2816_v1 = vrot.slane %v2815_v22, 4  ;;  %v3128_v23 = vrot.slane %v3126_v26, 7  ;;  %v2836_v56 = vshrl.u32 %v2502_v47, 16  ;;  %v8164_v13 = vpop.f32.mrb[23].mxu1  ;;  %v3122_v34 = vor.u32 %v3120_v60, %v3119_v31 }
 0x14c   : > { %9254 = vst [vmem:[#allocation16_spill] sm:$0xff] %v8164_v13  ;;  %v3124_v38 = vrot.slane %v3119_v31, 4  ;;  %v2825_v16 = vrot.slane %v2823_v28, 4  ;;  %v2828_v24 = vrot.slane %v2826_v30, 5  ;;  %v2991_v7 = vld [vmem:[#allocation2 + $0x94] sm:$0xf] }
 0x14d   : > { %v2821_v21 = vsel %vm7616_vm6, %v2816_v1, %v2820_v19  ;;  %v3131_v63 = vor.u32 %v3129_v59, %v3128_v23  ;;  %v2834_v35 = vrot.slane %v2832_v57, 5  ;;  %v2838_v22 = vrot.slane %v2836_v56, 4  ;;  %v2992_v28 = vld [vmem:[#allocation2 + $0x98] sm:$0xf]  ;;  %v2504_v30 = vld [vmem:[#allocation2 + $0x134] sm:$0xf] }
 0x14e   : > { %v8166_v17 = vpop.f32.mrb[20].mxu0  ;;  %v6209_v26 = vcombine.low %v2811_v61, %v2821_v21  ;;  %v3123_v47 = vsel %vm7405_vm2, %v6217_v39, %v3122_v34  ;;  %v2829_v60 = vor.u32 %v2828_v24, %v2825_v16  ;;  %v2842_v31 = vshll.u32 %v2503_v20, 16  ;;  %v2505_v57 = vld [vmem:[#allocation2 + $0x138] sm:$0xf]  ;;  %v2506_v16 = vld [vmem:[#allocation2 + $0x13c] sm:$0x1] }
 0x14f   : > { %9255 = vst [vmem:[#allocation17_spill] sm:$0xff] %v8166_v17  ;;  %v8170_v51 = vpop.f32.mrb[21].mxu0  ;;  %5371 = vmatmul.mubr.bf16.gmra.mrb[92].mxu1 %v6232_v12  ;;  %v3132_v19 = vsel %vm7405_vm2, %v3124_v38, %v3131_v63  ;;  %v2839_v1 = vor.u32 %v2838_v22, %v2834_v35  ;;  %v3134_v59 = vshrl.u32 %v2990_v4, 16  ;;  %v3139_v23 = vshrl.u32 %v2991_v7, 16 }
 0x150   : > { %9256 = vst [vmem:[#allocation18_spill] sm:$0xff] %v8170_v51  ;;  %v8174_v13 = vpop.f32.mrb[22].mxu0  ;;  %5281 = vmatprep.mubr.bf16.mxu0 %v6209_v26  ;;  %5378 = vmatprep.mubr.bf16.mxu1 %v7175_v48  ;;  %v6233_v61 = vcombine.low %v3123_v47, %v3132_v19  ;;  %v2830_v39 = vrot.slane %v2829_v60, 4  ;;  %v2844_v34 = vrot.slane %v2842_v31, 5  ;;  %v3142_v20 = vshll.u32 %v2991_v7, 16  ;;  %v7178_v31 = vld [vmem:[#allocation2 + $0x94] sm:$0xff]  }
 0x151   : > { %9257 = vst [vmem:[#allocation19_spill] sm:$0xff] %v8174_v13  ;;  %v8178_v56 = vpop.f32.mrb[23].mxu0  ;;  %v2840_v24 = vrot.slane %v2839_v1, 4  ;;  %v6218_v21 = vrot.slane %v3134_v59, 11  ;;  %v3141_v13 = vrot.slane %v3139_v23, 7  ;;  %v3148_v12 = vshrl.u32 %v2992_v28, 16 }
 0x152   : > { %9258 = vst [vmem:[#allocation20_spill] sm:$0xff] %v8178_v56  ;;  %v2993_v51 = vld [vmem:[#allocation2 + $0xa4] sm:$0x8]  ;;  %5282 = vmatmul.mubr.bf16.gmra.mrb[96].mxu0 %v7176_v29  ;;  %v2835_v4 = vsel %vm7616_vm6, %v2830_v39, %v2834_v35  ;;  %v3151_v38 = vshll.u32 %v2992_v28, 16  ;;  %v2847_v63 = vshrl.u32 %v2504_v30, 16  ;;  %v2850_v22 = vshll.u32 %v2504_v30, 16 }
 0x153   : > { %v2994_v56 = vld [vmem:[#allocation2 + $0xa8] sm:$0xf]  ;;  %v2845_v48 = vsel %vm7616_vm6, %v2840_v24, %v2844_v34  ;;  %v3144_v26 = vor.u32 %v3142_v20, %v3141_v13  ;;  %v3146_v47 = vrot.slane %v3141_v13, 4  ;;  %v3150_v7 = vrot.slane %v3148_v12, 7  ;;  %v7179_v23 = vld [vmem:[#allocation2 + $0x120] sm:$0xff]  }
 0x154   : > { %v6210_v60 = vcombine.low %v2835_v4, %v2845_v48  ;;  %v2849_v19 = vrot.slane %v2847_v63, 4  ;;  %v2852_v1 = vrot.slane %v2850_v22, 5  ;;  %v2856_v59 = vshll.u32 %v2505_v57, 16  ;;  %v2995_v20 = vld [vmem:[#allocation2 + $0xac] sm:$0xf] }
 0x155   : > { %v3145_v29 = vsel %vm7405_vm2, %v6218_v21, %v3144_v26  ;;  %v3153_v35 = vor.u32 %v3151_v38, %v3150_v7  ;;  %v2860_v28 = vshrl.u32 %v2505_v57, 16  ;;  %v2866_v39 = vshll.u32 %v2506_v16, 16  ;;  %v2507_v7 = vld [vmem:[#allocation2 + $0x148] sm:$0xf] }
 0x156   : > { %v8186_v30 = vpop.f32.mrb[24].mxu1  ;;  %5289 = vmatprep.mubr.bf16.mxu0 %v6210_v60  ;;  %v2853_v17 = vor.u32 %v2852_v1, %v2849_v19  ;;  %v2858_v34 = vrot.slane %v2856_v59, 5  ;;  %v3156_v13 = vshrl.u32 %v2993_v51, 16  ;;  %v3161_v24 = vshrl.u32 %v2994_v56, 16 }
 0x157   : > { %v8188_v12 = vpop.f32.mrb[25].mxu1  ;;  %5379 = vmatmul.mubr.bf16.gmra.mrb[96].mxu1 %v6233_v61  ;;  %v3154_v4 = vsel %vm7405_vm2, %v3146_v47, %v3153_v35  ;;  %v2862_v63 = vrot.slane %v2860_v28, 4  ;;  %v2868_v22 = vrot.slane %v2866_v39, 5  ;;  %v3164_v21 = vshll.u32 %v2994_v56, 16  ;;  %v2508_v47 = vld [vmem:[#allocation2 + $0x14c] sm:$0xf] }
 0x158   : > { %v8192_v38 = vpop.f32.mrb[26].mxu1  ;;  %5386 = vmatprep.mubr.bf16.mxu1 %v7178_v31  ;;  %v6234_v57 = vcombine.low %v3145_v29, %v3154_v4  ;;  %v2854_v16 = vrot.slane %v2853_v17, 4  ;;  %v6219_v48 = vrot.slane %v3156_v13, 11  ;;  %v3163_v26 = vrot.slane %v3161_v24, 7  ;;  %v2509_v35 = vld [vmem:[#allocation2 + $0x150] sm:$0x1] }
 0x159   : > { %v8194_v60 = vpop.f32.mrb[27].mxu1  ;;  %v2863_v51 = vor.u32 %v2862_v63, %v2858_v34  ;;  %v3170_v19 = vshrl.u32 %v2995_v20, 16  ;;  %v3173_v1 = vshll.u32 %v2995_v20, 16  ;;  %v8198_v61 = vadd.f32 %v7993_v8, %v7989_v0  ;;  %v7180_v20 = vld [vmem:[#allocation2 + $0xa8] sm:$0xff]  }
 0x15a   : > { %9259 = vst [vmem:[#allocation21_spill] sm:$0xff] %v8194_v60  ;;  %v8200_v59 = vpop.f32.mrb[24].mxu0  ;;  %5290 = vmatmul.mubr.bf16.gmra.mrb[100].mxu0 %v7179_v23  ;;  %v2859_v56 = vsel %vm7616_vm6, %v2854_v16, %v2858_v34  ;;  %v3166_v17 = vor.u32 %v3164_v21, %v3163_v26  ;;  %v3168_v31 = vrot.slane %v3163_v26, 4  ;;  %v8206_v29 = vadd.f32 %v8017_v25, %v8009_v32  ;;  %v2996_v34 = vld [vmem:[#allocation2 + $0xb8] sm:$0x8] }
 0x15b   : > { %v8208_v28 = vpop.f32.mrb[25].mxu0  ;;  %v2864_v39 = vrot.slane %v2863_v51, 4  ;;  %v3172_v0 = vrot.slane %v3170_v19, 7  ;;  %v8212_v8 = vadd.f32 %v8007_v58, %v8003_v52  ;;  %v8216_v23 = vadd.f32 %v8023_v44, %v8021_v37  ;;  %v2997_v26 = vld [vmem:[#allocation2 + $0xbc] sm:$0xf]  ;;  %v7181_v44 = vld [vmem:[#allocation2 + $0x134] sm:$0xff]  }
 0x15c   : > { %9260 = vst [vmem:[#allocation22_spill] sm:$0xff] %v8206_v29  ;;  %v8218_v13 = vpop.f32.mrb[26].mxu0  ;;  %v3167_v32 = vsel %vm7405_vm2, %v6219_v48, %v3166_v17  ;;  %v2871_v25 = vshrl.u32 %v2507_v7, 16  ;;  %v2874_v24 = vshll.u32 %v2507_v7, 16  ;;  %v2880_v4 = vshll.u32 %v2508_v47, 16 }
 0x15d   : > { %9261 = vst [vmem:[#allocation23_spill] sm:$0xff] %v8216_v23  ;;  %v8222_v63 = vpop.f32.mrb[27].mxu0  ;;  %v2869_v21 = vsel %vm7616_vm6, %v2864_v39, %v2868_v22  ;;  %v3175_v52 = vor.u32 %v3173_v1, %v3172_v0  ;;  %v2884_v58 = vshrl.u32 %v2508_v47, 16  ;;  %v2890_v16 = vshll.u32 %v2509_v35, 16  ;;  %v2998_v29 = vld [vmem:[#allocation2 + $0xc0] sm:$0xf] }
 0x15e   : > { %v6211_v37 = vcombine.low %v2859_v56, %v2869_v21  ;;  %v2873_v51 = vrot.slane %v2871_v25, 4  ;;  %v2876_v19 = vrot.slane %v2874_v24, 5  ;;  %v2882_v23 = vrot.slane %v2880_v4, 5  ;;  %v3599_v24 = vld [vmem:[#allocation2 + $0x30] sm:$0xf] }
 0x15f   : > { %5387 = vmatmul.mubr.bf16.gmra.mrb[100].mxu1 %v6234_v57  ;;  %v3176_v48 = vsel %vm7405_vm2, %v3168_v31, %v3175_v52  ;;  %v2886_v7 = vrot.slane %v2884_v58, 4  ;;  %v2892_v17 = vrot.slane %v2890_v16, 5  ;;  %v3178_v60 = vshrl.u32 %v2996_v34, 16  ;;  %v2999_v58 = vld [vmem:[#allocation2 + $0xcc] sm:$0x8] }
 0x160   : > { %5297 = vmatprep.mubr.bf16.mxu0 %v6211_v37  ;;  %5394 = vmatprep.mubr.bf16.mxu1 %v7180_v20  ;;  %v6235_v22 = vcombine.low %v3167_v32, %v3176_v48  ;;  %v2877_v1 = vor.u32 %v2876_v19, %v2873_v51  ;;  %v3183_v47 = vshrl.u32 %v2997_v26, 16  ;;  %v3186_v35 = vshll.u32 %v2997_v26, 16  ;;  %v3600_v20 = vld [vmem:[#allocation2 + $0x34] sm:$0xf]  ;;  %v3601_v32 = vld [vmem:[#allocation2 + $0x38] sm:$0x1] }
 0x161   : > { %v2887_v39 = vor.u32 %v2886_v7, %v2882_v23  ;;  %v6220_v56 = vrot.slane %v3178_v60, 11  ;;  %v3192_v0 = vshrl.u32 %v2998_v29, 16  ;;  %v3195_v25 = vshll.u32 %v2998_v29, 16  ;;  %v3000_v51 = vld [vmem:[#allocation2 + $0xd0] sm:$0xf] }
 0x162   : > { %5298 = vmatmul.mubr.bf16.gmra.mrb[104].mxu0 %v7181_v44  ;;  %v2878_v4 = vrot.slane %v2877_v1, 4  ;;  %v3185_v57 = vrot.slane %v3183_v47, 7  ;;  %v8230_v31 = vadd.f32 %v8051_v45, %v8047_v33  ;;  %v8234_v34 = vadd.f32 %v8053_v46, %v8049_v11  ;;  %v7183_v45 = vld [vmem:[#allocation2 + $0xbc] sm:$0xff]   ;;  %v3001_v1 = vld [vmem:[#allocation2 + $0xd4] sm:$0xf] }
 0x163   : > { %v2888_v21 = vrot.slane %v2887_v39, 4  ;;  %v3194_v52 = vrot.slane %v3192_v0, 7  ;;  %v8238_v60 = vadd.f32 %v8061_v15, %v8055_v54  ;;  %v8242_v29 = vadd.f32 %v8063_v9, %v8057_v50  ;;  %v7184_v9 = vld [vmem:[#allocation2 + $0x148] sm:$0xff]  }
 0x164   : > { %9262 = vst [vmem:[#allocation24_spill] sm:$0xff] %v8234_v34  ;;  %v2883_v33 = vsel %vm7616_vm6, %v2878_v4, %v2882_v23  ;;  %v3188_v16 = vor.u32 %v3186_v35, %v3185_v57  ;;  %v3190_v11 = vrot.slane %v3185_v57, 4  ;;  %v3648_v46 = vshrl.u32 %v3599_v24, 16 }
 0x165   : > { %9263 = vst [vmem:[#allocation25_spill] sm:$0xff] %v8242_v29  ;;  %v2893_v37 = vsel %vm7616_vm6, %v2888_v21, %v2892_v17  ;;  %v3197_v44 = vor.u32 %v3195_v25, %v3194_v52  ;;  %v3651_v54 = vshll.u32 %v3599_v24, 16  ;;  %v3657_v15 = vshll.u32 %v3600_v20, 16  ;;  %v3602_v21 = vld [vmem:[#allocation2 + $0x44] sm:$0xf] }
 0x166   : > { %v8246_v26 = vpop.f32.mrb[28].mxu1  ;;  %v6212_v50 = vcombine.low %v2883_v33, %v2893_v37  ;;  %v3189_v23 = vsel %vm7405_vm2, %v6220_v56, %v3188_v16  ;;  %v3650_v48 = vrot.slane %v3648_v46, 4  ;;  %v3661_v7 = vshrl.u32 %v3600_v20, 16  ;;  %v3603_v46 = vld [vmem:[#allocation2 + $0x48] sm:$0xf] }
 0x167   : > { %v8250_v19 = vpop.f32.mrb[29].mxu1  ;;  %5395 = vmatmul.mubr.bf16.gmra.mrb[104].mxu1 %v6235_v22  ;;  %v3198_v17 = vsel %vm7405_vm2, %v3190_v11, %v3197_v44  ;;  %v3653_v35 = vrot.slane %v3651_v54, 5  ;;  %v3659_v39 = vrot.slane %v3657_v15, 5  ;;  %v3667_v0 = vshll.u32 %v3601_v32, 16 }
 0x168   : > { %v8254_v47 = vpop.f32.mrb[30].mxu1  ;;  %v8258_v25 = vpop.f32.mrb[28].mxu0  ;;  %5305 = vmatprep.mubr.bf16.mxu0 %v6212_v50  ;;  %5402 = vmatprep.mubr.bf16.mxu1 %v7183_v45  ;;  %v6236_v4 = vcombine.low %v3189_v23, %v3198_v17  ;;  %v3663_v56 = vrot.slane %v3661_v7, 4  ;;  %v3200_v57 = vshrl.u32 %v2999_v58, 16  ;;  %v3205_v20 = vshrl.u32 %v3000_v51, 16  ;;  %v7185_v17 = vld [vmem:[#allocation2 + $0xd0] sm:$0xff]  }
 0x169   : > { %v8260_v24 = vpop.f32.mrb[31].mxu1  ;;  %v8262_v52 = vpop.f32.mrb[29].mxu0  ;;  %v3654_v22 = vor.u32 %v3653_v35, %v3650_v48  ;;  %v3669_v33 = vrot.slane %v3667_v0, 5  ;;  %v3208_v16 = vshll.u32 %v3000_v51, 16  ;;  %v3214_v11 = vshrl.u32 %v3001_v1, 16 }
 0x16a   : > { %9264 = vst [vmem:[#allocation26_spill] sm:$0xff] %v8260_v24  ;;  %v8264_v37 = vpop.f32.mrb[30].mxu0  ;;  %5306 = vmatmul.mubr.bf16.gmra.mrb[108].mxu0 %v7184_v9  ;;  %v3664_v32 = vor.u32 %v3663_v56, %v3659_v39  ;;  %v6221_v44 = vrot.slane %v3200_v57, 11  ;;  %v3207_v54 = vrot.slane %v3205_v20, 7  ;;  %v3217_v15 = vshll.u32 %v3001_v1, 16 }
 0x16b   : > { %v8266_v45 = vpop.f32.mrb[31].mxu0  ;;  %v3655_v50 = vrot.slane %v3654_v22, 4  ;;  %v3216_v58 = vrot.slane %v3214_v11, 7  ;;  %v3672_v23 = vshrl.u32 %v3602_v21, 16  ;;  %v3675_v7 = vshll.u32 %v3602_v21, 16 }
 0x16c   : > { %v3665_v29 = vrot.slane %v3664_v32, 4  ;;  %v3210_v48 = vor.u32 %v3208_v16, %v3207_v54  ;;  %v3212_v35 = vrot.slane %v3207_v54, 4  ;;  %v3604_v51 = vld [vmem:[#allocation2 + $0x4c] sm:$0x1]  ;;  %v3681_v0 = vshll.u32 %v3603_v46, 16 }
 0x16d   : > { %v3660_v34 = vsel %vm7616_vm6, %v3655_v50, %v3659_v39  ;;  %v3219_v9 = vor.u32 %v3217_v15, %v3216_v58  ;;  %v3674_v56 = vrot.slane %v3672_v23, 4  ;;  %v3677_v57 = vrot.slane %v3675_v7, 5  ;;  %v3605_v24 = vld [vmem:[#allocation2 + $0x58] sm:$0xf]  ;;  %v3606_v39 = vld [vmem:[#allocation2 + $0x5c] sm:$0xf] }
 0x16e   : > { %v3670_v1 = vsel %vm7616_vm6, %v3665_v29, %v3669_v33  ;;  %v3211_v20 = vsel %vm7405_vm2, %v6221_v44, %v3210_v48  ;;  %v3683_v22 = vrot.slane %v3681_v0, 5  ;;  %v3685_v21 = vshrl.u32 %v3603_v46, 16  ;;  %v3003_v7 = vld [vmem:[#allocation2 + $0xe4] sm:$0xf] }
 0x16f   : > { %5403 = vmatmul.mubr.bf16.gmra.mrb[108].mxu1 %v6236_v4  ;;  %v6261_v11 = vcombine.low %v3660_v34, %v3670_v1  ;;  %v3220_v16 = vsel %vm7405_vm2, %v3212_v35, %v3219_v9  ;;  %v3678_v32 = vor.u32 %v3677_v57, %v3674_v56  ;;  %v3691_v54 = vshll.u32 %v3604_v51, 16  ;;  %v3607_v4 = vld [vmem:[#allocation2 + $0x60] sm:$0x1]  ;;  %v3002_v34 = vld [vmem:[#allocation2 + $0xe0] sm:$0x8]  ;;  %v7186_v51 = vld [vmem:[#allocation2 + $0xe4] sm:$0xff]  }
 0x170   : > { %5410 = vmatprep.mubr.bf16.mxu1 %v7185_v17  ;;  %v6237_v15 = vcombine.low %v3211_v20, %v3220_v16  ;;  %v3687_v50 = vrot.slane %v3685_v21, 4  ;;  %v8278_v29 = vadd.f32 %v8067_v10, %v8065_v62  ;;  %v8282_v33 = vadd.f32 %v8090_v3, %v8086_v2  ;;  %v3004_v2 = vld [vmem:[#allocation2 + $0xe8] sm:$0xf] }
 0x171   : > { %7016 = vmatprep.mubr.bf16.mxu0 %v6261_v11  ;;  %v3679_v46 = vrot.slane %v3678_v32, 4  ;;  %v3693_v44 = vrot.slane %v3691_v54, 5  ;;  %v8286_v58 = vadd.f32 %v8088_v27, %v8071_v6  ;;  %v8290_v23 = vadd.f32 %v8096_v49, %v8094_v36  ;;  %v3608_v27 = vld [vmem:[#allocation2 + $0x6c] sm:$0xf] }
 0x172   : > { %9265 = vst [vmem:[#allocation27_spill] sm:$0xff] %v8282_v33  ;;  %v3688_v62 = vor.u32 %v3687_v50, %v3683_v22  ;;  %v3696_v10 = vshrl.u32 %v3605_v24, 16  ;;  %v3699_v17 = vshll.u32 %v3605_v24, 16  ;;  %v3705_v48 = vshll.u32 %v3606_v39, 16 }
 0x173   : > { %9266 = vst [vmem:[#allocation28_spill] sm:$0xff] %v8290_v23  ;;  %v8292_v3 = vpop.f32.mrb[32].mxu1  ;;  %v3684_v35 = vsel %vm7616_vm6, %v3679_v46, %v3683_v22  ;;  %v3709_v0 = vshrl.u32 %v3606_v39, 16  ;;  %v3715_v9 = vshll.u32 %v3607_v4, 16  ;;  %v3222_v6 = vshrl.u32 %v3002_v34, 16 }
 0x174   : > { %v8296_v56 = vpop.f32.mrb[32].mxu0  ;;  %v8298_v36 = vpop.f32.mrb[33].mxu1  ;;  %v3689_v49 = vrot.slane %v3688_v62, 4  ;;  %v3698_v57 = vrot.slane %v3696_v10, 4  ;;  %v3701_v1 = vrot.slane %v3699_v17, 5  ;;  %v3707_v24 = vrot.slane %v3705_v48, 5 }
 0x175   : > { %v8300_v20 = vpop.f32.mrb[33].mxu0  ;;  %v8302_v21 = vpop.f32.mrb[34].mxu1  ;;  %v3711_v11 = vrot.slane %v3709_v0, 4  ;;  %v3717_v16 = vrot.slane %v3715_v9, 5  ;;  %v6222_v22 = vrot.slane %v3222_v6, 11  ;;  %v3227_v32 = vshrl.u32 %v3003_v7, 16 }
 0x176   : > { %9267 = vst [vmem:[#allocation29_spill] sm:$0xff] %v8302_v21  ;;  %v8304_v54 = vpop.f32.mrb[34].mxu0  ;;  %v8306_v39 = vpop.f32.mrb[35].mxu1  ;;  %v3694_v50 = vsel %vm7616_vm6, %v3689_v49, %v3693_v44  ;;  %v3702_v4 = vor.u32 %v3701_v1, %v3698_v57  ;;  %v3230_v34 = vshll.u32 %v3003_v7, 16  ;;  %v3236_v46 = vshrl.u32 %v3004_v2, 16 }
 0x177   : > { %9268 = vst [vmem:[#allocation30_spill] sm:$0xff] %v8304_v54  ;;  %9269 = vst [vmem:[#allocation31_spill] sm:$0xff] %v8306_v39  ;;  %v3609_v62 = vld [vmem:[#allocation2 + $0x70] sm:$0xf]  ;;  %v8310_v10 = vpop.f32.mrb[35].mxu0  ;;  %5411 = vmatmul.mubr.bf16.gmra.mrb[112].mxu1 %v6237_v15  ;;  %v6262_v17 = vcombine.low %v3684_v35, %v3694_v50  ;;  %v3712_v48 = vor.u32 %v3711_v11, %v3707_v24  ;;  %v3229_v0 = vrot.slane %v3227_v32, 7 }
 0x178   : > { %v3239_v9 = vshll.u32 %v3004_v2, 16  ;;  %5418 = vmatprep.mubr.bf16.mxu1 %v7186_v51  ;;  %v3703_v6 = vrot.slane %v3702_v4, 4  ;;  %v3238_v23 = vrot.slane %v3236_v46, 7  ;;  %v3720_v33 = vshrl.u32 %v3608_v27, 16  ;;  %v3610_v49 = vld [vmem:[#allocation2 + $0x74] sm:$0x1] }
 0x179   : > { %v3723_v21 = vshll.u32 %v3608_v27, 16  ;;  %7017 = vmatmul.mubr.bf16.vlgmr.msra.gmra.mrb[112].mxu0 %v6262_v17  ;;  %v3713_v39 = vrot.slane %v3712_v48, 4  ;;  %v3232_v54 = vor.u32 %v3230_v34, %v3229_v0  ;;  %v3234_v44 = vrot.slane %v3229_v0, 4  ;;  %v7187_v46 = vld [vmem:[#allocation2 + $0xf8] sm:$0xff]   ;;  %v3611_v17 = vld [vmem:[#allocation2 + $0x80] sm:$0xf] }
 0x17a   : > { %v3729_v7 = vshll.u32 %v3609_v62, 16  ;;  %v3708_v57 = vsel %vm7616_vm6, %v3703_v6, %v3707_v24  ;;  %v3241_v1 = vor.u32 %v3239_v9, %v3238_v23  ;;  %v3722_v15 = vrot.slane %v3720_v33, 4  ;;  %v3612_v24 = vld [vmem:[#allocation2 + $0x84] sm:$0xf]  ;;  %v9271_v0 = vld [vmem:[#allocation4_spill] sm:$0xff]  ;;  %v9272_v9 = vld [vmem:[#allocation5_spill] sm:$0xff] }
 0x17b   : > { %v3725_v35 = vrot.slane %v3723_v21, 5  ;;  %v3718_v2 = vsel %vm7616_vm6, %v3713_v39, %v3717_v16  ;;  %v3233_v51 = vsel %vm7405_vm2, %v6222_v22, %v3232_v54  ;;  %v3733_v27 = vshrl.u32 %v3609_v62, 16  ;;  %v3613_v22 = vld [vmem:[#allocation2 + $0x88] sm:$0x1]  ;;  %v3005_v54 = vld [vmem:[#allocation2 + $0xf4] sm:$0x8] }
 0x17c   : > { %v3731_v11 = vrot.slane %v3729_v7, 5  ;;  %v6263_v32 = vcombine.low %v3708_v57, %v3718_v2  ;;  %v3242_v50 = vsel %vm7405_vm2, %v3234_v44, %v3241_v1  ;;  %v3739_v34 = vshll.u32 %v3610_v49, 16  ;;  %v3006_v44 = vld [vmem:[#allocation2 + $0xf8] sm:$0xf]  ;;  %v3007_v7 = vld [vmem:[#allocation2 + $0xfc] sm:$0xf] }
 0x17d   : > { %v3726_v4 = vor.u32 %v3725_v35, %v3722_v15  ;;  %v6238_v23 = vcombine.low %v3233_v51, %v3242_v50  ;;  %v3735_v33 = vrot.slane %v3733_v27, 4  ;;  %v8322_v21 = vadd.f32 %v8108_v41, %v8098_v53  ;;  %v3614_v35 = vld [vmem:[#allocation2 + $0x94] sm:$0xf] }
 0x17e   : > { %v8326_v16 = vadd.f32 %v8112_v40, %v8102_v5  ;;  %7020 = vmatprep.mubr.bf16.mxu0 %v6263_v32  ;;  %v3741_v62 = vrot.slane %v3739_v34, 5  ;;  %v8330_v48 = vadd.f32 %v8118_v43, %v8114_v55  ;;  %v8334_v6 = vadd.f32 %v9272_v9, %v9271_v0 }
 0x17f   : > { %v3727_v39 = vrot.slane %v3726_v4, 4  ;;  %v8336_v53 = vpop.f32.mrb[36].mxu1  ;;  %5419 = vmatmul.mubr.bf16.gmra.mrb[116].mxu1 %v6238_v23  ;;  %v3736_v41 = vor.u32 %v3735_v33, %v3731_v11  ;;  %v3744_v5 = vshrl.u32 %v3611_v17, 16  ;;  %v3747_v40 = vshll.u32 %v3611_v17, 16 }
 0x180   : > { %9270 = vst [vmem:[#allocation32_spill] sm:$0xff] %v8326_v16  ;;  %9273 = vst [vmem:[#allocation4_spill] sm:$0xff] %v8334_v6  ;;  %v3753_v49 = vshll.u32 %v3612_v24, 16  ;;  %v8338_v57 = vpop.f32.mrb[37].mxu1  ;;  %5426 = vmatprep.mubr.bf16.mxu1 %v7187_v46  ;;  %v3757_v55 = vshrl.u32 %v3612_v24, 16  ;;  %v3763_v43 = vshll.u32 %v3613_v22, 16 }
 0x181   : > { %v3732_v1 = vsel %vm7616_vm6, %v3727_v39, %v3731_v11  ;;  %v3244_v15 = vshrl.u32 %v3005_v54, 16  ;;  %v8342_v2 = vpop.f32.mrb[38].mxu1  ;;  %v3737_v51 = vrot.slane %v3736_v41, 4  ;;  %v3746_v27 = vrot.slane %v3744_v5, 4  ;;  %v3615_v54 = vld [vmem:[#allocation2 + $0x98] sm:$0xf] }
 0x182   : > { %9274 = vst [vmem:[#allocation5_spill] sm:$0xff] %v8342_v2  ;;  %v3749_v32 = vrot.slane %v3747_v40, 5  ;;  %v3755_v50 = vrot.slane %v3753_v49, 5  ;;  %v8344_v4 = vpop.f32.mrb[39].mxu1  ;;  %v3759_v34 = vrot.slane %v3757_v55, 4  ;;  %v3765_v17 = vrot.slane %v3763_v43, 5 }
 0x183   : > { %9275 = vst [vmem:[#allocation33_spill] sm:$0xff] %v8344_v4  ;;  %v6223_v23 = vrot.slane %v3244_v15, 11  ;;  %v3249_v33 = vshrl.u32 %v3006_v44, 16  ;;  %v3742_v11 = vsel %vm7616_vm6, %v3737_v51, %v3741_v62  ;;  %v3252_v24 = vshll.u32 %v3006_v44, 16  ;;  %v7188_v4 = vld [vmem:[#allocation2 + $0x10c] sm:$0xff]  }
 0x184   : > { %v8346_v0 = vpop.f32.mrb[36].mxu0  ;;  %v3750_v46 = vor.u32 %v3749_v32, %v3746_v27  ;;  %v3258_v22 = vshrl.u32 %v3007_v7, 16  ;;  %v6264_v9 = vcombine.low %v3732_v1, %v3742_v11  ;;  %v3760_v41 = vor.u32 %v3759_v34, %v3755_v50  ;;  %v3616_v27 = vld [vmem:[#allocation2 + $0x9c] sm:$0x1]  ;;  %v3617_v2 = vld [vmem:[#allocation2 + $0xa8] sm:$0xf] }
 0x185   : > { %v8350_v39 = vpop.f32.mrb[37].mxu0  ;;  %v3251_v5 = vrot.slane %v3249_v33, 7  ;;  %v3261_v40 = vshll.u32 %v3007_v7, 16  ;;  %v3768_v15 = vshrl.u32 %v3614_v35, 16  ;;  %v3771_v6 = vshll.u32 %v3614_v35, 16 }
 0x186   : > { %v8352_v49 = vpop.f32.mrb[38].mxu0  ;;  %v3751_v55 = vrot.slane %v3750_v46, 4  ;;  %v3260_v43 = vrot.slane %v3258_v22, 7  ;;  %7021 = vmatmul.mubr.bf16.gmra.mrb[116].mxu0 %v6264_v9  ;;  %v3761_v62 = vrot.slane %v3760_v41, 4  ;;  %v3777_v32 = vshll.u32 %v3615_v54, 16 }
 0x187   : > { %v8354_v16 = vpop.f32.mrb[39].mxu0  ;;  %v3254_v51 = vor.u32 %v3252_v24, %v3251_v5  ;;  %v3256_v44 = vrot.slane %v3251_v5, 4  ;;  %v3770_v33 = vrot.slane %v3768_v15, 4  ;;  %v3773_v7 = vrot.slane %v3771_v6, 5  ;;  %v9277_v6 = vld [vmem:[#allocation7_spill] sm:$0xff] }
 0x188   : > { %9276 = vst [vmem:[#allocation34_spill] sm:$0xff] %v8354_v16  ;;  %v3756_v1 = vsel %vm7616_vm6, %v3751_v55, %v3755_v50  ;;  %v3263_v34 = vor.u32 %v3261_v40, %v3260_v43  ;;  %v3766_v11 = vsel %vm7616_vm6, %v3761_v62, %v3765_v17  ;;  %v3779_v46 = vrot.slane %v3777_v32, 5  ;;  %v9278_v17 = vld [vmem:[#allocation6_spill] sm:$0xff]  ;;  %v9279_v43 = vld [vmem:[#allocation8_spill] sm:$0xff]  ;;  %v9281_v32 = vld [vmem:[#allocation11_spill] sm:$0xff] }
 0x189   : > { %v3255_v35 = vsel %vm7405_vm2, %v6223_v23, %v3254_v51  ;;  %v3781_v22 = vshrl.u32 %v3615_v54, 16  ;;  %v6265_v9 = vcombine.low %v3756_v1, %v3766_v11  ;;  %v3774_v41 = vor.u32 %v3773_v7, %v3770_v33  ;;  %v3618_v23 = vld [vmem:[#allocation2 + $0xac] sm:$0xf]  ;;  %v9280_v51 = vld [vmem:[#allocation9_spill] sm:$0xff] }
 0x18a   : > { %v3264_v24 = vsel %vm7405_vm2, %v3256_v44, %v3263_v34  ;;  %v3787_v5 = vshll.u32 %v3616_v27, 16  ;;  %v8366_v55 = vadd.f32 %v9277_v6, %v8130_v18  ;;  %v6658_v15 = vadd.f32 %v9279_v43, %v9278_v17  ;;  %v9282_v27 = vld [vmem:[#allocation10_spill] sm:$0xff]  ;;  %v9283_v1 = vld [vmem:[#allocation12_spill] sm:$0xff]  ;;  %v3619_v33 = vld [vmem:[#allocation2 + $0xb0] sm:$0x1] }
 0x18b   : > { %v6239_v50 = vcombine.low %v3255_v35, %v3264_v24  ;;  %v3783_v40 = vrot.slane %v3781_v22, 4  ;;  %7024 = vmatprep.mubr.bf16.mxu0 %v6265_v9  ;;  %v3775_v54 = vrot.slane %v3774_v41, 4  ;;  %v8372_v44 = vadd.f32 %v9281_v32, %v9280_v51  ;;  %v3008_v22 = vld [vmem:[#allocation2 + $0x108] sm:$0x8]  ;;  %v3009_v24 = vld [vmem:[#allocation2 + $0x10c] sm:$0xf] }
 0x18c   : > { %v3789_v62 = vrot.slane %v3787_v5, 5  ;;  %v6661_v34 = vadd.f32 %v9283_v1, %v9282_v27  ;;  %v8377_v18 = vadd.f32 %v6658_v15, %v8198_v61  ;;  %v3792_v11 = vshrl.u32 %v3617_v2, 16  ;;  %v3010_v17 = vld [vmem:[#allocation2 + $0x110] sm:$0xf]  ;;  %v3620_v43 = vld [vmem:[#allocation2 + $0xbc] sm:$0xf] }
 0x18d   : > { %5427 = vmatmul.mubr.bf16.gmra.mrb[120].mxu1 %v6239_v50  ;;  %v3784_v7 = vor.u32 %v3783_v40, %v3779_v46  ;;  %v3795_v35 = vshll.u32 %v3617_v2, 16  ;;  %v3780_v9 = vsel %vm7616_vm6, %v3775_v54, %v3779_v46  ;;  %v3801_v5 = vshll.u32 %v3618_v23, 16  ;;  %v8384_v50 = vpop.f32.mrb[40].mxu1 }
 0x18e   : > { %9284 = vst [vmem:[#allocation7_spill] sm:$0xff] %v8377_v18  ;;  %v8382_v41 = vadd.f32 %v6661_v34, %v8212_v8  ;;  %5434 = vmatprep.mubr.bf16.mxu1 %v7188_v4  ;;  %v3805_v6 = vshrl.u32 %v3618_v23, 16  ;;  %9286 = vst [vmem:[#allocation8_spill] sm:$0xff] %v8384_v50  ;;  %v3794_v61 = vrot.slane %v3792_v11, 4  ;;  %v3811_v51 = vshll.u32 %v3619_v33, 16  ;;  %v8386_v2 = vpop.f32.mrb[41].mxu1 }
 0x18f   : > { %v3785_v40 = vrot.slane %v3784_v7, 4  ;;  %v3797_v15 = vrot.slane %v3795_v35, 5  ;;  %9287 = vst [vmem:[#allocation9_spill] sm:$0xff] %v8386_v2  ;;  %v3803_v32 = vrot.slane %v3801_v5, 5  ;;  %v3266_v1 = vshrl.u32 %v3008_v22, 16  ;;  %v8388_v54 = vpop.f32.mrb[42].mxu1 }
 0x190   : > { %9285 = vst [vmem:[#allocation6_spill] sm:$0xff] %v8382_v41  ;;  %v3807_v27 = vrot.slane %v3805_v6, 4  ;;  %v3271_v46 = vshrl.u32 %v3009_v24, 16  ;;  %9288 = vst [vmem:[#allocation11_spill] sm:$0xff] %v8388_v54  ;;  %v3813_v23 = vrot.slane %v3811_v51, 5  ;;  %v3274_v34 = vshll.u32 %v3009_v24, 16 }
 0x191   : > { %v3790_v8 = vsel %vm7616_vm6, %v3785_v40, %v3789_v62  ;;  %v3798_v4 = vor.u32 %v3797_v15, %v3794_v61  ;;  %v8392_v41 = vpop.f32.mrb[40].mxu0  ;;  %v8394_v7 = vpop.f32.mrb[43].mxu1  ;;  %v6224_v35 = vrot.slane %v3266_v1, 11  ;;  %v3621_v5 = vld [vmem:[#allocation2 + $0xc0] sm:$0xf]  ;;  %v3280_v2 = vshrl.u32 %v3010_v17, 16 }
 0x192   : > { %9289 = vst [vmem:[#allocation10_spill] sm:$0xff] %v8392_v41  ;;  %9290 = vst [vmem:[#allocation12_spill] sm:$0xff] %v8394_v7  ;;  %v6266_v11 = vcombine.low %v3780_v9, %v3790_v8  ;;  %v3808_v33 = vor.u32 %v3807_v27, %v3803_v32  ;;  %v3273_v18 = vrot.slane %v3271_v46, 7  ;;  %v8396_v6 = vpop.f32.mrb[41].mxu0  ;;  %v3283_v54 = vshll.u32 %v3010_v17, 16 }
 0x193   : > { %9291 = vst [vmem:[#allocation35_spill] sm:$0xff] %v8396_v6  ;;  %v3799_v22 = vrot.slane %v3798_v4, 4  ;;  %v3816_v50 = vshrl.u32 %v3620_v43, 16  ;;  %v8398_v16 = vpop.f32.mrb[42].mxu0  ;;  %v3622_v61 = vld [vmem:[#allocation2 + $0xc4] sm:$0x1] }
 0x194   : > { %9292 = vst [vmem:[#allocation36_spill] sm:$0xff] %v8398_v16  ;;  %7025 = vmatmul.mubr.bf16.gmra.mrb[120].mxu0 %v6266_v11  ;;  %v3809_v62 = vrot.slane %v3808_v33, 4  ;;  %v3276_v24 = vor.u32 %v3274_v34, %v3273_v18  ;;  %v3278_v40 = vrot.slane %v3273_v18, 4  ;;  %v3819_v15 = vshll.u32 %v3620_v43, 16  ;;  %v8400_v51 = vpop.f32.mrb[43].mxu0  ;;  %v9294_v16 = vld [vmem:[#allocation17_spill] sm:$0xff] }
 0x195   : > { %9293 = vst [vmem:[#allocation37_spill] sm:$0xff] %v8400_v51  ;;  %v3804_v9 = vsel %vm7616_vm6, %v3799_v22, %v3803_v32  ;;  %v3282_v27 = vrot.slane %v3280_v2, 7  ;;  %v3818_v1 = vrot.slane %v3816_v50, 4  ;;  %v3825_v46 = vshll.u32 %v3621_v5, 16  ;;  %v9295_v6 = vld [vmem:[#allocation18_spill] sm:$0xff]  ;;  %v9296_v50 = vld [vmem:[#allocation13_spill] sm:$0xff] }
 0x196   : > { %v3814_v17 = vsel %vm7616_vm6, %v3809_v62, %v3813_v23  ;;  %v3277_v8 = vsel %vm7405_vm2, %v6224_v35, %v3276_v24  ;;  %v3821_v4 = vrot.slane %v3819_v15, 5  ;;  %v3829_v11 = vshrl.u32 %v3621_v5, 16  ;;  %v9297_v2 = vld [vmem:[#allocation14_spill] sm:$0xff]  ;;  %v3623_v41 = vld [vmem:[#allocation2 + $0xd0] sm:$0xf]  ;;  %v9298_v62 = vld [vmem:[#allocation19_spill] sm:$0xff] }
 0x197   : > { %v6267_v34 = vcombine.low %v3804_v9, %v3814_v17  ;;  %v3285_v18 = vor.u32 %v3283_v54, %v3282_v27  ;;  %v3827_v33 = vrot.slane %v3825_v46, 5  ;;  %v3835_v43 = vshll.u32 %v3622_v61, 16  ;;  %v3624_v23 = vld [vmem:[#allocation2 + $0xd4] sm:$0xf]  ;;  %v9299_v54 = vld [vmem:[#allocation20_spill] sm:$0xff]  ;;  %v9300_v61 = vld [vmem:[#allocation15_spill] sm:$0xff] }
 0x198   : > { %v3822_v7 = vor.u32 %v3821_v4, %v3818_v1  ;;  %v3831_v51 = vrot.slane %v3829_v11, 4  ;;  %v8410_v32 = vadd.f32 %v9295_v6, %v9294_v16  ;;  %v6664_v22 = vadd.f32 %v9297_v2, %v9296_v50  ;;  %v9301_v15 = vld [vmem:[#allocation16_spill] sm:$0xff]  ;;  %v7189_v27 = vld [vmem:[#allocation2 + $0x120] sm:$0xff]   ;;  %v3625_v16 = vld [vmem:[#allocation2 + $0xd8] sm:$0x1] }
 0x199   : > { %7028 = vmatprep.mubr.bf16.mxu0 %v6267_v34  ;;  %v3286_v35 = vsel %vm7405_vm2, %v3278_v40, %v3285_v18  ;;  %v3837_v5 = vrot.slane %v3835_v43, 5  ;;  %v8418_v24 = vadd.f32 %v9299_v54, %v9298_v62  ;;  %v6667_v9 = vadd.f32 %v9301_v15, %v9300_v61  ;;  %v3011_v4 = vld [vmem:[#allocation2 + $0x11c] sm:$0x8]  ;;  %v3012_v11 = vld [vmem:[#allocation2 + $0x120] sm:$0xf] }
 0x19a   : > { %v6240_v6 = vcombine.low %v3277_v8, %v3286_v35  ;;  %v3823_v1 = vrot.slane %v3822_v7, 4  ;;  %v3832_v46 = vor.u32 %v3831_v51, %v3827_v33  ;;  %v8423_v17 = vadd.f32 %v6664_v22, %v8230_v31  ;;  %v3013_v50 = vld [vmem:[#allocation2 + $0x124] sm:$0xf]  ;;  %v3627_v35 = vld [vmem:[#allocation2 + $0xe8] sm:$0xf]  ;;  %v9332_v42 = vld [vmem:[#allocation10_spill] sm:$0xff] }
 0x19b   : > { %v8426_v40 = vadd.f32 %v6667_v9, %v8238_v60  ;;  %v3840_v34 = vshrl.u32 %v3623_v41, 16  ;;  %v3843_v18 = vshll.u32 %v3623_v41, 16  ;;  %v3849_v43 = vshll.u32 %v3624_v23, 16  ;;  %v3626_v51 = vld [vmem:[#allocation2 + $0xe4] sm:$0xf]  ;;  %v8430_v31 = vpop.f32.mrb[44].mxu1 }
 0x19c   : > { %9302 = vst [vmem:[#allocation17_spill] sm:$0xff] %v8423_v17  ;;  %5435 = vmatmul.mubr.bf16.gmra.mrb[124].mxu1 %v6240_v6  ;;  %v3828_v2 = vsel %vm7616_vm6, %v3823_v1, %v3827_v33  ;;  %v3833_v62 = vrot.slane %v3832_v46, 4  ;;  %v3853_v8 = vshrl.u32 %v3624_v23, 16  ;;  %v3859_v7 = vshll.u32 %v3625_v16, 16  ;;  %9304 = vst [vmem:[#allocation13_spill] sm:$0xff] %v8430_v31  ;;  %v8432_v15 = vpop.f32.mrb[45].mxu1 }
 0x19d   : > { %9303 = vst [vmem:[#allocation18_spill] sm:$0xff] %v8426_v40  ;;  %5442 = vmatprep.mubr.bf16.mxu1 %v7189_v27  ;;  %v3842_v22 = vrot.slane %v3840_v34, 4  ;;  %v3845_v54 = vrot.slane %v3843_v18, 5  ;;  %v3851_v60 = vrot.slane %v3849_v43, 5  ;;  %v3288_v61 = vshrl.u32 %v3011_v4, 16  ;;  %9305 = vst [vmem:[#allocation14_spill] sm:$0xff] %v8432_v15 }
 0x19e   : > { %v3838_v41 = vsel %vm7616_vm6, %v3833_v62, %v3837_v5  ;;  %v3855_v9 = vrot.slane %v3853_v8, 4  ;;  %v3861_v6 = vrot.slane %v3859_v7, 5  ;;  %v3293_v33 = vshrl.u32 %v3012_v11, 16  ;;  %v8436_v1 = vpop.f32.mrb[44].mxu0  ;;  %v8438_v23 = vpop.f32.mrb[46].mxu1 }
 0x19f   : > { %9306 = vst [vmem:[#allocation19_spill] sm:$0xff] %v8438_v23  ;;  %v6268_v16 = vcombine.low %v3828_v2, %v3838_v41  ;;  %v3846_v46 = vor.u32 %v3845_v54, %v3842_v22  ;;  %v6225_v40 = vrot.slane %v3288_v61, 11  ;;  %v3296_v27 = vshll.u32 %v3012_v11, 16  ;;  %v8440_v34 = vpop.f32.mrb[45].mxu0  ;;  %v8442_v18 = vpop.f32.mrb[47].mxu1 }
 0x1a0   : > { %9307 = vst [vmem:[#allocation20_spill] sm:$0xff] %v8442_v18  ;;  %v3856_v4 = vor.u32 %v3855_v9, %v3851_v60  ;;  %v3295_v43 = vrot.slane %v3293_v33, 7  ;;  %v3302_v17 = vshrl.u32 %v3013_v50, 16  ;;  %v3305_v15 = vshll.u32 %v3013_v50, 16  ;;  %v8444_v5 = vpop.f32.mrb[46].mxu0 }
 0x1a1   : > { %7029 = vmatmul.mubr.bf16.gmra.mrb[124].mxu0 %v6268_v16  ;;  %v3847_v62 = vrot.slane %v3846_v46, 4  ;;  %v3864_v8 = vshrl.u32 %v3626_v51, 16  ;;  %v3867_v7 = vshll.u32 %v3626_v51, 16  ;;  %v3873_v31 = vshll.u32 %v3627_v35, 16  ;;  %v8446_v23 = vpop.f32.mrb[47].mxu0 }
 0x1a2   : > { %9308 = vst [vmem:[#allocation15_spill] sm:$0xff] %v8446_v23  ;;  %v3857_v2 = vrot.slane %v3856_v4, 4  ;;  %v3298_v22 = vor.u32 %v3296_v27, %v3295_v43  ;;  %v3300_v11 = vrot.slane %v3295_v43, 4  ;;  %v3304_v54 = vrot.slane %v3302_v17, 7  ;;  %v3628_v61 = vld [vmem:[#allocation2 + $0xec] sm:$0x1] }
 0x1a3   : > { %v3852_v41 = vsel %vm7616_vm6, %v3847_v62, %v3851_v60  ;;  %v3866_v9 = vrot.slane %v3864_v8, 4  ;;  %v3869_v33 = vrot.slane %v3867_v7, 5  ;;  %v3875_v50 = vrot.slane %v3873_v31, 5  ;;  %v3629_v43 = vld [vmem:[#allocation2 + $0xf8] sm:$0xf] }
 0x1a4   : > { %v3862_v16 = vsel %vm7616_vm6, %v3857_v2, %v3861_v6  ;;  %v3299_v51 = vsel %vm7405_vm2, %v6225_v40, %v3298_v22  ;;  %v3307_v46 = vor.u32 %v3305_v15, %v3304_v54  ;;  %v3877_v18 = vshrl.u32 %v3627_v35, 16  ;;  %v7190_v35 = vld [vmem:[#allocation2 + $0x134] sm:$0xff]   ;;  %v3630_v15 = vld [vmem:[#allocation2 + $0xfc] sm:$0xf]  ;;  %v3631_v62 = vld [vmem:[#allocation2 + $0x100] sm:$0x1] }
 0x1a5   : > { %v6269_v23 = vcombine.low %v3852_v41, %v3862_v16  ;;  %v3870_v4 = vor.u32 %v3869_v33, %v3866_v9  ;;  %v3883_v27 = vshll.u32 %v3628_v61, 16  ;;  %v8456_v17 = vadd.f32 %v8208_v28, %v8200_v59  ;;  %v9309_v28 = vld [vmem:[#allocation21_spill] sm:$0xff]  ;;  %v3016_v9 = vld [vmem:[#allocation2 + $0x138] sm:$0xf]  ;;  %v3632_v33 = vld [vmem:[#allocation2 + $0x10c] sm:$0xf] }
 0x1a6   : > { %v3308_v60 = vsel %vm7405_vm2, %v3300_v11, %v3307_v46  ;;  %v3879_v31 = vrot.slane %v3877_v18, 4  ;;  %v6670_v6 = vadd.f32 %v8188_v12, %v8186_v30  ;;  %v8464_v40 = vadd.f32 %v8222_v63, %v8218_v13  ;;  %v3014_v22 = vld [vmem:[#allocation2 + $0x130] sm:$0x8]  ;;  %v8468_v11 = vpop.f32.mrb[48].mxu0  ;;  %v3015_v63 = vld [vmem:[#allocation2 + $0x134] sm:$0xf] }
 0x1a7   : > { %7032 = vmatprep.mubr.bf16.mxu0 %v6269_v23  ;;  %v6241_v8 = vcombine.low %v3299_v51, %v3308_v60  ;;  %v3871_v7 = vrot.slane %v3870_v4, 4  ;;  %v3885_v59 = vrot.slane %v3883_v27, 5  ;;  %v6673_v2 = vadd.f32 %v9309_v28, %v8192_v38  ;;  %v8473_v54 = vpop.f32.mrb[49].mxu0 }
 0x1a8   : > { %v3880_v18 = vor.u32 %v3879_v31, %v3875_v50  ;;  %v8471_v30 = vadd.f32 %v6670_v6, %v8278_v29  ;;  %v3888_v12 = vshrl.u32 %v3629_v43, 16  ;;  %v3891_v13 = vshll.u32 %v3629_v43, 16  ;;  %v8480_v16 = vpop.f32.mrb[50].mxu0 }
 0x1a9   : > { %5443 = vmatmul.mubr.bf16.gmra.mrb[128].mxu1 %v6241_v8  ;;  %v3876_v23 = vsel %vm7616_vm6, %v3871_v7, %v3875_v50  ;;  %v8478_v61 = vadd.f32 %v6673_v2, %v8286_v58  ;;  %v3897_v38 = vshll.u32 %v3630_v15, 16  ;;  %v3901_v41 = vshrl.u32 %v3630_v15, 16  ;;  %v8482_v27 = vpop.f32.mrb[51].mxu0  ;;  %v8484_v6 = vpop.f32.mrb[48].mxu1 }
 0x1aa   : > { %9310 = vst [vmem:[#allocation16_spill] sm:$0xff] %v8471_v30  ;;  %v3881_v29 = vrot.slane %v3880_v18, 4  ;;  %5450 = vmatprep.mubr.bf16.mxu1 %v7190_v35  ;;  %v3890_v51 = vrot.slane %v3888_v12, 4  ;;  %v3893_v46 = vrot.slane %v3891_v13, 5  ;;  %v3907_v4 = vshll.u32 %v3631_v62, 16  ;;  %9312 = vst [vmem:[#allocation38_spill] sm:$0xff] %v8482_v27 }
 0x1ab   : > { %9311 = vst [vmem:[#allocation21_spill] sm:$0xff] %v8478_v61  ;;  %v3899_v43 = vrot.slane %v3897_v38, 5  ;;  %v3903_v60 = vrot.slane %v3901_v41, 4  ;;  %v3310_v31 = vshrl.u32 %v3014_v22, 16  ;;  %v3315_v50 = vshrl.u32 %v3015_v63, 16  ;;  %v8488_v28 = vpop.f32.mrb[49].mxu1 }
 0x1ac   : > { %v3886_v58 = vsel %vm7616_vm6, %v3881_v29, %v3885_v59  ;;  %v3894_v15 = vor.u32 %v3893_v46, %v3890_v51  ;;  %v3909_v8 = vrot.slane %v3907_v4, 5  ;;  %v3318_v7 = vshll.u32 %v3015_v63, 16  ;;  %v3633_v12 = vld [vmem:[#allocation2 + $0x110] sm:$0xf]  ;;  %v8490_v13 = vpop.f32.mrb[50].mxu1 }
 0x1ad   : > { %v6270_v35 = vcombine.low %v3876_v23, %v3886_v58  ;;  %v3904_v2 = vor.u32 %v3903_v60, %v3899_v43  ;;  %v6226_v18 = vrot.slane %v3310_v31, 11  ;;  %v3317_v62 = vrot.slane %v3315_v50, 7  ;;  %v8492_v30 = vpop.f32.mrb[51].mxu1  ;;  %v3634_v63 = vld [vmem:[#allocation2 + $0x114] sm:$0x1] }
 0x1ae   : > { %v3895_v38 = vrot.slane %v3894_v15, 4  ;;  %v3324_v22 = vshrl.u32 %v3016_v9, 16  ;;  %v3327_v41 = vshll.u32 %v3016_v9, 16  ;;  %v3912_v61 = vshrl.u32 %v3632_v33, 16 }
 0x1af   : > { %7033 = vmatmul.mubr.bf16.gmra.mrb[128].mxu0 %v6270_v35  ;;  %v3905_v59 = vrot.slane %v3904_v2, 4  ;;  %v3320_v29 = vor.u32 %v3318_v7, %v3317_v62  ;;  %v3322_v51 = vrot.slane %v3317_v62, 4  ;;  %v3915_v46 = vshll.u32 %v3632_v33, 16 }
 0x1b0   : > { %v3900_v23 = vsel %vm7616_vm6, %v3895_v38, %v3899_v43  ;;  %v3326_v4 = vrot.slane %v3324_v22, 7  ;;  %v3914_v60 = vrot.slane %v3912_v61, 4  ;;  %v3921_v31 = vshll.u32 %v3633_v12, 16  ;;  %v3635_v38 = vld [vmem:[#allocation2 + $0x120] sm:$0xf] }
 0x1b1   : > { %v3910_v50 = vsel %vm7616_vm6, %v3905_v59, %v3909_v8  ;;  %v3321_v9 = vsel %vm7405_vm2, %v6226_v18, %v3320_v29  ;;  %v3917_v58 = vrot.slane %v3915_v46, 5  ;;  %v3925_v15 = vshrl.u32 %v3633_v12, 16  ;;  %v3636_v8 = vld [vmem:[#allocation2 + $0x124] sm:$0xf]  ;;  %v9313_v59 = vld [vmem:[#allocation26_spill] sm:$0xff] }
 0x1b2   : > { %v6271_v35 = vcombine.low %v3900_v23, %v3910_v50  ;;  %v3329_v2 = vor.u32 %v3327_v41, %v3326_v4  ;;  %v3923_v7 = vrot.slane %v3921_v31, 5  ;;  %v3931_v62 = vshll.u32 %v3634_v63, 16  ;;  %v8506_v22 = vpop.f32.mrb[52].mxu0  ;;  %v3637_v29 = vld [vmem:[#allocation2 + $0x128] sm:$0x1] }
 0x1b3   : > { %v3918_v27 = vor.u32 %v3917_v58, %v3914_v60  ;;  %v3927_v33 = vrot.slane %v3925_v15, 4  ;;  %v8502_v43 = vadd.f32 %v8262_v52, %v8258_v25  ;;  %v6676_v61 = vadd.f32 %v8250_v19, %v8246_v26  ;;  %v7191_v52 = vld [vmem:[#allocation2 + $0x148] sm:$0xff]   ;;  %v8516_v63 = vpop.f32.mrb[53].mxu0  ;;  %v3017_v4 = vld [vmem:[#allocation2 + $0x144] sm:$0x8] }
 0x1b4   : > { %7036 = vmatprep.mubr.bf16.mxu0 %v6271_v35  ;;  %v3330_v18 = vsel %vm7405_vm2, %v3322_v51, %v3329_v2  ;;  %v3933_v12 = vrot.slane %v3931_v62, 5  ;;  %v8512_v41 = vadd.f32 %v8266_v45, %v8264_v37  ;;  %v6679_v25 = vadd.f32 %v9313_v59, %v8254_v47  ;;  %9314 = vst [vmem:[#allocation26_spill] sm:$0xff] %v8516_v63  ;;  %v3018_v51 = vld [vmem:[#allocation2 + $0x148] sm:$0xf]  ;;  %v8521_v60 = vpop.f32.mrb[54].mxu0  ;;  %v8526_v58 = vpop.f32.mrb[52].mxu1 }
 0x1b5   : > { %v6242_v26 = vcombine.low %v3321_v9, %v3330_v18  ;;  %v3919_v19 = vrot.slane %v3918_v27, 4  ;;  %v3928_v46 = vor.u32 %v3927_v33, %v3923_v7  ;;  %v8519_v23 = vadd.f32 %v6676_v61, %v8322_v21  ;;  %9316 = vst [vmem:[#allocation40_spill] sm:$0xff] %v8521_v60  ;;  %v3019_v50 = vld [vmem:[#allocation2 + $0x14c] sm:$0xf]  ;;  %v8528_v15 = vpop.f32.mrb[55].mxu0  ;;  %v8532_v62 = vpop.f32.mrb[53].mxu1 }
 0x1b6   : > { %v8524_v37 = vadd.f32 %v6679_v25, %v8330_v48  ;;  %v3936_v45 = vshrl.u32 %v3635_v38, 16  ;;  %v3939_v31 = vshll.u32 %v3635_v38, 16  ;;  %v3945_v47 = vshll.u32 %v3636_v8, 16  ;;  %9318 = vst [vmem:[#allocation42_spill] sm:$0xff] %v8528_v15  ;;  %v3638_v2 = vld [vmem:[#allocation2 + $0x134] sm:$0xf] }
 0x1b7   : > { %9315 = vst [vmem:[#allocation39_spill] sm:$0xff] %v8519_v23  ;;  %5451 = vmatmul.mubr.bf16.gmra.mrb[132].mxu1 %v6242_v26  ;;  %v3924_v21 = vsel %vm7616_vm6, %v3919_v19, %v3923_v7  ;;  %v3929_v27 = vrot.slane %v3928_v46, 4  ;;  %v3949_v9 = vshrl.u32 %v3636_v8, 16  ;;  %v3955_v35 = vshll.u32 %v3637_v29, 16  ;;  %v8534_v18 = vpop.f32.mrb[54].mxu1 }
 0x1b8   : > { %9317 = vst [vmem:[#allocation41_spill] sm:$0xff] %v8524_v37  ;;  %5458 = vmatprep.mubr.bf16.mxu1 %v7191_v52  ;;  %v3938_v48 = vrot.slane %v3936_v45, 4  ;;  %v3941_v33 = vrot.slane %v3939_v31, 5  ;;  %v3947_v61 = vrot.slane %v3945_v47, 5  ;;  %v3332_v38 = vshrl.u32 %v3017_v4, 16  ;;  %9319 = vst [vmem:[#allocation43_spill] sm:$0xff] %v8534_v18 }
 0x1b9   : > { %v3934_v59 = vsel %vm7616_vm6, %v3929_v27, %v3933_v12  ;;  %v3951_v25 = vrot.slane %v3949_v9, 4  ;;  %v3957_v26 = vrot.slane %v3955_v35, 5  ;;  %v3337_v37 = vshrl.u32 %v3018_v51, 16  ;;  %v3639_v7 = vld [vmem:[#allocation2 + $0x138] sm:$0xf]  ;;  %v8538_v19 = vpop.f32.mrb[55].mxu1 }
 0x1ba   : > { %v6272_v8 = vcombine.low %v3924_v21, %v3934_v59  ;;  %v3942_v29 = vor.u32 %v3941_v33, %v3938_v48  ;;  %v6227_v46 = vrot.slane %v3332_v38, 11  ;;  %v3340_v23 = vshll.u32 %v3018_v51, 16  ;;  %v3640_v63 = vld [vmem:[#allocation2 + $0x13c] sm:$0x1] }
 0x1bb   : > { %v3952_v52 = vor.u32 %v3951_v25, %v3947_v61  ;;  %v3339_v45 = vrot.slane %v3337_v37, 7  ;;  %v3346_v31 = vshrl.u32 %v3019_v50, 16  ;;  %v3349_v47 = vshll.u32 %v3019_v50, 16 }
 0x1bc   : > { %7037 = vmatmul.mubr.bf16.gmra.mrb[132].mxu0 %v6272_v8  ;;  %v3943_v4 = vrot.slane %v3942_v29, 4  ;;  %v3960_v15 = vshrl.u32 %v3638_v2, 16  ;;  %v3963_v60 = vshll.u32 %v3638_v2, 16  ;;  %v3969_v18 = vshll.u32 %v3639_v7, 16 }
 0x1bd   : > { %v3953_v12 = vrot.slane %v3952_v52, 4  ;;  %v3342_v27 = vor.u32 %v3340_v23, %v3339_v45  ;;  %v3344_v9 = vrot.slane %v3339_v45, 4  ;;  %v3348_v35 = vrot.slane %v3346_v31, 7  ;;  %v3643_v45 = vld [vmem:[#allocation2 + $0x150] sm:$0x1] }
 0x1be   : > { %v3948_v21 = vsel %vm7616_vm6, %v3943_v4, %v3947_v61  ;;  %v3962_v48 = vrot.slane %v3960_v15, 4  ;;  %v3965_v33 = vrot.slane %v3963_v60, 5  ;;  %v3971_v51 = vrot.slane %v3969_v18, 5  ;;  %v8546_v59 = vpop.f32.mrb[56].mxu0  ;;  %v3641_v15 = vld [vmem:[#allocation2 + $0x148] sm:$0xf] }
 0x1bf   : > { %v3958_v37 = vsel %vm7616_vm6, %v3953_v12, %v3957_v26  ;;  %v3343_v50 = vsel %vm7405_vm2, %v6227_v46, %v3342_v27  ;;  %v3351_v38 = vor.u32 %v3349_v47, %v3348_v35  ;;  %v3973_v2 = vshrl.u32 %v3639_v7, 16  ;;  %v3642_v60 = vld [vmem:[#allocation2 + $0x14c] sm:$0xf]  ;;  %v8552_v61 = vpop.f32.mrb[57].mxu0  ;;  %v9320_v46 = vld [vmem:[#allocation30_spill] sm:$0xff]  ;;  %v9322_v12 = vld [vmem:[#allocation29_spill] sm:$0xff] }
 0x1c0   : > { %v6273_v23 = vcombine.low %v3948_v21, %v3958_v37  ;;  %v3966_v25 = vor.u32 %v3965_v33, %v3962_v48  ;;  %v3979_v8 = vshll.u32 %v3640_v63, 16  ;;  %v8550_v29 = vadd.f32 %v8300_v20, %v8296_v56  ;;  %v7192_v63 = vld [vmem:[#allocation2 + $0x15c] sm:$0xff]   ;;  %v8562_v31 = vpop.f32.mrb[56].mxu1  ;;  %v8564_v56 = vpop.f32.mrb[58].mxu0  ;;  %v3020_v35 = vld [vmem:[#allocation2 + $0x158] sm:$0x8] }
 0x1c1   : > { %v3352_v18 = vsel %vm7405_vm2, %v3344_v9, %v3351_v38  ;;  %v3975_v26 = vrot.slane %v3973_v2, 4  ;;  %v6682_v7 = vadd.f32 %v8298_v36, %v8292_v3  ;;  %v8560_v52 = vadd.f32 %v8310_v10, %v9320_v46  ;;  %9321 = vst [vmem:[#allocation30_spill] sm:$0xff] %v8564_v56  ;;  %v9323_v27 = vld [vmem:[#allocation31_spill] sm:$0xff]  ;;  %v8568_v21 = vpop.f32.mrb[57].mxu1  ;;  %v8570_v3 = vpop.f32.mrb[59].mxu0 }
 0x1c2   : > { %7040 = vmatprep.mubr.bf16.mxu0 %v6273_v23  ;;  %v6243_v20 = vcombine.low %v3343_v50, %v3352_v18  ;;  %v3967_v47 = vrot.slane %v3966_v25, 4  ;;  %v3981_v4 = vrot.slane %v3979_v8, 5  ;;  %v6685_v9 = vadd.f32 %v9323_v27, %v9322_v12  ;;  %9324 = vst [vmem:[#allocation29_spill] sm:$0xff] %v8570_v3  ;;  %v3021_v37 = vld [vmem:[#allocation2 + $0x15c] sm:$0xf]  ;;  %v8575_v38 = vpop.f32.mrb[58].mxu1 }
 0x1c3   : > { %v3976_v36 = vor.u32 %v3975_v26, %v3971_v51  ;;  %v8573_v10 = vadd.f32 %v6682_v7, %v8366_v55  ;;  %v3984_v48 = vshrl.u32 %v3641_v15, 16  ;;  %v3987_v33 = vshll.u32 %v3641_v15, 16  ;;  %9326 = vst [vmem:[#allocation44_spill] sm:$0xff] %v8575_v38  ;;  %v8582_v8 = vpop.f32.mrb[59].mxu1  ;;  %v3022_v15 = vld [vmem:[#allocation2 + $0x160] sm:$0xf] }
 0x1c4   : > { %5459 = vmatmul.mubr.bf16.gmra.mrb[136].mxu1 %v6243_v20  ;;  %v3972_v50 = vsel %vm7616_vm6, %v3967_v47, %v3971_v51  ;;  %v8580_v2 = vadd.f32 %v6685_v9, %v8372_v44  ;;  %v3993_v23 = vshll.u32 %v3642_v60, 16  ;;  %v3997_v25 = vshrl.u32 %v3642_v60, 16  ;;  %9328 = vst [vmem:[#allocation46_spill] sm:$0xff] %v8582_v8  ;;  %v3646_v8 = vld [vmem:[#allocation2 + $0x164] sm:$0x1] }
 0x1c5   : > { %9325 = vst [vmem:[#allocation31_spill] sm:$0xff] %v8573_v10  ;;  %v3977_v18 = vrot.slane %v3976_v36, 4  ;;  %5466 = vmatprep.mubr.bf16.mxu1 %v7192_v63  ;;  %v3986_v55 = vrot.slane %v3984_v48, 4  ;;  %v3989_v26 = vrot.slane %v3987_v33, 5  ;;  %v4003_v7 = vshll.u32 %v3643_v45, 16 }
 0x1c6   : > { %9327 = vst [vmem:[#allocation45_spill] sm:$0xff] %v8580_v2  ;;  %v3995_v46 = vrot.slane %v3993_v23, 5  ;;  %v3999_v12 = vrot.slane %v3997_v25, 4  ;;  %v3354_v27 = vshrl.u32 %v3020_v35, 16  ;;  %v3359_v20 = vshrl.u32 %v3021_v37, 16 }
 0x1c7   : > { %v3644_v10 = vld [vmem:[#allocation2 + $0x15c] sm:$0xf]  ;;  %v3982_v51 = vsel %vm7616_vm6, %v3977_v18, %v3981_v4  ;;  %v3990_v44 = vor.u32 %v3989_v26, %v3986_v55  ;;  %v4005_v47 = vrot.slane %v4003_v7, 5  ;;  %v3362_v9 = vshll.u32 %v3021_v37, 16  ;;  %v3645_v63 = vld [vmem:[#allocation2 + $0x160] sm:$0xf] }
 0x1c8   : > { %v6274_v60 = vcombine.low %v3972_v50, %v3982_v51  ;;  %v4000_v2 = vor.u32 %v3999_v12, %v3995_v46  ;;  %v6228_v3 = vrot.slane %v3354_v27, 11  ;;  %v3361_v36 = vrot.slane %v3359_v20, 7 }
 0x1c9   : > { %v3991_v48 = vrot.slane %v3990_v44, 4  ;;  %v3368_v33 = vshrl.u32 %v3022_v15, 16  ;;  %v3371_v45 = vshll.u32 %v3022_v15, 16  ;;  %v4008_v56 = vshrl.u32 %v3644_v10, 16 }
 0x1ca   : > { %7041 = vmatmul.mubr.bf16.gmra.mrb[136].mxu0 %v6274_v60  ;;  %v4001_v23 = vrot.slane %v4000_v2, 4  ;;  %v3364_v35 = vor.u32 %v3362_v9, %v3361_v36  ;;  %v3366_v25 = vrot.slane %v3361_v36, 4  ;;  %v4011_v38 = vshll.u32 %v3644_v10, 16  ;;  %v9329_v60 = vld [vmem:[#allocation34_spill] sm:$0xff]  ;;  %v9330_v36 = vld [vmem:[#allocation5_spill] sm:$0xff] }
 0x1cb   : > { %v3996_v4 = vsel %vm7616_vm6, %v3991_v48, %v3995_v46  ;;  %v3370_v18 = vrot.slane %v3368_v33, 7  ;;  %v4010_v37 = vrot.slane %v4008_v56, 4  ;;  %v4017_v50 = vshll.u32 %v3645_v63, 16  ;;  %v8592_v12 = vpop.f32.mrb[60].mxu0 }
 0x1cc   : > { %v4006_v55 = vsel %vm7616_vm6, %v4001_v23, %v4005_v47  ;;  %v3365_v26 = vsel %vm7405_vm2, %v6228_v3, %v3364_v35  ;;  %v4013_v7 = vrot.slane %v4011_v38, 5  ;;  %v4021_v15 = vshrl.u32 %v3645_v63, 16  ;;  %v8594_v51 = vpop.f32.mrb[61].mxu0  ;;  %v9331_v63 = vld [vmem:[#allocation33_spill] sm:$0xff] }
 0x1cd   : > { %v6275_v2 = vcombine.low %v3996_v4, %v4006_v55  ;;  %v3373_v27 = vor.u32 %v3371_v45, %v3370_v18  ;;  %v4019_v20 = vrot.slane %v4017_v50, 5  ;;  %v4027_v10 = vshll.u32 %v3646_v8, 16  ;;  %v8600_v9 = vpop.f32.mrb[62].mxu0  ;;  %v9334_v18 = vld [vmem:[#allocation8_spill] sm:$0xff]  ;;  %v9337_v55 = vld [vmem:[#allocation37_spill] sm:$0xff] }
 0x1ce   : > { %v4014_v46 = vor.u32 %v4013_v7, %v4010_v37  ;;  %v4023_v44 = vrot.slane %v4021_v15, 4  ;;  %v6600_v56 = vadd.f32 %v8350_v39, %v8346_v0  ;;  %v6688_v47 = vadd.f32 %v8338_v57, %v8336_v53  ;;  %v6722_v33 = vpop.f32.mrb[60].mxu1  ;;  %v6790_v45 = vpop.f32.mrb[63].mxu0  ;;  %v9336_v50 = vld [vmem:[#allocation36_spill] sm:$0xff] }
 0x1cf   : > { %7044 = vmatprep.mubr.bf16.mxu0 %v6275_v2  ;;  %v3374_v3 = vsel %vm7405_vm2, %v3366_v25, %v3373_v27  ;;  %v4029_v38 = vrot.slane %v4027_v10, 5  ;;  %v6603_v8 = vadd.f32 %v9329_v60, %v8352_v49  ;;  %v6691_v48 = vadd.f32 %v9331_v63, %v9330_v36  ;;  %v6723_v57 = vpop.f32.mrb[61].mxu1  ;;  %v9333_v25 = vld [vmem:[#allocation35_spill] sm:$0xff]  ;;  %v9335_v49 = vld [vmem:[#allocation9_spill] sm:$0xff]  ;;  %v9339_v27 = vld [vmem:[#allocation12_spill] sm:$0xff] }
 0x1d0   : > { %v6244_v23 = vcombine.low %v3365_v26, %v3374_v3  ;;  %v4015_v0 = vrot.slane %v4014_v46, 4  ;;  %v4024_v39 = vor.u32 %v4023_v44, %v4019_v20  ;;  %v8609_v53 = vadd.f32 %v6688_v47, %v8410_v32  ;;  %v6725_v15 = vpop.f32.mrb[62].mxu1  ;;  %v9338_v2 = vld [vmem:[#allocation11_spill] sm:$0xff]  ;;  %v9340_v47 = vld [vmem:[#allocation13_spill] sm:$0xff]  ;;  %v9341_v3 = vld [vmem:[#allocation14_spill] sm:$0xff] }
 0x1d1   : > { %v8612_v35 = vadd.f32 %v6691_v48, %v8418_v24  ;;  %v6606_v4 = vadd.f32 %v9333_v25, %v9332_v42  ;;  %v6694_v37 = vadd.f32 %v9335_v49, %v9334_v18  ;;  %v6609_v7 = vadd.f32 %v9337_v55, %v9336_v50  ;;  %v6726_v46 = vpop.f32.mrb[63].mxu1  ;;  %v9342_v36 = vld [vmem:[#allocation15_spill] sm:$0xff]  ;;  %v9350_v18 = vld [vmem:[#allocation42_spill] sm:$0xff] }
 0x1d2   : > { %5467 = vmatmul.mubr.bf16.gmra.mrb[140].mxu1 %v6244_v23  ;;  %v4020_v26 = vsel %vm7616_vm6, %v4015_v0, %v4019_v20  ;;  %v4025_v32 = vrot.slane %v4024_v39, 4  ;;  %v6697_v10 = vadd.f32 %v9339_v27, %v9338_v2  ;;  %v6612_v24 = vadd.f32 %v8440_v34, %v8436_v1  ;;  %v9343_v48 = vld [vmem:[#allocation19_spill] sm:$0xff]  ;;  %v9344_v23 = vld [vmem:[#allocation20_spill] sm:$0xff]  ;;  %v9351_v50 = vld [vmem:[#allocation6_spill] sm:$0xff] }
 0x1d3   : > { %v8627_v44 = vadd.f32 %v6694_v37, %v8456_v17  ;;  %v6700_v60 = vadd.f32 %v9341_v3, %v9340_v47  ;;  %v6615_v63 = vadd.f32 %v9342_v36, %v8444_v5  ;;  %v6703_v20 = vadd.f32 %v9344_v23, %v9343_v48  ;;  %v9354_v27 = vld [vmem:[#allocation44_spill] sm:$0xff] }
 0x1d4   : > { %v4030_v0 = vsel %vm7616_vm6, %v4025_v32, %v4029_v38  ;;  %v8638_v39 = vadd.f32 %v6697_v10, %v8464_v40  ;;  %v6706_v1 = vadd.f32 %v8488_v28, %v8484_v6  ;;  %v6770_v34 = vadd.f32 %v8473_v54, %v8468_v11  ;;  %v9345_v40 = vld [vmem:[#allocation7_spill] sm:$0xff]  ;;  %v9346_v6 = vld [vmem:[#allocation38_spill] sm:$0xff] }
 0x1d5   : > { %v6276_v17 = vcombine.low %v4020_v26, %v4030_v0  ;;  %v8645_v42 = vadd.f32 %v6700_v60, %v8502_v43  ;;  %v8648_v5 = vadd.f32 %v6703_v20, %v8512_v41  ;;  %v6709_v14 = vadd.f32 %v8492_v30, %v8490_v13  ;;  %v9347_v43 = vld [vmem:[#allocation26_spill] sm:$0xff]  ;;  %v9348_v30 = vld [vmem:[#allocation43_spill] sm:$0xff]  ;;  %v9356_v60 = vld [vmem:[#allocation16_spill] sm:$0xff] }
 0x1d6   : > { %v8653_v38 = vadd.f32 %v6706_v1, %v8550_v29  ;;  %v8656_v25 = vadd.f32 %v6770_v34, %v9345_v40  ;;  %v6773_v28 = vadd.f32 %v9346_v6, %v8480_v16  ;;  %v6712_v11 = vadd.f32 %v8532_v62, %v8526_v58  ;;  %v9349_v29 = vld [vmem:[#allocation40_spill] sm:$0xff]  ;;  %v6792_v37 = vpop.f32.mrb[64].mxu0  ;;  %v9353_v32 = vld [vmem:[#allocation18_spill] sm:$0xff] }
 0x1d7   : > { %7045 = vmatmul.mubr.bf16.gmra.mrb[140].mxu0 %v6276_v17  ;;  %v8663_v54 = vadd.f32 %v6709_v14, %v8560_v52  ;;  %v6776_v41 = vadd.f32 %v9347_v43, %v8506_v22  ;;  %v6715_v13 = vadd.f32 %v8538_v19, %v9348_v30  ;;  %v6779_v49 = vadd.f32 %v9350_v18, %v9349_v29  ;;  %v6793_v52 = vpop.f32.mrb[65].mxu0  ;;  %v9352_v22 = vld [vmem:[#allocation17_spill] sm:$0xff]  ;;  %v9355_v10 = vld [vmem:[#allocation46_spill] sm:$0xff] }
 0x1d8   : > { %v8672_v55 = vadd.f32 %v6773_v28, %v9351_v50  ;;  %v8674_v16 = vadd.f32 %v6712_v11, %v6600_v56  ;;  %v6718_v58 = vadd.f32 %v8568_v21, %v8562_v31  ;;  %v6782_v62 = vadd.f32 %v8552_v61, %v8546_v59  ;;  %v6795_v56 = vpop.f32.mrb[66].mxu0  ;;  %v9357_v21 = vld [vmem:[#allocation30_spill] sm:$0xff]  ;;  %v9358_v59 = vld [vmem:[#allocation29_spill] sm:$0xff] }
 0x1d9   : > { %v8681_v26 = vadd.f32 %v6776_v41, %v9352_v22  ;;  %v8683_v19 = vadd.f32 %v6715_v13, %v6603_v8  ;;  %v8686_v2 = vadd.f32 %v6779_v49, %v9353_v32  ;;  %v6721_v47 = vadd.f32 %v9355_v10, %v9354_v27  ;;  %v6728_v48 = vpop.f32.mrb[64].mxu1  ;;  %v6796_v23 = vpop.f32.mrb[67].mxu0  ;;  %v9361_v11 = vld [vmem:[#allocation41_spill] sm:$0xff]  ;;  %v9365_v13 = vld [vmem:[#allocation23_spill] sm:$0xff] }
 0x1da   : > { %v8690_v3 = vadd.f32 %v6718_v58, %v6606_v4  ;;  %v8693_v31 = vadd.f32 %v6782_v62, %v9356_v60  ;;  %v6785_v61 = vadd.f32 %v9358_v59, %v9357_v21  ;;  %v6724_v36 = vadd.f32 %v6723_v57, %v6722_v33  ;;  %v6729_v34 = vpop.f32.mrb[65].mxu1  ;;  %v9359_v4 = vld [vmem:[#allocation21_spill] sm:$0xff]  ;;  %v9360_v33 = vld [vmem:[#allocation39_spill] sm:$0xff] }
 0x1db   : > { %v8697_v8 = vadd.f32 %v6721_v47, %v6609_v7  ;;  %v6788_v20 = vadd.f32 %v8594_v51, %v8592_v12  ;;  %v6727_v0 = vadd.f32 %v6726_v46, %v6725_v15  ;;  %v6791_v1 = vadd.f32 %v6790_v45, %v8600_v9  ;;  %v6731_v28 = vpop.f32.mrb[66].mxu1  ;;  %v9362_v9 = vld [vmem:[#allocation22_spill] sm:$0xff]  ;;  %v9363_v15 = vld [vmem:[#allocation31_spill] sm:$0xff]  ;;  %v9364_v41 = vld [vmem:[#allocation45_spill] sm:$0xff] }
 0x1dc   : > { %v8703_v17 = vadd.f32 %v6785_v61, %v9359_v4  ;;  %v8705_v14 = vadd.f32 %v6724_v36, %v6612_v24  ;;  %v6730_v40 = vadd.f32 %v6729_v34, %v6728_v48  ;;  %v6794_v6 = vadd.f32 %v6793_v52, %v6792_v37  ;;  %v6732_v12 = vpop.f32.mrb[67].mxu1  ;;  %v9366_v47 = vld [vmem:[#allocation24_spill] sm:$0xff]  ;;  %v9367_v59 = vld [vmem:[#allocation25_spill] sm:$0xff] }
 0x1dd   : > { %v8708_v57 = vadd.f32 %v6788_v20, %v9360_v33  ;;  %v8710_v7 = vadd.f32 %v6727_v0, %v6615_v63  ;;  %v8713_v43 = vadd.f32 %v6791_v1, %v9361_v11  ;;  %v6797_v51 = vadd.f32 %v6796_v23, %v6795_v56  ;;  %v9368_v33 = vld [vmem:[#allocation27_spill] sm:$0xff] }
 0x1de   : > { %v8716_v45 = vadd.f32 %v6730_v40, %v9362_v9  ;;  %v8719_v46 = vadd.f32 %v6794_v6, %v9363_v15  ;;  %v6733_v24 = vadd.f32 %v6732_v12, %v6731_v28 }
 0x1df   : > { %v8722_v30 = vadd.f32 %v6797_v51, %v9364_v41  ;;  %v9369_v51 = vld [vmem:[#allocation28_spill] sm:$0xff] }
 0x1e0   : > { %v8725_v29 = vadd.f32 %v6733_v24, %v9365_v13 }
 0x1e2   : > { %v6798_v63 = vpop.f32.mrb[68].mxu0 }
 0x1e3   : > { %v6799_v18 = vpop.f32.mrb[69].mxu0 }
 0x1e4   : > { %v6734_v49 = vpop.f32.mrb[68].mxu1  ;;  %v6800_v37 = vadd.f32 %v6799_v18, %v6798_v63  ;;  %v6801_v50 = vpop.f32.mrb[70].mxu0 }
 0x1e5   : > { %v6735_v58 = vpop.f32.mrb[69].mxu1  ;;  %v6802_v62 = vpop.f32.mrb[71].mxu0 }
 0x1e6   : > { %v6736_v52 = vadd.f32 %v6735_v58, %v6734_v49  ;;  %v8728_v22 = vadd.f32 %v6800_v37, %v8609_v53  ;;  %v6737_v32 = vpop.f32.mrb[70].mxu1  ;;  %v6803_v27 = vadd.f32 %v6802_v62, %v6801_v50 }
 0x1e7   : > { %v6738_v10 = vpop.f32.mrb[71].mxu1 }
 0x1e8   : > { %v8731_v56 = vadd.f32 %v6736_v52, %v9366_v47  ;;  %v6739_v60 = vadd.f32 %v6738_v10, %v6737_v32  ;;  %v8734_v21 = vadd.f32 %v6803_v27, %v8612_v35  ;;  %v9370_v47 = vld [vmem:[#allocation32_spill] sm:$0xff] }
 0x1ea   : > { %v8737_v61 = vadd.f32 %v6739_v60, %v9367_v59 }
 0x1ef   : > { %v6804_v36 = vpop.f32.mrb[72].mxu0 }
 0x1f0   : > { %v6805_v48 = vpop.f32.mrb[73].mxu0 }
 0x1f1   : > { %v6806_v23 = vadd.f32 %v6805_v48, %v6804_v36  ;;  %v6807_v20 = vpop.f32.mrb[74].mxu0  ;;  %v6740_v0 = vpop.f32.mrb[72].mxu1 }
 0x1f2   : > { %v6808_v53 = vpop.f32.mrb[75].mxu0  ;;  %v6741_v1 = vpop.f32.mrb[73].mxu1 }
 0x1f3   : > { %v8740_v34 = vadd.f32 %v6806_v23, %v8627_v44  ;;  %v6809_v4 = vadd.f32 %v6808_v53, %v6807_v20  ;;  %v6742_v40 = vadd.f32 %v6741_v1, %v6740_v0  ;;  %v6743_v6 = vpop.f32.mrb[74].mxu1 }
 0x1f4   : > { %v6744_v28 = vpop.f32.mrb[75].mxu1 }
 0x1f5   : > { %v8743_v35 = vadd.f32 %v6809_v4, %v8638_v39  ;;  %v8746_v11 = vadd.f32 %v6742_v40, %v9368_v33  ;;  %v6745_v12 = vadd.f32 %v6744_v28, %v6743_v6 }
 0x1f7   : > { %v8749_v9 = vadd.f32 %v6745_v12, %v9369_v51 }
 0x1fa   : > { %v6810_v15 = vpop.f32.mrb[76].mxu0 }
 0x1fb   : > { %v6811_v24 = vpop.f32.mrb[77].mxu0 }
 0x1fc   : > { %v6812_v41 = vadd.f32 %v6811_v24, %v6810_v15  ;;  %v6813_v13 = vpop.f32.mrb[78].mxu0 }
 0x1fd   : > { %v6814_v44 = vpop.f32.mrb[79].mxu0 }
 0x1fe   : > { %v8752_v63 = vadd.f32 %v6812_v41, %v8645_v42  ;;  %v6815_v18 = vadd.f32 %v6814_v44, %v6813_v13 }
 0x200   : > { %v8755_v49 = vadd.f32 %v6815_v18, %v8648_v5  ;;  %v9371_v5 = vld [vmem:[#allocation4_spill] sm:$0xff] }
 0x202   : > { %v6746_v39 = vpop.f32.mrb[76].mxu1 }
 0x203   : > { %v6747_v37 = vpop.f32.mrb[77].mxu1  ;;  %v6816_v50 = vpop.f32.mrb[80].mxu0 }
 0x204   : > { %v6748_v58 = vadd.f32 %v6747_v37, %v6746_v39  ;;  %v6749_v62 = vpop.f32.mrb[78].mxu1  ;;  %v6817_v52 = vpop.f32.mrb[81].mxu0 }
 0x205   : > { %v6750_v32 = vpop.f32.mrb[79].mxu1  ;;  %v6818_v27 = vadd.f32 %v6817_v52, %v6816_v50  ;;  %v6819_v10 = vpop.f32.mrb[82].mxu0 }
 0x206   : > { %v8758_v60 = vadd.f32 %v6748_v58, %v9370_v47  ;;  %v6751_v59 = vadd.f32 %v6750_v32, %v6749_v62  ;;  %v6820_v36 = vpop.f32.mrb[83].mxu0 }
 0x207   : > { %v8761_v42 = vadd.f32 %v6818_v27, %v8653_v38  ;;  %v6821_v48 = vadd.f32 %v6820_v36, %v6819_v10 }
 0x208   : > { %v8764_v23 = vadd.f32 %v6751_v59, %v9371_v5 }
 0x209   : > { %v8767_v20 = vadd.f32 %v6821_v48, %v8663_v54 }
 0x20a   : > { %v6880_v0 = vpop.f32.mrb[80].mxu1 }
 0x20b   : > { %v6881_v53 = vpop.f32.mrb[81].mxu1 }
 0x20c   : > { %v6882_v1 = vadd.f32 %v6881_v53, %v6880_v0  ;;  %v6883_v4 = vpop.f32.mrb[82].mxu1 }
 0x20d   : > { %v6884_v40 = vpop.f32.mrb[83].mxu1  ;;  %v6822_v6 = vpop.f32.mrb[84].mxu0 }
 0x20e   : > { %v6885_v28 = vadd.f32 %v6884_v40, %v6883_v4  ;;  %v6823_v33 = vpop.f32.mrb[85].mxu0  ;;  %v8770_v12 = vadd.f32 %v6882_v1, %v8656_v25 }
 0x20f   : > { %v6824_v38 = vadd.f32 %v6823_v33, %v6822_v6  ;;  %v6825_v51 = vpop.f32.mrb[86].mxu0 }
 0x210   : > { %v6826_v15 = vpop.f32.mrb[87].mxu0  ;;  %v8773_v24 = vadd.f32 %v6885_v28, %v8672_v55 }
 0x211   : > { %v8776_v54 = vadd.f32 %v6824_v38, %v8674_v16  ;;  %v6827_v41 = vadd.f32 %v6826_v15, %v6825_v51 }
 0x212   : > { %v6886_v13 = vpop.f32.mrb[84].mxu1 }
 0x213   : > { %v6887_v44 = vpop.f32.mrb[85].mxu1  ;;  %v8779_v18 = vadd.f32 %v6827_v41, %v8683_v19 }
 0x214   : > { %v6888_v39 = vadd.f32 %v6887_v44, %v6886_v13  ;;  %v6889_v37 = vpop.f32.mrb[86].mxu1 }
 0x215   : > { %v6890_v50 = vpop.f32.mrb[87].mxu1  ;;  %v6828_v25 = vpop.f32.mrb[88].mxu0 }
 0x216   : > { %v6891_v58 = vadd.f32 %v6890_v50, %v6889_v37  ;;  %v6829_v62 = vpop.f32.mrb[89].mxu0  ;;  %v8782_v52 = vadd.f32 %v6888_v39, %v8681_v26 }
 0x217   : > { %v6830_v55 = vadd.f32 %v6829_v62, %v6828_v25  ;;  %v6831_v32 = vpop.f32.mrb[90].mxu0 }
 0x218   : > { %v6832_v27 = vpop.f32.mrb[91].mxu0  ;;  %v8785_v16 = vadd.f32 %v6891_v58, %v8686_v2 }
 0x219   : > { %v8788_v10 = vadd.f32 %v6830_v55, %v8690_v3  ;;  %v6833_v19 = vadd.f32 %v6832_v27, %v6831_v32 }
 0x21a   : > { %v6892_v47 = vpop.f32.mrb[88].mxu1 }
 0x21b   : > { %v6893_v59 = vpop.f32.mrb[89].mxu1  ;;  %v8791_v36 = vadd.f32 %v6833_v19, %v8697_v8 }
 0x21c   : > { %v6894_v48 = vadd.f32 %v6893_v59, %v6892_v47  ;;  %v6895_v5 = vpop.f32.mrb[90].mxu1 }
 0x21d   : > { %v6896_v0 = vpop.f32.mrb[91].mxu1  ;;  %v6834_v26 = vpop.f32.mrb[92].mxu0 }
 0x21e   : > { %v6897_v53 = vadd.f32 %v6896_v0, %v6895_v5  ;;  %v6835_v1 = vpop.f32.mrb[93].mxu0  ;;  %v8794_v4 = vadd.f32 %v6894_v48, %v8693_v31 }
 0x21f   : > { %v6836_v2 = vadd.f32 %v6835_v1, %v6834_v26  ;;  %v6837_v40 = vpop.f32.mrb[94].mxu0 }
 0x220   : > { %v6838_v6 = vpop.f32.mrb[95].mxu0  ;;  %v8797_v3 = vadd.f32 %v6897_v53, %v8703_v17 }
 0x221   : > { %v8800_v28 = vadd.f32 %v6836_v2, %v8705_v14  ;;  %v6839_v8 = vadd.f32 %v6838_v6, %v6837_v40 }
 0x222   : > { %v6898_v33 = vpop.f32.mrb[92].mxu1 }
 0x223   : > { %v6899_v38 = vpop.f32.mrb[93].mxu1  ;;  %v8803_v51 = vadd.f32 %v6839_v8, %v8710_v7 }
 0x224   : > { %v6900_v15 = vadd.f32 %v6899_v38, %v6898_v33  ;;  %v6901_v41 = vpop.f32.mrb[94].mxu1 }
 0x225   : > { %v6902_v13 = vpop.f32.mrb[95].mxu1  ;;  %v6840_v31 = vpop.f32.mrb[96].mxu0 }
 0x226   : > { %v6903_v44 = vadd.f32 %v6902_v13, %v6901_v41  ;;  %v6841_v39 = vpop.f32.mrb[97].mxu0  ;;  %v8806_v37 = vadd.f32 %v6900_v15, %v8708_v57 }
 0x227   : > { %v6842_v17 = vadd.f32 %v6841_v39, %v6840_v31  ;;  %v6843_v50 = vpop.f32.mrb[98].mxu0 }
 0x228   : > { %v6844_v25 = vpop.f32.mrb[99].mxu0  ;;  %v8809_v14 = vadd.f32 %v6903_v44, %v8713_v43 }
 0x229   : > { %v8812_v58 = vadd.f32 %v6842_v17, %v8716_v45  ;;  %v6845_v7 = vadd.f32 %v6844_v25, %v6843_v50 }
 0x22a   : > { %v6904_v62 = vpop.f32.mrb[96].mxu1 }
 0x22b   : > { %v6905_v55 = vpop.f32.mrb[97].mxu1  ;;  %v8815_v32 = vadd.f32 %v6845_v7, %v8725_v29 }
 0x22c   : > { %v6906_v27 = vadd.f32 %v6905_v55, %v6904_v62  ;;  %v6907_v19 = vpop.f32.mrb[98].mxu1 }
 0x22d   : > { %v6908_v47 = vpop.f32.mrb[99].mxu1  ;;  %v6846_v57 = vpop.f32.mrb[100].mxu0 }
 0x22e   : > { %v6909_v59 = vadd.f32 %v6908_v47, %v6907_v19  ;;  %v6847_v48 = vpop.f32.mrb[101].mxu0  ;;  %v8818_v5 = vadd.f32 %v6906_v27, %v8719_v46 }
 0x22f   : > { %v6848_v43 = vadd.f32 %v6847_v48, %v6846_v57  ;;  %v6849_v0 = vpop.f32.mrb[102].mxu0 }
 0x230   : > { %v6850_v26 = vpop.f32.mrb[103].mxu0  ;;  %v8821_v45 = vadd.f32 %v6909_v59, %v8722_v30 }
 0x231   : > { %v8824_v53 = vadd.f32 %v6848_v43, %v8731_v56  ;;  %v6851_v29 = vadd.f32 %v6850_v26, %v6849_v0 }
 0x232   : > { %v6910_v1 = vpop.f32.mrb[100].mxu1 }
 0x233   : > { %v6911_v2 = vpop.f32.mrb[101].mxu1  ;;  %v8827_v40 = vadd.f32 %v6851_v29, %v8737_v61 }
 0x234   : > { %v6912_v6 = vadd.f32 %v6911_v2, %v6910_v1  ;;  %v6913_v8 = vpop.f32.mrb[102].mxu1 }
 0x235   : > { %v6914_v33 = vpop.f32.mrb[103].mxu1  ;;  %v6852_v46 = vpop.f32.mrb[104].mxu0 }
 0x236   : > { %v6915_v38 = vadd.f32 %v6914_v33, %v6913_v8  ;;  %v6853_v15 = vpop.f32.mrb[105].mxu0  ;;  %v8830_v41 = vadd.f32 %v6912_v6, %v8728_v22 }
 0x237   : > { %v6854_v30 = vadd.f32 %v6853_v15, %v6852_v46  ;;  %v6855_v13 = vpop.f32.mrb[106].mxu0 }
 0x238   : > { %v6856_v31 = vpop.f32.mrb[107].mxu0  ;;  %v8833_v56 = vadd.f32 %v6915_v38, %v8734_v21 }
 0x239   : > { %v8836_v44 = vadd.f32 %v6854_v30, %v8746_v11  ;;  %v6857_v61 = vadd.f32 %v6856_v31, %v6855_v13 }
 0x23a   : > { %v6916_v39 = vpop.f32.mrb[104].mxu1 }
 0x23b   : > { %v6917_v17 = vpop.f32.mrb[105].mxu1  ;;  %v8839_v50 = vadd.f32 %v6857_v61, %v8749_v9 }
 0x23c   : > { %v6918_v25 = vadd.f32 %v6917_v17, %v6916_v39  ;;  %v6919_v7 = vpop.f32.mrb[106].mxu1 }
 0x23d   : > { %v6920_v62 = vpop.f32.mrb[107].mxu1  ;;  %v6858_v22 = vpop.f32.mrb[108].mxu0 }
 0x23e   : > { %v6921_v55 = vadd.f32 %v6920_v62, %v6919_v7  ;;  %v6859_v27 = vpop.f32.mrb[109].mxu0  ;;  %v8842_v19 = vadd.f32 %v6918_v25, %v8740_v34 }
 0x23f   : > { %v6860_v21 = vadd.f32 %v6859_v27, %v6858_v22  ;;  %v6861_v47 = vpop.f32.mrb[110].mxu0 }
 0x240   : > { %v6862_v57 = vpop.f32.mrb[111].mxu0  ;;  %v8845_v11 = vadd.f32 %v6921_v55, %v8743_v35 }
 0x241   : > { %v8848_v59 = vadd.f32 %v6860_v21, %v8758_v60  ;;  %v6863_v9 = vadd.f32 %v6862_v57, %v6861_v47 }
 0x242   : > { %v6922_v48 = vpop.f32.mrb[108].mxu1 }
 0x243   : > { %v6923_v43 = vpop.f32.mrb[109].mxu1  ;;  %v8851_v0 = vadd.f32 %v6863_v9, %v8764_v23 }
 0x244   : > { %v6924_v26 = vadd.f32 %v6923_v43, %v6922_v48  ;;  %v6925_v29 = vpop.f32.mrb[110].mxu1 }
 0x245   : > { %v6926_v34 = vpop.f32.mrb[111].mxu1 }
 0x246   : > { %v6927_v1 = vadd.f32 %v6926_v34, %v6925_v29  ;;  %v8854_v2 = vadd.f32 %v6924_v26, %v8752_v63 }
 0x248   : > { %v8857_v35 = vadd.f32 %v6927_v1, %v8755_v49 }
 0x24a   : > { %v6928_v6 = vpop.f32.mrb[112].mxu1 }
 0x24b   : > { %v6929_v60 = vpop.f32.mrb[113].mxu1 }
 0x24c   : > { %v7018_v8 = vpop.f32.mrb[112].mxu0  ;;  %v6930_v33 = vadd.f32 %v6929_v60, %v6928_v6  ;;  %v6931_v46 = vpop.f32.mrb[114].mxu1 }
 0x24d   : > { %v8860_v38 = vadd.f32 %v7018_v8, %v8782_v52  ;;  %v5509_v23 = vpop.f32.mrb[113].mxu0  ;;  %v6932_v15 = vpop.f32.mrb[115].mxu1 }
 0x24e   : > { %v8870_v63 = vadd.f32 %v5509_v23, %v8770_v12  ;;  %v7019_v49 = vpop.f32.mrb[114].mxu0  ;;  %v6933_v30 = vadd.f32 %v6932_v15, %v6931_v46  ;;  %v8873_v52 = vadd.f32 %v6930_v33, %v8761_v42 }
 0x24f   : > { %v6419_v13 = vpack.c.bf16 %v8860_v38, %v8860_v38  ;;  %v8878_v31 = vadd.f32 %v7019_v49, %v8785_v16  ;;  %v5512_v61 = vpop.f32.mrb[115].mxu0 }
 0x250   : > { %v6417_v39 = vpack.c.bf16 %v8870_v63, %v8870_v63  ;;  %v8883_v12 = vadd.f32 %v5512_v61, %v8773_v24  ;;  %v8886_v17 = vadd.f32 %v6933_v30, %v8767_v20 }
 0x251   : > { %5907 = vst.msk [vmem:[%s8867_s19 + $0x8] sm:$0xf] %vm663_vm3, %v6419_v13  ;;  %v6420_v42 = vpack.c.bf16 %v8878_v31, %v8878_v31 }
 0x252   : > { %5905 = vst.msk [vmem:[%s8867_s19] sm:$0xf] %vm663_vm3, %v6417_v39  ;;  %v5636_v16 = vadd.f32 %v8883_v12, %v8870_v63  ;;  %v6418_v25 = vpack.c.bf16 %v8883_v12, %v8883_v12  ;;  %v6934_v7 = vpop.f32.mrb[116].mxu1 }
 0x253   : > { %5908 = vst.msk [vmem:[%s8867_s19 + $0xc] sm:$0xf] %vm663_vm3, %v6420_v42  ;;  %v6935_v24 = vpop.f32.mrb[117].mxu1 }
 0x254   : > { %5906 = vst.msk [vmem:[%s8867_s19 + $0x4] sm:$0xf] %vm663_vm3, %v6418_v25  ;;  %v6936_v20 = vadd.f32 %v6935_v24, %v6934_v7  ;;  %v6937_v62 = vpop.f32.mrb[118].mxu1  ;;  %v5637_v22 = vadd.f32 %v5636_v16, %v8860_v38 }
 0x255   : > { %v6938_v55 = vpop.f32.mrb[119].mxu1 }
 0x256   : > { %v6939_v27 = vadd.f32 %v6938_v55, %v6937_v62  ;;  %v8904_v21 = vadd.f32 %v6936_v20, %v8776_v54  ;;  %v5638_v9 = vadd.f32 %v5637_v22, %v8878_v31 }
 0x258   : > { %v8907_v47 = vadd.f32 %v6939_v27, %v8779_v18 }
 0x259   : > { %v7022_v57 = vpop.f32.mrb[116].mxu0 }
 0x25a   : > { %v8911_v48 = vadd.f32 %v7022_v57, %v8806_v37  ;;  %v5525_v43 = vpop.f32.mrb[117].mxu0 }
 0x25b   : > { %v8914_v26 = vadd.f32 %v5525_v43, %v8794_v4  ;;  %v7023_v29 = vpop.f32.mrb[118].mxu0 }
 0x25c   : > { %v6423_v54 = vpack.c.bf16 %v8911_v48, %v8911_v48  ;;  %v8919_v34 = vadd.f32 %v7023_v29, %v8809_v14  ;;  %v5528_v18 = vpop.f32.mrb[119].mxu0 }
 0x25d   : > { %v5639_v1 = vadd.f32 %v5638_v9, %v8914_v26  ;;  %v6421_v37 = vpack.c.bf16 %v8914_v26, %v8914_v26  ;;  %v8925_v6 = vadd.f32 %v5528_v18, %v8797_v3 }
 0x25e   : > { %5911 = vst.msk [vmem:[%s8867_s19 + $0x18] sm:$0xf] %vm663_vm3, %v6423_v54  ;;  %v6424_v4 = vpack.c.bf16 %v8919_v34, %v8919_v34 }
 0x25f   : > { %5909 = vst.msk [vmem:[%s8867_s19 + $0x10] sm:$0xf] %vm663_vm3, %v6421_v37  ;;  %v5640_v60 = vadd.f32 %v5639_v1, %v8925_v6  ;;  %v6422_v14 = vpack.c.bf16 %v8925_v6, %v8925_v6 }
 0x260   : > { %v6940_v8 = vpop.f32.mrb[120].mxu1  ;;  %5912 = vst.msk [vmem:[%s8867_s19 + $0x1c] sm:$0xf] %vm663_vm3, %v6424_v4 }
 0x261   : > { %v6941_v33 = vpop.f32.mrb[121].mxu1  ;;  %5910 = vst.msk [vmem:[%s8867_s19 + $0x14] sm:$0xf] %vm663_vm3, %v6422_v14  ;;  %v5641_v23 = vadd.f32 %v5640_v60, %v8911_v48 }
 0x262   : > { %v6942_v3 = vadd.f32 %v6941_v33, %v6940_v8  ;;  %v6943_v46 = vpop.f32.mrb[122].mxu1 }
 0x263   : > { %v6944_v15 = vpop.f32.mrb[123].mxu1  ;;  %v5642_v39 = vadd.f32 %v5641_v23, %v8919_v34 }
 0x264   : > { %v6945_v49 = vadd.f32 %v6944_v15, %v6943_v46  ;;  %v8942_v30 = vadd.f32 %v6942_v3, %v8788_v10 }
 0x266   : > { %v8945_v13 = vadd.f32 %v6945_v49, %v8791_v36 }
 0x267   : > { %v7026_v61 = vpop.f32.mrb[120].mxu0 }
 0x268   : > { %v8949_v42 = vadd.f32 %v7026_v61, %v8830_v41  ;;  %v5541_v16 = vpop.f32.mrb[121].mxu0 }
 0x269   : > { %v8952_v25 = vadd.f32 %v5541_v16, %v8818_v5  ;;  %v7027_v7 = vpop.f32.mrb[122].mxu0 }
 0x26a   : > { %v6427_v10 = vpack.c.bf16 %v8949_v42, %v8949_v42  ;;  %v8957_v24 = vadd.f32 %v7027_v7, %v8833_v56  ;;  %v5544_v36 = vpop.f32.mrb[123].mxu0 }
 0x26b   : > { %v5643_v20 = vadd.f32 %v5642_v39, %v8952_v25  ;;  %v6425_v62 = vpack.c.bf16 %v8952_v25, %v8952_v25  ;;  %v8963_v41 = vadd.f32 %v5544_v36, %v8821_v45 }
 0x26c   : > { %5915 = vst.msk [vmem:[%s8867_s19 + $0x28] sm:$0xf] %vm663_vm3, %v6427_v10  ;;  %v6428_v5 = vpack.c.bf16 %v8957_v24, %v8957_v24 }
 0x26d   : > { %5913 = vst.msk [vmem:[%s8867_s19 + $0x20] sm:$0xf] %vm663_vm3, %v6425_v62  ;;  %v5644_v22 = vadd.f32 %v5643_v20, %v8963_v41  ;;  %v6426_v56 = vpack.c.bf16 %v8963_v41, %v8963_v41 }
 0x26e   : > { %5916 = vst.msk [vmem:[%s8867_s19 + $0x2c] sm:$0xf] %vm663_vm3, %v6428_v5 }
 0x26f   : > { %5914 = vst.msk [vmem:[%s8867_s19 + $0x24] sm:$0xf] %vm663_vm3, %v6426_v56  ;;  %v6946_v55 = vpop.f32.mrb[124].mxu1  ;;  %v5645_v45 = vadd.f32 %v5644_v22, %v8949_v42 }
 0x270   : > { %v6947_v27 = vpop.f32.mrb[125].mxu1 }
 0x271   : > { %v6948_v57 = vadd.f32 %v6947_v27, %v6946_v55  ;;  %v6949_v9 = vpop.f32.mrb[126].mxu1  ;;  %v5646_v1 = vadd.f32 %v5645_v45, %v8957_v24 }
 0x272   : > { %v6950_v43 = vpop.f32.mrb[127].mxu1 }
 0x273   : > { %v6951_v29 = vadd.f32 %v6950_v43, %v6949_v9  ;;  %v5437_v54 = vadd.f32 %v6948_v57, %v8800_v28 }
 0x274   : > { %v7030_v18 = vpop.f32.mrb[124].mxu0 }
 0x275   : > { %v8982_v37 = vadd.f32 %v7030_v18, %v8854_v2  ;;  %v5557_v4 = vpop.f32.mrb[125].mxu0  ;;  %v5440_v60 = vadd.f32 %v6951_v29, %v8803_v51 }
 0x276   : > { %v8986_v14 = vadd.f32 %v5557_v4, %v8842_v19  ;;  %v7031_v8 = vpop.f32.mrb[126].mxu0 }
 0x277   : > { %v6431_v33 = vpack.c.bf16 %v8982_v37, %v8982_v37  ;;  %v8991_v28 = vadd.f32 %v7031_v8, %v8857_v35  ;;  %v5560_v3 = vpop.f32.mrb[127].mxu0 }
 0x278   : > { %v5647_v46 = vadd.f32 %v5646_v1, %v8986_v14  ;;  %v6429_v2 = vpack.c.bf16 %v8986_v14, %v8986_v14  ;;  %v8997_v23 = vadd.f32 %v5560_v3, %v8845_v11 }
 0x279   : > { %5919 = vst.msk [vmem:[%s8867_s19 + $0x38] sm:$0xf] %vm663_vm3, %v6431_v33  ;;  %v6432_v51 = vpack.c.bf16 %v8991_v28, %v8991_v28 }
 0x27a   : > { %5917 = vst.msk [vmem:[%s8867_s19 + $0x30] sm:$0xf] %vm663_vm3, %v6429_v2  ;;  %v5648_v19 = vadd.f32 %v5647_v46, %v8997_v23  ;;  %v6430_v35 = vpack.c.bf16 %v8997_v23, %v8997_v23 }
 0x27b   : > { %5920 = vst.msk [vmem:[%s8867_s19 + $0x3c] sm:$0xf] %vm663_vm3, %v6432_v51 }
 0x27c   : > { %5918 = vst.msk [vmem:[%s8867_s19 + $0x34] sm:$0xf] %vm663_vm3, %v6430_v35  ;;  %v6952_v15 = vpop.f32.mrb[128].mxu1  ;;  %v5649_v11 = vadd.f32 %v5648_v19, %v8982_v37 }
 0x27d   : > { %v6953_v49 = vpop.f32.mrb[129].mxu1 }
 0x27e   : > { %v6954_v61 = vadd.f32 %v6953_v49, %v6952_v15  ;;  %v6955_v39 = vpop.f32.mrb[130].mxu1  ;;  %v5650_v20 = vadd.f32 %v5649_v11, %v8991_v28 }
 0x27f   : > { %v6956_v16 = vpop.f32.mrb[131].mxu1 }
 0x280   : > { %v6957_v7 = vadd.f32 %v6956_v16, %v6955_v39  ;;  %v5445_v10 = vadd.f32 %v6954_v61, %v8812_v58 }
 0x282   : > { %v7034_v36 = vpop.f32.mrb[128].mxu0  ;;  %v9016_v62 = vadd.f32 %v6957_v7, %v8815_v32 }
 0x283   : > { %v9019_v5 = vadd.f32 %v7034_v36, %v8904_v21  ;;  %v5573_v22 = vpop.f32.mrb[129].mxu0 }
 0x284   : > { %v9022_v56 = vadd.f32 %v5573_v22, %v8873_v52  ;;  %v7035_v55 = vpop.f32.mrb[130].mxu0 }
 0x285   : > { %v6435_v58 = vpack.c.bf16 %v9019_v5, %v9019_v5  ;;  %v9027_v45 = vadd.f32 %v7035_v55, %v8907_v47  ;;  %v5576_v27 = vpop.f32.mrb[131].mxu0 }
 0x286   : > { %v5651_v32 = vadd.f32 %v5650_v20, %v9022_v56  ;;  %v6433_v57 = vpack.c.bf16 %v9022_v56, %v9022_v56  ;;  %v9033_v21 = vadd.f32 %v5576_v27, %v8886_v17 }
 0x287   : > { %5923 = vst.msk [vmem:[%s8867_s19 + $0x48] sm:$0xf] %vm663_vm3, %v6435_v58  ;;  %v6436_v52 = vpack.c.bf16 %v9027_v45, %v9027_v45 }
 0x288   : > { %5921 = vst.msk [vmem:[%s8867_s19 + $0x40] sm:$0xf] %vm663_vm3, %v6433_v57  ;;  %v5652_v9 = vadd.f32 %v5651_v32, %v9033_v21  ;;  %v6434_v47 = vpack.c.bf16 %v9033_v21, %v9033_v21 }
 0x289   : > { %5924 = vst.msk [vmem:[%s8867_s19 + $0x4c] sm:$0xf] %vm663_vm3, %v6436_v52 }
 0x28a   : > { %5922 = vst.msk [vmem:[%s8867_s19 + $0x44] sm:$0xf] %vm663_vm3, %v6434_v47  ;;  %v6958_v43 = vpop.f32.mrb[132].mxu1  ;;  %v5653_v17 = vadd.f32 %v5652_v9, %v9019_v5 }
 0x28b   : > { %v6959_v29 = vpop.f32.mrb[133].mxu1 }
 0x28c   : > { %v6960_v18 = vadd.f32 %v6959_v29, %v6958_v43  ;;  %v6961_v1 = vpop.f32.mrb[134].mxu1  ;;  %v5654_v46 = vadd.f32 %v5653_v17, %v9027_v45 }
 0x28d   : > { %v6962_v4 = vpop.f32.mrb[135].mxu1 }
 0x28e   : > { %v6963_v8 = vadd.f32 %v6962_v4, %v6961_v1  ;;  %v5453_v33 = vadd.f32 %v6960_v18, %v8824_v53 }
 0x28f   : > { %v7038_v3 = vpop.f32.mrb[132].mxu0 }
 0x290   : > { %v9051_v2 = vadd.f32 %v7038_v3, %v5437_v54  ;;  %v5589_v51 = vpop.f32.mrb[133].mxu0  ;;  %v5456_v19 = vadd.f32 %v6963_v8, %v8827_v40 }
 0x291   : > { %v9055_v35 = vadd.f32 %v5589_v51, %v8942_v30  ;;  %v7039_v15 = vpop.f32.mrb[134].mxu0 }
 0x292   : > { %v6439_v49 = vpack.c.bf16 %v9051_v2, %v9051_v2  ;;  %v9059_v11 = vadd.f32 %v7039_v15, %v5440_v60  ;;  %v5592_v53 = vpop.f32.mrb[135].mxu0 }
 0x293   : > { %v5655_v61 = vadd.f32 %v5654_v46, %v9055_v35  ;;  %v6437_v54 = vpack.c.bf16 %v9055_v35, %v9055_v35  ;;  %v9065_v39 = vadd.f32 %v5592_v53, %v8945_v13 }
 0x294   : > { %5927 = vst.msk [vmem:[%s8867_s19 + $0x58] sm:$0xf] %vm663_vm3, %v6439_v49  ;;  %v6440_v40 = vpack.c.bf16 %v9059_v11, %v9059_v11 }
 0x295   : > { %5925 = vst.msk [vmem:[%s8867_s19 + $0x50] sm:$0xf] %vm663_vm3, %v6437_v54  ;;  %v5656_v30 = vadd.f32 %v5655_v61, %v9065_v39  ;;  %v6438_v60 = vpack.c.bf16 %v9065_v39, %v9065_v39 }
 0x296   : > { %5928 = vst.msk [vmem:[%s8867_s19 + $0x5c] sm:$0xf] %vm663_vm3, %v6440_v40 }
 0x297   : > { %v5657_v16 = vadd.f32 %v5656_v30, %v9051_v2  ;;  %5926 = vst.msk [vmem:[%s8867_s19 + $0x54] sm:$0xf] %vm663_vm3, %v6438_v60  ;;  %v6964_v13 = vpop.f32.mrb[136].mxu1 }
 0x298   : > { %v6965_v7 = vpop.f32.mrb[137].mxu1 }
 0x299   : > { %v6966_v36 = vadd.f32 %v6965_v7, %v6964_v13  ;;  %v5658_v20 = vadd.f32 %v5657_v16, %v9059_v11  ;;  %v6967_v22 = vpop.f32.mrb[138].mxu1 }
 0x29a   : > { %v6968_v55 = vpop.f32.mrb[139].mxu1 }
 0x29b   : > { %v6969_v58 = vadd.f32 %v6968_v55, %v6967_v22  ;;  %v5461_v27 = vadd.f32 %v6966_v36, %v8836_v44 }
 0x29d   : > { %v7042_v32 = vpop.f32.mrb[136].mxu0  ;;  %v5464_v57 = vadd.f32 %v6969_v58, %v8839_v50 }
 0x29e   : > { %v9084_v52 = vadd.f32 %v7042_v32, %v5453_v33  ;;  %v5605_v9 = vpop.f32.mrb[137].mxu0 }
 0x29f   : > { %v5606_v47 = vadd.f32 %v5605_v9, %v5445_v10  ;;  %v7043_v43 = vpop.f32.mrb[138].mxu0 }
 0x2a0   : > { %v6443_v17 = vpack.c.bf16 %v9084_v52, %v9084_v52  ;;  %v5617_v29 = vadd.f32 %v7043_v43, %v5456_v19  ;;  %v5608_v18 = vpop.f32.mrb[139].mxu0 }
 0x2a1   : > { %v5659_v1 = vadd.f32 %v5658_v20, %v5606_v47  ;;  %v6441_v4 = vpack.c.bf16 %v5606_v47, %v5606_v47  ;;  %v5609_v8 = vadd.f32 %v5608_v18, %v9016_v62 }
 0x2a2   : > { %5931 = vst.msk [vmem:[%s8867_s19 + $0x68] sm:$0xf] %vm663_vm3, %v6443_v17  ;;  %v6444_v44 = vpack.c.bf16 %v5617_v29, %v5617_v29 }
 0x2a3   : > { %5929 = vst.msk [vmem:[%s8867_s19 + $0x60] sm:$0xf] %vm663_vm3, %v6441_v4  ;;  %v5660_v50 = vadd.f32 %v5659_v1, %v5609_v8  ;;  %v6442_v33 = vpack.c.bf16 %v5609_v8, %v5609_v8 }
 0x2a4   : > { %5932 = vst.msk [vmem:[%s8867_s19 + $0x6c] sm:$0xf] %vm663_vm3, %v6444_v44 }
 0x2a5   : > { %v5661_v10 = vadd.f32 %v5660_v50, %v9084_v52  ;;  %5930 = vst.msk [vmem:[%s8867_s19 + $0x64] sm:$0xf] %vm663_vm3, %v6442_v33  ;;  %v6970_v3 = vpop.f32.mrb[140].mxu1 }
 0x2a6   : > { %v6971_v46 = vpop.f32.mrb[141].mxu1 }
 0x2a7   : > { %v6972_v51 = vadd.f32 %v6971_v46, %v6970_v3  ;;  %v5662_v19 = vadd.f32 %v5661_v10, %v5617_v29  ;;  %v6973_v15 = vpop.f32.mrb[142].mxu1 }
 0x2a8   : > { %v6974_v62 = vpop.f32.mrb[143].mxu1 }
 0x2a9   : > { %v5469_v49 = vadd.f32 %v6972_v51, %v8848_v59  ;;  %v6975_v53 = vadd.f32 %v6974_v62, %v6973_v15 }
 0x2aa   : > { %v7046_v61 = vpop.f32.mrb[140].mxu0 }
 0x2ab   : > { %v5630_v54 = vadd.f32 %v7046_v61, %v5469_v49  ;;  %v5621_v40 = vpop.f32.mrb[141].mxu0  ;;  %v5472_v30 = vadd.f32 %v6975_v53, %v8851_v0 }
 0x2ac   : > { %v5622_v60 = vadd.f32 %v5621_v40, %v5461_v27  ;;  %v7047_v16 = vpop.f32.mrb[142].mxu0 }
 0x2ad   : > { %v6447_v13 = vpack.c.bf16 %v5630_v54, %v5630_v54  ;;  %v5633_v7 = vadd.f32 %v7047_v16, %v5472_v30  ;;  %v5624_v36 = vpop.f32.mrb[143].mxu0 }
 0x2ae   : > { %v5663_v20 = vadd.f32 %v5662_v19, %v5622_v60  ;;  %v6445_v22 = vpack.c.bf16 %v5622_v60, %v5622_v60  ;;  %v5625_v55 = vadd.f32 %v5624_v36, %v5464_v57 }
 0x2af   : > { %5935 = vst.msk [vmem:[%s8867_s19 + $0x78] sm:$0xf] %vm663_vm3, %v6447_v13  ;;  %v6448_v59 = vpack.c.bf16 %v5633_v7, %v5633_v7 }
 0x2b0   : > { %5933 = vst.msk [vmem:[%s8867_s19 + $0x70] sm:$0xf] %vm663_vm3, %v6445_v22  ;;  %v5664_v58 = vadd.f32 %v5663_v20, %v5625_v55  ;;  %v6446_v32 = vpack.c.bf16 %v5625_v55, %v5625_v55 }
 0x2b1   : > { %5936 = vst.msk [vmem:[%s8867_s19 + $0x7c] sm:$0xf] %vm663_vm3, %v6448_v59 }
 0x2b2   : > { %v5665_v0 = vadd.f32 %v5664_v58, %v5630_v54  ;;  %5934 = vst.msk [vmem:[%s8867_s19 + $0x74] sm:$0xf] %vm663_vm3, %v6446_v32 }
 0x2b4   : > { %v5666_v27 = vadd.f32 %v5665_v0, %v5633_v7 }
 0x2b6   : > { %v5667_v9 = vrot.slane %v5666_v27, 4 }
 0x2b8   : > { %v5668_v43 = vadd.f32 %v5667_v9, %v5666_v27 }
 0x2ba   : > { %v5669_v17 = vrot.slane %v5668_v43, 2 }
 0x2bc   : > { %v5670_v18 = vadd.f32 %v5669_v17, %v5668_v43 }
 0x2be   : > { %v5671_v1 = vrot.slane %v5670_v18, 1 }
 0x2c0   : > { %v5672_v57 = vadd.f32 %v5671_v1, %v5670_v18 }
 0x2c2   : > { %v9112_v4 = vmul.f32 0.00390625, %v5672_v57 }
 0x2c4   : > { %5776 = vst [vmem:[%s265_s20] sm:$0x1] %v9112_v4  ;;  %v9117_v44 = vsub.f32 %v9033_v21, %v9112_v4  ;;  %v9121_v50 = vsub.f32 %v9055_v35, %v9112_v4  ;;  %v9125_v33 = vsub.f32 %v9065_v39, %v9112_v4  ;;  %v9129_v10 = vsub.f32 %v9051_v2, %v9112_v4 }
 0x2c5   : > { %v9133_v3 = vsub.f32 %v9059_v11, %v9112_v4  ;;  %v9136_v46 = vsub.f32 %v5606_v47, %v9112_v4  ;;  %v9139_v21 = vsub.f32 %v5609_v8, %v9112_v4  ;;  %v9143_v35 = vsub.f32 %v9084_v52, %v9112_v4 }
 0x2c6   : > { %v9146_v39 = vsub.f32 %v5617_v29, %v9112_v4  ;;  %v9149_v2 = vsub.f32 %v5622_v60, %v9112_v4  ;;  %v9152_v51 = vsub.f32 %v5625_v55, %v9112_v4  ;;  %v9155_v11 = vsub.f32 %v5630_v54, %v9112_v4 }
 0x2c7   : > { %v9158_v47 = vsub.f32 %v5633_v7, %v9112_v4  ;;  %v5674_v8 = vsub.f32 %v8870_v63, %v9112_v4  ;;  %v5675_v52 = vsub.f32 %v8883_v12, %v9112_v4  ;;  %v5676_v29 = vsub.f32 %v8860_v38, %v9112_v4 }
 0x2c8   : > { %v5677_v62 = vsub.f32 %v8878_v31, %v9112_v4  ;;  %v5678_v49 = vsub.f32 %v8914_v26, %v9112_v4  ;;  %v5679_v54 = vsub.f32 %v8925_v6, %v9112_v4  ;;  %v5680_v12 = vsub.f32 %v8911_v48, %v9112_v4 }
 0x2c9   : > { %v5706_v19 = vmul.f32 %v5674_v8, %v5674_v8  ;;  %v5707_v15 = vmul.f32 %v5675_v52, %v5675_v52  ;;  %v5708_v53 = vmul.f32 %v5676_v29, %v5676_v29  ;;  %v5681_v60 = vsub.f32 %v8919_v34, %v9112_v4 }
 0x2ca   : > { %v5709_v63 = vmul.f32 %v5677_v62, %v5677_v62  ;;  %v5710_v30 = vmul.f32 %v5678_v49, %v5678_v49  ;;  %v5711_v16 = vmul.f32 %v5679_v54, %v5679_v54  ;;  %v5682_v26 = vsub.f32 %v8952_v25, %v9112_v4 }
 0x2cb   : > { %v5738_v61 = vadd.f32 %v5707_v15, %v5706_v19  ;;  %v5712_v13 = vmul.f32 %v5680_v12, %v5680_v12  ;;  %v5683_v6 = vsub.f32 %v8963_v41, %v9112_v4  ;;  %v5713_v36 = vmul.f32 %v5681_v60, %v5681_v60 }
 0x2cc   : > { %v5684_v48 = vsub.f32 %v8949_v42, %v9112_v4  ;;  %v5714_v22 = vmul.f32 %v5682_v26, %v5682_v26  ;;  %v5685_v34 = vsub.f32 %v8957_v24, %v9112_v4  ;;  %v5686_v25 = vsub.f32 %v8986_v14, %v9112_v4 }
 0x2cd   : > { %v5739_v40 = vadd.f32 %v5738_v61, %v5708_v53  ;;  %v5715_v59 = vmul.f32 %v5683_v6, %v5683_v6  ;;  %v5687_v41 = vsub.f32 %v8997_v23, %v9112_v4  ;;  %v5688_v42 = vsub.f32 %v8982_v37, %v9112_v4 }
 0x2ce   : > { %v5716_v32 = vmul.f32 %v5684_v48, %v5684_v48  ;;  %v5717_v27 = vmul.f32 %v5685_v34, %v5685_v34  ;;  %v5718_v43 = vmul.f32 %v5686_v25, %v5686_v25  ;;  %v5689_v24 = vsub.f32 %v8991_v28, %v9112_v4 }
 0x2cf   : > { %v5740_v38 = vadd.f32 %v5739_v40, %v5709_v63  ;;  %v5719_v18 = vmul.f32 %v5687_v41, %v5687_v41  ;;  %v5690_v14 = vsub.f32 %v9022_v56, %v9112_v4  ;;  %v5720_v57 = vmul.f32 %v5688_v42, %v5688_v42 }
 0x2d0   : > { %v5721_v52 = vmul.f32 %v5689_v24, %v5689_v24  ;;  %v5692_v23 = vsub.f32 %v9019_v5, %v9112_v4  ;;  %v5693_v37 = vsub.f32 %v9027_v45, %v9112_v4  ;;  %v5723_v28 = vmul.f32 %v9117_v44, %v9117_v44 }
 0x2d1   : > { %v5741_v31 = vadd.f32 %v5740_v38, %v5710_v30  ;;  %v5722_v19 = vmul.f32 %v5690_v14, %v5690_v14  ;;  %v5726_v54 = vmul.f32 %v9121_v50, %v9121_v50  ;;  %v5727_v5 = vmul.f32 %v9125_v33, %v9125_v33 }
 0x2d2   : > { %v5724_v49 = vmul.f32 %v5692_v23, %v5692_v23  ;;  %v5725_v61 = vmul.f32 %v5693_v37, %v5693_v37  ;;  %v5728_v12 = vmul.f32 %v9129_v10, %v9129_v10  ;;  %v5729_v4 = vmul.f32 %v9133_v3, %v9133_v3 }
 0x2d3   : > { %v5742_v7 = vadd.f32 %v5741_v31, %v5711_v16  ;;  %v5730_v30 = vmul.f32 %v9136_v46, %v9136_v46  ;;  %v5731_v50 = vmul.f32 %v9139_v21, %v9139_v21  ;;  %v5732_v33 = vmul.f32 %v9143_v35, %v9143_v35 }
 0x2d4   : > { %v5733_v10 = vmul.f32 %v9146_v39, %v9146_v39  ;;  %v5734_v3 = vmul.f32 %v9149_v2, %v9149_v2  ;;  %v5735_v46 = vmul.f32 %v9152_v51, %v9152_v51  ;;  %v5736_v21 = vmul.f32 %v9155_v11, %v9155_v11 }
 0x2d5   : > { %v5743_v20 = vadd.f32 %v5742_v7, %v5712_v13  ;;  %v5737_v35 = vmul.f32 %v9158_v47, %v9158_v47 }
 0x2d7   : > { %v5744_v55 = vadd.f32 %v5743_v20, %v5713_v36 }
 0x2d9   : > { %v5745_v58 = vadd.f32 %v5744_v55, %v5714_v22 }
 0x2db   : > { %v5746_v0 = vadd.f32 %v5745_v58, %v5715_v59 }
 0x2dd   : > { %v5747_v9 = vadd.f32 %v5746_v0, %v5716_v32 }
 0x2df   : > { %v5748_v17 = vadd.f32 %v5747_v9, %v5717_v27 }
 0x2e1   : > { %v5749_v1 = vadd.f32 %v5748_v17, %v5718_v43 }
 0x2e3   : > { %v5750_v8 = vadd.f32 %v5749_v1, %v5719_v18 }
 0x2e5   : > { %v5751_v29 = vadd.f32 %v5750_v8, %v5720_v57 }
 0x2e7   : > { %v5752_v15 = vadd.f32 %v5751_v29, %v5721_v52 }
 0x2e9   : > { %v5753_v62 = vadd.f32 %v5752_v15, %v5722_v19 }
 0x2eb   : > { %v5754_v53 = vadd.f32 %v5753_v62, %v5723_v28 }
 0x2ed   : > { %v5755_v56 = vadd.f32 %v5754_v53, %v5724_v49 }
 0x2ef   : > { %v5756_v63 = vadd.f32 %v5755_v56, %v5725_v61 }
 0x2f1   : > { %v5757_v40 = vadd.f32 %v5756_v63, %v5726_v54 }
 0x2f3   : > { %v5758_v45 = vadd.f32 %v5757_v40, %v5727_v5 }
 0x2f5   : > { %v5759_v44 = vadd.f32 %v5758_v45, %v5728_v12 }
 0x2f7   : > { %v5760_v38 = vadd.f32 %v5759_v44, %v5729_v4 }
 0x2f9   : > { %v5761_v60 = vadd.f32 %v5760_v38, %v5730_v30 }
 0x2fb   : > { %v5762_v16 = vadd.f32 %v5761_v60, %v5731_v50 }
 0x2fd   : > { %v5763_v31 = vadd.f32 %v5762_v16, %v5732_v33 }
 0x2ff   : > { %v5764_v26 = vadd.f32 %v5763_v31, %v5733_v10 }
 0x301   : > { %v5765_v13 = vadd.f32 %v5764_v26, %v5734_v3 }
 0x303   : > { %v5766_v7 = vadd.f32 %v5765_v13, %v5735_v46 }
 0x305   : > { %v5767_v6 = vadd.f32 %v5766_v7, %v5736_v21 }
 0x307   : > { %v5768_v36 = vadd.f32 %v5767_v6, %v5737_v35 }
 0x309   : > { %v5769_v39 = vrot.slane %v5768_v36, 4 }
 0x30b   : > { %v5770_v20 = vadd.f32 %v5769_v39, %v5768_v36 }
 0x30d   : > { %v5771_v48 = vrot.slane %v5770_v20, 2 }
 0x30f   : > { %v5772_v22 = vadd.f32 %v5771_v48, %v5770_v20 }
 0x311   : > { %v5773_v55 = vrot.slane %v5772_v22, 1 }
 0x313   : > { %v5774_v2 = vadd.f32 %v5773_v55, %v5772_v22 }
 0x315   : > { %5775 = vst [vmem:[%s268_s26] sm:$0x1] %v5774_v2 }
 0x316 PF: > { %s17_s21 = sadd.s32 1, %s7203_s21  }
 0x317   : > { %p14_p4 = scmp.ge.s32.totalorder %s17_s21, 4  }
 0x319   :  { %16 = sbr.rel (!%p14_p4) target bundleno = 1 (0x1), region = 92 }

// kernel: basic_block_forward.3
= control target key start
LH: loop header
LB: loop body
LE: loop exit
PB: predicated region body
PF: predicated region fallthrough
CT: control target
= control target key end

     0   :  { %s7014_s21 = smov 0   ;;  %s8829_s0 = inlined_call_operand.vmem [shape: f32[2,16,16,4], index: 0, kind: input, shape index: {}]   ;;  %s8830_s1 = inlined_call_operand.vmem [shape: bf16[1152,128], index: 1, kind: input, shape index: {}]   ;;  %s8831_s2 = inlined_call_operand.vmem [shape: f32[1,4], index: 2, kind: input, shape index: {}]   ;;  %s8832_s3 = inlined_call_operand.vmem [shape: f32[1,4], index: 3, kind: input, shape index: {}]   ;;  %s8833_s4 = inlined_call_operand.vmem [shape: bf16[2,16,16,4], index: 4, kind: output, shape index: {0}]   ;;  %s8834_s5 = inlined_call_operand.vmem [shape: f32[2,1,128], index: 5, kind: output, shape index: {1}]   ;;  %s8835_s6 = inlined_call_operand.vmem [shape: f32[2,1,128], index: 6, kind: output, shape index: {2}]  }
   0x1 LB: > { %s5900_s2 = sadd.s32 4294967295, %s6976_s21   ;;  %p5904_p0 = scmp.ge.s32.totalorder %s6976_s21, 1  ;;  %s6976_s21 = sphi %s7014_s21, %s17_s21  }
   0x2   : > { %p217_p1 = scmp.lt.s32.totalorder %s6976_s21, 3 }
   0x4   : > { %p218_p2 = pnand %p5904_p0, %p217_p1 }
   0x6   : > { %221 = sbr.rel (%p218_p2) target bundleno = 773 (0x305), region = 36 }
   0xd   : > { %v7025_v0 = vld [vmem:[%s8830_s1 + $0x40] sm:$0xff]   ;;  %v6978_v2 = vmov 0   ;;  %v6852_v3 = vld [vmem:[%s8830_s1 + $0x48] sm:$0xff]   ;;  %p253_p3 = scmp.lt.s32.totalorder %s5900_s2, 1  ;;  %v6854_v5 = vld [vmem:[%s8830_s1 + $0x50] sm:$0xff]   ;;  %vm521_vm0 = vcmask 27648  }
   0xe   : > { %v7030_v1 = vld [vmem:[%s8830_s1] sm:$0xff]   ;;  %272 = vst [vmem:[#allocation2 + $0x8] sm:$0xf] %v6978_v2  ;;  %273 = vst [vmem:[#allocation2 + $0xc] sm:$0xf] %v6978_v2  ;;  %6305 = vmatprep.subr.bf16.mxu0 %v7025_v0  ;;  %6825 = vmatprep.subr.bf16.mxu1 %v7025_v0  ;;  %v6853_v4 = vld [vmem:[%s8830_s1 + $0x8] sm:$0xff]  }
   0xf   : > { %271 = vst [vmem:[#allocation2 + $0x4] sm:$0xf] %v6978_v2  ;;  %274 = vst [vmem:[#allocation2 + $0x10] sm:$0xf] %v6978_v2  ;;  %6306 = vmatpush3.bf16.msra.mxu0 %v7030_v1  ;;  %6833 = vmatpush3.bf16.msra.mxu1 %v7030_v1  ;;  %v6855_v6 = vld [vmem:[%s8830_s1 + $0x10] sm:$0xff]   ;;  %s8959_s2 = smov (!%p253_p3, %s5900_s2), 1 }
  0x10   : > { %276 = vst [vmem:[#allocation2 + $0x18] sm:$0xf] %v6978_v2  ;;  %277 = vst [vmem:[#allocation2 + $0x1c] sm:$0xf] %v6978_v2  ;;  %6307 = vmatprep.subr.bf16.mxu0 %v6852_v3  ;;  %6826 = vmatprep.subr.bf16.mxu1 %v6852_v3  ;;  %v6856_v7 = vld [vmem:[%s8830_s1 + $0x58] sm:$0xff]   ;;  %s6239_s13 = sshll.u32 %s8959_s2, 8  ;;  %s265_s11 = scalar_lea.vmem %s8834_s5, %s8959_s2 }
  0x11   : > { %278 = vst [vmem:[#allocation2 + $0x20] sm:$0xf] %v6978_v2  ;;  %279 = vst [vmem:[#allocation2 + $0x24] sm:$0xf] %v6978_v2  ;;  %v6857_v8 = vld [vmem:[%s8830_s1 + $0x18] sm:$0xff]   ;;  %v6858_v9 = vld [vmem:[%s8830_s1 + $0x60] sm:$0xff]   ;;  %s7142_s20 = scalar_lea.vmem %s8829_s0, %s6239_s13  ;;  %s268_s14 = scalar_lea.vmem %s8835_s6, %s8959_s2 }
  0x12   : > { %281 = vst [vmem:[#allocation2 + $0x2c] sm:$0xf] %v6978_v2  ;;  %282 = vst [vmem:[#allocation2 + $0x30] sm:$0xf] %v6978_v2  ;;  %v6859_v10 = vld [vmem:[%s8830_s1 + $0x20] sm:$0xff]   ;;  %v6860_v11 = vld [vmem:[%s8830_s1 + $0x68] sm:$0xff]  }
  0x13   : > { %283 = vst [vmem:[#allocation2 + $0x34] sm:$0xf] %v6978_v2  ;;  %284 = vst [vmem:[#allocation2 + $0x38] sm:$0xf] %v6978_v2  ;;  %6308 = vmatpush3.bf16.msra.mxu0 %v6853_v4  ;;  %6834 = vmatpush3.bf16.msra.mxu1 %v6853_v4  ;;  %v382_v13 = vld [vmem:[%s7142_s20 + $0xb0] sm:$0xff]  ;;  %v383_v14 = vld [vmem:[%s7142_s20 + $0xb8] sm:$0xff] }
  0x14   : > { %286 = vst [vmem:[#allocation2 + $0x40] sm:$0xf] %v6978_v2  ;;  %287 = vst [vmem:[#allocation2 + $0x44] sm:$0xf] %v6978_v2  ;;  %6309 = vmatprep.subr.bf16.mxu0 %v6854_v5  ;;  %6827 = vmatprep.subr.bf16.mxu1 %v6854_v5  ;;  %vm602_vm1 = vsmask.f32 256  ;;  %v6263_v16 = vpack.c.bf16 %v382_v13, %v382_v13  ;;  %v6264_v17 = vpack.c.bf16 %v383_v14, %v383_v14 }
  0x15   : > { %288 = vst [vmem:[#allocation2 + $0x48] sm:$0xf] %v6978_v2  ;;  %289 = vst [vmem:[#allocation2 + $0x4c] sm:$0xf] %v6978_v2  ;;  %v6866_v12 = vld [vmem:[#allocation2 + $0x8] sm:$0xff]   ;;  %v6862_v25 = vld [vmem:[%s8830_s1 + $0x70] sm:$0xff]  }
  0x16   : > { %291 = vst [vmem:[#allocation2 + $0x54] sm:$0xf] %v6978_v2  ;;  %292 = vst [vmem:[#allocation2 + $0x58] sm:$0xf] %v6978_v2  ;;  %v554_v15 = vld [vmem:[#allocation2 + $0x4] sm:$0x8]  ;;  %4721 = vmatprep.mubr.bf16.mxu0 %v6866_v12 }
  0x17   : > { %293 = vst [vmem:[#allocation2 + $0x5c] sm:$0xf] %v6978_v2  ;;  %294 = vst [vmem:[#allocation2 + $0x60] sm:$0xf] %v6978_v2  ;;  %6310 = vmatpush3.bf16.msra.mxu0 %v6855_v6  ;;  %6835 = vmatpush3.bf16.msra.mxu1 %v6855_v6  ;;  %v555_v18 = vld [vmem:[#allocation2 + $0x8] sm:$0xf] }
  0x18   : > { %296 = vst [vmem:[#allocation2 + $0x68] sm:$0xf] %v6978_v2  ;;  %297 = vst [vmem:[#allocation2 + $0x6c] sm:$0xf] %v6978_v2  ;;  %6311 = vmatprep.subr.bf16.mxu0 %v6856_v7  ;;  %6828 = vmatprep.subr.bf16.mxu1 %v6856_v7  ;;  %v556_v19 = vld [vmem:[#allocation2 + $0xc] sm:$0xf] }
  0x19   : > { %298 = vst [vmem:[#allocation2 + $0x70] sm:$0xf] %v6978_v2  ;;  %299 = vst [vmem:[#allocation2 + $0x74] sm:$0xf] %v6978_v2  ;;  %vm603_vm2 = vsmask.f32 4368 }
  0x1a   : > { %301 = vst [vmem:[#allocation2 + $0x7c] sm:$0xf] %v6978_v2  ;;  %302 = vst [vmem:[#allocation2 + $0x80] sm:$0xf] %v6978_v2  ;;  %v6861_v20 = vld [vmem:[%s8830_s1 + $0x28] sm:$0xff]   ;;  %v606_v21 = vshrl.u32 %v554_v15, 16 }
  0x1b   : > { %303 = vst [vmem:[#allocation2 + $0x84] sm:$0xf] %v6978_v2  ;;  %304 = vst [vmem:[#allocation2 + $0x88] sm:$0xf] %v6978_v2  ;;  %6312 = vmatpush3.bf16.msra.mxu0 %v6857_v8  ;;  %6836 = vmatpush3.bf16.msra.mxu1 %v6857_v8  ;;  %v611_v22 = vshrl.u32 %v555_v18, 16  ;;  %v614_v23 = vshll.u32 %v555_v18, 16 }
  0x1c   : > { %306 = vst [vmem:[#allocation2 + $0x90] sm:$0xf] %v6978_v2  ;;  %307 = vst [vmem:[#allocation2 + $0x94] sm:$0xf] %v6978_v2  ;;  %6313 = vmatprep.subr.bf16.mxu0 %v6858_v9  ;;  %6829 = vmatprep.subr.bf16.mxu1 %v6858_v9  ;;  %v620_v24 = vshrl.u32 %v556_v19, 16  ;;  %v623_v26 = vshll.u32 %v556_v19, 16 }
  0x1d   : > { %308 = vst [vmem:[#allocation2 + $0x98] sm:$0xf] %v6978_v2  ;;  %309 = vst [vmem:[#allocation2 + $0x9c] sm:$0xf] %v6978_v2  ;;  %v6863_v27 = vld [vmem:[%s8830_s1 + $0x30] sm:$0xff]   ;;  %v613_v28 = vrot.slane %v611_v22, 7 }
  0x1e   : > { %311 = vst [vmem:[#allocation2 + $0xa4] sm:$0xf] %v6978_v2  ;;  %312 = vst [vmem:[#allocation2 + $0xa8] sm:$0xf] %v6978_v2  ;;  %v622_v29 = vrot.slane %v620_v24, 7  ;;  %v6864_v30 = vld [vmem:[%s8830_s1 + $0x78] sm:$0xff]  }
  0x1f   : > { %313 = vst [vmem:[#allocation2 + $0xac] sm:$0xf] %v6978_v2  ;;  %314 = vst [vmem:[#allocation2 + $0xb0] sm:$0xf] %v6978_v2  ;;  %6314 = vmatpush3.bf16.msra.mxu0 %v6859_v10  ;;  %6837 = vmatpush3.bf16.msra.mxu1 %v6859_v10  ;;  %v5941_v32 = vrot.slane %v606_v21, 11  ;;  %v616_v33 = vor.u32 %v614_v23, %v613_v28  ;;  %v618_v34 = vrot.slane %v613_v28, 4 }
  0x20   : > { %316 = vst [vmem:[#allocation2 + $0xb8] sm:$0xf] %v6978_v2  ;;  %317 = vst [vmem:[#allocation2 + $0xbc] sm:$0xf] %v6978_v2  ;;  %6315 = vmatprep.subr.bf16.mxu0 %v6860_v11  ;;  %6830 = vmatprep.subr.bf16.mxu1 %v6860_v11  ;;  %v625_v35 = vor.u32 %v623_v26, %v622_v29  ;;  %v6865_v37 = vld [vmem:[%s8830_s1 + $0x38] sm:$0xff]   ;;  %v6868_v38 = vld [vmem:[%s8830_s1 + $0xc0] sm:$0xff]  }
  0x21   : > { %318 = vst [vmem:[#allocation2 + $0xc0] sm:$0xf] %v6978_v2  ;;  %319 = vst [vmem:[#allocation2 + $0xc4] sm:$0xf] %v6978_v2  ;;  %v6869_v39 = vld [vmem:[%s8830_s1 + $0x140] sm:$0xff]   ;;  %v361_v48 = vld [vmem:[%s7142_s20 + $0x8] sm:$0xff] }
  0x22   : > { %321 = vst [vmem:[#allocation2 + $0xcc] sm:$0xf] %v6978_v2  ;;  %322 = vst [vmem:[#allocation2 + $0xd0] sm:$0xf] %v6978_v2  ;;  %v360_v40 = vld [vmem:[%s7142_s20] sm:$0xff]  ;;  %v385_v54 = vld [vmem:[%s7142_s20 + $0xc8] sm:$0xff]  ;;  %v6242_v56 = vpack.c.bf16 %v361_v48, %v361_v48 }
  0x23   : > { %323 = vst [vmem:[#allocation2 + $0xd4] sm:$0xf] %v6978_v2  ;;  %324 = vst [vmem:[#allocation2 + $0xd8] sm:$0xf] %v6978_v2  ;;  %6316 = vmatpush3.bf16.msra.mxu0 %v6861_v20  ;;  %6838 = vmatpush3.bf16.msra.mxu1 %v6861_v20  ;;  %v6241_v45 = vpack.c.bf16 %v360_v40, %v360_v40  ;;  %v384_v53 = vld [vmem:[%s7142_s20 + $0xc0] sm:$0xff]  ;;  %v6266_v58 = vpack.c.bf16 %v385_v54, %v385_v54  ;;  %v6879_v5 = vld [vmem:[%s8830_s1 + $0x148] sm:$0xff]  }
  0x24   : > { %326 = vst [vmem:[#allocation2 + $0xe0] sm:$0xf] %v6978_v2  ;;  %327 = vst [vmem:[#allocation2 + $0xe4] sm:$0xf] %v6978_v2  ;;  %6317 = vmatprep.subr.bf16.mxu0 %v6862_v25  ;;  %6831 = vmatprep.subr.bf16.mxu1 %v6862_v25  ;;  %v6265_v57 = vpack.c.bf16 %v384_v53, %v384_v53  ;;  %v6871_v62 = vld [vmem:[%s8830_s1 + $0x100] sm:$0xff]   ;;  %v6872_v9 = vld [vmem:[%s8830_s1 + $0xc8] sm:$0xff]  }
  0x25   : > { %328 = vst [vmem:[#allocation2 + $0xe8] sm:$0xf] %v6978_v2  ;;  %329 = vst [vmem:[#allocation2 + $0xec] sm:$0xf] %v6978_v2  ;;  %v557_v63 = vld [vmem:[#allocation2 + $0x18] sm:$0x8] }
  0x26   : > { %331 = vst [vmem:[#allocation2 + $0xf4] sm:$0xf] %v6978_v2  ;;  %332 = vst [vmem:[#allocation2 + $0xf8] sm:$0xf] %v6978_v2  ;;  %v6870_v3 = vld [vmem:[%s8830_s1 + $0x80] sm:$0xff]   ;;  %v628_v11 = vshrl.u32 %v557_v63, 16 }
  0x27   : > { %333 = vst [vmem:[#allocation2 + $0xfc] sm:$0xf] %v6978_v2  ;;  %334 = vst [vmem:[#allocation2 + $0x100] sm:$0xf] %v6978_v2  ;;  %6318 = vmatpush3.bf16.msra.mxu0 %v6863_v27  ;;  %6839 = vmatpush3.bf16.msra.mxu1 %v6863_v27  ;;  %v6873_v12 = vld [vmem:[%s8830_s1 + $0x88] sm:$0xff]   ;;  %v362_v18 = vld [vmem:[%s7142_s20 + $0x10] sm:$0xff] }
  0x28   : > { %336 = vst [vmem:[#allocation2 + $0x108] sm:$0xf] %v6978_v2  ;;  %337 = vst [vmem:[#allocation2 + $0x10c] sm:$0xf] %v6978_v2  ;;  %6319 = vmatprep.subr.bf16.mxu0 %v6864_v30  ;;  %6832 = vmatprep.subr.bf16.mxu1 %v6864_v30  ;;  %v363_v19 = vld [vmem:[%s7142_s20 + $0x18] sm:$0xff]  ;;  %v6243_v22 = vpack.c.bf16 %v362_v18, %v362_v18  ;;  %v5942_v26 = vrot.slane %v628_v11, 11 }
  0x29   : > { %338 = vst [vmem:[#allocation2 + $0x110] sm:$0xf] %v6978_v2  ;;  %339 = vst [vmem:[#allocation2 + $0x114] sm:$0xf] %v6978_v2  ;;  %v6244_v23 = vpack.c.bf16 %v363_v19, %v363_v19  ;;  %v6886_v19 = vld [vmem:[%s8830_s1 + $0xe8] sm:$0xff]  }
  0x2a   : > { %341 = vst [vmem:[#allocation2 + $0x11c] sm:$0xf] %v6978_v2  ;;  %342 = vst [vmem:[#allocation2 + $0x120] sm:$0xf] %v6978_v2  ;;  %vm1229_vm4 = vsmask.f32 3328 }
  0x2b   : > { %343 = vst [vmem:[#allocation2 + $0x124] sm:$0xf] %v6978_v2  ;;  %344 = vst [vmem:[#allocation2 + $0x128] sm:$0xf] %v6978_v2  ;;  %6320 = vmatpush3.bf16.msra.mxu0 %v6865_v37  ;;  %6840 = vmatpush3.bf16.msra.mxu1 %v6865_v37  ;;  %vm1230_vm5 = vsmask.f32 7440 }
  0x2c   : > { %346 = vst [vmem:[#allocation2 + $0x130] sm:$0xf] %v6978_v2  ;;  %347 = vst [vmem:[#allocation2 + $0x134] sm:$0xf] %v6978_v2  ;;  %6417 = vmatprep.subr.bf16.mxu1 %v6868_v38  ;;  %6529 = vmatprep.subr.bf16.mxu0 %v6869_v39  ;;  %v6878_v38 = vld [vmem:[%s8830_s1 + $0xd8] sm:$0xff]  }
  0x2d   : > { %348 = vst [vmem:[#allocation2 + $0x138] sm:$0xf] %v6978_v2  ;;  %349 = vst [vmem:[#allocation2 + $0x13c] sm:$0xf] %v6978_v2  ;;  %v590_v36 = vld [vmem:[#allocation2 + $0xf4] sm:$0x8] }
  0x2e   : > { %351 = vst [vmem:[#allocation2 + $0x144] sm:$0xf] %v6978_v2  ;;  %352 = vst [vmem:[#allocation2 + $0x148] sm:$0xf] %v6978_v2  ;;  %v870_v44 = vshrl.u32 %v590_v36, 16  ;;  %v387_v39 = vld [vmem:[%s7142_s20 + $0xd8] sm:$0xff] }
  0x2f   : > { %353 = vst [vmem:[#allocation2 + $0x14c] sm:$0xf] %v6978_v2  ;;  %354 = vst [vmem:[#allocation2 + $0x150] sm:$0xf] %v6978_v2  ;;  %v593_v4 = vld [vmem:[#allocation2 + $0x108] sm:$0x8] }
  0x30   : > { %356 = vst [vmem:[#allocation2 + $0x158] sm:$0xf] %v6978_v2  ;;  %357 = vst [vmem:[#allocation2 + $0x15c] sm:$0xf] %v6978_v2  ;;  %v5953_v59 = vrot.slane %v870_v44, 11  ;;  %v892_v15 = vshrl.u32 %v593_v4, 16 }
  0x31   : > { %358 = vst [vmem:[#allocation2 + $0x160] sm:$0xf] %v6978_v2  ;;  %359 = vst [vmem:[#allocation2 + $0x164] sm:$0xf] %v6978_v2 }
  0x32   : > { %544 = vst.msk [vmem:[#allocation2 + $0xf8] sm:$0xf] %vm521_vm0, %v6263_v16  ;;  %545 = vst.msk [vmem:[#allocation2 + $0xfc] sm:$0xf] %vm521_vm0, %v6264_v17  ;;  %v6876_v16 = vld [vmem:[%s8830_s1 + $0xd0] sm:$0xff]   ;;  %v6881_v17 = vld [vmem:[%s8830_s1 + $0x108] sm:$0xff]  }
  0x33   : > { %vm7165_vm3 = vmor %vm602_vm1, %vm603_vm2  ;;  %522 = vst.msk [vmem:[#allocation2 + $0x1c] sm:$0xf] %vm521_vm0, %v6241_v45  ;;  %v560_v45 = vld [vmem:[#allocation2 + $0x2c] sm:$0x8] }
  0x34   : > { %v617_v42 = vsel %vm7165_vm3, %v5941_v32, %v616_v33  ;;  %v626_v43 = vsel %vm7165_vm3, %v618_v34, %v625_v35  ;;  %523 = vst.msk [vmem:[#allocation2 + $0x20] sm:$0xf] %vm521_vm0, %v6242_v56  ;;  %546 = vst.msk [vmem:[#allocation2 + $0x10c] sm:$0xf] %vm521_vm0, %v6265_v57  ;;  %v6877_v32 = vld [vmem:[%s8830_s1 + $0x90] sm:$0xff]   ;;  %v5954_v35 = vrot.slane %v892_v15, 11 }
  0x35   : > { %v5957_v55 = vcombine.low %v617_v42, %v626_v43  ;;  %547 = vst.msk [vmem:[#allocation2 + $0x110] sm:$0xf] %vm521_vm0, %v6266_v58  ;;  %524 = vst.msk [vmem:[#allocation2 + $0x30] sm:$0xf] %vm521_vm0, %v6243_v22  ;;  %v386_v33 = vld [vmem:[%s7142_s20 + $0xd0] sm:$0xff]  ;;  %v650_v48 = vshrl.u32 %v560_v45, 16 }
  0x36   : > { %525 = vst.msk [vmem:[#allocation2 + $0x34] sm:$0xf] %vm521_vm0, %v6244_v23  ;;  %v6267_v40 = vpack.c.bf16 %v386_v33, %v386_v33  ;;  %v599_v33 = vld [vmem:[#allocation2 + $0x130] sm:$0x8]  ;;  %vm7318_vm6 = vmor %vm1229_vm4, %vm1230_vm5 }
  0x37   : > { %4722 = vmatmul.mubr.bf16.vlgmr.msra.gmra.mrb[0].mxu0 %v5957_v55  ;;  %v6880_v55 = vld [vmem:[%s8830_s1 + $0x98] sm:$0xff]   ;;  %v5943_v63 = vrot.slane %v650_v48, 11 }
  0x38   : > { %6530 = vmatpush3.bf16.msra.mxu0 %v6871_v62  ;;  %548 = vst.msk [vmem:[#allocation2 + $0x120] sm:$0xf] %vm521_vm0, %v6267_v40 }
  0x39   : > { %v6867_v41 = vld [vmem:[#allocation2 + $0xf8] sm:$0xff]   ;;  %6531 = vmatprep.subr.bf16.mxu0 %v6879_v5 }
  0x3a   : > { %v591_v46 = vld [vmem:[#allocation2 + $0xf8] sm:$0xf]  ;;  %v592_v47 = vld [vmem:[#allocation2 + $0xfc] sm:$0xf]  ;;  %4817 = vmatprep.mubr.bf16.mxu1 %v6867_v41 }
  0x3b   : > { %v875_v49 = vshrl.u32 %v591_v46, 16  ;;  %v878_v50 = vshll.u32 %v591_v46, 16  ;;  %v884_v51 = vshrl.u32 %v592_v47, 16  ;;  %v887_v52 = vshll.u32 %v592_v47, 16  ;;  %v558_v10 = vld [vmem:[#allocation2 + $0x1c] sm:$0xf] }
  0x3c   : > { %v633_v13 = vshrl.u32 %v558_v10, 16  ;;  %v636_v14 = vshll.u32 %v558_v10, 16  ;;  %v6874_v20 = vld [vmem:[#allocation2 + $0x1c] sm:$0xff]   ;;  %v6875_v24 = vld [vmem:[#allocation2 + $0x10c] sm:$0xff]   ;;  %6532 = vmatpush3.bf16.msra.mxu0 %v6881_v17  ;;  %v6268_v47 = vpack.c.bf16 %v387_v39, %v387_v39 }
  0x3d   : > { %v877_v60 = vrot.slane %v875_v49, 7  ;;  %v886_v61 = vrot.slane %v884_v51, 7  ;;  %v559_v25 = vld [vmem:[#allocation2 + $0x20] sm:$0xf]  ;;  %4729 = vmatprep.mubr.bf16.mxu0 %v6874_v20  ;;  %v594_v30 = vld [vmem:[#allocation2 + $0x10c] sm:$0xf] }
  0x3e   : > { %v635_v21 = vrot.slane %v633_v13, 7  ;;  %v642_v28 = vshrl.u32 %v559_v25, 16  ;;  %v645_v29 = vshll.u32 %v559_v25, 16  ;;  %v595_v34 = vld [vmem:[#allocation2 + $0x110] sm:$0xf]  ;;  %v897_v36 = vshrl.u32 %v594_v30, 16 }
  0x3f   : > { %v880_v0 = vor.u32 %v878_v50, %v877_v60  ;;  %v882_v1 = vrot.slane %v877_v60, 4  ;;  %v889_v2 = vor.u32 %v887_v52, %v886_v61  ;;  %v900_v37 = vshll.u32 %v594_v30, 16  ;;  %v596_v49 = vld [vmem:[#allocation2 + $0x11c] sm:$0x8]  ;;  %549 = vst.msk [vmem:[#allocation2 + $0x124] sm:$0xf] %vm521_vm0, %v6268_v47 }
  0x40   : > { %v638_v27 = vor.u32 %v636_v14, %v635_v21  ;;  %v640_v41 = vrot.slane %v635_v21, 4  ;;  %v644_v42 = vrot.slane %v642_v28, 7  ;;  %v906_v43 = vshrl.u32 %v595_v34, 16  ;;  %v6882_v62 = vld [vmem:[#allocation2 + $0x30] sm:$0xff]   ;;  %v597_v11 = vld [vmem:[#allocation2 + $0x120] sm:$0xf] }
  0x41   : > { %v881_v6 = vsel %vm7165_vm3, %v5953_v59, %v880_v0  ;;  %v890_v7 = vsel %vm7165_vm3, %v882_v1, %v889_v2  ;;  %v909_v44 = vshll.u32 %v595_v34, 16  ;;  %v899_v46 = vrot.slane %v897_v36, 7  ;;  %v6884_v59 = vld [vmem:[%s8830_s1 + $0xe0] sm:$0xff]   ;;  %v561_v1 = vld [vmem:[#allocation2 + $0x30] sm:$0xf]  ;;  %v389_v20 = vld [vmem:[%s7142_s20 + $0xe8] sm:$0xff] }
  0x42   : > { %v5969_v8 = vcombine.low %v881_v6, %v890_v7  ;;  %v639_v50 = vsel %vm7165_vm3, %v5942_v26, %v638_v27  ;;  %v647_v51 = vor.u32 %v645_v29, %v644_v42  ;;  %v908_v52 = vrot.slane %v906_v43, 7  ;;  %v562_v2 = vld [vmem:[#allocation2 + $0x34] sm:$0xf]  ;;  %v6885_v7 = vld [vmem:[%s8830_s1 + $0xa0] sm:$0xff]  }
  0x43   : > { %v902_v53 = vor.u32 %v900_v37, %v899_v46  ;;  %v904_v54 = vrot.slane %v899_v46, 4  ;;  %v914_v58 = vshrl.u32 %v596_v49, 16  ;;  %v655_v4 = vshrl.u32 %v561_v1, 16  ;;  %v388_v14 = vld [vmem:[%s7142_s20 + $0xe0] sm:$0xff]  ;;  %v6890_v37 = vld [vmem:[%s8830_s1 + $0xf0] sm:$0xff]  }
  0x44   : > { %4818 = vmatmul.mubr.bf16.vlgmr.msra.gmra.mrb[0].mxu1 %v5969_v8  ;;  %v648_v56 = vsel %vm7165_vm3, %v640_v41, %v647_v51  ;;  %v911_v57 = vor.u32 %v909_v44, %v908_v52  ;;  %v658_v5 = vshll.u32 %v561_v1, 16  ;;  %v664_v6 = vshrl.u32 %v562_v2, 16  ;;  %v364_v8 = vld [vmem:[%s7142_s20 + $0x20] sm:$0xff]  ;;  %v6891_v42 = vld [vmem:[%s8830_s1 + $0x150] sm:$0xff]  }
  0x45   : > { %6418 = vmatpush3.bf16.msra.mxu1 %v6870_v3  ;;  %4825 = vmatprep.mubr.bf16.mxu1 %v6875_v24  ;;  %v5958_v60 = vcombine.low %v639_v50, %v648_v56  ;;  %v903_v61 = vsel %vm7165_vm3, %v5954_v35, %v902_v53  ;;  %v667_v10 = vshll.u32 %v562_v2, 16  ;;  %v657_v15 = vrot.slane %v655_v4, 7  ;;  %v6887_v24 = vld [vmem:[%s8830_s1 + $0xa8] sm:$0xff]   ;;  %v6892_v46 = vld [vmem:[%s8830_s1 + $0xb0] sm:$0xff]   ;;  %v6895_v4 = vld [vmem:[%s8830_s1 + $0xb8] sm:$0xff]  }
  0x46   : > { %6419 = vmatprep.subr.bf16.mxu1 %v6872_v9  ;;  %v912_v0 = vsel %vm7165_vm3, %v904_v54, %v911_v57  ;;  %v365_v9 = vld [vmem:[%s7142_s20 + $0x28] sm:$0xff]  ;;  %v919_v17 = vshrl.u32 %v597_v11, 16  ;;  %v922_v18 = vshll.u32 %v597_v11, 16  ;;  %v6883_v21 = vld [vmem:[#allocation2 + $0x120] sm:$0xff]   ;;  %v5955_v23 = vrot.slane %v914_v58, 11  ;;  %6533 = vmatprep.subr.bf16.mxu0 %v6891_v42  ;;  %v6893_v50 = vld [vmem:[%s8830_s1 + $0x110] sm:$0xff]  }
  0x47   : > { %4730 = vmatmul.mubr.bf16.gmra.mrb[4].mxu0 %v5958_v60  ;;  %v5970_v3 = vcombine.low %v903_v61, %v912_v0  ;;  %v6246_v13 = vpack.c.bf16 %v365_v9, %v365_v9  ;;  %v598_v22 = vld [vmem:[#allocation2 + $0x124] sm:$0xf]  ;;  %v6269_v25 = vpack.c.bf16 %v388_v14, %v388_v14  ;;  %v6270_v26 = vpack.c.bf16 %v389_v20, %v389_v20 }
  0x48   : > { %4737 = vmatprep.mubr.bf16.mxu0 %v6882_v62  ;;  %v660_v27 = vor.u32 %v658_v5, %v657_v15  ;;  %v662_v28 = vrot.slane %v657_v15, 4  ;;  %v921_v30 = vrot.slane %v919_v17, 7  ;;  %v928_v34 = vshrl.u32 %v598_v22, 16  ;;  %6534 = vmatpush3.bf16.msra.mxu0 %v6893_v50  ;;  %v6897_v14 = vld [vmem:[%s8830_s1 + $0x1c0] sm:$0xff]  }
  0x49   : > { %6420 = vmatpush3.bf16.msra.mxu1 %v6873_v12  ;;  %v6245_v12 = vpack.c.bf16 %v364_v8, %v364_v8  ;;  %527 = vst.msk [vmem:[#allocation2 + $0x48] sm:$0xf] %vm521_vm0, %v6246_v13  ;;  %v931_v35 = vshll.u32 %v598_v22, 16  ;;  %550 = vst.msk [vmem:[#allocation2 + $0x134] sm:$0xf] %vm521_vm0, %v6269_v25  ;;  %v936_v41 = vshrl.u32 %v599_v33, 16 }
  0x4a   : > { %6421 = vmatprep.subr.bf16.mxu1 %v6876_v16  ;;  %v666_v16 = vrot.slane %v664_v6, 7  ;;  %551 = vst.msk [vmem:[#allocation2 + $0x138] sm:$0xf] %vm521_vm0, %v6270_v26  ;;  %v924_v40 = vor.u32 %v922_v18, %v921_v30  ;;  %v926_v44 = vrot.slane %v921_v30, 4  ;;  %v930_v45 = vrot.slane %v928_v34, 7  ;;  %v366_v8 = vld [vmem:[%s7142_s20 + $0x30] sm:$0xff] }
  0x4b   : > { %526 = vst.msk [vmem:[#allocation2 + $0x44] sm:$0xf] %vm521_vm0, %v6245_v12  ;;  %v7278_v52 = vrot.slane %v936_v41, 11  ;;  %v367_v12 = vld [vmem:[%s7142_s20 + $0x38] sm:$0xff]  ;;  %v6247_v13 = vpack.c.bf16 %v366_v8, %v366_v8  ;;  %v566_v25 = vld [vmem:[#allocation2 + $0x54] sm:$0x8] }
  0x4c   : > { %4826 = vmatmul.mubr.bf16.gmra.mrb[4].mxu1 %v5970_v3  ;;  %v669_v29 = vor.u32 %v667_v10, %v666_v16  ;;  %v925_v47 = vsel %vm7165_vm3, %v5955_v23, %v924_v40  ;;  %v933_v48 = vor.u32 %v931_v35, %v930_v45  ;;  %v6248_v17 = vpack.c.bf16 %v367_v12, %v367_v12  ;;  %v1696_v18 = vld [vmem:[#allocation2 + $0x18] sm:$0x8]  ;;  %v1698_v23 = vld [vmem:[#allocation2 + $0x20] sm:$0xf]  ;;  %v1181_v30 = vld [vmem:[#allocation2 + $0x8] sm:$0xf] }
  0x4d   : > { %6422 = vmatpush3.bf16.msra.mxu1 %v6877_v32  ;;  %v563_v32 = vld [vmem:[#allocation2 + $0x40] sm:$0x8]  ;;  %4833 = vmatprep.mubr.bf16.mxu1 %v6883_v21  ;;  %528 = vst.msk [vmem:[#allocation2 + $0x58] sm:$0xf] %vm521_vm0, %v6247_v13  ;;  %v1759_v35 = vshrl.u32 %v1698_v23, 16  ;;  %v1762_v40 = vshll.u32 %v1698_v23, 16 }
  0x4e   : > { %6423 = vmatprep.subr.bf16.mxu1 %v6878_v38  ;;  %v672_v36 = vshrl.u32 %v563_v32, 16  ;;  %v661_v38 = vsel %vm7165_vm3, %v5943_v63, %v660_v27  ;;  %v670_v39 = vsel %vm7165_vm3, %v662_v28, %v669_v29  ;;  %v934_v53 = vsel %vm7165_vm3, %v926_v44, %v933_v48  ;;  %v6894_v63 = vld [vmem:[%s8830_s1 + $0xf8] sm:$0xff]   ;;  %529 = vst.msk [vmem:[#allocation2 + $0x5c] sm:$0xf] %vm521_vm0, %v6248_v17  ;;  %v1182_v32 = vld [vmem:[#allocation2 + $0xc] sm:$0xf] }
  0x4f   : > { %v5959_v43 = vcombine.low %v661_v38, %v670_v39  ;;  %v5971_v56 = vcombine.low %v925_v47, %v934_v53  ;;  %v6899_v41 = vld [vmem:[%s8830_s1 + $0x158] sm:$0xff]   ;;  %v1233_v44 = vshrl.u32 %v1181_v30, 16  ;;  %v1236_v45 = vshll.u32 %v1181_v30, 16  ;;  %v1701_v23 = vld [vmem:[#allocation2 + $0x34] sm:$0xf] }
  0x50   : > { %v5944_v49 = vrot.slane %v672_v36, 11  ;;  %v600_v62 = vld [vmem:[#allocation2 + $0x134] sm:$0xf]  ;;  %v1183_v36 = vld [vmem:[#allocation2 + $0x10] sm:$0x1]  ;;  %v1242_v50 = vshll.u32 %v1182_v32, 16  ;;  %6535 = vmatprep.subr.bf16.mxu0 %v6899_v41 }
  0x51   : > { %6424 = vmatpush3.bf16.msra.mxu1 %v6880_v55  ;;  %4738 = vmatmul.mubr.bf16.gmra.mrb[8].mxu0 %v5959_v43  ;;  %v565_v55 = vld [vmem:[#allocation2 + $0x48] sm:$0xf]  ;;  %v6889_v57 = vld [vmem:[#allocation2 + $0x134] sm:$0xff]   ;;  %v941_v2 = vshrl.u32 %v600_v62, 16  ;;  %v944_v3 = vshll.u32 %v600_v62, 16  ;;  %v1761_v43 = vrot.slane %v1759_v35, 7 }
  0x52   : > { %6425 = vmatprep.subr.bf16.mxu1 %v6884_v59  ;;  %v6888_v51 = vld [vmem:[#allocation2 + $0x44] sm:$0xff]   ;;  %v686_v60 = vshrl.u32 %v565_v55, 16  ;;  %v689_v61 = vshll.u32 %v565_v55, 16  ;;  %v601_v1 = vld [vmem:[#allocation2 + $0x138] sm:$0xf]  ;;  %v1235_v53 = vrot.slane %v1233_v44, 4 }
  0x53   : > { %v564_v54 = vld [vmem:[#allocation2 + $0x44] sm:$0xf]  ;;  %4745 = vmatprep.mubr.bf16.mxu0 %v6888_v51  ;;  %v950_v6 = vshrl.u32 %v601_v1, 16  ;;  %v943_v11 = vrot.slane %v941_v2, 7  ;;  %v1246_v55 = vshrl.u32 %v1182_v32, 16  ;;  %v371_v30 = vld [vmem:[%s7142_s20 + $0x58] sm:$0xff] }
  0x54   : > { %v677_v58 = vshrl.u32 %v564_v54, 16  ;;  %v680_v59 = vshll.u32 %v564_v54, 16  ;;  %4834 = vmatmul.mubr.bf16.gmra.mrb[8].mxu1 %v5971_v56  ;;  %v688_v5 = vrot.slane %v686_v60, 7  ;;  %v368_v51 = vld [vmem:[%s7142_s20 + $0x40] sm:$0xff]  ;;  %v1238_v54 = vrot.slane %v1236_v45, 5  ;;  %v369_v56 = vld [vmem:[%s7142_s20 + $0x48] sm:$0xff] }
  0x55   : > { %6426 = vmatpush3.bf16.msra.mxu1 %v6885_v7  ;;  %4841 = vmatprep.mubr.bf16.mxu1 %v6889_v57  ;;  %v953_v7 = vshll.u32 %v601_v1, 16  ;;  %v952_v16 = vrot.slane %v950_v6, 7  ;;  %v946_v21 = vor.u32 %v944_v3, %v943_v11  ;;  %v948_v22 = vrot.slane %v943_v11, 4  ;;  %v6896_v62 = vld [vmem:[#allocation2 + $0x58] sm:$0xff]   ;;  %v6904_v44 = vld [vmem:[%s8830_s1 + $0x1c8] sm:$0xff]  }
  0x56   : > { %6427 = vmatprep.subr.bf16.mxu1 %v6886_v19  ;;  %v679_v0 = vrot.slane %v677_v58, 7  ;;  %v691_v15 = vor.u32 %v689_v61, %v688_v5  ;;  %v1697_v19 = vld [vmem:[#allocation2 + $0x1c] sm:$0xf]  ;;  %v567_v58 = vld [vmem:[#allocation2 + $0x58] sm:$0xf]  ;;  %v1252_v60 = vshll.u32 %v1183_v36, 16  ;;  %v6249_v61 = vpack.c.bf16 %v368_v51, %v368_v51 }
  0x57   : > { %v955_v27 = vor.u32 %v953_v7, %v952_v16  ;;  %v1750_v28 = vshrl.u32 %v1697_v19, 16  ;;  %v1753_v29 = vshll.u32 %v1697_v19, 16  ;;  %v947_v34 = vsel %vm7165_vm3, %v7278_v52, %v946_v21  ;;  %v1699_v16 = vld [vmem:[#allocation2 + $0x2c] sm:$0x8] }
  0x58   : > { %v682_v9 = vor.u32 %v680_v59, %v679_v0  ;;  %v684_v10 = vrot.slane %v679_v0, 4  ;;  %v1764_v52 = vor.u32 %v1762_v40, %v1761_v43  ;;  %v1244_v59 = vrot.slane %v1242_v50, 5  ;;  %v568_v0 = vld [vmem:[#allocation2 + $0x5c] sm:$0xf]  ;;  %530 = vst.msk [vmem:[#allocation2 + $0x6c] sm:$0xf] %vm521_vm0, %v6249_v61 }
  0x59   : > { %6428 = vmatpush3.bf16.msra.mxu1 %v6887_v24  ;;  %v1745_v24 = vshrl.u32 %v1696_v18, 16  ;;  %v1752_v39 = vrot.slane %v1750_v28, 7  ;;  %v699_v1 = vshrl.u32 %v567_v58, 16  ;;  %v1239_v2 = vor.u32 %v1238_v54, %v1235_v53  ;;  %v1185_v43 = vld [vmem:[#allocation2 + $0x20] sm:$0xf] }
  0x5a   : > { %6429 = vmatprep.subr.bf16.mxu1 %v6890_v37  ;;  %v683_v20 = vsel %vm7165_vm3, %v5944_v49, %v682_v9  ;;  %v692_v26 = vsel %vm7165_vm3, %v684_v10, %v691_v15  ;;  %v956_v37 = vsel %vm7165_vm3, %v948_v22, %v955_v27  ;;  %v694_v49 = vshrl.u32 %v566_v25, 16  ;;  %v370_v9 = vld [vmem:[%s7142_s20 + $0x50] sm:$0xff] }
  0x5b   : > { %v5960_v33 = vcombine.low %v683_v20, %v692_v26  ;;  %v6005_v38 = vrot.slane %v1745_v24, 11  ;;  %v5972_v42 = vcombine.low %v947_v34, %v956_v37  ;;  %v1755_v47 = vor.u32 %v1753_v29, %v1752_v39  ;;  %v1700_v22 = vld [vmem:[#allocation2 + $0x30] sm:$0xf]  ;;  %v6903_v24 = vld [vmem:[%s8830_s1 + $0x160] sm:$0xff]   ;;  %v569_v29 = vld [vmem:[#allocation2 + $0x68] sm:$0x8] }
  0x5c   : > { %v1757_v48 = vrot.slane %v1752_v39, 4  ;;  %v6250_v3 = vpack.c.bf16 %v369_v56, %v369_v56  ;;  %v702_v5 = vshll.u32 %v567_v58, 16  ;;  %v708_v6 = vshrl.u32 %v568_v0, 16  ;;  %v6898_v34 = vld [vmem:[%s8830_s1 + $0x180] sm:$0xff]   ;;  %v1184_v37 = vld [vmem:[#allocation2 + $0x1c] sm:$0xf] }
  0x5d   : > { %6430 = vmatpush3.bf16.msra.mxu1 %v6892_v46  ;;  %4746 = vmatmul.mubr.bf16.gmra.mrb[12].mxu0 %v5960_v33  ;;  %v6900_v46 = vld [vmem:[%s8830_s1 + $0x118] sm:$0xff]   ;;  %v1756_v57 = vsel %vm7165_vm3, %v6005_v38, %v1755_v47  ;;  %v711_v7 = vshll.u32 %v568_v0, 16  ;;  %v5945_v10 = vrot.slane %v694_v49, 11  ;;  %v701_v11 = vrot.slane %v699_v1, 7  ;;  %v6905_v38 = vld [vmem:[%s8830_s1 + $0x120] sm:$0xff]  }
  0x5e   : > { %6431 = vmatprep.subr.bf16.mxu1 %v6894_v63  ;;  %4842 = vmatmul.mubr.bf16.gmra.mrb[12].mxu1 %v5972_v42  ;;  %v1765_v63 = vsel %vm7165_vm3, %v1757_v48, %v1764_v52  ;;  %v1240_v12 = vrot.slane %v1239_v2, 4  ;;  %v1248_v13 = vrot.slane %v1246_v55, 4  ;;  %531 = vst.msk [vmem:[#allocation2 + $0x70] sm:$0xf] %vm521_vm0, %v6250_v3  ;;  %v1254_v15 = vrot.slane %v1252_v60, 5  ;;  %v6906_v2 = vld [vmem:[%s8830_s1 + $0x188] sm:$0xff]  }
  0x5f   : > { %6536 = vmatpush3.bf16.msra.mxu0 %v6900_v46  ;;  %4753 = vmatprep.mubr.bf16.mxu0 %v6896_v62  ;;  %v6251_v17 = vpack.c.bf16 %v370_v9, %v370_v9  ;;  %v704_v18 = vor.u32 %v702_v5, %v701_v11  ;;  %v706_v19 = vrot.slane %v701_v11, 4  ;;  %v1767_v26 = vshrl.u32 %v1699_v16, 16  ;;  %v570_v48 = vld [vmem:[#allocation2 + $0x6c] sm:$0xf]  ;;  %v1186_v60 = vld [vmem:[#allocation2 + $0x24] sm:$0x1] }
  0x60   : > { %v1245_v20 = vsel %vm7318_vm6, %v1240_v12, %v1244_v59  ;;  %v1249_v21 = vor.u32 %v1248_v13, %v1244_v59  ;;  %v1772_v27 = vshrl.u32 %v1700_v22, 16  ;;  %v1775_v28 = vshll.u32 %v1700_v22, 16  ;;  %6537 = vmatprep.subr.bf16.mxu0 %v6903_v24  ;;  %v1702_v1 = vld [vmem:[#allocation2 + $0x40] sm:$0x8]  ;;  %v1703_v13 = vld [vmem:[#allocation2 + $0x44] sm:$0xf] }
  0x61   : > { %6432 = vmatpush3.bf16.msra.mxu1 %v6895_v4  ;;  %v6021_v4 = vcombine.low %v1756_v57, %v1765_v63  ;;  %532 = vst.msk [vmem:[#allocation2 + $0x80] sm:$0xf] %vm521_vm0, %v6251_v17  ;;  %v705_v32 = vsel %vm7165_vm3, %v5945_v10, %v704_v18  ;;  %v1781_v35 = vshrl.u32 %v1701_v23, 16  ;;  %v1784_v36 = vshll.u32 %v1701_v23, 16 }
  0x62   : > { %6641 = vmatprep.subr.bf16.mxu1 %v6897_v14  ;;  %v710_v14 = vrot.slane %v708_v6, 7  ;;  %v1250_v33 = vrot.slane %v1249_v21, 4  ;;  %v6006_v40 = vrot.slane %v1767_v26, 11  ;;  %v1774_v41 = vrot.slane %v1772_v27, 7 }
  0x63   : > { %4882 = vmatprep.mubr.bf16.mxu1 %v6021_v4  ;;  %v716_v42 = vshrl.u32 %v569_v29, 16  ;;  %v1783_v47 = vrot.slane %v1781_v35, 7  ;;  %v1257_v49 = vshrl.u32 %v1184_v37, 16  ;;  %6538 = vmatpush3.bf16.msra.mxu0 %v6905_v38  ;;  %v6252_v55 = vpack.c.bf16 %v371_v30, %v371_v30 }
  0x64   : > { %v713_v25 = vor.u32 %v711_v7, %v710_v14  ;;  %v1255_v46 = vsel %vm7318_vm6, %v1250_v33, %v1254_v15  ;;  %v1777_v52 = vor.u32 %v1775_v28, %v1774_v41  ;;  %v1779_v53 = vrot.slane %v1774_v41, 4  ;;  %v6908_v7 = vld [vmem:[%s8830_s1 + $0x168] sm:$0xff]   ;;  %v572_v28 = vld [vmem:[#allocation2 + $0x7c] sm:$0x8] }
  0x65   : > { %v5989_v50 = vcombine.low %v1245_v20, %v1255_v46  ;;  %v6901_v51 = vld [vmem:[#allocation2 + $0x6c] sm:$0xff]   ;;  %v1786_v56 = vor.u32 %v1784_v36, %v1783_v47  ;;  %v5946_v57 = vrot.slane %v716_v42, 11  ;;  %v721_v58 = vshrl.u32 %v570_v48, 16  ;;  %533 = vst.msk [vmem:[#allocation2 + $0x84] sm:$0xf] %vm521_vm0, %v6252_v55  ;;  %6539 = vmatprep.subr.bf16.mxu0 %v6908_v7 }
  0x66   : > { %v714_v39 = vsel %vm7165_vm3, %v706_v19, %v713_v25  ;;  %v571_v54 = vld [vmem:[#allocation2 + $0x70] sm:$0xf]  ;;  %v724_v59 = vshll.u32 %v570_v48, 16  ;;  %v1778_v61 = vsel %vm7165_vm3, %v6006_v40, %v1777_v52  ;;  %v1259_v0 = vrot.slane %v1257_v49, 4  ;;  %v6909_v14 = vld [vmem:[%s8830_s1 + $0x128] sm:$0xff]  }
  0x67   : > { %v5961_v45 = vcombine.low %v705_v32, %v714_v39  ;;  %4883 = vmatmul.mubr.bf16.vlgmr.msra.gmra.mrb[16].mxu1 %v5989_v50  ;;  %v730_v62 = vshrl.u32 %v571_v54, 16  ;;  %v733_v63 = vshll.u32 %v571_v54, 16  ;;  %v1787_v3 = vsel %vm7165_vm3, %v1779_v53, %v1786_v56  ;;  %v1704_v19 = vld [vmem:[#allocation2 + $0x48] sm:$0xf]  ;;  %6540 = vmatpush3.bf16.msra.mxu0 %v6909_v14  ;;  %v1187_v40 = vld [vmem:[#allocation2 + $0x30] sm:$0xf] }
  0x68   : > { %6642 = vmatpush3.bf16.msra.mxu1 %v6898_v34  ;;  %v723_v4 = vrot.slane %v721_v58, 7  ;;  %v1260_v5 = vshll.u32 %v1184_v37, 16  ;;  %v1266_v6 = vshll.u32 %v1185_v43, 16  ;;  %v6022_v9 = vcombine.low %v1778_v61, %v1787_v3  ;;  %v573_v29 = vld [vmem:[#allocation2 + $0x80] sm:$0xf]  ;;  %v373_v61 = vld [vmem:[%s7142_s20 + $0x68] sm:$0xff] }
  0x69   : > { %4754 = vmatmul.mubr.bf16.gmra.mrb[16].mxu0 %v5961_v45  ;;  %v732_v10 = vrot.slane %v730_v62, 7  ;;  %v1270_v11 = vshrl.u32 %v1185_v43, 16  ;;  %v1276_v12 = vshll.u32 %v1186_v60, 16  ;;  %6643 = vmatprep.subr.bf16.mxu1 %v6904_v44  ;;  %v1789_v23 = vshrl.u32 %v1702_v1, 16  ;;  %v1188_v46 = vld [vmem:[#allocation2 + $0x34] sm:$0xf] }
  0x6a   : > { %4761 = vmatprep.mubr.bf16.mxu0 %v6901_v51  ;;  %v726_v15 = vor.u32 %v724_v59, %v723_v4  ;;  %v728_v16 = vrot.slane %v723_v4, 4  ;;  %v1262_v17 = vrot.slane %v1260_v5, 5  ;;  %v1268_v18 = vrot.slane %v1266_v6, 5  ;;  %4890 = vmatprep.mubr.bf16.mxu1 %v6022_v9  ;;  %v1189_v51 = vld [vmem:[#allocation2 + $0x38] sm:$0x1]  ;;  %v372_v56 = vld [vmem:[%s7142_s20 + $0x60] sm:$0xff] }
  0x6b   : > { %v735_v20 = vor.u32 %v733_v63, %v732_v10  ;;  %v1272_v21 = vrot.slane %v1270_v11, 4  ;;  %v1278_v22 = vrot.slane %v1276_v12, 5  ;;  %v1794_v26 = vshrl.u32 %v1703_v13, 16  ;;  %v1705_v6 = vld [vmem:[#allocation2 + $0x54] sm:$0x8] }
  0x6c   : > { %v727_v24 = vsel %vm7165_vm3, %v5946_v57, %v726_v15  ;;  %v1263_v25 = vor.u32 %v1262_v17, %v1259_v0  ;;  %v1797_v27 = vshll.u32 %v1703_v13, 16  ;;  %6644 = vmatpush3.bf16.msra.mxu1 %v6906_v2  ;;  %v6007_v33 = vrot.slane %v1789_v23, 11  ;;  %v6902_v37 = vld [vmem:[#allocation2 + $0x80] sm:$0xff]   ;;  %v6911_v7 = vld [vmem:[%s8830_s1 + $0x1d0] sm:$0xff]   ;;  %v1706_v13 = vld [vmem:[#allocation2 + $0x58] sm:$0xf] }
  0x6d   : > { %v736_v30 = vsel %vm7165_vm3, %v728_v16, %v735_v20  ;;  %v1273_v32 = vor.u32 %v1272_v21, %v1268_v18  ;;  %v1803_v34 = vshrl.u32 %v1704_v19, 16  ;;  %v1796_v38 = vrot.slane %v1794_v26, 7  ;;  %v574_v43 = vld [vmem:[#allocation2 + $0x84] sm:$0xf]  ;;  %v6912_v14 = vld [vmem:[%s8830_s1 + $0x190] sm:$0xff]   ;;  %6645 = vmatprep.subr.bf16.mxu1 %v6911_v7 }
  0x6e   : > { %v5962_v35 = vcombine.low %v727_v24, %v736_v30  ;;  %v1264_v36 = vrot.slane %v1263_v25, 4  ;;  %v1806_v39 = vshll.u32 %v1704_v19, 16  ;;  %v738_v44 = vshrl.u32 %v572_v28, 16  ;;  %v1707_v19 = vld [vmem:[#allocation2 + $0x5c] sm:$0xf] }
  0x6f   : > { %v1274_v41 = vrot.slane %v1273_v32, 4  ;;  %v1805_v42 = vrot.slane %v1803_v34, 7  ;;  %v743_v45 = vshrl.u32 %v573_v29, 16  ;;  %v1799_v48 = vor.u32 %v1797_v27, %v1796_v38  ;;  %v575_v24 = vld [vmem:[#allocation2 + $0x90] sm:$0x8] }
  0x70   : > { %v1269_v47 = vsel %vm7318_vm6, %v1264_v36, %v1268_v18  ;;  %v1801_v49 = vrot.slane %v1796_v38, 4  ;;  %v746_v50 = vshll.u32 %v573_v29, 16  ;;  %v5947_v54 = vrot.slane %v738_v44, 11  ;;  %6646 = vmatpush3.bf16.msra.mxu1 %v6912_v14  ;;  %v1190_v29 = vld [vmem:[#allocation2 + $0x44] sm:$0xf] }
  0x71   : > { %4762 = vmatmul.mubr.bf16.gmra.mrb[20].mxu0 %v5962_v35  ;;  %v1279_v52 = vsel %vm7318_vm6, %v1274_v41, %v1278_v22  ;;  %v1808_v53 = vor.u32 %v1806_v39, %v1805_v42  ;;  %v745_v55 = vrot.slane %v743_v45, 7  ;;  %v1800_v58 = vsel %vm7165_vm3, %v6007_v33, %v1799_v48  ;;  %v1191_v35 = vld [vmem:[#allocation2 + $0x48] sm:$0xf]  ;;  %v1192_v48 = vld [vmem:[#allocation2 + $0x4c] sm:$0x1] }
  0x72   : > { %4769 = vmatprep.mubr.bf16.mxu0 %v6902_v37  ;;  %v5990_v57 = vcombine.low %v1269_v47, %v1279_v52  ;;  %v752_v59 = vshrl.u32 %v574_v43, 16  ;;  %v755_v60 = vshll.u32 %v574_v43, 16  ;;  %v1281_v1 = vshrl.u32 %v1187_v40, 16 }
  0x73   : > { %v1809_v62 = vsel %vm7165_vm3, %v1801_v49, %v1808_v53  ;;  %v748_v63 = vor.u32 %v746_v50, %v745_v55  ;;  %v750_v0 = vrot.slane %v745_v55, 4  ;;  %v1284_v4 = vshll.u32 %v1187_v40, 16  ;;  %v374_v49 = vld [vmem:[%s7142_s20 + $0x70] sm:$0xff]  ;;  %v376_v55 = vld [vmem:[%s7142_s20 + $0x80] sm:$0xff] }
  0x74   : > { %4891 = vmatmul.mubr.bf16.gmra.mrb[20].mxu1 %v5990_v57  ;;  %v6023_v2 = vcombine.low %v1800_v58, %v1809_v62  ;;  %v754_v3 = vrot.slane %v752_v59, 7  ;;  %v1290_v5 = vshll.u32 %v1188_v46, 16  ;;  %v1283_v10 = vrot.slane %v1281_v1, 4 }
  0x75   : > { %v749_v9 = vsel %vm7165_vm3, %v5947_v54, %v748_v63  ;;  %v1294_v11 = vshrl.u32 %v1188_v46, 16  ;;  %v1300_v12 = vshll.u32 %v1189_v51, 16  ;;  %v1286_v16 = vrot.slane %v1284_v4, 5  ;;  %v375_v54 = vld [vmem:[%s7142_s20 + $0x78] sm:$0xff] }
  0x76   : > { %4898 = vmatprep.mubr.bf16.mxu1 %v6023_v2  ;;  %v757_v15 = vor.u32 %v755_v60, %v754_v3  ;;  %v1292_v17 = vrot.slane %v1290_v5, 5  ;;  %v6253_v18 = vpack.c.bf16 %v372_v56, %v372_v56  ;;  %v6254_v22 = vpack.c.bf16 %v373_v61, %v373_v61  ;;  %v1708_v60 = vld [vmem:[#allocation2 + $0x68] sm:$0x8]  ;;  %v1709_v61 = vld [vmem:[#allocation2 + $0x6c] sm:$0xf] }
  0x77   : > { %v1296_v20 = vrot.slane %v1294_v11, 4  ;;  %v1302_v21 = vrot.slane %v1300_v12, 5  ;;  %v1811_v23 = vshrl.u32 %v1705_v6, 16  ;;  %v1287_v26 = vor.u32 %v1286_v16, %v1283_v10 }
  0x78   : > { %v758_v25 = vsel %vm7165_vm3, %v750_v0, %v757_v15  ;;  %534 = vst.msk [vmem:[#allocation2 + $0x94] sm:$0xf] %vm521_vm0, %v6253_v18  ;;  %v1816_v27 = vshrl.u32 %v1706_v13, 16  ;;  %v1819_v28 = vshll.u32 %v1706_v13, 16  ;;  %535 = vst.msk [vmem:[#allocation2 + $0x98] sm:$0xf] %vm521_vm0, %v6254_v22  ;;  %v6255_v2 = vpack.c.bf16 %v374_v49, %v374_v49 }
  0x79   : > { %v5963_v30 = vcombine.low %v749_v9, %v758_v25  ;;  %v1297_v32 = vor.u32 %v1296_v20, %v1292_v17  ;;  %v6008_v33 = vrot.slane %v1811_v23, 11  ;;  %v1825_v34 = vshrl.u32 %v1707_v19, 16  ;;  %v1710_v9 = vld [vmem:[#allocation2 + $0x70] sm:$0xf]  ;;  %v578_v15 = vld [vmem:[#allocation2 + $0xa4] sm:$0x8] }
  0x7a   : > { %v1288_v36 = vrot.slane %v1287_v26, 4  ;;  %v1818_v37 = vrot.slane %v1816_v27, 7  ;;  %v1828_v38 = vshll.u32 %v1707_v19, 16  ;;  %v760_v39 = vshrl.u32 %v575_v24, 16  ;;  %536 = vst.msk [vmem:[#allocation2 + $0xa8] sm:$0xf] %vm521_vm0, %v6255_v2 }
  0x7b   : > { %4770 = vmatmul.mubr.bf16.gmra.mrb[24].mxu0 %v5963_v30  ;;  %v1298_v40 = vrot.slane %v1297_v32, 4  ;;  %v1827_v41 = vrot.slane %v1825_v34, 7  ;;  %v1305_v42 = vshrl.u32 %v1190_v29, 16  ;;  %v1308_v43 = vshll.u32 %v1190_v29, 16  ;;  %v1193_v34 = vld [vmem:[#allocation2 + $0x58] sm:$0xf] }
  0x7c   : > { %v1293_v44 = vsel %vm7318_vm6, %v1288_v36, %v1292_v17  ;;  %v1821_v45 = vor.u32 %v1819_v28, %v1818_v37  ;;  %v1823_v46 = vrot.slane %v1818_v37, 4  ;;  %v7389_v47 = vrot.slane %v760_v39, 11  ;;  %v6914_v28 = vld [vmem:[%s8830_s1 + $0x170] sm:$0xff]   ;;  %v1711_v2 = vld [vmem:[#allocation2 + $0x7c] sm:$0x8] }
  0x7d   : > { %v1303_v50 = vsel %vm7318_vm6, %v1298_v40, %v1302_v21  ;;  %v1830_v51 = vor.u32 %v1828_v38, %v1827_v41  ;;  %v1307_v52 = vrot.slane %v1305_v42, 4  ;;  %v1310_v53 = vrot.slane %v1308_v43, 5  ;;  %6541 = vmatprep.subr.bf16.mxu0 %v6914_v28 }
  0x7e   : > { %v5991_v56 = vcombine.low %v1293_v44, %v1303_v50  ;;  %v1822_v57 = vsel %vm7165_vm3, %v6008_v33, %v1821_v45  ;;  %v1314_v58 = vshll.u32 %v1191_v35, 16  ;;  %v1318_v59 = vshrl.u32 %v1191_v35, 16  ;;  %v6915_v35 = vld [vmem:[%s8830_s1 + $0x130] sm:$0xff]   ;;  %v1194_v44 = vld [vmem:[#allocation2 + $0x5c] sm:$0xf] }
  0x7f   : > { %v1831_v62 = vsel %vm7165_vm3, %v1823_v46, %v1830_v51  ;;  %v576_v63 = vld [vmem:[#allocation2 + $0x94] sm:$0xf]  ;;  %v1311_v0 = vor.u32 %v1310_v53, %v1307_v52  ;;  %v1324_v1 = vshll.u32 %v1192_v48, 16  ;;  %v577_v5 = vld [vmem:[#allocation2 + $0x98] sm:$0xf]  ;;  %v6256_v7 = vpack.c.bf16 %v375_v54, %v375_v54  ;;  %6542 = vmatpush3.bf16.msra.mxu0 %v6915_v35 }
  0x80   : > { %4899 = vmatmul.mubr.bf16.gmra.mrb[24].mxu1 %v5991_v56  ;;  %v6907_v3 = vld [vmem:[#allocation2 + $0x94] sm:$0xff]   ;;  %v6024_v4 = vcombine.low %v1822_v57, %v1831_v62  ;;  %v765_v6 = vshrl.u32 %v576_v63, 16  ;;  %v6257_v10 = vpack.c.bf16 %v376_v55, %v376_v55  ;;  %v768_v11 = vshll.u32 %v576_v63, 16  ;;  %v1195_v45 = vld [vmem:[#allocation2 + $0x60] sm:$0x1] }
  0x81   : > { %v774_v12 = vshrl.u32 %v577_v5, 16  ;;  %v777_v13 = vshll.u32 %v577_v5, 16  ;;  %v1312_v14 = vrot.slane %v1311_v0, 4  ;;  %4777 = vmatprep.mubr.bf16.mxu0 %v6907_v3  ;;  %v1316_v17 = vrot.slane %v1314_v58, 5  ;;  %537 = vst.msk [vmem:[#allocation2 + $0xac] sm:$0xf] %vm521_vm0, %v6256_v7 }
  0x82   : > { %4906 = vmatprep.mubr.bf16.mxu1 %v6024_v4  ;;  %v767_v16 = vrot.slane %v765_v6, 7  ;;  %v1320_v18 = vrot.slane %v1318_v59, 4  ;;  %v1326_v19 = vrot.slane %v1324_v1, 5  ;;  %538 = vst.msk [vmem:[#allocation2 + $0xbc] sm:$0xf] %vm521_vm0, %v6257_v10  ;;  %v1833_v21 = vshrl.u32 %v1708_v60, 16 }
  0x83   : > { %v776_v20 = vrot.slane %v774_v12, 7  ;;  %v1838_v22 = vshrl.u32 %v1709_v61, 16  ;;  %v1841_v23 = vshll.u32 %v1709_v61, 16  ;;  %v1317_v26 = vsel %vm7318_vm6, %v1312_v14, %v1316_v17  ;;  %v579_v49 = vld [vmem:[#allocation2 + $0xa8] sm:$0xf]  ;;  %v6919_v35 = vld [vmem:[%s8830_s1 + $0x178] sm:$0xff]  }
  0x84   : > { %v770_v24 = vor.u32 %v768_v11, %v767_v16  ;;  %v772_v25 = vrot.slane %v767_v16, 4  ;;  %v1321_v27 = vor.u32 %v1320_v18, %v1316_v17  ;;  %v6009_v30 = vrot.slane %v1833_v21, 11  ;;  %v377_v1 = vld [vmem:[%s7142_s20 + $0x88] sm:$0xff]  ;;  %v1712_v7 = vld [vmem:[#allocation2 + $0x80] sm:$0xf]  ;;  %6543 = vmatprep.subr.bf16.mxu0 %v6919_v35 }
  0x85   : > { %v779_v29 = vor.u32 %v777_v13, %v776_v20  ;;  %v1840_v32 = vrot.slane %v1838_v22, 7  ;;  %v1847_v33 = vshrl.u32 %v1710_v9, 16  ;;  %v1850_v38 = vshll.u32 %v1710_v9, 16  ;;  %v6917_v9 = vld [vmem:[%s8830_s1 + $0x1d8] sm:$0xff]   ;;  %v1713_v14 = vld [vmem:[#allocation2 + $0x84] sm:$0xf] }
  0x86   : > { %v771_v36 = vsel %vm7165_vm3, %v7389_v47, %v770_v24  ;;  %v1322_v37 = vrot.slane %v1321_v27, 4  ;;  %v782_v39 = vshrl.u32 %v578_v15, 16  ;;  %v1329_v47 = vshrl.u32 %v1193_v34, 16  ;;  %v6918_v15 = vld [vmem:[%s8830_s1 + $0x198] sm:$0xff]   ;;  %6647 = vmatprep.subr.bf16.mxu1 %v6917_v9 }
  0x87   : > { %v780_v40 = vsel %vm7165_vm3, %v772_v25, %v779_v29  ;;  %v1843_v41 = vor.u32 %v1841_v23, %v1840_v32  ;;  %v1845_v42 = vrot.slane %v1840_v32, 4  ;;  %v1849_v43 = vrot.slane %v1847_v33, 7  ;;  %v581_v20 = vld [vmem:[#allocation2 + $0xb8] sm:$0x8]  ;;  %6648 = vmatpush3.bf16.msra.mxu1 %v6918_v15 }
  0x88   : > { %v5964_v46 = vcombine.low %v771_v36, %v780_v40  ;;  %v1327_v48 = vsel %vm7318_vm6, %v1322_v37, %v1326_v19  ;;  %v5949_v50 = vrot.slane %v782_v39, 11  ;;  %v6910_v52 = vld [vmem:[#allocation2 + $0xa8] sm:$0xff]   ;;  %v787_v56 = vshrl.u32 %v579_v49, 16 }
  0x89   : > { %v5992_v51 = vcombine.low %v1317_v26, %v1327_v48  ;;  %v1844_v53 = vsel %vm7165_vm3, %v6009_v30, %v1843_v41  ;;  %v1852_v54 = vor.u32 %v1850_v38, %v1849_v43  ;;  %v580_v55 = vld [vmem:[#allocation2 + $0xac] sm:$0xf]  ;;  %v790_v57 = vshll.u32 %v579_v49, 16  ;;  %v582_v29 = vld [vmem:[#allocation2 + $0xbc] sm:$0xf] }
  0x8a   : > { %4778 = vmatmul.mubr.bf16.gmra.mrb[28].mxu0 %v5964_v46  ;;  %v796_v58 = vshrl.u32 %v580_v55, 16  ;;  %v799_v59 = vshll.u32 %v580_v55, 16  ;;  %v1331_v60 = vrot.slane %v1329_v47, 4  ;;  %v789_v62 = vrot.slane %v787_v56, 7  ;;  %v1196_v40 = vld [vmem:[#allocation2 + $0x6c] sm:$0xf] }
  0x8b   : > { %4907 = vmatmul.mubr.bf16.gmra.mrb[28].mxu1 %v5992_v51  ;;  %4785 = vmatprep.mubr.bf16.mxu0 %v6910_v52  ;;  %v1853_v61 = vsel %vm7165_vm3, %v1845_v42, %v1852_v54  ;;  %v1332_v63 = vshll.u32 %v1193_v34, 16  ;;  %v1338_v0 = vshll.u32 %v1194_v44, 16  ;;  %v1342_v5 = vshrl.u32 %v1194_v44, 16  ;;  %v1198_v47 = vld [vmem:[#allocation2 + $0x74] sm:$0x1]  ;;  %v379_v56 = vld [vmem:[%s7142_s20 + $0x98] sm:$0xff] }
  0x8c   : > { %v6025_v3 = vcombine.low %v1844_v53, %v1853_v61  ;;  %v798_v4 = vrot.slane %v796_v58, 7  ;;  %v1348_v6 = vshll.u32 %v1195_v45, 16  ;;  %v792_v10 = vor.u32 %v790_v57, %v789_v62  ;;  %v1197_v45 = vld [vmem:[#allocation2 + $0x70] sm:$0xf] }
  0x8d   : > { %v794_v11 = vrot.slane %v789_v62, 4  ;;  %v1334_v12 = vrot.slane %v1332_v63, 5  ;;  %v1340_v13 = vrot.slane %v1338_v0, 5  ;;  %v1344_v17 = vrot.slane %v1342_v5, 4  ;;  %v378_v51 = vld [vmem:[%s7142_s20 + $0x90] sm:$0xff]  ;;  %v6920_v63 = vld [vmem:[%s8830_s1 + $0x138] sm:$0xff]  }
  0x8e   : > { %4914 = vmatprep.mubr.bf16.mxu1 %v6025_v3  ;;  %v801_v16 = vor.u32 %v799_v59, %v798_v4  ;;  %v1350_v18 = vrot.slane %v1348_v6, 5  ;;  %v6258_v19 = vpack.c.bf16 %v377_v1, %v377_v1  ;;  %v793_v21 = vsel %vm7165_vm3, %v5949_v50, %v792_v10  ;;  %v1714_v57 = vld [vmem:[#allocation2 + $0x90] sm:$0x8]  ;;  %v1715_v62 = vld [vmem:[#allocation2 + $0x94] sm:$0xf]  ;;  %6544 = vmatpush3.bf16.msra.mxu0 %v6920_v63 }
  0x8f   : > { %v1335_v22 = vor.u32 %v1334_v12, %v1331_v60  ;;  %v1855_v23 = vshrl.u32 %v1711_v2, 16  ;;  %v1860_v24 = vshrl.u32 %v1712_v7, 16  ;;  %v1345_v26 = vor.u32 %v1344_v17, %v1340_v13  ;;  %v1716_v6 = vld [vmem:[#allocation2 + $0x98] sm:$0xf]  ;;  %v584_v12 = vld [vmem:[#allocation2 + $0xcc] sm:$0x8] }
  0x90   : > { %v802_v25 = vsel %vm7165_vm3, %v794_v11, %v801_v16  ;;  %539 = vst.msk [vmem:[#allocation2 + $0xc0] sm:$0xf] %vm521_vm0, %v6258_v19  ;;  %v1863_v27 = vshll.u32 %v1712_v7, 16  ;;  %v1869_v28 = vshrl.u32 %v1713_v14, 16  ;;  %v1872_v38 = vshll.u32 %v1713_v14, 16 }
  0x91   : > { %v5965_v30 = vcombine.low %v793_v21, %v802_v25  ;;  %v1336_v32 = vrot.slane %v1335_v22, 4  ;;  %v6010_v33 = vrot.slane %v1855_v23, 11  ;;  %v1862_v34 = vrot.slane %v1860_v24, 7  ;;  %v1199_v17 = vld [vmem:[#allocation2 + $0x80] sm:$0xf] }
  0x92   : > { %v1346_v36 = vrot.slane %v1345_v26, 4  ;;  %v1871_v37 = vrot.slane %v1869_v28, 7  ;;  %v804_v39 = vshrl.u32 %v581_v20, 16  ;;  %v809_v44 = vshrl.u32 %v582_v29, 16  ;;  %v1718_v63 = vld [vmem:[#allocation2 + $0xa8] sm:$0xf] }
  0x93   : > { %4786 = vmatmul.mubr.bf16.gmra.mrb[32].mxu0 %v5965_v30  ;;  %v1341_v41 = vsel %vm7318_vm6, %v1336_v32, %v1340_v13  ;;  %v1865_v42 = vor.u32 %v1863_v27, %v1862_v34  ;;  %v1867_v43 = vrot.slane %v1862_v34, 4  ;;  %v812_v50 = vshll.u32 %v582_v29, 16 }
  0x94   : > { %v1351_v46 = vsel %vm7318_vm6, %v1346_v36, %v1350_v18  ;;  %v1874_v48 = vor.u32 %v1872_v38, %v1871_v37  ;;  %v5950_v49 = vrot.slane %v804_v39, 11  ;;  %v811_v54 = vrot.slane %v809_v44, 7  ;;  %v1200_v38 = vld [vmem:[#allocation2 + $0x84] sm:$0xf]  ;;  %v1201_v39 = vld [vmem:[#allocation2 + $0x88] sm:$0x1] }
  0x95   : > { %v5993_v52 = vcombine.low %v1341_v41, %v1351_v46  ;;  %v1866_v53 = vsel %vm7165_vm3, %v6010_v33, %v1865_v42  ;;  %v1353_v55 = vshrl.u32 %v1196_v40, 16  ;;  %v1356_v59 = vshll.u32 %v1196_v40, 16  ;;  %v381_v46 = vld [vmem:[%s7142_s20 + $0xa8] sm:$0xff] }
  0x96   : > { %v1875_v58 = vsel %vm7165_vm3, %v1867_v43, %v1874_v48  ;;  %v1362_v60 = vshll.u32 %v1197_v45, 16  ;;  %v1366_v61 = vshrl.u32 %v1197_v45, 16  ;;  %v814_v3 = vor.u32 %v812_v50, %v811_v54  ;;  %v380_v45 = vld [vmem:[%s7142_s20 + $0xa0] sm:$0xff] }
  0x97   : > { %4915 = vmatmul.mubr.bf16.gmra.mrb[32].mxu1 %v5993_v52  ;;  %v6913_v0 = vld [vmem:[#allocation2 + $0xbc] sm:$0xff]   ;;  %v6026_v1 = vcombine.low %v1866_v53, %v1875_v58  ;;  %v816_v4 = vrot.slane %v811_v54, 4  ;;  %v6259_v5 = vpack.c.bf16 %v378_v51, %v378_v51  ;;  %v1355_v10 = vrot.slane %v1353_v55, 4 }
  0x98   : > { %v583_v2 = vld [vmem:[#allocation2 + $0xc0] sm:$0xf]  ;;  %v1358_v11 = vrot.slane %v1356_v59, 5  ;;  %4793 = vmatprep.mubr.bf16.mxu0 %v6913_v0  ;;  %v815_v13 = vsel %vm7165_vm3, %v5950_v49, %v814_v3  ;;  %v1364_v14 = vrot.slane %v1362_v60, 5  ;;  %v1368_v15 = vrot.slane %v1366_v61, 4 }
  0x99   : > { %v818_v7 = vshrl.u32 %v583_v2, 16  ;;  %v821_v9 = vshll.u32 %v583_v2, 16  ;;  %4922 = vmatprep.mubr.bf16.mxu1 %v6026_v1  ;;  %v1372_v16 = vshll.u32 %v1198_v47, 16  ;;  %540 = vst.msk [vmem:[#allocation2 + $0xd0] sm:$0xf] %vm521_vm0, %v6259_v5  ;;  %v6260_v20 = vpack.c.bf16 %v379_v56, %v379_v56  ;;  %v6923_v48 = vld [vmem:[%s8830_s1 + $0x1e0] sm:$0xff]  }
  0x9a   : > { %v1359_v19 = vor.u32 %v1358_v11, %v1355_v10  ;;  %v1877_v21 = vshrl.u32 %v1714_v57, 16  ;;  %v1369_v22 = vor.u32 %v1368_v15, %v1364_v14  ;;  %v1882_v24 = vshrl.u32 %v1715_v62, 16  ;;  %v1717_v57 = vld [vmem:[#allocation2 + $0xa4] sm:$0x8]  ;;  %6649 = vmatprep.subr.bf16.mxu1 %v6923_v48  ;;  %v6930_v48 = vld [vmem:[%s8830_s1 + $0x1a8] sm:$0xff]  }
  0x9b   : > { %v820_v18 = vrot.slane %v818_v7, 7  ;;  %v1374_v23 = vrot.slane %v1372_v16, 5  ;;  %v1885_v25 = vshll.u32 %v1715_v62, 16  ;;  %541 = vst.msk [vmem:[#allocation2 + $0xd4] sm:$0xf] %vm521_vm0, %v6260_v20  ;;  %v1891_v29 = vshrl.u32 %v1716_v6, 16 }
  0x9c   : > { %v1360_v27 = vrot.slane %v1359_v19, 4  ;;  %v6011_v28 = vrot.slane %v1877_v21, 11  ;;  %v1370_v30 = vrot.slane %v1369_v22, 4  ;;  %v1884_v32 = vrot.slane %v1882_v24, 7  ;;  %v7472_v58 = vld [vmem:[%s8830_s1 + $0x200] sm:$0xff]  }
  0x9d   : > { %v823_v26 = vor.u32 %v821_v9, %v820_v18  ;;  %v1894_v33 = vshll.u32 %v1716_v6, 16  ;;  %v826_v34 = vshrl.u32 %v584_v12, 16  ;;  %v1893_v37 = vrot.slane %v1891_v29, 7  ;;  %v6925_v0 = vld [vmem:[%s8830_s1 + $0x1a0] sm:$0xff]   ;;  %6777 = vmatprep.subr.bf16.mxu0 %v7472_v58  ;;  %v1719_v12 = vld [vmem:[#allocation2 + $0xac] sm:$0xf] }
  0x9e   : > { %v1365_v36 = vsel %vm7318_vm6, %v1360_v27, %v1364_v14  ;;  %v1377_v40 = vshrl.u32 %v1199_v17, 16  ;;  %v1375_v42 = vsel %vm7318_vm6, %v1370_v30, %v1374_v23  ;;  %v1887_v43 = vor.u32 %v1885_v25, %v1884_v32  ;;  %6650 = vmatpush3.bf16.msra.mxu1 %v6925_v0  ;;  %v587_v21 = vld [vmem:[#allocation2 + $0xe0] sm:$0x8]  ;;  %v6928_v30 = vld [vmem:[%s8830_s1 + $0x1e8] sm:$0xff]  }
  0x9f   : > { %v824_v35 = vsel %vm7165_vm3, %v816_v4, %v823_v26  ;;  %v1889_v44 = vrot.slane %v1884_v32, 4  ;;  %v5994_v49 = vcombine.low %v1365_v36, %v1375_v42  ;;  %v1896_v50 = vor.u32 %v1894_v33, %v1893_v37  ;;  %v1202_v36 = vld [vmem:[#allocation2 + $0x94] sm:$0xf]  ;;  %6651 = vmatprep.subr.bf16.mxu1 %v6928_v30 }
  0xa0   : > { %v5966_v41 = vcombine.low %v815_v13, %v824_v35  ;;  %v585_v47 = vld [vmem:[#allocation2 + $0xd0] sm:$0xf]  ;;  %v7465_v51 = vrot.slane %v826_v34, 11  ;;  %v1379_v52 = vrot.slane %v1377_v40, 4  ;;  %v1888_v53 = vsel %vm7165_vm3, %v6011_v28, %v1887_v43 }
  0xa1   : > { %v831_v54 = vshrl.u32 %v585_v47, 16  ;;  %v834_v55 = vshll.u32 %v585_v47, 16  ;;  %v1380_v56 = vshll.u32 %v1199_v17, 16  ;;  %4923 = vmatmul.mubr.bf16.gmra.mrb[36].mxu1 %v5994_v49  ;;  %v1897_v59 = vsel %vm7165_vm3, %v1889_v44, %v1896_v50 }
  0xa2   : > { %4794 = vmatmul.mubr.bf16.gmra.mrb[36].mxu0 %v5966_v41  ;;  %v1386_v60 = vshll.u32 %v1200_v38, 16  ;;  %v1390_v61 = vshrl.u32 %v1200_v38, 16  ;;  %v1396_v62 = vshll.u32 %v1201_v39, 16  ;;  %v6916_v1 = vld [vmem:[#allocation2 + $0xd0] sm:$0xff]   ;;  %v6027_v2 = vcombine.low %v1888_v53, %v1897_v59  ;;  %v1203_v41 = vld [vmem:[#allocation2 + $0x98] sm:$0xf]  ;;  %6652 = vmatpush3.bf16.msra.mxu1 %v6930_v48 }
  0xa3   : > { %v586_v3 = vld [vmem:[#allocation2 + $0xd4] sm:$0xf]  ;;  %v833_v4 = vrot.slane %v831_v54, 7  ;;  %v6261_v5 = vpack.c.bf16 %v380_v45, %v380_v45  ;;  %v6262_v6 = vpack.c.bf16 %v381_v46, %v381_v46  ;;  %v1382_v10 = vrot.slane %v1380_v56, 5  ;;  %4801 = vmatprep.mubr.bf16.mxu0 %v6916_v1  ;;  %v1204_v46 = vld [vmem:[#allocation2 + $0x9c] sm:$0x1] }
  0xa4   : > { %v840_v7 = vshrl.u32 %v586_v3, 16  ;;  %v843_v9 = vshll.u32 %v586_v3, 16  ;;  %v1388_v11 = vrot.slane %v1386_v60, 5  ;;  %4930 = vmatprep.mubr.bf16.mxu1 %v6027_v2  ;;  %v1392_v15 = vrot.slane %v1390_v61, 4  ;;  %v1721_v53 = vld [vmem:[#allocation2 + $0xbc] sm:$0xf] }
  0xa5   : > { %v836_v13 = vor.u32 %v834_v55, %v833_v4  ;;  %v838_v14 = vrot.slane %v833_v4, 4  ;;  %v1398_v16 = vrot.slane %v1396_v62, 5  ;;  %542 = vst.msk [vmem:[#allocation2 + $0xe4] sm:$0xf] %vm521_vm0, %v6261_v5  ;;  %543 = vst.msk [vmem:[#allocation2 + $0xe8] sm:$0xf] %vm521_vm0, %v6262_v6  ;;  %v1383_v18 = vor.u32 %v1382_v10, %v1379_v52 }
  0xa6   : > { %v842_v17 = vrot.slane %v840_v7, 7  ;;  %v1899_v19 = vshrl.u32 %v1717_v57, 16  ;;  %v1904_v20 = vshrl.u32 %v1718_v63, 16  ;;  %v1393_v23 = vor.u32 %v1392_v15, %v1388_v11  ;;  %v1720_v52 = vld [vmem:[#allocation2 + $0xb8] sm:$0x8] }
  0xa7   : > { %v837_v22 = vsel %vm7165_vm3, %v7465_v51, %v836_v13  ;;  %v1907_v24 = vshll.u32 %v1718_v63, 16  ;;  %v1913_v25 = vshrl.u32 %v1719_v12, 16  ;;  %v1384_v27 = vrot.slane %v1383_v18, 4  ;;  %v1722_v4 = vld [vmem:[#allocation2 + $0xc0] sm:$0xf] }
  0xa8   : > { %v845_v26 = vor.u32 %v843_v9, %v842_v17  ;;  %v6012_v28 = vrot.slane %v1899_v19, 11  ;;  %v1906_v29 = vrot.slane %v1904_v20, 7  ;;  %v1394_v32 = vrot.slane %v1393_v23, 4 }
  0xa9   : > { %v1915_v33 = vrot.slane %v1913_v25, 7  ;;  %v1916_v34 = vshll.u32 %v1719_v12, 16  ;;  %v848_v35 = vshrl.u32 %v587_v21, 16  ;;  %v1389_v38 = vsel %vm7318_vm6, %v1384_v27, %v1388_v11  ;;  %v2321_v27 = vld [vmem:[#allocation2 + $0x20] sm:$0xf] }
  0xaa   : > { %v846_v37 = vsel %vm7165_vm3, %v838_v14, %v845_v26  ;;  %v1909_v39 = vor.u32 %v1907_v24, %v1906_v29  ;;  %v1911_v40 = vrot.slane %v1906_v29, 4  ;;  %v1399_v43 = vsel %vm7318_vm6, %v1394_v32, %v1398_v16 }
  0xab   : > { %v5967_v42 = vcombine.low %v837_v22, %v846_v37  ;;  %v1918_v44 = vor.u32 %v1916_v34, %v1915_v33  ;;  %v5952_v45 = vrot.slane %v848_v35, 11  ;;  %v5995_v49 = vcombine.low %v1389_v38, %v1399_v43  ;;  %v2320_v22 = vld [vmem:[#allocation2 + $0x1c] sm:$0xf]  ;;  %v2322_v34 = vld [vmem:[#allocation2 + $0x24] sm:$0x1] }
  0xac   : > { %v6921_v50 = vld [vmem:[#allocation2 + $0xe4] sm:$0xff]   ;;  %v1910_v47 = vsel %vm7165_vm3, %v6012_v28, %v1909_v39  ;;  %v1401_v51 = vshrl.u32 %v1202_v36, 16  ;;  %v1404_v57 = vshll.u32 %v1202_v36, 16  ;;  %v1410_v59 = vshll.u32 %v1203_v41, 16  ;;  %v6933_v28 = vld [vmem:[%s8830_s1 + $0x1f0] sm:$0xff]  }
  0xad   : > { %4802 = vmatmul.mubr.bf16.gmra.mrb[40].mxu0 %v5967_v42  ;;  %v1919_v54 = vsel %vm7165_vm3, %v1911_v40, %v1918_v44  ;;  %v588_v55 = vld [vmem:[#allocation2 + $0xe4] sm:$0xf]  ;;  %v589_v56 = vld [vmem:[#allocation2 + $0xe8] sm:$0xf]  ;;  %4931 = vmatmul.mubr.bf16.gmra.mrb[40].mxu1 %v5995_v49  ;;  %v1414_v7 = vshrl.u32 %v1203_v41, 16  ;;  %v1420_v9 = vshll.u32 %v1204_v46, 16 }
  0xae   : > { %4809 = vmatprep.mubr.bf16.mxu0 %v6921_v50  ;;  %v6028_v60 = vcombine.low %v1910_v47, %v1919_v54  ;;  %v853_v61 = vshrl.u32 %v588_v55, 16  ;;  %v856_v62 = vshll.u32 %v588_v55, 16  ;;  %v862_v63 = vshrl.u32 %v589_v56, 16  ;;  %v1205_v39 = vld [vmem:[#allocation2 + $0xa8] sm:$0xf]  ;;  %6653 = vmatprep.subr.bf16.mxu1 %v6933_v28 }
  0xaf   : > { %v865_v0 = vshll.u32 %v589_v56, 16  ;;  %v1403_v1 = vrot.slane %v1401_v51, 4  ;;  %v1406_v2 = vrot.slane %v1404_v57, 5  ;;  %v1412_v3 = vrot.slane %v1410_v59, 5  ;;  %v1206_v44 = vld [vmem:[#allocation2 + $0xac] sm:$0xf] }
  0xb0   : > { %4938 = vmatprep.mubr.bf16.mxu1 %v6028_v60  ;;  %v855_v5 = vrot.slane %v853_v61, 7  ;;  %v864_v6 = vrot.slane %v862_v63, 7  ;;  %v1921_v11 = vshrl.u32 %v1720_v52, 16  ;;  %v1926_v12 = vshrl.u32 %v1721_v53, 16  ;;  %v1207_v47 = vld [vmem:[#allocation2 + $0xb0] sm:$0x1] }
  0xb1   : > { %v1407_v10 = vor.u32 %v1406_v2, %v1403_v1  ;;  %v1929_v13 = vshll.u32 %v1721_v53, 16  ;;  %v1416_v17 = vrot.slane %v1414_v7, 4  ;;  %v1422_v19 = vrot.slane %v1420_v9, 5  ;;  %v1723_v60 = vld [vmem:[#allocation2 + $0xcc] sm:$0x8]  ;;  %v6938_v2 = vld [vmem:[%s8830_s1 + $0x1f8] sm:$0xff]  }
  0xb2   : > { %v858_v14 = vor.u32 %v856_v62, %v855_v5  ;;  %v860_v15 = vrot.slane %v855_v5, 4  ;;  %v867_v16 = vor.u32 %v865_v0, %v864_v6  ;;  %v6013_v20 = vrot.slane %v1921_v11, 11  ;;  %v1724_v1 = vld [vmem:[#allocation2 + $0xd0] sm:$0xf]  ;;  %v1725_v11 = vld [vmem:[#allocation2 + $0xd4] sm:$0xf] }
  0xb3   : > { %v1408_v18 = vrot.slane %v1407_v10, 4  ;;  %v1928_v21 = vrot.slane %v1926_v12, 7  ;;  %v1417_v25 = vor.u32 %v1416_v17, %v1412_v3  ;;  %v1935_v26 = vshrl.u32 %v1722_v4, 16  ;;  %v2323_v17 = vld [vmem:[#allocation2 + $0x30] sm:$0xf] }
  0xb4   : > { %v859_v23 = vsel %vm7165_vm3, %v5952_v45, %v858_v14  ;;  %v868_v24 = vsel %vm7165_vm3, %v860_v15, %v867_v16  ;;  %v1938_v37 = vshll.u32 %v1722_v4, 16  ;;  %v2369_v38 = vshrl.u32 %v2320_v22, 16  ;;  %v6935_v45 = vld [vmem:[%s8830_s1 + $0x1b0] sm:$0xff]  }
  0xb5   : > { %v5968_v29 = vcombine.low %v859_v23, %v868_v24  ;;  %v1413_v30 = vsel %vm7318_vm6, %v1408_v18, %v1412_v3  ;;  %v1931_v32 = vor.u32 %v1929_v13, %v1928_v21  ;;  %v1933_v33 = vrot.slane %v1928_v21, 4  ;;  %6654 = vmatpush3.bf16.msra.mxu1 %v6935_v45  ;;  %v2324_v23 = vld [vmem:[#allocation2 + $0x34] sm:$0xf]  ;;  %v6929_v24 = vld [vmem:[%s8830_s1 + $0x208] sm:$0xff]  }
  0xb6   : > { %v1418_v35 = vrot.slane %v1417_v25, 4  ;;  %v1937_v36 = vrot.slane %v1935_v26, 7  ;;  %v2372_v41 = vshll.u32 %v2320_v22, 16  ;;  %v2378_v42 = vshll.u32 %v2321_v27, 16  ;;  %6655 = vmatprep.subr.bf16.mxu1 %v6938_v2  ;;  %v6934_v45 = vld [vmem:[%s8830_s1 + $0x210] sm:$0xff]  }
  0xb7   : > { %4810 = vmatmul.mubr.bf16.gmra.mrb[44].mxu0 %v5968_v29  ;;  %v1932_v40 = vsel %vm7165_vm3, %v6013_v20, %v1931_v32  ;;  %v2382_v43 = vshrl.u32 %v2321_v27, 16  ;;  %v2371_v49 = vrot.slane %v2369_v38, 4  ;;  %v2388_v50 = vshll.u32 %v2322_v34, 16  ;;  %v6922_v20 = vld [vmem:[#allocation2 + $0x1c] sm:$0xff]   ;;  %v2325_v29 = vld [vmem:[#allocation2 + $0x38] sm:$0x1] }
  0xb8   : > { %v1423_v46 = vsel %vm7318_vm6, %v1418_v35, %v1422_v19  ;;  %v1940_v48 = vor.u32 %v1938_v37, %v1937_v36  ;;  %v2374_v52 = vrot.slane %v2372_v41, 5  ;;  %v2380_v53 = vrot.slane %v2378_v42, 5  ;;  %v1208_v35 = vld [vmem:[#allocation2 + $0xbc] sm:$0xf] }
  0xb9   : > { %v5996_v51 = vcombine.low %v1413_v30, %v1423_v46  ;;  %v2384_v54 = vrot.slane %v2382_v43, 4  ;;  %v2390_v56 = vrot.slane %v2388_v50, 5  ;;  %v1425_v57 = vshrl.u32 %v1205_v39, 16 }
  0xba   : > { %v1941_v55 = vsel %vm7165_vm3, %v1933_v33, %v1940_v48  ;;  %v1428_v59 = vshll.u32 %v1205_v39, 16  ;;  %v2375_v62 = vor.u32 %v2374_v52, %v2371_v49  ;;  %v1434_v0 = vshll.u32 %v1206_v44, 16 }
  0xbb   : > { %4939 = vmatmul.mubr.bf16.gmra.mrb[44].mxu1 %v5996_v51  ;;  %v6029_v61 = vcombine.low %v1932_v40, %v1941_v55  ;;  %v2385_v63 = vor.u32 %v2384_v54, %v2380_v53  ;;  %v1427_v3 = vrot.slane %v1425_v57, 4  ;;  %v1438_v5 = vshrl.u32 %v1206_v44, 16  ;;  %v1209_v40 = vld [vmem:[#allocation2 + $0xc0] sm:$0xf]  ;;  %v1210_v54 = vld [vmem:[#allocation2 + $0xc4] sm:$0x1] }
  0xbc   : > { %v1430_v4 = vrot.slane %v1428_v59, 5  ;;  %v1444_v6 = vshll.u32 %v1207_v47, 16  ;;  %v2376_v7 = vrot.slane %v2375_v62, 4  ;;  %v1436_v10 = vrot.slane %v1434_v0, 5  ;;  %v6940_v55 = vld [vmem:[%s8830_s1 + $0x1b8] sm:$0xff]  }
  0xbd   : > { %4946 = vmatprep.mubr.bf16.mxu1 %v6029_v61  ;;  %v2386_v9 = vrot.slane %v2385_v63, 4  ;;  %v1943_v12 = vshrl.u32 %v1723_v60, 16  ;;  %v1440_v14 = vrot.slane %v1438_v5, 4  ;;  %v1948_v16 = vshrl.u32 %v1724_v1, 16  ;;  %6656 = vmatpush3.bf16.msra.mxu1 %v6940_v55 }
  0xbe   : > { %v1431_v13 = vor.u32 %v1430_v4, %v1427_v3  ;;  %v1446_v15 = vrot.slane %v1444_v6, 5  ;;  %v2381_v18 = vsel %vm7318_vm6, %v2376_v7, %v2380_v53  ;;  %v1951_v22 = vshll.u32 %v1724_v1, 16  ;;  %v1727_v1 = vld [vmem:[#allocation2 + $0xe4] sm:$0xf]  ;;  %v1728_v6 = vld [vmem:[#allocation2 + $0xe8] sm:$0xf] }
  0xbf   : > { %v2391_v19 = vsel %vm7318_vm6, %v2386_v9, %v2390_v56  ;;  %v6014_v21 = vrot.slane %v1943_v12, 11  ;;  %v1441_v27 = vor.u32 %v1440_v14, %v1436_v10  ;;  %v1950_v28 = vrot.slane %v1948_v16, 7  ;;  %v6939_v12 = vld [vmem:[%s8830_s1 + $0x218] sm:$0xff]  }
  0xc0   : > { %v6053_v25 = vcombine.low %v2381_v18, %v2391_v19  ;;  %v1432_v26 = vrot.slane %v1431_v13, 4  ;;  %v1957_v30 = vshrl.u32 %v1725_v11, 16  ;;  %v1960_v32 = vshll.u32 %v1725_v11, 16 }
  0xc1   : > { %v2393_v33 = vshrl.u32 %v2323_v17, 16  ;;  %v2396_v34 = vshll.u32 %v2323_v17, 16  ;;  %v1442_v37 = vrot.slane %v1441_v27, 4  ;;  %v1953_v38 = vor.u32 %v1951_v22, %v1950_v28  ;;  %v2326_v17 = vld [vmem:[#allocation2 + $0x44] sm:$0xf] }
  0xc2   : > { %5043 = vmatprep.mubr.bf16.mxu0 %v6053_v25  ;;  %v1437_v36 = vsel %vm7318_vm6, %v1432_v26, %v1436_v10  ;;  %v1955_v39 = vrot.slane %v1950_v28, 4  ;;  %v1959_v41 = vrot.slane %v1957_v30, 7  ;;  %v2402_v44 = vshll.u32 %v2324_v23, 16  ;;  %v2327_v22 = vld [vmem:[#allocation2 + $0x48] sm:$0xf]  ;;  %v6926_v25 = vld [vmem:[#allocation2 + $0x30] sm:$0xff]  }
  0xc3   : > { %5044 = vmatmul.mubr.bf16.vlgmr.msra.gmra.mrb[48].mxu0 %v6922_v20  ;;  %v2395_v42 = vrot.slane %v2393_v33, 4  ;;  %v2398_v43 = vrot.slane %v2396_v34, 5  ;;  %v1447_v46 = vsel %vm7318_vm6, %v1442_v37, %v1446_v15  ;;  %v1954_v48 = vsel %vm7165_vm3, %v6014_v21, %v1953_v38  ;;  %v2328_v28 = vld [vmem:[#allocation2 + $0x4c] sm:$0x1]  ;;  %v6944_v38 = vld [vmem:[%s8830_s1 + $0x220] sm:$0xff]  }
  0xc4   : > { %6778 = vmatpush3.bf16.msra.mxu0 %v7472_v58  ;;  %v2406_v49 = vshrl.u32 %v2324_v23, 16  ;;  %v2412_v50 = vshll.u32 %v2325_v29, 16  ;;  %v5997_v47 = vcombine.low %v1437_v36, %v1447_v46  ;;  %v1962_v51 = vor.u32 %v1960_v32, %v1959_v41  ;;  %v1726_v58 = vld [vmem:[#allocation2 + $0xe0] sm:$0x8] }
  0xc5   : > { %v2399_v52 = vor.u32 %v2398_v43, %v2395_v42  ;;  %v2404_v53 = vrot.slane %v2402_v44, 5  ;;  %6779 = vmatprep.subr.bf16.mxu0 %v6929_v24  ;;  %v1449_v59 = vshrl.u32 %v1208_v35, 16  ;;  %v1452_v60 = vshll.u32 %v1208_v35, 16  ;;  %v1211_v43 = vld [vmem:[#allocation2 + $0xd0] sm:$0xf] }
  0xc6   : > { %v2408_v56 = vrot.slane %v2406_v49, 4  ;;  %v2414_v57 = vrot.slane %v2412_v50, 5  ;;  %4947 = vmatmul.mubr.bf16.gmra.mrb[48].mxu1 %v5997_v47  ;;  %v1963_v61 = vsel %vm7165_vm3, %v1955_v39, %v1962_v51  ;;  %v1458_v63 = vshll.u32 %v1209_v40, 16  ;;  %v1212_v49 = vld [vmem:[#allocation2 + $0xd4] sm:$0xf] }
  0xc7   : > { %v2400_v62 = vrot.slane %v2399_v52, 4  ;;  %v1462_v0 = vshrl.u32 %v1209_v40, 16  ;;  %v6030_v2 = vcombine.low %v1954_v48, %v1963_v61  ;;  %v1451_v4 = vrot.slane %v1449_v59, 4  ;;  %v1213_v50 = vld [vmem:[#allocation2 + $0xd8] sm:$0x1] }
  0xc8   : > { %v2409_v3 = vor.u32 %v2408_v56, %v2404_v53  ;;  %v1454_v5 = vrot.slane %v1452_v60, 5  ;;  %6780 = vmatpush3.bf16.msra.mxu0 %v6929_v24  ;;  %v1460_v9 = vrot.slane %v1458_v63, 5  ;;  %v1468_v11 = vshll.u32 %v1210_v54, 16  ;;  %v1729_v54 = vld [vmem:[#allocation2 + $0xf4] sm:$0x8] }
  0xc9   : > { %v2405_v7 = vsel %vm7318_vm6, %v2400_v62, %v2404_v53  ;;  %v1464_v10 = vrot.slane %v1462_v0, 4  ;;  %6781 = vmatprep.subr.bf16.mxu0 %v6934_v45  ;;  %4954 = vmatprep.mubr.bf16.mxu1 %v6030_v2  ;;  %v1965_v15 = vshrl.u32 %v1726_v58, 16  ;;  %v1970_v16 = vshrl.u32 %v1727_v1, 16  ;;  %v1730_v60 = vld [vmem:[#allocation2 + $0xf8] sm:$0xf] }
  0xca   : > { %v2410_v13 = vrot.slane %v2409_v3, 4  ;;  %v1455_v14 = vor.u32 %v1454_v5, %v1451_v4  ;;  %v1470_v19 = vrot.slane %v1468_v11, 5  ;;  %v1973_v20 = vshll.u32 %v1727_v1, 16  ;;  %v1731_v0 = vld [vmem:[#allocation2 + $0xfc] sm:$0xf] }
  0xcb   : > { %v1465_v18 = vor.u32 %v1464_v10, %v1460_v9  ;;  %v1979_v21 = vshrl.u32 %v1728_v6, 16  ;;  %v6015_v26 = vrot.slane %v1965_v15, 11  ;;  %v1972_v27 = vrot.slane %v1970_v16, 7  ;;  %v2329_v5 = vld [vmem:[#allocation2 + $0x58] sm:$0xf]  ;;  %v6949_v16 = vld [vmem:[%s8830_s1 + $0x228] sm:$0xff]  }
  0xcc   : > { %v2415_v23 = vsel %vm7318_vm6, %v2410_v13, %v2414_v57  ;;  %v1456_v24 = vrot.slane %v1455_v14, 4  ;;  %6782 = vmatpush3.bf16.msra.mxu0 %v6934_v45  ;;  %v1982_v33 = vshll.u32 %v1728_v6, 16  ;;  %v2417_v37 = vshrl.u32 %v2326_v17, 16  ;;  %v2330_v15 = vld [vmem:[#allocation2 + $0x5c] sm:$0xf] }
  0xcd   : > { %v6054_v29 = vcombine.low %v2405_v7, %v2415_v23  ;;  %v1466_v30 = vrot.slane %v1465_v18, 4  ;;  %v1981_v32 = vrot.slane %v1979_v21, 7  ;;  %6783 = vmatprep.subr.bf16.mxu0 %v6939_v12  ;;  %v1975_v35 = vor.u32 %v1973_v20, %v1972_v27  ;;  %v6927_v23 = vld [vmem:[#allocation2 + $0x44] sm:$0xff]  }
  0xce   : > { %v1461_v34 = vsel %vm7318_vm6, %v1456_v24, %v1460_v9  ;;  %v1977_v36 = vrot.slane %v1972_v27, 4  ;;  %v2420_v41 = vshll.u32 %v2326_v17, 16  ;;  %v2426_v42 = vshll.u32 %v2327_v22, 16  ;;  %v1214_v27 = vld [vmem:[#allocation2 + $0xe4] sm:$0xf] }
  0xcf   : > { %5051 = vmatprep.mubr.bf16.mxu0 %v6054_v29  ;;  %v1471_v39 = vsel %vm7318_vm6, %v1466_v30, %v1470_v19  ;;  %v1984_v40 = vor.u32 %v1982_v33, %v1981_v32  ;;  %v1976_v45 = vsel %vm7165_vm3, %v6015_v26, %v1975_v35  ;;  %v2419_v46 = vrot.slane %v2417_v37, 4  ;;  %v2331_v26 = vld [vmem:[#allocation2 + $0x60] sm:$0x1] }
  0xd0   : > { %v5998_v44 = vcombine.low %v1461_v34, %v1471_v39  ;;  %5052 = vmatmul.mubr.bf16.gmra.mrb[52].mxu0 %v6926_v25  ;;  %v2430_v48 = vshrl.u32 %v2327_v22, 16  ;;  %v2422_v51 = vrot.slane %v2420_v41, 5  ;;  %v2428_v52 = vrot.slane %v2426_v42, 5  ;;  %v1215_v41 = vld [vmem:[#allocation2 + $0xe8] sm:$0xf] }
  0xd1   : > { %v1985_v47 = vsel %vm7165_vm3, %v1977_v36, %v1984_v40  ;;  %v2436_v53 = vshll.u32 %v2328_v28, 16  ;;  %6784 = vmatpush3.bf16.msra.mxu0 %v6939_v12  ;;  %v1473_v57 = vshrl.u32 %v1211_v43, 16  ;;  %v1476_v59 = vshll.u32 %v1211_v43, 16 }
  0xd2   : > { %4955 = vmatmul.mubr.bf16.gmra.mrb[52].mxu1 %v5998_v44  ;;  %v6031_v55 = vcombine.low %v1976_v45, %v1985_v47  ;;  %v2432_v56 = vrot.slane %v2430_v48, 4  ;;  %6785 = vmatprep.subr.bf16.mxu0 %v6944_v38  ;;  %v2423_v58 = vor.u32 %v2422_v51, %v2419_v46  ;;  %v1482_v62 = vshll.u32 %v1212_v49, 16  ;;  %v1216_v46 = vld [vmem:[#allocation2 + $0xec] sm:$0x1]  ;;  %v1732_v51 = vld [vmem:[#allocation2 + $0x108] sm:$0x8] }
  0xd3   : > { %v2438_v61 = vrot.slane %v2436_v53, 5  ;;  %v1486_v63 = vshrl.u32 %v1212_v49, 16  ;;  %v1475_v2 = vrot.slane %v1473_v57, 4  ;;  %v1478_v3 = vrot.slane %v1476_v59, 5  ;;  %v6954_v57 = vld [vmem:[%s8830_s1 + $0x230] sm:$0xff]  }
  0xd4   : > { %4962 = vmatprep.mubr.bf16.mxu1 %v6031_v55  ;;  %v2433_v1 = vor.u32 %v2432_v56, %v2428_v52  ;;  %v1492_v4 = vshll.u32 %v1213_v50, 16  ;;  %v2424_v6 = vrot.slane %v2423_v58, 4  ;;  %v1484_v7 = vrot.slane %v1482_v62, 5  ;;  %v1733_v56 = vld [vmem:[#allocation2 + $0x10c] sm:$0xf] }
  0xd5   : > { %v1488_v9 = vrot.slane %v1486_v63, 4  ;;  %v1987_v10 = vshrl.u32 %v1729_v54, 16  ;;  %6786 = vmatpush3.bf16.msra.mxu0 %v6944_v38  ;;  %v1479_v12 = vor.u32 %v1478_v3, %v1475_v2  ;;  %v1992_v14 = vshrl.u32 %v1730_v60, 16  ;;  %v1734_v2 = vld [vmem:[#allocation2 + $0x110] sm:$0xf] }
  0xd6   : > { %v2434_v11 = vrot.slane %v2433_v1, 4  ;;  %v1494_v13 = vrot.slane %v1492_v4, 5  ;;  %v2429_v17 = vsel %vm7318_vm6, %v2424_v6, %v2428_v52  ;;  %v1995_v20 = vshll.u32 %v1730_v60, 16  ;;  %6787 = vmatprep.subr.bf16.mxu0 %v6949_v16 }
  0xd7   : > { %v1489_v18 = vor.u32 %v1488_v9, %v1484_v7  ;;  %v6016_v19 = vrot.slane %v1987_v10, 11  ;;  %v1480_v22 = vrot.slane %v1479_v12, 4  ;;  %v1994_v24 = vrot.slane %v1992_v14, 7 }
  0xd8   : > { %v2439_v21 = vsel %vm7318_vm6, %v2434_v11, %v2438_v61  ;;  %v2001_v25 = vshrl.u32 %v1731_v0, 16  ;;  %v2004_v30 = vshll.u32 %v1731_v0, 16  ;;  %v2441_v32 = vshrl.u32 %v2329_v5, 16 }
  0xd9   : > { %v6055_v28 = vcombine.low %v2429_v17, %v2439_v21  ;;  %v1490_v29 = vrot.slane %v1489_v18, 4  ;;  %6788 = vmatpush3.bf16.msra.mxu0 %v6949_v16  ;;  %v1485_v33 = vsel %vm7318_vm6, %v1480_v22, %v1484_v7  ;;  %v1997_v34 = vor.u32 %v1995_v20, %v1994_v24  ;;  %v2332_v7 = vld [vmem:[#allocation2 + $0x6c] sm:$0xf]  ;;  %v6931_v20 = vld [vmem:[#allocation2 + $0x58] sm:$0xff]   ;;  %v2333_v22 = vld [vmem:[#allocation2 + $0x70] sm:$0xf] }
  0xda   : > { %v1999_v35 = vrot.slane %v1994_v24, 4  ;;  %v2003_v36 = vrot.slane %v2001_v25, 7  ;;  %v2443_v38 = vrot.slane %v2441_v32, 4  ;;  %v2444_v39 = vshll.u32 %v2329_v5, 16  ;;  %6789 = vmatprep.subr.bf16.mxu0 %v6954_v57 }
  0xdb   : > { %5059 = vmatprep.mubr.bf16.mxu0 %v6055_v28  ;;  %v1495_v37 = vsel %vm7318_vm6, %v1490_v29, %v1494_v13  ;;  %v2450_v40 = vshll.u32 %v2330_v15, 16  ;;  %v1998_v43 = vsel %vm7165_vm3, %v6016_v19, %v1997_v34  ;;  %v2454_v45 = vshrl.u32 %v2330_v15, 16 }
  0xdc   : > { %v5999_v42 = vcombine.low %v1485_v33, %v1495_v37  ;;  %5060 = vmatmul.mubr.bf16.gmra.mrb[56].mxu0 %v6927_v23  ;;  %v2006_v44 = vor.u32 %v2004_v30, %v2003_v36  ;;  %v2446_v48 = vrot.slane %v2444_v39, 5  ;;  %v2460_v50 = vshll.u32 %v2331_v26, 16  ;;  %v1217_v33 = vld [vmem:[#allocation2 + $0xf8] sm:$0xf] }
  0xdd   : > { %v2452_v49 = vrot.slane %v2450_v40, 5  ;;  %v1497_v47 = vshrl.u32 %v1214_v27, 16  ;;  %v2456_v53 = vrot.slane %v2454_v45, 4  ;;  %v1500_v54 = vshll.u32 %v1214_v27, 16  ;;  %6790 = vmatpush3.bf16.msra.mxu0 %v6954_v57  ;;  %v2334_v27 = vld [vmem:[#allocation2 + $0x74] sm:$0x1] }
  0xde   : > { %4963 = vmatmul.mubr.bf16.gmra.mrb[56].mxu1 %v5999_v42  ;;  %v2007_v52 = vsel %vm7165_vm3, %v1999_v35, %v2006_v44  ;;  %v1506_v55 = vshll.u32 %v1215_v41, 16  ;;  %v2447_v60 = vor.u32 %v2446_v48, %v2443_v38  ;;  %v2462_v58 = vrot.slane %v2460_v50, 5  ;;  %v1218_v38 = vld [vmem:[#allocation2 + $0xfc] sm:$0xf]  ;;  %v1219_v44 = vld [vmem:[#allocation2 + $0x100] sm:$0x1] }
  0xdf   : > { %v6032_v59 = vcombine.low %v1998_v43, %v2007_v52  ;;  %v1499_v61 = vrot.slane %v1497_v47, 4  ;;  %v2457_v62 = vor.u32 %v2456_v53, %v2452_v49  ;;  %v1502_v63 = vrot.slane %v1500_v54, 5  ;;  %v6959_v39 = vld [vmem:[%s8830_s1 + $0x238] sm:$0xff]   ;;  %v1736_v47 = vld [vmem:[#allocation2 + $0x120] sm:$0xf] }
  0xe0   : > { %v1508_v0 = vrot.slane %v1506_v55, 5  ;;  %v1510_v1 = vshrl.u32 %v1215_v41, 16  ;;  %v2448_v3 = vrot.slane %v2447_v60, 4  ;;  %v1516_v4 = vshll.u32 %v1216_v46, 16  ;;  %v1735_v45 = vld [vmem:[#allocation2 + $0x11c] sm:$0x8]  ;;  %6791 = vmatprep.subr.bf16.mxu0 %v6959_v39 }
  0xe1   : > { %4970 = vmatprep.mubr.bf16.mxu1 %v6032_v59  ;;  %v2009_v5 = vshrl.u32 %v1732_v51, 16  ;;  %v2014_v6 = vshrl.u32 %v1733_v56, 16  ;;  %v2458_v9 = vrot.slane %v2457_v62, 4  ;;  %v1503_v10 = vor.u32 %v1502_v63, %v1499_v61  ;;  %6792 = vmatpush3.bf16.msra.mxu0 %v6959_v39  ;;  %v1737_v63 = vld [vmem:[#allocation2 + $0x124] sm:$0xf] }
  0xe2   : > { %v1512_v11 = vrot.slane %v1510_v1, 4  ;;  %v2017_v12 = vshll.u32 %v1733_v56, 16  ;;  %v2453_v13 = vsel %vm7318_vm6, %v2448_v3, %v2452_v49  ;;  %v1518_v14 = vrot.slane %v1516_v4, 5 }
  0xe3   : > { %v6017_v15 = vrot.slane %v2009_v5, 11  ;;  %v2016_v16 = vrot.slane %v2014_v6, 7  ;;  %v2463_v17 = vsel %vm7318_vm6, %v2458_v9, %v2462_v58  ;;  %v1504_v18 = vrot.slane %v1503_v10, 4  ;;  %v6932_v9 = vld [vmem:[#allocation2 + $0x6c] sm:$0xff]  }
  0xe4   : > { %v1513_v19 = vor.u32 %v1512_v11, %v1508_v0  ;;  %v2023_v21 = vshrl.u32 %v1734_v2, 16  ;;  %v6056_v23 = vcombine.low %v2453_v13, %v2463_v17  ;;  %v2026_v26 = vshll.u32 %v1734_v2, 16 }
  0xe5   : > { %v2019_v24 = vor.u32 %v2017_v12, %v2016_v16  ;;  %v2021_v25 = vrot.slane %v2016_v16, 4  ;;  %v1509_v28 = vsel %vm7318_vm6, %v1504_v18, %v1508_v0  ;;  %v2465_v32 = vshrl.u32 %v2332_v7, 16  ;;  %v2335_v0 = vld [vmem:[#allocation2 + $0x80] sm:$0xf] }
  0xe6   : > { %v1514_v29 = vrot.slane %v1513_v19, 4  ;;  %v2025_v30 = vrot.slane %v2023_v21, 7  ;;  %5067 = vmatprep.mubr.bf16.mxu0 %v6056_v23  ;;  %v2468_v35 = vshll.u32 %v2332_v7, 16  ;;  %v2474_v36 = vshll.u32 %v2333_v22, 16  ;;  %v2336_v19 = vld [vmem:[#allocation2 + $0x84] sm:$0xf] }
  0xe7   : > { %v2020_v34 = vsel %vm7165_vm3, %v6017_v15, %v2019_v24  ;;  %v2478_v37 = vshrl.u32 %v2333_v22, 16  ;;  %5068 = vmatmul.mubr.bf16.gmra.mrb[60].mxu0 %v6931_v20  ;;  %v2467_v42 = vrot.slane %v2465_v32, 4  ;;  %v2484_v43 = vshll.u32 %v2334_v27, 16  ;;  %v2337_v22 = vld [vmem:[#allocation2 + $0x88] sm:$0x1] }
  0xe8   : > { %v1519_v40 = vsel %vm7318_vm6, %v1514_v29, %v1518_v14  ;;  %v2028_v41 = vor.u32 %v2026_v26, %v2025_v30  ;;  %v2470_v48 = vrot.slane %v2468_v35, 5  ;;  %v2476_v49 = vrot.slane %v2474_v36, 5  ;;  %v1220_v29 = vld [vmem:[#allocation2 + $0x10c] sm:$0xf]  ;;  %v1221_v35 = vld [vmem:[#allocation2 + $0x110] sm:$0xf] }
  0xe9   : > { %v6000_v46 = vcombine.low %v1509_v28, %v1519_v40  ;;  %v2480_v50 = vrot.slane %v2478_v37, 4  ;;  %v2486_v52 = vrot.slane %v2484_v43, 5  ;;  %v1521_v53 = vshrl.u32 %v1217_v33, 16  ;;  %v1222_v40 = vld [vmem:[#allocation2 + $0x114] sm:$0x1] }
  0xea   : > { %v2029_v51 = vsel %vm7165_vm3, %v2021_v25, %v2028_v41  ;;  %v1524_v54 = vshll.u32 %v1217_v33, 16  ;;  %v2471_v56 = vor.u32 %v2470_v48, %v2467_v42  ;;  %v1530_v59 = vshll.u32 %v1218_v38, 16 }
  0xeb   : > { %4971 = vmatmul.mubr.bf16.gmra.mrb[60].mxu1 %v6000_v46  ;;  %v6033_v55 = vcombine.low %v2020_v34, %v2029_v51  ;;  %v2481_v57 = vor.u32 %v2480_v50, %v2476_v49  ;;  %v1523_v60 = vrot.slane %v1521_v53, 4  ;;  %v1534_v61 = vshrl.u32 %v1218_v38, 16 }
  0xec   : > { %v1526_v58 = vrot.slane %v1524_v54, 5  ;;  %v1540_v62 = vshll.u32 %v1219_v44, 16  ;;  %v2472_v1 = vrot.slane %v2471_v56, 4  ;;  %v1532_v3 = vrot.slane %v1530_v59, 5 }
  0xed   : > { %4978 = vmatprep.mubr.bf16.mxu1 %v6033_v55  ;;  %v2482_v2 = vrot.slane %v2481_v57, 4  ;;  %v2031_v4 = vshrl.u32 %v1735_v45, 16  ;;  %v1536_v6 = vrot.slane %v1534_v61, 4  ;;  %v2036_v10 = vshrl.u32 %v1736_v47, 16  ;;  %v1738_v45 = vld [vmem:[#allocation2 + $0x130] sm:$0x8] }
  0xee   : > { %v1527_v5 = vor.u32 %v1526_v58, %v1523_v60  ;;  %v1542_v7 = vrot.slane %v1540_v62, 5  ;;  %v2477_v11 = vsel %vm7318_vm6, %v2472_v1, %v2476_v49  ;;  %v2039_v14 = vshll.u32 %v1736_v47, 16  ;;  %v1739_v47 = vld [vmem:[#allocation2 + $0x134] sm:$0xf]  ;;  %v1740_v55 = vld [vmem:[#allocation2 + $0x138] sm:$0xf] }
  0xef   : > { %v2487_v12 = vsel %vm7318_vm6, %v2482_v2, %v2486_v52  ;;  %v6018_v13 = vrot.slane %v2031_v4, 11  ;;  %v1537_v17 = vor.u32 %v1536_v6, %v1532_v3  ;;  %v2038_v18 = vrot.slane %v2036_v10, 7 }
  0xf0   : > { %v6057_v15 = vcombine.low %v2477_v11, %v2487_v12  ;;  %v1528_v16 = vrot.slane %v1527_v5, 4  ;;  %v2045_v20 = vshrl.u32 %v1737_v63, 16  ;;  %v2048_v21 = vshll.u32 %v1737_v63, 16  ;;  %v6936_v12 = vld [vmem:[#allocation2 + $0x80] sm:$0xff]  }
  0xf1   : > { %v2489_v23 = vshrl.u32 %v2335_v0, 16  ;;  %v2492_v24 = vshll.u32 %v2335_v0, 16  ;;  %v1538_v26 = vrot.slane %v1537_v17, 4  ;;  %v2041_v27 = vor.u32 %v2039_v14, %v2038_v18 }
  0xf2   : > { %5075 = vmatprep.mubr.bf16.mxu0 %v6057_v15  ;;  %v1533_v25 = vsel %vm7318_vm6, %v1528_v16, %v1532_v3  ;;  %v2043_v28 = vrot.slane %v2038_v18, 4  ;;  %v2047_v30 = vrot.slane %v2045_v20, 7  ;;  %v2498_v34 = vshll.u32 %v2336_v19, 16  ;;  %v2339_v15 = vld [vmem:[#allocation2 + $0x98] sm:$0xf] }
  0xf3   : > { %5076 = vmatmul.mubr.bf16.gmra.mrb[64].mxu0 %v6932_v9  ;;  %v2491_v32 = vrot.slane %v2489_v23, 4  ;;  %v2494_v33 = vrot.slane %v2492_v24, 5  ;;  %v1543_v36 = vsel %vm7318_vm6, %v1538_v26, %v1542_v7  ;;  %v2042_v37 = vsel %vm7165_vm3, %v6018_v13, %v2041_v27  ;;  %v2338_v9 = vld [vmem:[#allocation2 + $0x94] sm:$0xf]  ;;  %v2340_v20 = vld [vmem:[#allocation2 + $0x9c] sm:$0x1] }
  0xf4   : > { %v2502_v38 = vshrl.u32 %v2336_v19, 16  ;;  %v2508_v39 = vshll.u32 %v2337_v22, 16  ;;  %v6001_v41 = vcombine.low %v1533_v25, %v1543_v36  ;;  %v2050_v42 = vor.u32 %v2048_v21, %v2047_v30  ;;  %v1224_v30 = vld [vmem:[#allocation2 + $0x124] sm:$0xf]  ;;  %v1225_v36 = vld [vmem:[#allocation2 + $0x128] sm:$0x1] }
  0xf5   : > { %v2495_v43 = vor.u32 %v2494_v33, %v2491_v32  ;;  %v2500_v44 = vrot.slane %v2498_v34, 5  ;;  %v1545_v49 = vshrl.u32 %v1220_v29, 16  ;;  %v1548_v50 = vshll.u32 %v1220_v29, 16  ;;  %v1223_v29 = vld [vmem:[#allocation2 + $0x120] sm:$0xf] }
  0xf6   : > { %v2504_v46 = vrot.slane %v2502_v38, 4  ;;  %v2510_v48 = vrot.slane %v2508_v39, 5  ;;  %4979 = vmatmul.mubr.bf16.gmra.mrb[64].mxu1 %v6001_v41  ;;  %v2051_v51 = vsel %vm7165_vm3, %v2043_v28, %v2050_v42  ;;  %v1554_v53 = vshll.u32 %v1221_v35, 16 }
  0xf7   : > { %v2496_v52 = vrot.slane %v2495_v43, 4  ;;  %v1558_v54 = vshrl.u32 %v1221_v35, 16  ;;  %v6034_v56 = vcombine.low %v2042_v37, %v2051_v51  ;;  %v1547_v59 = vrot.slane %v1545_v49, 4  ;;  %v391_v51 = vld [vmem:[%s7142_s20 + $0xf8] sm:$0xff] }
  0xf8   : > { %v2505_v57 = vor.u32 %v2504_v46, %v2500_v44  ;;  %v1550_v60 = vrot.slane %v1548_v50, 5  ;;  %v1556_v61 = vrot.slane %v1554_v53, 5  ;;  %v1564_v63 = vshll.u32 %v1222_v40, 16  ;;  %v1741_v46 = vld [vmem:[#allocation2 + $0x144] sm:$0x8] }
  0xf9   : > { %v2501_v58 = vsel %vm7318_vm6, %v2496_v52, %v2500_v44  ;;  %v1560_v62 = vrot.slane %v1558_v54, 4  ;;  %4986 = vmatprep.mubr.bf16.mxu1 %v6034_v56  ;;  %v2053_v2 = vshrl.u32 %v1738_v45, 16  ;;  %v2058_v3 = vshrl.u32 %v1739_v47, 16  ;;  %v390_v45 = vld [vmem:[%s7142_s20 + $0xf0] sm:$0xff]  ;;  %v2341_v56 = vld [vmem:[#allocation2 + $0xa8] sm:$0xf] }
  0xfa   : > { %v2506_v0 = vrot.slane %v2505_v57, 4  ;;  %v1551_v1 = vor.u32 %v1550_v60, %v1547_v59  ;;  %v1566_v5 = vrot.slane %v1564_v63, 5  ;;  %v2061_v6 = vshll.u32 %v1739_v47, 16  ;;  %s6240_s20 = sshll.u32 %s8959_s2, 7 }
  0xfb   : > { %v1561_v4 = vor.u32 %v1560_v62, %v1556_v61  ;;  %v2067_v7 = vshrl.u32 %v1740_v55, 16  ;;  %v6019_v13 = vrot.slane %v2053_v2, 11  ;;  %v2060_v14 = vrot.slane %v2058_v3, 7  ;;  %v6937_v2 = vld [vmem:[#allocation2 + $0x94] sm:$0xff]   ;;  %s8465_s8 = scalar_lea.vmem %s8833_s4, %s6240_s20 }
  0xfc   : > { %v2511_v10 = vsel %vm7318_vm6, %v2506_v0, %v2510_v48  ;;  %v1552_v11 = vrot.slane %v1551_v1, 4  ;;  %v2070_v19 = vshll.u32 %v1740_v55, 16  ;;  %v2513_v24 = vshrl.u32 %v2338_v9, 16 }
  0xfd   : > { %v6058_v16 = vcombine.low %v2501_v58, %v2511_v10  ;;  %v1562_v17 = vrot.slane %v1561_v4, 4  ;;  %v2069_v18 = vrot.slane %v2067_v7, 7  ;;  %v2063_v22 = vor.u32 %v2061_v6, %v2060_v14  ;;  %v2343_v4 = vld [vmem:[#allocation2 + $0xb0] sm:$0x1]  ;;  %v1226_v10 = vld [vmem:[#allocation2 + $0x134] sm:$0xf] }
  0xfe   : > { %v1557_v21 = vsel %vm7318_vm6, %v1552_v11, %v1556_v61  ;;  %v2065_v23 = vrot.slane %v2060_v14, 4  ;;  %v2516_v27 = vshll.u32 %v2338_v9, 16  ;;  %v2522_v28 = vshll.u32 %v2339_v15, 16  ;;  %v2342_v61 = vld [vmem:[#allocation2 + $0xac] sm:$0xf] }
  0xff   : > { %5083 = vmatprep.mubr.bf16.mxu0 %v6058_v16  ;;  %v1567_v25 = vsel %vm7318_vm6, %v1562_v17, %v1566_v5  ;;  %v2072_v26 = vor.u32 %v2070_v19, %v2069_v18  ;;  %v2064_v33 = vsel %vm7165_vm3, %v6019_v13, %v2063_v22  ;;  %v2515_v34 = vrot.slane %v2513_v24, 4  ;;  %v1227_v11 = vld [vmem:[#allocation2 + $0x138] sm:$0xf] }
 0x100   : > { %v6002_v32 = vcombine.low %v1557_v21, %v1567_v25  ;;  %5084 = vmatmul.mubr.bf16.gmra.mrb[68].mxu0 %v6936_v12  ;;  %v2526_v35 = vshrl.u32 %v2339_v15, 16  ;;  %v2518_v38 = vrot.slane %v2516_v27, 5  ;;  %v2524_v39 = vrot.slane %v2522_v28, 5  ;;  %v1228_v21 = vld [vmem:[#allocation2 + $0x13c] sm:$0x1] }
 0x101   : > { %v2073_v37 = vsel %vm7165_vm3, %v2065_v23, %v2072_v26  ;;  %v2532_v40 = vshll.u32 %v2340_v20, 16  ;;  %v1569_v43 = vshrl.u32 %v1223_v29, 16  ;;  %v1572_v44 = vshll.u32 %v1223_v29, 16 }
 0x102   : > { %4987 = vmatmul.mubr.bf16.gmra.mrb[68].mxu1 %v6002_v32  ;;  %v6035_v41 = vcombine.low %v2064_v33, %v2073_v37  ;;  %v2528_v42 = vrot.slane %v2526_v35, 4  ;;  %v2519_v48 = vor.u32 %v2518_v38, %v2515_v34  ;;  %v1578_v50 = vshll.u32 %v1224_v30, 16 }
 0x103   : > { %v2534_v49 = vrot.slane %v2532_v40, 5  ;;  %v1582_v47 = vshrl.u32 %v1224_v30, 16  ;;  %v1571_v53 = vrot.slane %v1569_v43, 4  ;;  %v1574_v54 = vrot.slane %v1572_v44, 5 }
 0x104   : > { %4994 = vmatprep.mubr.bf16.mxu1 %v6035_v41  ;;  %v2529_v52 = vor.u32 %v2528_v42, %v2524_v39  ;;  %v1588_v55 = vshll.u32 %v1225_v36, 16  ;;  %v2520_v57 = vrot.slane %v2519_v48, 4  ;;  %v1580_v59 = vrot.slane %v1578_v50, 5  ;;  %v2344_v42 = vld [vmem:[#allocation2 + $0xbc] sm:$0xf] }
 0x105   : > { %v1584_v60 = vrot.slane %v1582_v47, 4  ;;  %v6271_v58 = vpack.c.bf16 %v390_v45, %v390_v45  ;;  %v1575_v0 = vor.u32 %v1574_v54, %v1571_v53  ;;  %v6272_v3 = vpack.c.bf16 %v391_v51, %v391_v51 }
 0x106   : > { %v2530_v63 = vrot.slane %v2529_v52, 4  ;;  %v1590_v1 = vrot.slane %v1588_v55, 5  ;;  %v2525_v5 = vsel %vm7318_vm6, %v2520_v57, %v2524_v39  ;;  %v2075_v7 = vshrl.u32 %v1741_v46, 16 }
 0x107   : > { %v1585_v6 = vor.u32 %v1584_v60, %v1580_v59  ;;  %552 = vst.msk [vmem:[#allocation2 + $0x148] sm:$0xf] %vm521_vm0, %v6271_v58  ;;  %v2537_v9 = vshrl.u32 %v2341_v56, 16  ;;  %v1576_v13 = vrot.slane %v1575_v0, 4  ;;  %553 = vst.msk [vmem:[#allocation2 + $0x14c] sm:$0xf] %vm521_vm0, %v6272_v3 }
 0x108   : > { %v2535_v12 = vsel %vm7318_vm6, %v2530_v63, %v2534_v49  ;;  %v2540_v14 = vshll.u32 %v2341_v56, 16  ;;  %v2546_v15 = vshll.u32 %v2342_v61, 16  ;;  %v7631_v19 = vrot.slane %v2075_v7, 11  ;;  %v2345_v60 = vld [vmem:[#allocation2 + $0xc0] sm:$0xf] }
 0x109   : > { %v6059_v17 = vcombine.low %v2525_v5, %v2535_v12  ;;  %v1586_v18 = vrot.slane %v1585_v6, 4  ;;  %v2539_v20 = vrot.slane %v2537_v9, 4  ;;  %v1581_v23 = vsel %vm7318_vm6, %v1576_v13, %v1580_v59  ;;  %v2346_v5 = vld [vmem:[#allocation2 + $0xc4] sm:$0x1]  ;;  %v2833_v13 = vld [vmem:[#allocation2 + $0x2c] sm:$0x8] }
 0x10a   : > { %v7621_v62 = vpop.f32.mrb[0].mxu0  ;;  %v2542_v24 = vrot.slane %v2540_v14, 5  ;;  %v2548_v25 = vrot.slane %v2546_v15, 5  ;;  %v2550_v26 = vshrl.u32 %v2342_v61, 16  ;;  %v2556_v29 = vshll.u32 %v2343_v4, 16  ;;  %v6941_v4 = vld [vmem:[#allocation2 + $0xa8] sm:$0xff]  }
 0x10b   : > { %v7629_v16 = vpop.f32.mrb[1].mxu0  ;;  %5091 = vmatprep.mubr.bf16.mxu0 %v6059_v17  ;;  %v1591_v28 = vsel %vm7318_vm6, %v1586_v18, %v1590_v1  ;;  %v1593_v30 = vshrl.u32 %v1226_v10, 16  ;;  %v1596_v32 = vshll.u32 %v1226_v10, 16  ;;  %v1602_v37 = vshll.u32 %v1227_v11, 16  ;;  %v2834_v14 = vld [vmem:[#allocation2 + $0x30] sm:$0xf] }
 0x10c   : > { %v7641_v33 = vpop.f32.mrb[2].mxu0  ;;  %v6003_v34 = vcombine.low %v1581_v23, %v1591_v28  ;;  %5092 = vmatmul.mubr.bf16.gmra.mrb[72].mxu0 %v6937_v2  ;;  %v2543_v35 = vor.u32 %v2542_v24, %v2539_v20  ;;  %v2552_v36 = vrot.slane %v2550_v26, 4  ;;  %v2558_v38 = vrot.slane %v2556_v29, 5 }
 0x10d   : > { %v1595_v39 = vrot.slane %v1593_v30, 4  ;;  %v1598_v40 = vrot.slane %v1596_v32, 5  ;;  %v1606_v41 = vshrl.u32 %v1227_v11, 16  ;;  %v1604_v46 = vrot.slane %v1602_v37, 5  ;;  %v7645_v54 = vpop.f32.mrb[3].mxu0 }
 0x10e   : > { %4995 = vmatmul.mubr.bf16.gmra.mrb[72].mxu1 %v6003_v34  ;;  %v1742_v43 = vld [vmem:[#allocation2 + $0x148] sm:$0xf]  ;;  %v2544_v44 = vrot.slane %v2543_v35, 4  ;;  %v2553_v45 = vor.u32 %v2552_v36, %v2548_v25  ;;  %v1612_v48 = vshll.u32 %v1228_v21, 16  ;;  %v1743_v50 = vld [vmem:[#allocation2 + $0x14c] sm:$0xf] }
 0x10f   : > { %v2080_v47 = vshrl.u32 %v1742_v43, 16  ;;  %v2083_v51 = vshll.u32 %v1742_v43, 16  ;;  %v1599_v52 = vor.u32 %v1598_v40, %v1595_v39  ;;  %v1608_v53 = vrot.slane %v1606_v41, 4  ;;  %v2835_v21 = vld [vmem:[#allocation2 + $0x34] sm:$0xf] }
 0x110   : > { %v2089_v55 = vshrl.u32 %v1743_v50, 16  ;;  %v2092_v56 = vshll.u32 %v1743_v50, 16  ;;  %v2549_v57 = vsel %vm7318_vm6, %v2544_v44, %v2548_v25  ;;  %v2554_v59 = vrot.slane %v2553_v45, 4  ;;  %v6942_v39 = vld [vmem:[#allocation2 + $0x30] sm:$0xff]  }
 0x111   : > { %v2082_v61 = vrot.slane %v2080_v47, 7  ;;  %v1600_v63 = vrot.slane %v1599_v52, 4  ;;  %v1609_v0 = vor.u32 %v1608_v53, %v1604_v46  ;;  %v1614_v1 = vrot.slane %v1612_v48, 5  ;;  %v2347_v40 = vld [vmem:[#allocation2 + $0xd0] sm:$0xf] }
 0x112   : > { %v2091_v2 = vrot.slane %v2089_v55, 7  ;;  %v2559_v3 = vsel %vm7318_vm6, %v2554_v59, %v2558_v38  ;;  %v2561_v6 = vshrl.u32 %v2344_v42, 16  ;;  %v2564_v7 = vshll.u32 %v2344_v42, 16  ;;  %v2348_v45 = vld [vmem:[#allocation2 + $0xd4] sm:$0xf] }
 0x113   : > { %v2085_v9 = vor.u32 %v2083_v51, %v2082_v61  ;;  %v2087_v10 = vrot.slane %v2082_v61, 4  ;;  %v6060_v11 = vcombine.low %v2549_v57, %v2559_v3  ;;  %v1605_v12 = vsel %vm7318_vm6, %v1600_v63, %v1604_v46  ;;  %v2349_v51 = vld [vmem:[#allocation2 + $0xd8] sm:$0x1]  ;;  %v2836_v59 = vld [vmem:[#allocation2 + $0x40] sm:$0x8] }
 0x114   : > { %v2094_v15 = vor.u32 %v2092_v56, %v2091_v2  ;;  %v1610_v17 = vrot.slane %v1609_v0, 4  ;;  %v2563_v18 = vrot.slane %v2561_v6, 4  ;;  %v2566_v20 = vrot.slane %v2564_v7, 5  ;;  %v6943_v63 = vld [vmem:[#allocation2 + $0xbc] sm:$0xff]   ;;  %v2837_v3 = vld [vmem:[#allocation2 + $0x44] sm:$0xf] }
 0x115   : > { %v2086_v23 = vsel %vm7165_vm3, %v7631_v19, %v2085_v9  ;;  %5099 = vmatprep.mubr.bf16.mxu0 %v6060_v11  ;;  %v2570_v24 = vshll.u32 %v2345_v60, 16  ;;  %v2574_v25 = vshrl.u32 %v2345_v60, 16  ;;  %v2580_v26 = vshll.u32 %v2346_v5, 16 }
 0x116   : > { %v2095_v29 = vsel %vm7165_vm3, %v2087_v10, %v2094_v15  ;;  %v1615_v30 = vsel %vm7318_vm6, %v1610_v17, %v1614_v1  ;;  %5100 = vmatmul.mubr.bf16.gmra.mrb[76].mxu0 %v6941_v4  ;;  %v2567_v32 = vor.u32 %v2566_v20, %v2563_v18  ;;  %v2882_v34 = vshrl.u32 %v2833_v13, 16 }
 0x117   : > { %v7633_v22 = vpop.f32.mrb[0].mxu1  ;;  %v6036_v36 = vcombine.low %v2086_v23, %v2095_v29  ;;  %v6004_v37 = vcombine.low %v1605_v12, %v1615_v30  ;;  %v2572_v19 = vrot.slane %v2570_v24, 5  ;;  %v2576_v38 = vrot.slane %v2574_v25, 4  ;;  %v2350_v30 = vld [vmem:[#allocation2 + $0xe4] sm:$0xf] }
 0x118   : > { %v7637_v27 = vpop.f32.mrb[1].mxu1  ;;  %v2568_v41 = vrot.slane %v2567_v32, 4  ;;  %v2582_v42 = vrot.slane %v2580_v26, 5  ;;  %v6069_v43 = vrot.slane %v2882_v34, 11  ;;  %v2887_v44 = vshrl.u32 %v2834_v14, 16 }
 0x119   : > { %v7643_v49 = vpop.f32.mrb[2].mxu1  ;;  %5002 = vmatprep.mubr.bf16.mxu1 %v6036_v36  ;;  %v2577_v46 = vor.u32 %v2576_v38, %v2572_v19  ;;  %v2890_v48 = vshll.u32 %v2834_v14, 16  ;;  %v2896_v50 = vshrl.u32 %v2835_v21, 16  ;;  %v2899_v47 = vshll.u32 %v2835_v21, 16  ;;  %v6945_v14 = vld [vmem:[#allocation2 + $0x44] sm:$0xff]  }
 0x11a   : > { %v7649_v58 = vpop.f32.mrb[3].mxu1  ;;  %v7658_v28 = vpop.f32.mrb[4].mxu0  ;;  %5003 = vmatmul.mubr.bf16.gmra.mrb[76].mxu1 %v6004_v37  ;;  %v2573_v53 = vsel %vm7318_vm6, %v2568_v41, %v2572_v19  ;;  %v2889_v55 = vrot.slane %v2887_v44, 7  ;;  %v2585_v56 = vshrl.u32 %v2347_v40, 16  ;;  %v2588_v57 = vshll.u32 %v2347_v40, 16 }
 0x11b   : > { %v7664_v35 = vpop.f32.mrb[5].mxu0  ;;  %v2578_v61 = vrot.slane %v2577_v46, 4  ;;  %5204 = vmatprep.mubr.bf16.mxu1 %v6942_v39  ;;  %v2898_v0 = vrot.slane %v2896_v50, 7  ;;  %v2594_v1 = vshll.u32 %v2348_v45, 16  ;;  %v2598_v2 = vshrl.u32 %v2348_v45, 16 }
 0x11c   : > { %v2892_v4 = vor.u32 %v2890_v48, %v2889_v55  ;;  %v2894_v5 = vrot.slane %v2889_v55, 4  ;;  %v2587_v6 = vrot.slane %v2585_v56, 4  ;;  %v2590_v7 = vrot.slane %v2588_v57, 5  ;;  %v7672_v9 = vpop.f32.mrb[6].mxu0  ;;  %v2838_v21 = vld [vmem:[#allocation2 + $0x48] sm:$0xf] }
 0x11d   : > { %v2583_v10 = vsel %vm7318_vm6, %v2578_v61, %v2582_v42  ;;  %v2901_v11 = vor.u32 %v2899_v47, %v2898_v0  ;;  %v2596_v12 = vrot.slane %v2594_v1, 5  ;;  %v2600_v13 = vrot.slane %v2598_v2, 4  ;;  %v2351_v32 = vld [vmem:[#allocation2 + $0xe8] sm:$0xf]  ;;  %v7682_v38 = vpop.f32.mrb[7].mxu0 }
 0x11e   : > { %v6061_v15 = vcombine.low %v2573_v53, %v2583_v10  ;;  %v2893_v17 = vsel %vm7165_vm3, %v6069_v43, %v2892_v4  ;;  %v2591_v18 = vor.u32 %v2590_v7, %v2587_v6  ;;  %v2604_v20 = vshll.u32 %v2349_v51, 16  ;;  %v2352_v45 = vld [vmem:[#allocation2 + $0xec] sm:$0x1]  ;;  %v6946_v51 = vld [vmem:[#allocation2 + $0xd0] sm:$0xff]   ;;  %v2841_v2 = vld [vmem:[#allocation2 + $0x5c] sm:$0xf] }
 0x11f   : > { %v7666_v52 = vpop.f32.mrb[4].mxu1  ;;  %v2902_v24 = vsel %vm7165_vm3, %v2894_v5, %v2901_v11  ;;  %v2601_v25 = vor.u32 %v2600_v13, %v2596_v12  ;;  %v2904_v26 = vshrl.u32 %v2836_v59, 16  ;;  %v2909_v29 = vshrl.u32 %v2837_v3, 16  ;;  %v2839_v57 = vld [vmem:[#allocation2 + $0x54] sm:$0x8] }
 0x120   : > { %v7670_v60 = vpop.f32.mrb[5].mxu1  ;;  %5107 = vmatprep.mubr.bf16.mxu0 %v6061_v15  ;;  %v6085_v34 = vcombine.low %v2893_v17, %v2902_v24  ;;  %v2592_v36 = vrot.slane %v2591_v18, 4  ;;  %v2606_v37 = vrot.slane %v2604_v20, 5  ;;  %v2912_v19 = vshll.u32 %v2837_v3, 16  ;;  %v2840_v59 = vld [vmem:[#allocation2 + $0x58] sm:$0xf] }
 0x121   : > { %v7678_v23 = vpop.f32.mrb[6].mxu1  ;;  %5108 = vmatmul.mubr.bf16.gmra.mrb[80].mxu0 %v6943_v63  ;;  %v2602_v39 = vrot.slane %v2601_v25, 4  ;;  %v6070_v40 = vrot.slane %v2904_v26, 11  ;;  %v2911_v41 = vrot.slane %v2909_v29, 7  ;;  %v2918_v42 = vshrl.u32 %v2838_v21, 16 }
 0x122   : > { %5205 = vmatmul.mubr.bf16.vlgmr.msra.gmra.mrb[80].mxu1 %v6085_v34  ;;  %v2597_v43 = vsel %vm7318_vm6, %v2592_v36, %v2596_v12  ;;  %v2921_v44 = vshll.u32 %v2838_v21, 16  ;;  %v2609_v46 = vshrl.u32 %v2350_v30, 16  ;;  %v2612_v48 = vshll.u32 %v2350_v30, 16  ;;  %v7686_v50 = vpop.f32.mrb[7].mxu1  ;;  %v2353_v3 = vld [vmem:[#allocation2 + $0xf8] sm:$0xf] }
 0x123   : > { %v2607_v47 = vsel %vm7318_vm6, %v2602_v39, %v2606_v37  ;;  %5212 = vmatprep.mubr.bf16.mxu1 %v6945_v14  ;;  %v2914_v53 = vor.u32 %v2912_v19, %v2911_v41  ;;  %v2916_v55 = vrot.slane %v2911_v41, 4  ;;  %v2920_v56 = vrot.slane %v2918_v42, 7  ;;  %v6947_v21 = vld [vmem:[#allocation2 + $0x58] sm:$0xff]  }
 0x124   : > { %v6062_v61 = vcombine.low %v2597_v43, %v2607_v47  ;;  %v2611_v63 = vrot.slane %v2609_v46, 4  ;;  %v2614_v0 = vrot.slane %v2612_v48, 5  ;;  %v2618_v1 = vshll.u32 %v2351_v32, 16  ;;  %v7690_v4 = vpop.f32.mrb[8].mxu0  ;;  %v2354_v34 = vld [vmem:[#allocation2 + $0xfc] sm:$0xf] }
 0x125   : > { %v2915_v5 = vsel %vm7165_vm3, %v6070_v40, %v2914_v53  ;;  %v2923_v6 = vor.u32 %v2921_v44, %v2920_v56  ;;  %v2622_v7 = vshrl.u32 %v2351_v32, 16  ;;  %v2628_v10 = vshll.u32 %v2352_v45, 16  ;;  %v7698_v25 = vpop.f32.mrb[9].mxu0  ;;  %v2355_v40 = vld [vmem:[#allocation2 + $0x100] sm:$0x1] }
 0x126   : > { %5115 = vmatprep.mubr.bf16.mxu0 %v6062_v61  ;;  %v2615_v11 = vor.u32 %v2614_v0, %v2611_v63  ;;  %v2620_v12 = vrot.slane %v2618_v1, 5  ;;  %v2926_v13 = vshrl.u32 %v2839_v57, 16  ;;  %v2931_v14 = vshrl.u32 %v2840_v59, 16  ;;  %v7702_v42 = vpop.f32.mrb[10].mxu0  ;;  %v2842_v48 = vld [vmem:[#allocation2 + $0x68] sm:$0x8] }
 0x127   : > { %v7694_v15 = vpop.f32.mrb[8].mxu1  ;;  %v2924_v17 = vsel %vm7165_vm3, %v2916_v55, %v2923_v6  ;;  %v2624_v18 = vrot.slane %v2622_v7, 4  ;;  %v2630_v20 = vrot.slane %v2628_v10, 5  ;;  %v2934_v24 = vshll.u32 %v2840_v59, 16  ;;  %v2843_v47 = vld [vmem:[#allocation2 + $0x6c] sm:$0xf] }
 0x128   : > { %v6086_v26 = vcombine.low %v2915_v5, %v2924_v17  ;;  %v2616_v29 = vrot.slane %v2615_v11, 4  ;;  %v6071_v30 = vrot.slane %v2926_v13, 11  ;;  %v2933_v32 = vrot.slane %v2931_v14, 7  ;;  %v7700_v36 = vpop.f32.mrb[9].mxu1  ;;  %v6948_v55 = vld [vmem:[#allocation2 + $0xe4] sm:$0xff]   ;;  %v6950_v7 = vld [vmem:[#allocation2 + $0x6c] sm:$0xff]  }
 0x129   : > { %5116 = vmatmul.mubr.bf16.gmra.mrb[84].mxu0 %v6946_v51  ;;  %v2625_v37 = vor.u32 %v2624_v18, %v2620_v12  ;;  %v2940_v19 = vshrl.u32 %v2841_v2, 16  ;;  %v2943_v39 = vshll.u32 %v2841_v2, 16  ;;  %v2633_v41 = vshrl.u32 %v2353_v3, 16  ;;  %v2844_v59 = vld [vmem:[#allocation2 + $0x70] sm:$0xf]  ;;  %v7708_v2 = vpop.f32.mrb[10].mxu1 }
 0x12a   : > { %5213 = vmatmul.mubr.bf16.gmra.mrb[84].mxu1 %v6086_v26  ;;  %v2621_v43 = vsel %vm7318_vm6, %v2616_v29, %v2620_v12  ;;  %v2936_v44 = vor.u32 %v2934_v24, %v2933_v32  ;;  %v2938_v45 = vrot.slane %v2933_v32, 4  ;;  %v2636_v46 = vshll.u32 %v2353_v3, 16  ;;  %v2356_v17 = vld [vmem:[#allocation2 + $0x10c] sm:$0xf]  ;;  %v2357_v29 = vld [vmem:[#allocation2 + $0x110] sm:$0xf] }
 0x12b   : > { %v2626_v53 = vrot.slane %v2625_v37, 4  ;;  %5220 = vmatprep.mubr.bf16.mxu1 %v6947_v21  ;;  %v2942_v51 = vrot.slane %v2940_v19, 7  ;;  %v2635_v56 = vrot.slane %v2633_v41, 4  ;;  %v2642_v57 = vshll.u32 %v2354_v34, 16  ;;  %v2358_v19 = vld [vmem:[#allocation2 + $0x114] sm:$0x1] }
 0x12c   : > { %v2937_v61 = vsel %vm7165_vm3, %v6071_v30, %v2936_v44  ;;  %v2638_v63 = vrot.slane %v2636_v46, 5  ;;  %v2646_v0 = vshrl.u32 %v2354_v34, 16  ;;  %v2652_v1 = vshll.u32 %v2355_v40, 16  ;;  %v7714_v30 = vpop.f32.mrb[11].mxu0  ;;  %v2845_v44 = vld [vmem:[#allocation2 + $0x7c] sm:$0x8] }
 0x12d   : > { %v2631_v3 = vsel %vm7318_vm6, %v2626_v53, %v2630_v20  ;;  %v2945_v5 = vor.u32 %v2943_v39, %v2942_v51  ;;  %v2644_v6 = vrot.slane %v2642_v57, 5  ;;  %v2948_v10 = vshrl.u32 %v2842_v48, 16  ;;  %v2846_v53 = vld [vmem:[#allocation2 + $0x80] sm:$0xf]  ;;  %v7718_v51 = vpop.f32.mrb[11].mxu1 }
 0x12e   : > { %v6063_v11 = vcombine.low %v2621_v43, %v2631_v3  ;;  %v2639_v12 = vor.u32 %v2638_v63, %v2635_v56  ;;  %v2648_v13 = vrot.slane %v2646_v0, 4  ;;  %v2654_v14 = vrot.slane %v2652_v1, 5  ;;  %v6951_v56 = vld [vmem:[#allocation2 + $0xf8] sm:$0xff]  }
 0x12f   : > { %v2946_v18 = vsel %vm7165_vm3, %v2938_v45, %v2945_v5  ;;  %v6072_v21 = vrot.slane %v2948_v10, 11  ;;  %v2953_v24 = vshrl.u32 %v2843_v47, 16  ;;  %v2956_v26 = vshll.u32 %v2843_v47, 16  ;;  %v2359_v10 = vld [vmem:[#allocation2 + $0x120] sm:$0xf] }
 0x130   : > { %5123 = vmatprep.mubr.bf16.mxu0 %v6063_v11  ;;  %v6087_v20 = vcombine.low %v2937_v61, %v2946_v18  ;;  %v2640_v32 = vrot.slane %v2639_v12, 4  ;;  %v2649_v34 = vor.u32 %v2648_v13, %v2644_v6  ;;  %v2962_v37 = vshrl.u32 %v2844_v59, 16  ;;  %v7720_v0 = vpop.f32.mrb[12].mxu0 }
 0x131   : > { %5124 = vmatmul.mubr.bf16.gmra.mrb[88].mxu0 %v6948_v55  ;;  %v2955_v39 = vrot.slane %v2953_v24, 7  ;;  %v2965_v40 = vshll.u32 %v2844_v59, 16  ;;  %v2657_v41 = vshrl.u32 %v2356_v17, 16  ;;  %v2660_v43 = vshll.u32 %v2356_v17, 16  ;;  %v2847_v59 = vld [vmem:[#allocation2 + $0x84] sm:$0xf] }
 0x132   : > { %5221 = vmatmul.mubr.bf16.gmra.mrb[88].mxu1 %v6087_v20  ;;  %v2645_v45 = vsel %vm7318_vm6, %v2640_v32, %v2644_v6  ;;  %v2650_v46 = vrot.slane %v2649_v34, 4  ;;  %v2964_v48 = vrot.slane %v2962_v37, 7  ;;  %v2666_v47 = vshll.u32 %v2357_v29, 16  ;;  %v6952_v17 = vld [vmem:[#allocation2 + $0x80] sm:$0xff]   ;;  %v7726_v18 = vpop.f32.mrb[12].mxu1 }
 0x133   : > { %5228 = vmatprep.mubr.bf16.mxu1 %v6950_v7  ;;  %v2958_v57 = vor.u32 %v2956_v26, %v2955_v39  ;;  %v2960_v61 = vrot.slane %v2955_v39, 4  ;;  %v2659_v55 = vrot.slane %v2657_v41, 4  ;;  %v2662_v63 = vrot.slane %v2660_v43, 5 }
 0x134   : > { %v2655_v1 = vsel %vm7318_vm6, %v2650_v46, %v2654_v14  ;;  %v2967_v3 = vor.u32 %v2965_v40, %v2964_v48  ;;  %v2668_v5 = vrot.slane %v2666_v47, 5  ;;  %v2670_v6 = vshrl.u32 %v2357_v29, 16  ;;  %v7730_v14 = vpop.f32.mrb[13].mxu0  ;;  %v2360_v40 = vld [vmem:[#allocation2 + $0x124] sm:$0xf] }
 0x135   : > { %v6064_v11 = vcombine.low %v2645_v45, %v2655_v1  ;;  %v2959_v12 = vsel %vm7165_vm3, %v6072_v21, %v2958_v57  ;;  %v2663_v7 = vor.u32 %v2662_v63, %v2659_v55  ;;  %v2676_v13 = vshll.u32 %v2358_v19, 16  ;;  %v7732_v21 = vpop.f32.mrb[13].mxu1  ;;  %v2361_v46 = vld [vmem:[#allocation2 + $0x128] sm:$0x1]  ;;  %v7734_v48 = vpop.f32.mrb[14].mxu0 }
 0x136   : > { %v2968_v24 = vsel %vm7165_vm3, %v2960_v61, %v2967_v3  ;;  %v2672_v26 = vrot.slane %v2670_v6, 4  ;;  %v2970_v20 = vshrl.u32 %v2845_v44, 16  ;;  %v2975_v32 = vshrl.u32 %v2846_v53, 16  ;;  %v2848_v55 = vld [vmem:[#allocation2 + $0x90] sm:$0x8] }
 0x137   : > { %5131 = vmatprep.mubr.bf16.mxu0 %v6064_v11  ;;  %v6088_v29 = vcombine.low %v2959_v12, %v2968_v24  ;;  %v2664_v34 = vrot.slane %v2663_v7, 4  ;;  %v2678_v37 = vrot.slane %v2676_v13, 5  ;;  %v2978_v39 = vshll.u32 %v2846_v53, 16  ;;  %v2849_v63 = vld [vmem:[#allocation2 + $0x94] sm:$0xf]  ;;  %v7738_v53 = vpop.f32.mrb[14].mxu1 }
 0x138   : > { %v2673_v19 = vor.u32 %v2672_v26, %v2668_v5  ;;  %v6073_v41 = vrot.slane %v2970_v20, 11  ;;  %v2977_v43 = vrot.slane %v2975_v32, 7  ;;  %v2984_v45 = vshrl.u32 %v2847_v59, 16  ;;  %8840 = vst [vmem:[#allocation4_spill] sm:$0xff] %v7738_v53  ;;  %v7740_v12 = vpop.f32.mrb[15].mxu0  ;;  %v7746_v20 = vpop.f32.mrb[15].mxu1 }
 0x139   : > { %5132 = vmatmul.mubr.bf16.gmra.mrb[92].mxu0 %v6951_v56  ;;  %v2669_v44 = vsel %vm7318_vm6, %v2664_v34, %v2668_v5  ;;  %v2987_v47 = vshll.u32 %v2847_v59, 16  ;;  %v2681_v57 = vshrl.u32 %v2359_v10, 16  ;;  %v2684_v61 = vshll.u32 %v2359_v10, 16  ;;  %8841 = vst [vmem:[#allocation5_spill] sm:$0xff] %v7746_v20 }
 0x13a   : > { %5229 = vmatmul.mubr.bf16.gmra.mrb[92].mxu1 %v6088_v29  ;;  %v2674_v1 = vrot.slane %v2673_v19, 4  ;;  %v2980_v3 = vor.u32 %v2978_v39, %v2977_v43  ;;  %v2982_v6 = vrot.slane %v2977_v43, 4  ;;  %v2986_v11 = vrot.slane %v2984_v45, 7  ;;  %v6953_v29 = vld [vmem:[#allocation2 + $0x10c] sm:$0xff]  }
 0x13b   : > { %5236 = vmatprep.mubr.bf16.mxu1 %v6952_v17  ;;  %v2683_v7 = vrot.slane %v2681_v57, 4  ;;  %v2686_v56 = vrot.slane %v2684_v61, 5  ;;  %v2690_v13 = vshll.u32 %v2360_v40, 16  ;;  %v2694_v24 = vshrl.u32 %v2360_v40, 16  ;;  %v2850_v17 = vld [vmem:[#allocation2 + $0x98] sm:$0xf] }
 0x13c   : > { %v2679_v59 = vsel %vm7318_vm6, %v2674_v1, %v2678_v37  ;;  %v2981_v5 = vsel %vm7165_vm3, %v6073_v41, %v2980_v3  ;;  %v2989_v10 = vor.u32 %v2987_v47, %v2986_v11  ;;  %v2700_v26 = vshll.u32 %v2361_v46, 16  ;;  %v2362_v37 = vld [vmem:[#allocation2 + $0x134] sm:$0xf]  ;;  %v7750_v61 = vpop.f32.mrb[16].mxu0  ;;  %v2363_v3 = vld [vmem:[#allocation2 + $0x138] sm:$0xf] }
 0x13d   : > { %v6065_v32 = vcombine.low %v2669_v44, %v2679_v59  ;;  %v2687_v34 = vor.u32 %v2686_v56, %v2683_v7  ;;  %v2692_v39 = vrot.slane %v2690_v13, 5  ;;  %v2696_v19 = vrot.slane %v2694_v24, 4  ;;  %8842 = vst [vmem:[#allocation6_spill] sm:$0xff] %v7750_v61  ;;  %v6955_v1 = vld [vmem:[#allocation2 + $0x94] sm:$0xff]   ;;  %v2364_v24 = vld [vmem:[#allocation2 + $0x13c] sm:$0x1] }
 0x13e   : > { %v2990_v43 = vsel %vm7165_vm3, %v2982_v6, %v2989_v10  ;;  %v2702_v40 = vrot.slane %v2700_v26, 5  ;;  %v2992_v45 = vshrl.u32 %v2848_v55, 16  ;;  %v2997_v57 = vshrl.u32 %v2849_v63, 16  ;;  %v2851_v59 = vld [vmem:[#allocation2 + $0xa4] sm:$0x8] }
 0x13f   : > { %5139 = vmatprep.mubr.bf16.mxu0 %v6065_v32  ;;  %v6089_v41 = vcombine.low %v2981_v5, %v2990_v43  ;;  %v2688_v46 = vrot.slane %v2687_v34, 4  ;;  %v2697_v47 = vor.u32 %v2696_v19, %v2692_v39  ;;  %v3000_v44 = vshll.u32 %v2849_v63, 16  ;;  %v2852_v32 = vld [vmem:[#allocation2 + $0xa8] sm:$0xf]  ;;  %v2853_v5 = vld [vmem:[#allocation2 + $0xac] sm:$0xf] }
 0x140   : > { %v6074_v11 = vrot.slane %v2992_v45, 11  ;;  %v2999_v7 = vrot.slane %v2997_v57, 7  ;;  %v3006_v56 = vshrl.u32 %v2850_v17, 16  ;;  %v3009_v13 = vshll.u32 %v2850_v17, 16  ;;  %v7754_v34 = vpop.f32.mrb[16].mxu1  ;;  %v7756_v57 = vpop.f32.mrb[17].mxu0 }
 0x141   : > { %5140 = vmatmul.mubr.bf16.gmra.mrb[96].mxu0 %v6953_v29  ;;  %v2693_v55 = vsel %vm7318_vm6, %v2688_v46, %v2692_v39  ;;  %v2698_v6 = vrot.slane %v2697_v47, 4  ;;  %v2705_v10 = vshrl.u32 %v2362_v37, 16  ;;  %v2708_v26 = vshll.u32 %v2362_v37, 16  ;;  %8843 = vst [vmem:[#allocation7_spill] sm:$0xff] %v7754_v34  ;;  %8844 = vst [vmem:[#allocation8_spill] sm:$0xff] %v7756_v57  ;;  %v7760_v47 = vpop.f32.mrb[17].mxu1 }
 0x142   : > { %5237 = vmatmul.mubr.bf16.gmra.mrb[96].mxu1 %v6089_v41  ;;  %v3002_v63 = vor.u32 %v3000_v44, %v2999_v7  ;;  %v3004_v19 = vrot.slane %v2999_v7, 4  ;;  %v3008_v43 = vrot.slane %v3006_v56, 7  ;;  %v2714_v45 = vshll.u32 %v2363_v3, 16  ;;  %v7764_v7 = vpop.f32.mrb[18].mxu0  ;;  %v6956_v56 = vld [vmem:[#allocation2 + $0x120] sm:$0xff]  }
 0x143   : > { %v2703_v29 = vsel %vm7318_vm6, %v2698_v6, %v2702_v40  ;;  %5244 = vmatprep.mubr.bf16.mxu1 %v6955_v1  ;;  %v2707_v17 = vrot.slane %v2705_v10, 4  ;;  %v2710_v39 = vrot.slane %v2708_v26, 5  ;;  %v2718_v46 = vshrl.u32 %v2363_v3, 16  ;;  %v7766_v40 = vpop.f32.mrb[18].mxu1  ;;  %v7770_v10 = vpop.f32.mrb[19].mxu0 }
 0x144   : > { %v6066_v37 = vcombine.low %v2693_v55, %v2703_v29  ;;  %v3003_v34 = vsel %vm7165_vm3, %v6074_v11, %v3002_v63  ;;  %v3011_v41 = vor.u32 %v3009_v13, %v3008_v43  ;;  %v2716_v44 = vrot.slane %v2714_v45, 5  ;;  %v6957_v43 = vld [vmem:[#allocation2 + $0xa8] sm:$0xff]  }
 0x145   : > { %v2711_v61 = vor.u32 %v2710_v39, %v2707_v17  ;;  %v2720_v57 = vrot.slane %v2718_v46, 4  ;;  %v2724_v20 = vshll.u32 %v2364_v24, 16  ;;  %v3014_v53 = vshrl.u32 %v2851_v59, 16  ;;  %v2365_v17 = vld [vmem:[#allocation2 + $0x148] sm:$0xf] }
 0x146   : > { %5147 = vmatprep.mubr.bf16.mxu0 %v6066_v37  ;;  %v3012_v1 = vsel %vm7165_vm3, %v3004_v19, %v3011_v41  ;;  %v3019_v3 = vshrl.u32 %v2852_v32, 16  ;;  %v3022_v55 = vshll.u32 %v2852_v32, 16  ;;  %v3028_v6 = vshrl.u32 %v2853_v5, 16  ;;  %v7788_v41 = vpop.f32.mrb[20].mxu0 }
 0x147   : > { %v6090_v11 = vcombine.low %v3003_v34, %v3012_v1  ;;  %v2712_v13 = vrot.slane %v2711_v61, 4  ;;  %v2721_v26 = vor.u32 %v2720_v57, %v2716_v44  ;;  %v2726_v63 = vrot.slane %v2724_v20, 5  ;;  %v2366_v20 = vld [vmem:[#allocation2 + $0x14c] sm:$0xf]  ;;  %v2367_v34 = vld [vmem:[#allocation2 + $0x150] sm:$0x1] }
 0x148   : > { %v6075_v45 = vrot.slane %v3014_v53, 11  ;;  %v3021_v29 = vrot.slane %v3019_v3, 7  ;;  %v3030_v24 = vrot.slane %v3028_v6, 7  ;;  %v3031_v59 = vshll.u32 %v2853_v5, 16  ;;  %v7782_v53 = vpop.f32.mrb[19].mxu1 }
 0x149   : > { %5148 = vmatmul.mubr.bf16.gmra.mrb[100].mxu0 %v6956_v56  ;;  %v2717_v39 = vsel %vm7318_vm6, %v2712_v13, %v2716_v44  ;;  %v2722_v19 = vrot.slane %v2721_v26, 4  ;;  %v7776_v32 = vadd.f32 %v7629_v16, %v7621_v62  ;;  %v7780_v61 = vadd.f32 %v7637_v27, %v7633_v22  ;;  %v2854_v44 = vld [vmem:[#allocation2 + $0xb8] sm:$0x8]  ;;  %v2855_v56 = vld [vmem:[#allocation2 + $0xbc] sm:$0xf]  ;;  %v7800_v6 = vpop.f32.mrb[20].mxu1 }
 0x14a   : > { %5245 = vmatmul.mubr.bf16.gmra.mrb[100].mxu1 %v6090_v11  ;;  %v3024_v5 = vor.u32 %v3022_v55, %v3021_v29  ;;  %v3026_v57 = vrot.slane %v3021_v29, 4  ;;  %v3033_v46 = vor.u32 %v3031_v59, %v3030_v24  ;;  %v7786_v37 = vadd.f32 %v7645_v54, %v7641_v33  ;;  %v2856_v55 = vld [vmem:[#allocation2 + $0xc0] sm:$0xf]  ;;  %v6958_v11 = vld [vmem:[#allocation2 + $0x134] sm:$0xff]  }
 0x14b   : > { %8845 = vst [vmem:[#allocation9_spill] sm:$0xff] %v7780_v61  ;;  %v2727_v62 = vsel %vm7318_vm6, %v2722_v19, %v2726_v63  ;;  %5252 = vmatprep.mubr.bf16.mxu1 %v6957_v43  ;;  %v7794_v16 = vadd.f32 %v7649_v58, %v7643_v49  ;;  %v2729_v22 = vshrl.u32 %v2365_v17, 16  ;;  %v2732_v27 = vshll.u32 %v2365_v17, 16  ;;  %v7802_v63 = vpop.f32.mrb[21].mxu0  ;;  %v3468_v61 = vld [vmem:[#allocation2 + $0x74] sm:$0x1] }
 0x14c   : > { %v6067_v1 = vcombine.low %v2717_v39, %v2727_v62  ;;  %v3025_v3 = vsel %vm7165_vm3, %v6075_v45, %v3024_v5  ;;  %v3034_v33 = vsel %vm7165_vm3, %v3026_v57, %v3033_v46  ;;  %v2738_v54 = vshll.u32 %v2366_v20, 16  ;;  %v6960_v39 = vld [vmem:[#allocation2 + $0xbc] sm:$0xff]   ;;  %v7804_v57 = vpop.f32.mrb[21].mxu1 }
 0x14d   : > { %8846 = vst [vmem:[#allocation10_spill] sm:$0xff] %v7794_v16  ;;  %v6091_v13 = vcombine.low %v3025_v3, %v3034_v33  ;;  %v2731_v26 = vrot.slane %v2729_v22, 4  ;;  %v2734_v49 = vrot.slane %v2732_v27, 5  ;;  %v2742_v58 = vshrl.u32 %v2366_v20, 16  ;;  %v3457_v27 = vld [vmem:[#allocation2 + $0x30] sm:$0xf] }
 0x14e   : > { %5155 = vmatprep.mubr.bf16.mxu0 %v6067_v1  ;;  %v2740_v43 = vrot.slane %v2738_v54, 5  ;;  %v2748_v29 = vshll.u32 %v2367_v34, 16  ;;  %v3036_v24 = vshrl.u32 %v2854_v44, 16  ;;  %v3041_v59 = vshrl.u32 %v2855_v56, 16  ;;  %v3458_v44 = vld [vmem:[#allocation2 + $0x34] sm:$0xf] }
 0x14f   : > { %v2735_v45 = vor.u32 %v2734_v49, %v2731_v26  ;;  %v2744_v17 = vrot.slane %v2742_v58, 4  ;;  %v3044_v19 = vshll.u32 %v2855_v56, 16  ;;  %v3050_v5 = vshrl.u32 %v2856_v55, 16  ;;  %v7818_v49 = vpop.f32.mrb[22].mxu0 }
 0x150   : > { %v2750_v46 = vrot.slane %v2748_v29, 5  ;;  %v6076_v62 = vrot.slane %v3036_v24, 11  ;;  %v3043_v3 = vrot.slane %v3041_v59, 7  ;;  %v3053_v22 = vshll.u32 %v2856_v55, 16  ;;  %v2857_v59 = vld [vmem:[#allocation2 + $0xcc] sm:$0x8] }
 0x151   : > { %5156 = vmatmul.mubr.bf16.gmra.mrb[104].mxu0 %v6958_v11  ;;  %v2736_v20 = vrot.slane %v2735_v45, 4  ;;  %v2745_v33 = vor.u32 %v2744_v17, %v2740_v43  ;;  %v3052_v1 = vrot.slane %v3050_v5, 7  ;;  %v7808_v34 = vadd.f32 %v7664_v35, %v7658_v28  ;;  %v3459_v11 = vld [vmem:[#allocation2 + $0x38] sm:$0x1]  ;;  %v6961_v35 = vld [vmem:[#allocation2 + $0x148] sm:$0xff]   ;;  %v7830_v45 = vpop.f32.mrb[23].mxu0 }
 0x152   : > { %5253 = vmatmul.mubr.bf16.gmra.mrb[104].mxu1 %v6091_v13  ;;  %v3046_v54 = vor.u32 %v3044_v19, %v3043_v3  ;;  %v3048_v56 = vrot.slane %v3043_v3, 4  ;;  %v7812_v26 = vadd.f32 %v7670_v60, %v7666_v52  ;;  %v7816_v55 = vadd.f32 %v7682_v38, %v7672_v9  ;;  %v7826_v52 = vpop.f32.mrb[22].mxu1  ;;  %v2859_v19 = vld [vmem:[#allocation2 + $0xd4] sm:$0xf] }
 0x153   : > { %v2741_v58 = vsel %vm7318_vm6, %v2736_v20, %v2740_v43  ;;  %v2746_v28 = vrot.slane %v2745_v33, 4  ;;  %5260 = vmatprep.mubr.bf16.mxu1 %v6960_v39  ;;  %v3055_v13 = vor.u32 %v3053_v22, %v3052_v1  ;;  %v7824_v29 = vadd.f32 %v7686_v50, %v7678_v23  ;;  %v2858_v50 = vld [vmem:[#allocation2 + $0xd0] sm:$0xf] }
 0x154   : > { %8847 = vst [vmem:[#allocation11_spill] sm:$0xff] %v7812_v26  ;;  %v3047_v60 = vsel %vm7165_vm3, %v6076_v62, %v3046_v54  ;;  %v3506_v9 = vshrl.u32 %v3457_v27, 16  ;;  %v3509_v38 = vshll.u32 %v3457_v27, 16  ;;  %v3515_v24 = vshll.u32 %v3458_v44, 16  ;;  %v6962_v22 = vld [vmem:[#allocation2 + $0xd0] sm:$0xff]  }
 0x155   : > { %8848 = vst [vmem:[#allocation12_spill] sm:$0xff] %v7824_v29  ;;  %v2751_v43 = vsel %vm7318_vm6, %v2746_v28, %v2750_v46  ;;  %v3056_v17 = vsel %vm7165_vm3, %v3048_v56, %v3055_v13  ;;  %v3519_v39 = vshrl.u32 %v3458_v44, 16  ;;  %v3525_v23 = vshll.u32 %v3459_v11, 16  ;;  %v3460_v27 = vld [vmem:[#allocation2 + $0x44] sm:$0xf]  ;;  %v7836_v44 = vpop.f32.mrb[23].mxu1 }
 0x156   : > { %v6068_v5 = vcombine.low %v2741_v58, %v2751_v43  ;;  %v6092_v3 = vcombine.low %v3047_v60, %v3056_v17  ;;  %v3508_v62 = vrot.slane %v3506_v9, 4  ;;  %v3511_v20 = vrot.slane %v3509_v38, 5  ;;  %v3461_v26 = vld [vmem:[#allocation2 + $0x48] sm:$0xf]  ;;  %v7838_v9 = vpop.f32.mrb[24].mxu0 }
 0x157   : > { %v3517_v33 = vrot.slane %v3515_v24, 5  ;;  %v3521_v1 = vrot.slane %v3519_v39, 4  ;;  %v3527_v54 = vrot.slane %v3525_v23, 5  ;;  %v3058_v29 = vshrl.u32 %v2857_v59, 16  ;;  %v3462_v39 = vld [vmem:[#allocation2 + $0x4c] sm:$0x1] }
 0x158   : > { %5163 = vmatprep.mubr.bf16.mxu0 %v6068_v5  ;;  %v3512_v46 = vor.u32 %v3511_v20, %v3508_v62  ;;  %v3063_v28 = vshrl.u32 %v2858_v50, 16  ;;  %v3066_v16 = vshll.u32 %v2858_v50, 16  ;;  %v3072_v56 = vshrl.u32 %v2859_v19, 16  ;;  %v7842_v20 = vpop.f32.mrb[24].mxu1 }
 0x159   : > { %5164 = vmatmul.mubr.bf16.gmra.mrb[108].mxu0 %v6961_v35  ;;  %v3522_v11 = vor.u32 %v3521_v1, %v3517_v33  ;;  %v6077_v58 = vrot.slane %v3058_v29, 11  ;;  %v3075_v13 = vshll.u32 %v2859_v19, 16  ;;  %v3530_v60 = vshrl.u32 %v3460_v27, 16 }
 0x15a   : > { %5261 = vmatmul.mubr.bf16.gmra.mrb[108].mxu1 %v6092_v3  ;;  %v3513_v38 = vrot.slane %v3512_v46, 4  ;;  %v3065_v24 = vrot.slane %v3063_v28, 7  ;;  %v3074_v43 = vrot.slane %v3072_v56, 7  ;;  %v3533_v59 = vshll.u32 %v3460_v27, 16  ;;  %v7846_v28 = vpop.f32.mrb[25].mxu0 }
 0x15b   : > { %5268 = vmatprep.mubr.bf16.mxu1 %v6962_v22  ;;  %v3523_v17 = vrot.slane %v3522_v11, 4  ;;  %v3532_v23 = vrot.slane %v3530_v60, 4  ;;  %v3539_v50 = vshll.u32 %v3461_v26, 16  ;;  %v3543_v5 = vshrl.u32 %v3461_v26, 16  ;;  %v6963_v22 = vld [vmem:[#allocation2 + $0xe4] sm:$0xff]   ;;  %v7852_v60 = vpop.f32.mrb[25].mxu1 }
 0x15c   : > { %v3518_v35 = vsel %vm7318_vm6, %v3513_v38, %v3517_v33  ;;  %v3068_v62 = vor.u32 %v3066_v16, %v3065_v24  ;;  %v3070_v29 = vrot.slane %v3065_v24, 4  ;;  %v3077_v19 = vor.u32 %v3075_v13, %v3074_v43  ;;  %v3463_v11 = vld [vmem:[#allocation2 + $0x58] sm:$0xf]  ;;  %v3464_v13 = vld [vmem:[#allocation2 + $0x5c] sm:$0xf] }
 0x15d   : > { %v3528_v3 = vsel %vm7318_vm6, %v3523_v17, %v3527_v54  ;;  %v3535_v1 = vrot.slane %v3533_v59, 5  ;;  %v3541_v46 = vrot.slane %v3539_v50, 5  ;;  %v3545_v27 = vrot.slane %v3543_v5, 4  ;;  %v3465_v59 = vld [vmem:[#allocation2 + $0x60] sm:$0x1]  ;;  %v7858_v50 = vpop.f32.mrb[26].mxu0 }
 0x15e   : > { %v6117_v56 = vcombine.low %v3518_v35, %v3528_v3  ;;  %v3069_v26 = vsel %vm7165_vm3, %v6077_v58, %v3068_v62  ;;  %v3078_v16 = vsel %vm7165_vm3, %v3070_v29, %v3077_v19  ;;  %v3549_v33 = vshll.u32 %v3462_v39, 16  ;;  %v2860_v17 = vld [vmem:[#allocation2 + $0xe0] sm:$0x8]  ;;  %v7860_v58 = vpop.f32.mrb[26].mxu1 }
 0x15f   : > { %v6093_v38 = vcombine.low %v3069_v26, %v3078_v16  ;;  %v3536_v54 = vor.u32 %v3535_v1, %v3532_v23  ;;  %v3546_v24 = vor.u32 %v3545_v27, %v3541_v46  ;;  %v7856_v43 = vadd.f32 %v7698_v25, %v7690_v4  ;;  %v7874_v25 = vpop.f32.mrb[27].mxu0  ;;  %v7876_v35 = vpop.f32.mrb[27].mxu1  ;;  %v2861_v27 = vld [vmem:[#allocation2 + $0xe4] sm:$0xf]  ;;  %v2862_v26 = vld [vmem:[#allocation2 + $0xe8] sm:$0xf] }
 0x160   : > { %6793 = vmatprep.mubr.bf16.mxu0 %v6117_v56  ;;  %v3551_v5 = vrot.slane %v3549_v33, 5  ;;  %v7864_v39 = vadd.f32 %v7700_v36, %v7694_v15  ;;  %v7868_v23 = vadd.f32 %v7714_v30, %v7702_v42  ;;  %v7872_v4 = vadd.f32 %v7718_v51, %v7708_v2  ;;  %v3466_v16 = vld [vmem:[#allocation2 + $0x6c] sm:$0xf] }
 0x161   : > { %v3537_v62 = vrot.slane %v3536_v54, 4  ;;  %v3547_v29 = vrot.slane %v3546_v24, 4  ;;  %v3554_v19 = vshrl.u32 %v3463_v11, 16  ;;  %v3557_v3 = vshll.u32 %v3463_v11, 16  ;;  %v3467_v24 = vld [vmem:[#allocation2 + $0x70] sm:$0xf] }
 0x162   : > { %8849 = vst [vmem:[#allocation13_spill] sm:$0xff] %v7864_v39  ;;  %8850 = vst [vmem:[#allocation14_spill] sm:$0xff] %v7872_v4  ;;  %5269 = vmatmul.mubr.bf16.gmra.mrb[112].mxu1 %v6093_v38  ;;  %v3563_v1 = vshll.u32 %v3464_v13, 16  ;;  %v3567_v15 = vshrl.u32 %v3464_v13, 16  ;;  %v3573_v36 = vshll.u32 %v3465_v59, 16  ;;  %v3080_v56 = vshrl.u32 %v2860_v17, 16 }
 0x163   : > { %v3542_v42 = vsel %vm7318_vm6, %v3537_v62, %v3541_v46  ;;  %v3552_v2 = vsel %vm7318_vm6, %v3547_v29, %v3551_v5  ;;  %5276 = vmatprep.mubr.bf16.mxu1 %v6963_v22  ;;  %v3556_v30 = vrot.slane %v3554_v19, 4  ;;  %v3559_v51 = vrot.slane %v3557_v3, 5  ;;  %v7882_v13 = vpop.f32.mrb[28].mxu0  ;;  %v7884_v46 = vpop.f32.mrb[28].mxu1 }
 0x164   : > { %v6118_v33 = vcombine.low %v3542_v42, %v3552_v2  ;;  %v3565_v54 = vrot.slane %v3563_v1, 5  ;;  %v3569_v11 = vrot.slane %v3567_v15, 4  ;;  %v3575_v38 = vrot.slane %v3573_v36, 5  ;;  %8851 = vst [vmem:[#allocation15_spill] sm:$0xff] %v7882_v13  ;;  %8852 = vst [vmem:[#allocation16_spill] sm:$0xff] %v7884_v46  ;;  %v7886_v19 = vpop.f32.mrb[29].mxu0 }
 0x165   : > { %v3560_v59 = vor.u32 %v3559_v51, %v3556_v30  ;;  %v6078_v17 = vrot.slane %v3080_v56, 11  ;;  %v3085_v4 = vshrl.u32 %v2861_v27, 16  ;;  %v3088_v39 = vshll.u32 %v2861_v27, 16  ;;  %v3469_v46 = vld [vmem:[#allocation2 + $0x80] sm:$0xf]  ;;  %v7892_v13 = vpop.f32.mrb[30].mxu0 }
 0x166   : > { %6794 = vmatmul.mubr.bf16.vlgmr.msra.gmra.mrb[112].mxu0 %v6118_v33  ;;  %v3570_v5 = vor.u32 %v3569_v11, %v3565_v54  ;;  %v3094_v22 = vshrl.u32 %v2862_v26, 16  ;;  %v3097_v62 = vshll.u32 %v2862_v26, 16  ;;  %v3578_v29 = vshrl.u32 %v3466_v16, 16  ;;  %v7890_v26 = vpop.f32.mrb[29].mxu1 }
 0x167   : > { %v3561_v3 = vrot.slane %v3560_v59, 4  ;;  %v3087_v1 = vrot.slane %v3085_v4, 7  ;;  %v3581_v15 = vshll.u32 %v3466_v16, 16  ;;  %v3587_v36 = vshll.u32 %v3467_v24, 16 }
 0x168   : > { %v3571_v42 = vrot.slane %v3570_v5, 4  ;;  %v3096_v2 = vrot.slane %v3094_v22, 7  ;;  %v3580_v30 = vrot.slane %v3578_v29, 4  ;;  %v3591_v56 = vshrl.u32 %v3467_v24, 16  ;;  %v7896_v22 = vpop.f32.mrb[30].mxu1  ;;  %v7898_v24 = vpop.f32.mrb[31].mxu0 }
 0x169   : > { %v3566_v27 = vsel %vm7318_vm6, %v3561_v3, %v3565_v54  ;;  %v3090_v51 = vor.u32 %v3088_v39, %v3087_v1  ;;  %v3092_v33 = vrot.slane %v3087_v1, 4  ;;  %v3583_v11 = vrot.slane %v3581_v15, 5  ;;  %v7902_v1 = vpop.f32.mrb[31].mxu1  ;;  %v7904_v15 = vpop.f32.mrb[32].mxu0 }
 0x16a   : > { %v3576_v4 = vsel %vm7318_vm6, %v3571_v42, %v3575_v38  ;;  %v3099_v16 = vor.u32 %v3097_v62, %v3096_v2  ;;  %v3589_v59 = vrot.slane %v3587_v36, 5  ;;  %v3593_v5 = vrot.slane %v3591_v56, 4  ;;  %8853 = vst [vmem:[#allocation17_spill] sm:$0xff] %v7904_v15  ;;  %v6964_v2 = vld [vmem:[#allocation2 + $0xf8] sm:$0xff]  }
 0x16b   : > { %v6119_v29 = vcombine.low %v3566_v27, %v3576_v4  ;;  %v3091_v39 = vsel %vm7165_vm3, %v6078_v17, %v3090_v51  ;;  %v3584_v54 = vor.u32 %v3583_v11, %v3580_v30  ;;  %v3597_v3 = vshll.u32 %v3468_v61, 16  ;;  %v3470_v17 = vld [vmem:[#allocation2 + $0x84] sm:$0xf]  ;;  %v3471_v30 = vld [vmem:[#allocation2 + $0x88] sm:$0x1] }
 0x16c   : > { %v3100_v38 = vsel %vm7165_vm3, %v3092_v33, %v3099_v16  ;;  %v3594_v62 = vor.u32 %v3593_v5, %v3589_v59  ;;  %v7910_v36 = vadd.f32 %v7730_v14, %v7720_v0  ;;  %v7914_v42 = vadd.f32 %v7732_v21, %v7726_v18  ;;  %v2863_v33 = vld [vmem:[#allocation2 + $0xf4] sm:$0x8]  ;;  %v8857_v4 = vld [vmem:[#allocation4_spill] sm:$0xff]  ;;  %v2864_v21 = vld [vmem:[#allocation2 + $0xf8] sm:$0xf]  ;;  %v7924_v5 = vpop.f32.mrb[32].mxu1 }
 0x16d   : > { %6797 = vmatprep.mubr.bf16.mxu0 %v6119_v29  ;;  %v6094_v61 = vcombine.low %v3091_v39, %v3100_v38  ;;  %v3585_v56 = vrot.slane %v3584_v54, 4  ;;  %v3599_v27 = vrot.slane %v3597_v3, 5  ;;  %v7918_v51 = vadd.f32 %v7740_v12, %v7734_v48  ;;  %v8858_v0 = vld [vmem:[#allocation5_spill] sm:$0xff]  ;;  %v2865_v48 = vld [vmem:[#allocation2 + $0xfc] sm:$0xf]  ;;  %v7928_v12 = vpop.f32.mrb[33].mxu0 }
 0x16e   : > { %8854 = vst [vmem:[#allocation18_spill] sm:$0xff] %v7910_v36  ;;  %8855 = vst [vmem:[#allocation19_spill] sm:$0xff] %v7914_v42  ;;  %v3595_v11 = vrot.slane %v3594_v62, 4  ;;  %v7922_v14 = vadd.f32 %v8858_v0, %v8857_v4  ;;  %v3602_v16 = vshrl.u32 %v3469_v46, 16  ;;  %v3605_v18 = vshll.u32 %v3469_v46, 16 }
 0x16f   : > { %8856 = vst [vmem:[#allocation20_spill] sm:$0xff] %v7918_v51  ;;  %8860 = vst [vmem:[#allocation5_spill] sm:$0xff] %v7924_v5  ;;  %5277 = vmatmul.mubr.bf16.gmra.mrb[116].mxu1 %v6094_v61  ;;  %v3590_v29 = vsel %vm7318_vm6, %v3585_v56, %v3589_v59  ;;  %v3611_v39 = vshll.u32 %v3470_v17, 16  ;;  %v3615_v54 = vshrl.u32 %v3470_v17, 16  ;;  %v3621_v3 = vshll.u32 %v3471_v30, 16  ;;  %v7934_v17 = vpop.f32.mrb[34].mxu0 }
 0x170   : > { %8859 = vst [vmem:[#allocation4_spill] sm:$0xff] %v7922_v14  ;;  %8861 = vst [vmem:[#allocation21_spill] sm:$0xff] %v7928_v12  ;;  %v3600_v38 = vsel %vm7318_vm6, %v3595_v11, %v3599_v27  ;;  %5284 = vmatprep.mubr.bf16.mxu1 %v6964_v2  ;;  %v3604_v62 = vrot.slane %v3602_v16, 4  ;;  %v3607_v4 = vrot.slane %v3605_v18, 5  ;;  %v3102_v46 = vshrl.u32 %v2863_v33, 16  ;;  %v7932_v14 = vpop.f32.mrb[33].mxu1 }
 0x171   : > { %v3472_v0 = vld [vmem:[#allocation2 + $0x94] sm:$0xf]  ;;  %v6120_v61 = vcombine.low %v3590_v29, %v3600_v38  ;;  %v3613_v42 = vrot.slane %v3611_v39, 5  ;;  %v3617_v5 = vrot.slane %v3615_v54, 4  ;;  %v3623_v59 = vrot.slane %v3621_v3, 5  ;;  %8862 = vst [vmem:[#allocation22_spill] sm:$0xff] %v7934_v17 }
 0x172   : > { %v3473_v56 = vld [vmem:[#allocation2 + $0x98] sm:$0xf]  ;;  %v3608_v30 = vor.u32 %v3607_v4, %v3604_v62  ;;  %v6079_v15 = vrot.slane %v3102_v46, 11  ;;  %v3107_v12 = vshrl.u32 %v2864_v21, 16  ;;  %v3110_v51 = vshll.u32 %v2864_v21, 16  ;;  %v7936_v36 = vpop.f32.mrb[34].mxu1 }
 0x173   : > { %8863 = vst [vmem:[#allocation23_spill] sm:$0xff] %v7936_v36  ;;  %v7938_v2 = vpop.f32.mrb[35].mxu0  ;;  %6798 = vmatmul.mubr.bf16.gmra.mrb[116].mxu0 %v6120_v61  ;;  %v3618_v27 = vor.u32 %v3617_v5, %v3613_v42  ;;  %v3116_v33 = vshrl.u32 %v2865_v48, 16  ;;  %v3119_v11 = vshll.u32 %v2865_v48, 16  ;;  %v3626_v16 = vshrl.u32 %v3472_v0, 16  ;;  %v7940_v18 = vpop.f32.mrb[35].mxu1 }
 0x174   : > { %8864 = vst [vmem:[#allocation24_spill] sm:$0xff] %v7938_v2  ;;  %8865 = vst [vmem:[#allocation25_spill] sm:$0xff] %v7940_v18  ;;  %v3609_v29 = vrot.slane %v3608_v30, 4  ;;  %v3109_v39 = vrot.slane %v3107_v12, 7  ;;  %v3629_v54 = vshll.u32 %v3472_v0, 16  ;;  %v3635_v3 = vshll.u32 %v3473_v56, 16 }
 0x175   : > { %v3619_v38 = vrot.slane %v3618_v27, 4  ;;  %v3118_v62 = vrot.slane %v3116_v33, 7  ;;  %v3474_v4 = vld [vmem:[#allocation2 + $0x9c] sm:$0x1]  ;;  %v3628_v46 = vrot.slane %v3626_v16, 4  ;;  %v3639_v21 = vshrl.u32 %v3473_v56, 16 }
 0x176   : > { %v3614_v36 = vsel %vm7318_vm6, %v3609_v29, %v3613_v42  ;;  %v3112_v2 = vor.u32 %v3110_v51, %v3109_v39  ;;  %v3114_v61 = vrot.slane %v3109_v39, 4  ;;  %v3631_v5 = vrot.slane %v3629_v54, 5  ;;  %v3475_v16 = vld [vmem:[#allocation2 + $0xa8] sm:$0xf]  ;;  %v7948_v56 = vpop.f32.mrb[36].mxu0  ;;  %v8866_v29 = vld [vmem:[#allocation6_spill] sm:$0xff] }
 0x177   : > { %v3624_v48 = vsel %vm7318_vm6, %v3619_v38, %v3623_v59  ;;  %v3121_v17 = vor.u32 %v3119_v11, %v3118_v62  ;;  %v3637_v18 = vrot.slane %v3635_v3, 5  ;;  %v3641_v30 = vrot.slane %v3639_v21, 4  ;;  %v8867_v39 = vld [vmem:[#allocation8_spill] sm:$0xff]  ;;  %v8868_v59 = vld [vmem:[#allocation7_spill] sm:$0xff]  ;;  %v7958_v38 = vpop.f32.mrb[36].mxu1 }
 0x178   : > { %v6121_v12 = vcombine.low %v3614_v36, %v3624_v48  ;;  %v3113_v0 = vsel %vm7165_vm3, %v6079_v15, %v3112_v2  ;;  %v3632_v27 = vor.u32 %v3631_v5, %v3628_v46  ;;  %v3645_v33 = vshll.u32 %v3474_v4, 16  ;;  %v6965_v36 = vld [vmem:[#allocation2 + $0x10c] sm:$0xff]   ;;  %v7960_v15 = vpop.f32.mrb[37].mxu0  ;;  %v7966_v21 = vpop.f32.mrb[37].mxu1 }
 0x179   : > { %v3122_v42 = vsel %vm7165_vm3, %v3114_v61, %v3121_v17  ;;  %v3642_v51 = vor.u32 %v3641_v30, %v3637_v18  ;;  %v7954_v54 = vadd.f32 %v8867_v39, %v8866_v29  ;;  %v6435_v11 = vadd.f32 %v7760_v47, %v8868_v59  ;;  %v3476_v3 = vld [vmem:[#allocation2 + $0xac] sm:$0xf]  ;;  %v3477_v46 = vld [vmem:[#allocation2 + $0xb0] sm:$0x1]  ;;  %v7968_v61 = vpop.f32.mrb[38].mxu0 }
 0x17a   : > { %6801 = vmatprep.mubr.bf16.mxu0 %v6121_v12  ;;  %v6095_v2 = vcombine.low %v3113_v0, %v3122_v42  ;;  %v3633_v62 = vrot.slane %v3632_v27, 4  ;;  %v3647_v4 = vrot.slane %v3645_v33, 5  ;;  %v7964_v17 = vadd.f32 %v7770_v10, %v7764_v7  ;;  %8869 = vst [vmem:[#allocation6_spill] sm:$0xff] %v7968_v61  ;;  %v2866_v12 = vld [vmem:[#allocation2 + $0x108] sm:$0x8]  ;;  %v7975_v0 = vpop.f32.mrb[38].mxu1 }
 0x17b   : > { %v3643_v47 = vrot.slane %v3642_v51, 4  ;;  %v7971_v5 = vadd.f32 %v6435_v11, %v7776_v32  ;;  %v6438_v48 = vadd.f32 %v7782_v53, %v7766_v40  ;;  %v3650_v30 = vshrl.u32 %v3475_v16, 16  ;;  %8871 = vst [vmem:[#allocation7_spill] sm:$0xff] %v7975_v0  ;;  %v7977_v27 = vpop.f32.mrb[39].mxu0  ;;  %v2867_v51 = vld [vmem:[#allocation2 + $0x10c] sm:$0xf] }
 0x17c   : > { %8872 = vst [vmem:[#allocation26_spill] sm:$0xff] %v7977_v27  ;;  %5285 = vmatmul.mubr.bf16.gmra.mrb[120].mxu1 %v6095_v2  ;;  %v3638_v7 = vsel %vm7318_vm6, %v3633_v62, %v3637_v18  ;;  %v3653_v10 = vshll.u32 %v3475_v16, 16  ;;  %v3659_v33 = vshll.u32 %v3476_v3, 16  ;;  %v3663_v42 = vshrl.u32 %v3476_v3, 16  ;;  %v7981_v29 = vpop.f32.mrb[39].mxu1 }
 0x17d   : > { %8870 = vst [vmem:[#allocation8_spill] sm:$0xff] %v7971_v5  ;;  %8873 = vst [vmem:[#allocation27_spill] sm:$0xff] %v7981_v29  ;;  %v3648_v32 = vsel %vm7318_vm6, %v3643_v47, %v3647_v4  ;;  %v7986_v40 = vadd.f32 %v6438_v48, %v7786_v37  ;;  %5292 = vmatprep.mubr.bf16.mxu1 %v6965_v36  ;;  %v3652_v53 = vrot.slane %v3650_v30, 4  ;;  %v3669_v39 = vshll.u32 %v3477_v46, 16  ;;  %v2868_v59 = vld [vmem:[#allocation2 + $0x110] sm:$0xf] }
 0x17e   : > { %v6122_v11 = vcombine.low %v3638_v7, %v3648_v32  ;;  %v3655_v2 = vrot.slane %v3653_v10, 5  ;;  %v3661_v5 = vrot.slane %v3659_v33, 5  ;;  %v3665_v18 = vrot.slane %v3663_v42, 4  ;;  %v3478_v16 = vld [vmem:[#allocation2 + $0xbc] sm:$0xf] }
 0x17f   : > { %8874 = vst [vmem:[#allocation28_spill] sm:$0xff] %v7986_v40  ;;  %v3671_v62 = vrot.slane %v3669_v39, 5  ;;  %v3124_v3 = vshrl.u32 %v2866_v12, 16  ;;  %v3129_v0 = vshrl.u32 %v2867_v51, 16  ;;  %v3132_v27 = vshll.u32 %v2867_v51, 16 }
 0x180   : > { %v3479_v29 = vld [vmem:[#allocation2 + $0xc0] sm:$0xf]  ;;  %6802 = vmatmul.mubr.bf16.gmra.mrb[120].mxu0 %v6122_v11  ;;  %v3656_v61 = vor.u32 %v3655_v2, %v3652_v53  ;;  %v3666_v4 = vor.u32 %v3665_v18, %v3661_v5  ;;  %v3138_v47 = vshrl.u32 %v2868_v59, 16  ;;  %v3141_v37 = vshll.u32 %v2868_v59, 16  ;;  %v7988_v48 = vpop.f32.mrb[40].mxu0  ;;  %v7990_v33 = vpop.f32.mrb[40].mxu1 }
 0x181   : > { %v6080_v36 = vrot.slane %v3124_v3, 11  ;;  %v3131_v46 = vrot.slane %v3129_v0, 7  ;;  %v3480_v30 = vld [vmem:[#allocation2 + $0xc4] sm:$0x1]  ;;  %v3674_v7 = vshrl.u32 %v3478_v16, 16  ;;  %v3677_v10 = vshll.u32 %v3478_v16, 16 }
 0x182   : > { %8875 = vst [vmem:[#allocation29_spill] sm:$0xff] %v7990_v33  ;;  %v7992_v42 = vpop.f32.mrb[41].mxu0  ;;  %v3657_v12 = vrot.slane %v3656_v61, 4  ;;  %v3667_v32 = vrot.slane %v3666_v4, 4  ;;  %v3140_v51 = vrot.slane %v3138_v47, 7  ;;  %v3683_v39 = vshll.u32 %v3479_v29, 16 }
 0x183   : > { %v7994_v11 = vpop.f32.mrb[41].mxu1  ;;  %v7996_v53 = vpop.f32.mrb[42].mxu0  ;;  %v3134_v59 = vor.u32 %v3132_v27, %v3131_v46  ;;  %v3136_v2 = vrot.slane %v3131_v46, 4  ;;  %v3676_v18 = vrot.slane %v3674_v7, 4  ;;  %v3679_v3 = vrot.slane %v3677_v10, 5 }
 0x184   : > { %8876 = vst [vmem:[#allocation30_spill] sm:$0xff] %v7994_v11  ;;  %v7998_v0 = vpop.f32.mrb[42].mxu1  ;;  %v8000_v40 = vpop.f32.mrb[43].mxu0  ;;  %v3662_v16 = vsel %vm7318_vm6, %v3657_v12, %v3661_v5  ;;  %v3672_v61 = vsel %vm7318_vm6, %v3667_v32, %v3671_v62  ;;  %v3143_v4 = vor.u32 %v3141_v37, %v3140_v51  ;;  %v3685_v47 = vrot.slane %v3683_v39, 5  ;;  %v3481_v10 = vld [vmem:[#allocation2 + $0xd0] sm:$0xf] }
 0x185   : > { %8877 = vst [vmem:[#allocation31_spill] sm:$0xff] %v7998_v0  ;;  %8878 = vst [vmem:[#allocation32_spill] sm:$0xff] %v8000_v40  ;;  %v8006_v33 = vpop.f32.mrb[43].mxu1  ;;  %v6123_v11 = vcombine.low %v3662_v16, %v3672_v61  ;;  %v3135_v27 = vsel %vm7165_vm3, %v6080_v36, %v3134_v59  ;;  %v3680_v46 = vor.u32 %v3679_v3, %v3676_v18  ;;  %v3687_v7 = vshrl.u32 %v3479_v29, 16  ;;  %v6966_v37 = vld [vmem:[#allocation2 + $0x120] sm:$0xff]  }
 0x186   : > { %v3144_v0 = vsel %vm7165_vm3, %v3136_v2, %v3143_v4  ;;  %v3693_v40 = vshll.u32 %v3480_v30, 16  ;;  %v8014_v5 = vadd.f32 %v7802_v63, %v7788_v41  ;;  %v6441_v62 = vadd.f32 %v7804_v57, %v7800_v6  ;;  %v3482_v12 = vld [vmem:[#allocation2 + $0xd4] sm:$0xf]  ;;  %v3483_v39 = vld [vmem:[#allocation2 + $0xd8] sm:$0x1] }
 0x187   : > { %6805 = vmatprep.mubr.bf16.mxu0 %v6123_v11  ;;  %v6096_v32 = vcombine.low %v3135_v27, %v3144_v0  ;;  %v3681_v51 = vrot.slane %v3680_v46, 4  ;;  %v3689_v36 = vrot.slane %v3687_v7, 4  ;;  %v8020_v29 = vadd.f32 %v7830_v45, %v7818_v49  ;;  %v2869_v6 = vld [vmem:[#allocation2 + $0x11c] sm:$0x8]  ;;  %v2870_v3 = vld [vmem:[#allocation2 + $0x120] sm:$0xf] }
 0x188   : > { %v3695_v59 = vrot.slane %v3693_v40, 5  ;;  %v8023_v30 = vadd.f32 %v6441_v62, %v7808_v34  ;;  %v6444_v41 = vadd.f32 %v7836_v44, %v7826_v52  ;;  %v3698_v63 = vshrl.u32 %v3481_v10, 16  ;;  %v2871_v49 = vld [vmem:[#allocation2 + $0x124] sm:$0xf] }
 0x189   : > { %5293 = vmatmul.mubr.bf16.gmra.mrb[124].mxu1 %v6096_v32  ;;  %v3686_v57 = vsel %vm7318_vm6, %v3681_v51, %v3685_v47  ;;  %v3690_v11 = vor.u32 %v3689_v36, %v3685_v47  ;;  %v3701_v2 = vshll.u32 %v3481_v10, 16  ;;  %v3707_v18 = vshll.u32 %v3482_v12, 16  ;;  %v3484_v16 = vld [vmem:[#allocation2 + $0xe4] sm:$0xf]  ;;  %v3485_v36 = vld [vmem:[#allocation2 + $0xe8] sm:$0xf] }
 0x18a   : > { %8879 = vst [vmem:[#allocation33_spill] sm:$0xff] %v8023_v30  ;;  %v8030_v45 = vadd.f32 %v6444_v41, %v7816_v55  ;;  %5300 = vmatprep.mubr.bf16.mxu1 %v6966_v37  ;;  %v3700_v34 = vrot.slane %v3698_v63, 4  ;;  %v3711_v40 = vshrl.u32 %v3482_v12, 16  ;;  %v3717_v0 = vshll.u32 %v3483_v39, 16  ;;  %v8032_v52 = vpop.f32.mrb[44].mxu0 }
 0x18b   : > { %v3691_v44 = vrot.slane %v3690_v11, 4  ;;  %v3703_v61 = vrot.slane %v3701_v2, 5  ;;  %v3709_v4 = vrot.slane %v3707_v18, 5  ;;  %v3146_v27 = vshrl.u32 %v2869_v6, 16  ;;  %v8034_v46 = vpop.f32.mrb[45].mxu0 }
 0x18c   : > { %8880 = vst [vmem:[#allocation34_spill] sm:$0xff] %v8030_v45  ;;  %v3713_v47 = vrot.slane %v3711_v40, 4  ;;  %v3719_v7 = vrot.slane %v3717_v0, 5  ;;  %v3151_v10 = vshrl.u32 %v2870_v3, 16  ;;  %v3154_v62 = vshll.u32 %v2870_v3, 16  ;;  %v8036_v32 = vpop.f32.mrb[46].mxu0 }
 0x18d   : > { %v3696_v55 = vsel %vm7318_vm6, %v3691_v44, %v3695_v59  ;;  %v3704_v37 = vor.u32 %v3703_v61, %v3700_v34  ;;  %v6081_v12 = vrot.slane %v3146_v27, 11  ;;  %v3160_v51 = vshrl.u32 %v2871_v49, 16  ;;  %v8040_v39 = vpop.f32.mrb[47].mxu0  ;;  %v3486_v61 = vld [vmem:[#allocation2 + $0xec] sm:$0x1] }
 0x18e   : > { %v6124_v41 = vcombine.low %v3686_v57, %v3696_v55  ;;  %v3714_v63 = vor.u32 %v3713_v47, %v3709_v4  ;;  %v3153_v6 = vrot.slane %v3151_v10, 7  ;;  %v3163_v11 = vshll.u32 %v2871_v49, 16  ;;  %v8042_v2 = vpop.f32.mrb[44].mxu1 }
 0x18f   : > { %v3705_v18 = vrot.slane %v3704_v37, 4  ;;  %v3162_v40 = vrot.slane %v3160_v51, 7  ;;  %v3722_v3 = vshrl.u32 %v3484_v16, 16  ;;  %v3725_v0 = vshll.u32 %v3484_v16, 16  ;;  %v8044_v45 = vpop.f32.mrb[45].mxu1 }
 0x190   : > { %6806 = vmatmul.mubr.bf16.gmra.mrb[124].mxu0 %v6124_v41  ;;  %v3715_v59 = vrot.slane %v3714_v63, 4  ;;  %v3156_v34 = vor.u32 %v3154_v62, %v3153_v6  ;;  %v3158_v44 = vrot.slane %v3153_v6, 4  ;;  %v3731_v27 = vshll.u32 %v3485_v36, 16  ;;  %v8046_v30 = vpop.f32.mrb[46].mxu1 }
 0x191   : > { %8881 = vst [vmem:[#allocation35_spill] sm:$0xff] %v8046_v30  ;;  %v3710_v57 = vsel %vm7318_vm6, %v3705_v18, %v3709_v4  ;;  %v3165_v49 = vor.u32 %v3163_v11, %v3162_v40  ;;  %v3724_v47 = vrot.slane %v3722_v3, 4  ;;  %v3727_v10 = vrot.slane %v3725_v0, 5  ;;  %v8050_v55 = vpop.f32.mrb[47].mxu1  ;;  %v6967_v4 = vld [vmem:[#allocation2 + $0x134] sm:$0xff]  }
 0x192   : > { %v3720_v16 = vsel %vm7318_vm6, %v3715_v59, %v3719_v7  ;;  %v3157_v37 = vsel %vm7165_vm3, %v6081_v12, %v3156_v34  ;;  %v3733_v62 = vrot.slane %v3731_v27, 5  ;;  %v3735_v51 = vshrl.u32 %v3485_v36, 16  ;;  %v3487_v11 = vld [vmem:[#allocation2 + $0xf8] sm:$0xf]  ;;  %v3488_v12 = vld [vmem:[#allocation2 + $0xfc] sm:$0xf] }
 0x193   : > { %v6125_v41 = vcombine.low %v3710_v57, %v3720_v16  ;;  %v3166_v63 = vsel %vm7165_vm3, %v3158_v44, %v3165_v49  ;;  %v3728_v6 = vor.u32 %v3727_v10, %v3724_v47  ;;  %v3741_v30 = vshll.u32 %v3486_v61, 16  ;;  %v3489_v44 = vld [vmem:[#allocation2 + $0x100] sm:$0x1]  ;;  %v2872_v61 = vld [vmem:[#allocation2 + $0x130] sm:$0x8] }
 0x194   : > { %v6097_v18 = vcombine.low %v3157_v37, %v3166_v63  ;;  %v3737_v40 = vrot.slane %v3735_v51, 4  ;;  %v8060_v3 = vadd.f32 %v7846_v28, %v7838_v9  ;;  %v6447_v7 = vadd.f32 %v7852_v60, %v7842_v20  ;;  %v2873_v60 = vld [vmem:[#allocation2 + $0x134] sm:$0xf]  ;;  %v3490_v49 = vld [vmem:[#allocation2 + $0x10c] sm:$0xf] }
 0x195   : > { %6809 = vmatprep.mubr.bf16.mxu0 %v6125_v41  ;;  %v3729_v36 = vrot.slane %v3728_v6, 4  ;;  %v3743_v0 = vrot.slane %v3741_v30, 5  ;;  %v8066_v59 = vadd.f32 %v7874_v25, %v7858_v50  ;;  %v6450_v34 = vadd.f32 %v7876_v35, %v7860_v58  ;;  %v2874_v35 = vld [vmem:[#allocation2 + $0x138] sm:$0xf] }
 0x196   : > { %5301 = vmatmul.mubr.bf16.gmra.mrb[128].mxu1 %v6097_v18  ;;  %v3738_v27 = vor.u32 %v3737_v40, %v3733_v62  ;;  %v8071_v9 = vadd.f32 %v6447_v7, %v7856_v43  ;;  %v3746_v28 = vshrl.u32 %v3487_v11, 16  ;;  %v3749_v20 = vshll.u32 %v3487_v11, 16  ;;  %v8073_v57 = vpop.f32.mrb[48].mxu0 }
 0x197   : > { %v3734_v30 = vsel %vm7318_vm6, %v3729_v36, %v3733_v62  ;;  %v8078_v50 = vadd.f32 %v6450_v34, %v7868_v23  ;;  %5308 = vmatprep.mubr.bf16.mxu1 %v6967_v4  ;;  %v3755_v58 = vshll.u32 %v3488_v12, 16  ;;  %v3759_v25 = vshrl.u32 %v3488_v12, 16  ;;  %v8080_v47 = vpop.f32.mrb[49].mxu0 }
 0x198   : > { %8882 = vst [vmem:[#allocation36_spill] sm:$0xff] %v8071_v9  ;;  %v3739_v43 = vrot.slane %v3738_v27, 4  ;;  %v3748_v10 = vrot.slane %v3746_v28, 4  ;;  %v3751_v16 = vrot.slane %v3749_v20, 5  ;;  %v3765_v37 = vshll.u32 %v3489_v44, 16  ;;  %v8082_v51 = vpop.f32.mrb[50].mxu0 }
 0x199   : > { %8883 = vst [vmem:[#allocation37_spill] sm:$0xff] %v8078_v50  ;;  %8884 = vst [vmem:[#allocation38_spill] sm:$0xff] %v8082_v51  ;;  %v3757_v41 = vrot.slane %v3755_v58, 5  ;;  %v3761_v63 = vrot.slane %v3759_v25, 4  ;;  %v3168_v6 = vshrl.u32 %v2872_v61, 16  ;;  %v3173_v62 = vshrl.u32 %v2873_v60, 16 }
 0x19a   : > { %v8084_v11 = vpop.f32.mrb[51].mxu0  ;;  %v3744_v23 = vsel %vm7318_vm6, %v3739_v43, %v3743_v0  ;;  %v3752_v4 = vor.u32 %v3751_v16, %v3748_v10  ;;  %v3767_v18 = vrot.slane %v3765_v37, 5  ;;  %v3176_v40 = vshll.u32 %v2873_v60, 16  ;;  %v8088_v7 = vpop.f32.mrb[48].mxu1  ;;  %v3491_v27 = vld [vmem:[#allocation2 + $0x110] sm:$0xf] }
 0x19b   : > { %8885 = vst [vmem:[#allocation39_spill] sm:$0xff] %v8084_v11  ;;  %v6126_v12 = vcombine.low %v3734_v30, %v3744_v23  ;;  %v3762_v36 = vor.u32 %v3761_v63, %v3757_v41  ;;  %v6082_v34 = vrot.slane %v3168_v6, 11  ;;  %v3175_v44 = vrot.slane %v3173_v62, 7  ;;  %v8090_v28 = vpop.f32.mrb[49].mxu1  ;;  %v3492_v60 = vld [vmem:[#allocation2 + $0x114] sm:$0x1] }
 0x19c   : > { %v3753_v20 = vrot.slane %v3752_v4, 4  ;;  %v3182_v61 = vshrl.u32 %v2874_v35, 16  ;;  %v3185_v58 = vshll.u32 %v2874_v35, 16  ;;  %v3770_v25 = vshrl.u32 %v3490_v49, 16  ;;  %v8092_v50 = vpop.f32.mrb[50].mxu1  ;;  %v8886_v51 = vld [vmem:[#allocation15_spill] sm:$0xff] }
 0x19d   : > { %6810 = vmatmul.mubr.bf16.gmra.mrb[128].mxu0 %v6126_v12  ;;  %v3763_v0 = vrot.slane %v3762_v36, 4  ;;  %v3178_v43 = vor.u32 %v3176_v40, %v3175_v44  ;;  %v3180_v10 = vrot.slane %v3175_v44, 4  ;;  %v3773_v16 = vshll.u32 %v3490_v49, 16  ;;  %v8094_v37 = vpop.f32.mrb[51].mxu1 }
 0x19e   : > { %v3758_v30 = vsel %vm7318_vm6, %v3753_v20, %v3757_v41  ;;  %v3184_v63 = vrot.slane %v3182_v61, 7  ;;  %v3772_v6 = vrot.slane %v3770_v25, 4  ;;  %v3779_v62 = vshll.u32 %v3491_v27, 16  ;;  %v8887_v20 = vld [vmem:[#allocation16_spill] sm:$0xff]  ;;  %v3493_v25 = vld [vmem:[#allocation2 + $0x120] sm:$0xf] }
 0x19f   : > { %v3768_v35 = vsel %vm7318_vm6, %v3763_v0, %v3767_v18  ;;  %v3179_v23 = vsel %vm7165_vm3, %v6082_v34, %v3178_v43  ;;  %v3775_v4 = vrot.slane %v3773_v16, 5  ;;  %v3783_v12 = vshrl.u32 %v3491_v27, 16  ;;  %v3494_v18 = vld [vmem:[#allocation2 + $0x124] sm:$0xf]  ;;  %v6968_v43 = vld [vmem:[#allocation2 + $0x148] sm:$0xff]  }
 0x1a0   : > { %v6127_v40 = vcombine.low %v3758_v30, %v3768_v35  ;;  %v3187_v36 = vor.u32 %v3185_v58, %v3184_v63  ;;  %v3781_v44 = vrot.slane %v3779_v62, 5  ;;  %v3789_v49 = vshll.u32 %v3492_v60, 16  ;;  %v2875_v63 = vld [vmem:[#allocation2 + $0x144] sm:$0x8] }
 0x1a1   : > { %v3776_v9 = vor.u32 %v3775_v4, %v3772_v6  ;;  %v3785_v11 = vrot.slane %v3783_v12, 4  ;;  %v8104_v41 = vadd.f32 %v7886_v19, %v8886_v51  ;;  %v6453_v61 = vadd.f32 %v7890_v26, %v8887_v20  ;;  %v3495_v19 = vld [vmem:[#allocation2 + $0x128] sm:$0x1]  ;;  %v8888_v26 = vld [vmem:[#allocation18_spill] sm:$0xff]  ;;  %v2877_v12 = vld [vmem:[#allocation2 + $0x14c] sm:$0xf] }
 0x1a2   : > { %6813 = vmatprep.mubr.bf16.mxu0 %v6127_v40  ;;  %v3188_v34 = vsel %vm7165_vm3, %v3180_v10, %v3187_v36  ;;  %v3791_v27 = vrot.slane %v3789_v49, 5  ;;  %v8112_v58 = vadd.f32 %v7898_v24, %v7892_v13  ;;  %v6456_v0 = vadd.f32 %v7902_v1, %v7896_v22  ;;  %v2876_v6 = vld [vmem:[#allocation2 + $0x148] sm:$0xf]  ;;  %v3496_v40 = vld [vmem:[#allocation2 + $0x134] sm:$0xf] }
 0x1a3   : > { %v6098_v51 = vcombine.low %v3179_v23, %v3188_v34  ;;  %v3777_v60 = vrot.slane %v3776_v9, 4  ;;  %v3786_v16 = vor.u32 %v3785_v11, %v3781_v44  ;;  %v8117_v30 = vadd.f32 %v6453_v61, %v8888_v26  ;;  %v8119_v62 = vpop.f32.mrb[52].mxu0  ;;  %v8891_v10 = vld [vmem:[#allocation20_spill] sm:$0xff] }
 0x1a4   : > { %8890 = vst [vmem:[#allocation16_spill] sm:$0xff] %v8119_v62  ;;  %v8122_v35 = vadd.f32 %v6456_v0, %v8891_v10  ;;  %v3794_v13 = vshrl.u32 %v3493_v25, 16  ;;  %v3797_v24 = vshll.u32 %v3493_v25, 16  ;;  %v3803_v4 = vshll.u32 %v3494_v18, 16  ;;  %v8124_v22 = vpop.f32.mrb[53].mxu0 }
 0x1a5   : > { %8889 = vst [vmem:[#allocation15_spill] sm:$0xff] %v8117_v30  ;;  %8893 = vst [vmem:[#allocation20_spill] sm:$0xff] %v8124_v22  ;;  %5309 = vmatmul.mubr.bf16.gmra.mrb[132].mxu1 %v6098_v51  ;;  %v3782_v1 = vsel %vm7318_vm6, %v3777_v60, %v3781_v44  ;;  %v3787_v9 = vrot.slane %v3786_v16, 4  ;;  %v3807_v11 = vshrl.u32 %v3494_v18, 16  ;;  %v3813_v23 = vshll.u32 %v3495_v19, 16  ;;  %v8128_v36 = vpop.f32.mrb[52].mxu1 }
 0x1a6   : > { %8892 = vst [vmem:[#allocation18_spill] sm:$0xff] %v8122_v35  ;;  %v8130_v49 = vpop.f32.mrb[54].mxu0  ;;  %5316 = vmatprep.mubr.bf16.mxu1 %v6968_v43  ;;  %v3796_v20 = vrot.slane %v3794_v13, 4  ;;  %v3799_v61 = vrot.slane %v3797_v24, 5  ;;  %v3805_v25 = vrot.slane %v3803_v4, 5  ;;  %v3190_v34 = vshrl.u32 %v2875_v63, 16 }
 0x1a7   : > { %8894 = vst [vmem:[#allocation40_spill] sm:$0xff] %v8130_v49  ;;  %v8132_v0 = vpop.f32.mrb[53].mxu1  ;;  %v8134_v26 = vpop.f32.mrb[55].mxu0  ;;  %v3792_v44 = vsel %vm7318_vm6, %v3787_v9, %v3791_v27  ;;  %v3809_v51 = vrot.slane %v3807_v11, 4  ;;  %v3815_v18 = vrot.slane %v3813_v23, 5  ;;  %v3195_v19 = vshrl.u32 %v2876_v6, 16 }
 0x1a8   : > { %8895 = vst [vmem:[#allocation41_spill] sm:$0xff] %v8132_v0  ;;  %8896 = vst [vmem:[#allocation42_spill] sm:$0xff] %v8134_v26  ;;  %v3497_v60 = vld [vmem:[#allocation2 + $0x138] sm:$0xf]  ;;  %v8138_v16 = vpop.f32.mrb[54].mxu1  ;;  %v6128_v10 = vcombine.low %v3782_v1, %v3792_v44  ;;  %v3800_v35 = vor.u32 %v3799_v61, %v3796_v20  ;;  %v6083_v43 = vrot.slane %v3190_v34, 11  ;;  %v6383_v31 = vadd.f32 %v7992_v42, %v7988_v48 }
 0x1a9   : > { %8897 = vst [vmem:[#allocation43_spill] sm:$0xff] %v8138_v16  ;;  %v3198_v13 = vshll.u32 %v2876_v6, 16  ;;  %v8140_v24 = vpop.f32.mrb[55].mxu1  ;;  %v3810_v63 = vor.u32 %v3809_v51, %v3805_v25  ;;  %v3197_v4 = vrot.slane %v3195_v19, 7  ;;  %v3204_v30 = vshrl.u32 %v2877_v12, 16 }
 0x1aa   : > { %v3207_v49 = vshll.u32 %v2877_v12, 16  ;;  %6814 = vmatmul.mubr.bf16.gmra.mrb[132].mxu0 %v6128_v10  ;;  %v3801_v26 = vrot.slane %v3800_v35, 4  ;;  %v3818_v22 = vshrl.u32 %v3496_v40, 16  ;;  %v3821_v27 = vshll.u32 %v3496_v40, 16  ;;  %v3498_v16 = vld [vmem:[#allocation2 + $0x13c] sm:$0x1] }
 0x1ab   : > { %v3827_v9 = vshll.u32 %v3497_v60, 16  ;;  %v3811_v11 = vrot.slane %v3810_v63, 4  ;;  %v3200_v23 = vor.u32 %v3198_v13, %v3197_v4  ;;  %v3202_v62 = vrot.slane %v3197_v4, 4  ;;  %v8898_v10 = vld [vmem:[#allocation17_spill] sm:$0xff]  ;;  %v6969_v63 = vld [vmem:[#allocation2 + $0x15c] sm:$0xff]  }
 0x1ac   : > { %v3206_v0 = vrot.slane %v3204_v30, 7  ;;  %v3806_v1 = vsel %vm7318_vm6, %v3801_v26, %v3805_v25  ;;  %v3820_v6 = vrot.slane %v3818_v22, 4  ;;  %v3823_v20 = vrot.slane %v3821_v27, 5  ;;  %v8899_v30 = vld [vmem:[#allocation21_spill] sm:$0xff]  ;;  %v3499_v25 = vld [vmem:[#allocation2 + $0x148] sm:$0xf] }
 0x1ad   : > { %v3829_v61 = vrot.slane %v3827_v9, 5  ;;  %v3816_v34 = vsel %vm7318_vm6, %v3811_v11, %v3815_v18  ;;  %v3201_v35 = vsel %vm7165_vm3, %v6083_v43, %v3200_v23  ;;  %v3831_v40 = vshrl.u32 %v3497_v60, 16  ;;  %v8900_v4 = vld [vmem:[#allocation5_spill] sm:$0xff]  ;;  %v8901_v27 = vld [vmem:[#allocation22_spill] sm:$0xff]  ;;  %v8902_v43 = vld [vmem:[#allocation24_spill] sm:$0xff] }
 0x1ae   : > { %v3209_v12 = vor.u32 %v3207_v49, %v3206_v0  ;;  %v6129_v44 = vcombine.low %v3806_v1, %v3816_v34  ;;  %v3824_v51 = vor.u32 %v3823_v20, %v3820_v6  ;;  %v3837_v19 = vshll.u32 %v3498_v16, 16  ;;  %v3500_v0 = vld [vmem:[#allocation2 + $0x14c] sm:$0xf]  ;;  %v3501_v60 = vld [vmem:[#allocation2 + $0x150] sm:$0x1]  ;;  %v8904_v1 = vld [vmem:[#allocation23_spill] sm:$0xff] }
 0x1af   : > { %v8150_v13 = vadd.f32 %v8899_v30, %v8898_v10  ;;  %v3833_v26 = vrot.slane %v3831_v40, 4  ;;  %v6459_v18 = vadd.f32 %v7932_v14, %v8900_v4  ;;  %v8158_v49 = vadd.f32 %v8902_v43, %v8901_v27  ;;  %v8160_v16 = vpop.f32.mrb[56].mxu0  ;;  %v8905_v6 = vld [vmem:[#allocation25_spill] sm:$0xff]  ;;  %v2879_v30 = vld [vmem:[#allocation2 + $0x15c] sm:$0xf] }
 0x1b0   : > { %v3210_v22 = vsel %vm7165_vm3, %v3202_v62, %v3209_v12  ;;  %8903 = vst [vmem:[#allocation17_spill] sm:$0xff] %v8160_v16  ;;  %6817 = vmatprep.mubr.bf16.mxu0 %v6129_v44  ;;  %v3825_v11 = vrot.slane %v3824_v51, 4  ;;  %v3839_v23 = vrot.slane %v3837_v19, 5  ;;  %v6462_v20 = vadd.f32 %v8905_v6, %v8904_v1  ;;  %v2878_v62 = vld [vmem:[#allocation2 + $0x158] sm:$0x8]  ;;  %v8164_v34 = vpop.f32.mrb[57].mxu0 }
 0x1b1   : > { %v6099_v9 = vcombine.low %v3201_v35, %v3210_v22  ;;  %8906 = vst [vmem:[#allocation21_spill] sm:$0xff] %v8164_v34  ;;  %v3834_v12 = vor.u32 %v3833_v26, %v3829_v61  ;;  %v8167_v14 = vadd.f32 %v6459_v18, %v7954_v54  ;;  %v3842_v40 = vshrl.u32 %v3499_v25, 16  ;;  %v8169_v4 = vpop.f32.mrb[56].mxu1  ;;  %v8171_v27 = vpop.f32.mrb[58].mxu0  ;;  %v2880_v22 = vld [vmem:[#allocation2 + $0x160] sm:$0xf] }
 0x1b2   : > { %v3845_v10 = vshll.u32 %v3499_v25, 16  ;;  %8908 = vst [vmem:[#allocation22_spill] sm:$0xff] %v8169_v4  ;;  %8909 = vst [vmem:[#allocation24_spill] sm:$0xff] %v8171_v27  ;;  %v3830_v35 = vsel %vm7318_vm6, %v3825_v11, %v3829_v61  ;;  %v8176_v44 = vadd.f32 %v6462_v20, %v7964_v17  ;;  %v3851_v51 = vshll.u32 %v3500_v0, 16  ;;  %v3502_v26 = vld [vmem:[#allocation2 + $0x15c] sm:$0xf] }
 0x1b3   : > { %8907 = vst [vmem:[#allocation5_spill] sm:$0xff] %v8167_v14  ;;  %5317 = vmatmul.mubr.bf16.gmra.mrb[136].mxu1 %v6099_v9  ;;  %v3855_v19 = vshrl.u32 %v3500_v0, 16  ;;  %v8178_v54 = vpop.f32.mrb[57].mxu1  ;;  %v8180_v18 = vpop.f32.mrb[59].mxu0  ;;  %v3835_v25 = vrot.slane %v3834_v12, 4  ;;  %v3844_v43 = vrot.slane %v3842_v40, 4  ;;  %v6477_v42 = vadd.f32 %v8044_v45, %v8042_v2 }
 0x1b4   : > { %8910 = vst [vmem:[#allocation23_spill] sm:$0xff] %v8176_v44  ;;  %8911 = vst [vmem:[#allocation25_spill] sm:$0xff] %v8178_v54  ;;  %5324 = vmatprep.mubr.bf16.mxu1 %v6969_v63  ;;  %v3847_v1 = vrot.slane %v3845_v10, 5  ;;  %v3861_v6 = vshll.u32 %v3501_v60, 16  ;;  %v8182_v9 = vpop.f32.mrb[58].mxu1  ;;  %v3853_v14 = vrot.slane %v3851_v51, 5  ;;  %v6486_v8 = vadd.f32 %v8094_v37, %v8092_v50 }
 0x1b5   : > { %8912 = vst [vmem:[#allocation44_spill] sm:$0xff] %v8180_v18  ;;  %8913 = vst [vmem:[#allocation45_spill] sm:$0xff] %v8182_v9  ;;  %v3857_v61 = vrot.slane %v3855_v19, 4  ;;  %v3212_v11 = vshrl.u32 %v2878_v62, 16  ;;  %v3217_v17 = vshrl.u32 %v2879_v30, 16  ;;  %v8184_v20 = vpop.f32.mrb[59].mxu1  ;;  %v3840_v0 = vsel %vm7318_vm6, %v3835_v25, %v3839_v23 }
 0x1b6   : > { %8914 = vst [vmem:[#allocation46_spill] sm:$0xff] %v8184_v20  ;;  %v3848_v44 = vor.u32 %v3847_v1, %v3844_v43  ;;  %v3863_v27 = vrot.slane %v3861_v6, 5  ;;  %v3220_v34 = vshll.u32 %v2879_v30, 16  ;;  %v6130_v18 = vcombine.low %v3830_v35, %v3840_v0  ;;  %v3503_v10 = vld [vmem:[#allocation2 + $0x160] sm:$0xf] }
 0x1b7   : > { %v3858_v12 = vor.u32 %v3857_v61, %v3853_v14  ;;  %v6084_v63 = vrot.slane %v3212_v11, 11  ;;  %v3219_v40 = vrot.slane %v3217_v17, 7  ;;  %v3226_v16 = vshrl.u32 %v2880_v22, 16  ;;  %v3504_v20 = vld [vmem:[#allocation2 + $0x164] sm:$0x1] }
 0x1b8   : > { %v3849_v60 = vrot.slane %v3848_v44, 4  ;;  %v3229_v9 = vshll.u32 %v2880_v22, 16  ;;  %v3866_v51 = vshrl.u32 %v3502_v26, 16  ;;  %6818 = vmatmul.mubr.bf16.gmra.mrb[136].mxu0 %v6130_v18  ;;  %v3869_v4 = vshll.u32 %v3502_v26, 16  ;;  %v8930_v50 = vld [vmem:[#allocation43_spill] sm:$0xff] }
 0x1b9   : > { %v3859_v62 = vrot.slane %v3858_v12, 4  ;;  %v3222_v19 = vor.u32 %v3220_v34, %v3219_v40  ;;  %v3224_v54 = vrot.slane %v3219_v40, 4  ;;  %v3228_v25 = vrot.slane %v3226_v16, 7  ;;  %v8915_v12 = vld [vmem:[#allocation6_spill] sm:$0xff]  ;;  %v8918_v40 = vld [vmem:[#allocation27_spill] sm:$0xff] }
 0x1ba   : > { %v3854_v23 = vsel %vm7318_vm6, %v3849_v60, %v3853_v14  ;;  %v3868_v30 = vrot.slane %v3866_v51, 4  ;;  %v3875_v35 = vshll.u32 %v3503_v10, 16  ;;  %v3871_v22 = vrot.slane %v3869_v4, 5  ;;  %v8194_v11 = vpop.f32.mrb[60].mxu0 }
 0x1bb   : > { %v3864_v43 = vsel %vm7318_vm6, %v3859_v62, %v3863_v27  ;;  %v3223_v44 = vsel %vm7165_vm3, %v6084_v63, %v3222_v19  ;;  %v3879_v1 = vshrl.u32 %v3503_v10, 16  ;;  %v3231_v6 = vor.u32 %v3229_v9, %v3228_v25  ;;  %v6564_v27 = vpop.f32.mrb[61].mxu0  ;;  %v8916_v9 = vld [vmem:[#allocation26_spill] sm:$0xff] }
 0x1bc   : > { %v6131_v18 = vcombine.low %v3854_v23, %v3864_v43  ;;  %v3877_v34 = vrot.slane %v3875_v35, 5  ;;  %v3885_v61 = vshll.u32 %v3504_v20, 16  ;;  %v3872_v26 = vor.u32 %v3871_v22, %v3868_v30  ;;  %v8917_v20 = vld [vmem:[#allocation7_spill] sm:$0xff]  ;;  %v6566_v60 = vpop.f32.mrb[62].mxu0  ;;  %v8920_v23 = vld [vmem:[#allocation30_spill] sm:$0xff]  ;;  %v8921_v30 = vld [vmem:[#allocation32_spill] sm:$0xff] }
 0x1bd   : > { %v3881_v17 = vrot.slane %v3879_v1, 4  ;;  %v6377_v16 = vadd.f32 %v7960_v15, %v7948_v56  ;;  %v6465_v14 = vadd.f32 %v7966_v21, %v7958_v38  ;;  %v3232_v4 = vsel %vm7165_vm3, %v3224_v54, %v3231_v6  ;;  %v6567_v15 = vpop.f32.mrb[63].mxu0  ;;  %v8919_v54 = vld [vmem:[#allocation29_spill] sm:$0xff]  ;;  %v8922_v22 = vld [vmem:[#allocation31_spill] sm:$0xff] }
 0x1be   : > { %6821 = vmatprep.mubr.bf16.mxu0 %v6131_v18  ;;  %v3887_v0 = vrot.slane %v3885_v61, 5  ;;  %v6380_v63 = vadd.f32 %v8916_v9, %v8915_v12  ;;  %v6468_v10 = vadd.f32 %v8918_v40, %v8917_v20  ;;  %v6100_v51 = vcombine.low %v3223_v44, %v3232_v4  ;;  %v6499_v38 = vpop.f32.mrb[60].mxu1  ;;  %v8923_v6 = vld [vmem:[#allocation35_spill] sm:$0xff]  ;;  %v8932_v4 = vld [vmem:[#allocation42_spill] sm:$0xff]  ;;  %v8933_v12 = vld [vmem:[#allocation28_spill] sm:$0xff] }
 0x1bf   : > { %v3873_v62 = vrot.slane %v3872_v26, 4  ;;  %v3882_v19 = vor.u32 %v3881_v17, %v3877_v34  ;;  %v8207_v56 = vadd.f32 %v6465_v14, %v8014_v5  ;;  %v6471_v25 = vadd.f32 %v8920_v23, %v8919_v54  ;;  %v6500_v43 = vpop.f32.mrb[61].mxu1  ;;  %v8929_v17 = vld [vmem:[#allocation20_spill] sm:$0xff]  ;;  %v8934_v40 = vld [vmem:[#allocation22_spill] sm:$0xff]  ;;  %v8938_v54 = vld [vmem:[#allocation33_spill] sm:$0xff] }
 0x1c0   : > { %v8210_v21 = vadd.f32 %v6468_v10, %v8020_v29  ;;  %v6386_v35 = vadd.f32 %v8921_v30, %v7996_v53  ;;  %5325 = vmatmul.mubr.bf16.gmra.mrb[140].mxu1 %v6100_v51  ;;  %v6474_v1 = vadd.f32 %v8006_v33, %v8922_v22  ;;  %v6389_v29 = vadd.f32 %v8034_v46, %v8032_v52  ;;  %v6502_v18 = vpop.f32.mrb[62].mxu1  ;;  %v8936_v51 = vld [vmem:[#allocation17_spill] sm:$0xff] }
 0x1c1   : > { %v3878_v5 = vsel %vm7318_vm6, %v3873_v62, %v3877_v34  ;;  %v3883_v44 = vrot.slane %v3882_v19, 4  ;;  %v8225_v48 = vadd.f32 %v6471_v25, %v8060_v3  ;;  %v6392_v53 = vadd.f32 %v8040_v39, %v8036_v32  ;;  %v6503_v61 = vpop.f32.mrb[63].mxu1 }
 0x1c2   : > { %v6480_v34 = vadd.f32 %v8050_v55, %v8923_v6  ;;  %v8236_v26 = vadd.f32 %v6474_v1, %v8066_v59  ;;  %v6483_v52 = vadd.f32 %v8090_v28, %v8088_v7  ;;  %v6547_v46 = vadd.f32 %v8080_v47, %v8073_v57  ;;  %v8924_v55 = vld [vmem:[#allocation8_spill] sm:$0xff]  ;;  %v8925_v59 = vld [vmem:[#allocation38_spill] sm:$0xff]  ;;  %v8926_v7 = vld [vmem:[#allocation39_spill] sm:$0xff] }
 0x1c3   : > { %v3888_v33 = vsel %vm7318_vm6, %v3883_v44, %v3887_v0  ;;  %v8243_v2 = vadd.f32 %v6477_v42, %v8104_v41  ;;  %v6550_v28 = vadd.f32 %v8926_v7, %v8925_v59  ;;  %v8927_v57 = vld [vmem:[#allocation41_spill] sm:$0xff]  ;;  %v8261_v41 = vadd.f32 %v6486_v8, %v8158_v49  ;;  %v8941_v44 = vld [vmem:[#allocation46_spill] sm:$0xff]  ;;  %v8942_v42 = vld [vmem:[#allocation36_spill] sm:$0xff] }
 0x1c4   : > { %v6132_v45 = vcombine.low %v3878_v5, %v3888_v33  ;;  %v8246_v32 = vadd.f32 %v6480_v34, %v8112_v58  ;;  %v8251_v39 = vadd.f32 %v6483_v52, %v8150_v13  ;;  %v8254_v3 = vadd.f32 %v6547_v46, %v8924_v55  ;;  %v8928_v58 = vld [vmem:[#allocation16_spill] sm:$0xff]  ;;  %v8937_v49 = vld [vmem:[#allocation21_spill] sm:$0xff] }
 0x1c5   : > { %v6489_v47 = vadd.f32 %v8927_v57, %v8128_v36  ;;  %v6553_v14 = vadd.f32 %v8929_v17, %v8928_v58  ;;  %v6492_v37 = vadd.f32 %v8140_v24, %v8930_v50  ;;  %v8931_v13 = vld [vmem:[#allocation40_spill] sm:$0xff]  ;;  %v8270_v9 = vadd.f32 %v6550_v28, %v8933_v12  ;;  %v8935_v36 = vld [vmem:[#allocation25_spill] sm:$0xff]  ;;  %v8939_v24 = vld [vmem:[#allocation34_spill] sm:$0xff] }
 0x1c6   : > { %6822 = vmatmul.mubr.bf16.gmra.mrb[140].mxu0 %v6132_v45  ;;  %v6556_v0 = vadd.f32 %v8932_v4, %v8931_v13  ;;  %v6495_v10 = vadd.f32 %v8935_v36, %v8934_v40  ;;  %v6559_v62 = vadd.f32 %v8937_v49, %v8936_v51  ;;  %v6569_v19 = vpop.f32.mrb[64].mxu0  ;;  %v8940_v5 = vld [vmem:[#allocation45_spill] sm:$0xff]  ;;  %v8943_v34 = vld [vmem:[#allocation24_spill] sm:$0xff]  ;;  %v6501_v46 = vadd.f32 %v6500_v43, %v6499_v38  ;;  %v8951_v12 = vld [vmem:[#allocation10_spill] sm:$0xff] }
 0x1c7   : > { %v8272_v20 = vadd.f32 %v6489_v47, %v6377_v16  ;;  %v8279_v23 = vadd.f32 %v6553_v14, %v8938_v54  ;;  %v8281_v25 = vadd.f32 %v6492_v37, %v6380_v63  ;;  %v6498_v22 = vadd.f32 %v8941_v44, %v8940_v5  ;;  %v6570_v16 = vpop.f32.mrb[65].mxu0  ;;  %v8944_v33 = vld [vmem:[#allocation44_spill] sm:$0xff]  ;;  %v8945_v28 = vld [vmem:[#allocation37_spill] sm:$0xff]  ;;  %v8946_v14 = vld [vmem:[#allocation15_spill] sm:$0xff] }
 0x1c8   : > { %v8284_v30 = vadd.f32 %v6556_v0, %v8939_v24  ;;  %v8288_v1 = vadd.f32 %v6495_v10, %v6383_v31  ;;  %v8291_v6 = vadd.f32 %v6559_v62, %v8942_v42  ;;  %v6562_v52 = vadd.f32 %v8944_v33, %v8943_v34  ;;  %v6572_v45 = vpop.f32.mrb[66].mxu0  ;;  %v8950_v13 = vld [vmem:[#allocation9_spill] sm:$0xff] }
 0x1c9   : > { %v8295_v8 = vadd.f32 %v6498_v22, %v6386_v35  ;;  %v6565_v63 = vadd.f32 %v6564_v27, %v8194_v11  ;;  %v6504_v55 = vadd.f32 %v6503_v61, %v6502_v18  ;;  %v6568_v59 = vadd.f32 %v6567_v15, %v6566_v60  ;;  %v6573_v7 = vpop.f32.mrb[67].mxu0  ;;  %v6505_v47 = vpop.f32.mrb[64].mxu1  ;;  %v8947_v35 = vld [vmem:[#allocation18_spill] sm:$0xff]  ;;  %v8948_v60 = vld [vmem:[#allocation5_spill] sm:$0xff]  ;;  %v8949_v61 = vld [vmem:[#allocation23_spill] sm:$0xff] }
 0x1ca   : > { %v8299_v57 = vadd.f32 %v6562_v52, %v8945_v28  ;;  %v8301_v31 = vadd.f32 %v6501_v46, %v6389_v29  ;;  %v6571_v58 = vadd.f32 %v6570_v16, %v6569_v19  ;;  %v6574_v17 = vadd.f32 %v6573_v7, %v6572_v45  ;;  %v6506_v11 = vpop.f32.mrb[65].mxu1  ;;  %v8952_v16 = vld [vmem:[#allocation11_spill] sm:$0xff]  ;;  %v8953_v52 = vld [vmem:[#allocation12_spill] sm:$0xff] }
 0x1cb   : > { %v8304_v50 = vadd.f32 %v6565_v63, %v8946_v14  ;;  %v8306_v38 = vadd.f32 %v6504_v55, %v6392_v53  ;;  %v8309_v43 = vadd.f32 %v6568_v59, %v8947_v35  ;;  %v6507_v27 = vadd.f32 %v6506_v11, %v6505_v47  ;;  %v6508_v18 = vpop.f32.mrb[66].mxu1  ;;  %v8954_v11 = vld [vmem:[#allocation13_spill] sm:$0xff] }
 0x1cc   : > { %v8312_v15 = vadd.f32 %v6571_v58, %v8948_v60  ;;  %v8315_v29 = vadd.f32 %v6574_v17, %v8949_v61  ;;  %v6509_v37 = vpop.f32.mrb[67].mxu1 }
 0x1cd   : > { %v8318_v4 = vadd.f32 %v6507_v27, %v8950_v13  ;;  %v6510_v0 = vadd.f32 %v6509_v37, %v6508_v18  ;;  %v8955_v18 = vld [vmem:[#allocation14_spill] sm:$0xff] }
 0x1cf   : > { %v8321_v53 = vadd.f32 %v6510_v0, %v8951_v12 }
 0x1d3   : > { %v6575_v40 = vpop.f32.mrb[68].mxu0 }
 0x1d4   : > { %v6576_v36 = vpop.f32.mrb[69].mxu0 }
 0x1d5   : > { %v6511_v10 = vpop.f32.mrb[68].mxu1  ;;  %v6577_v51 = vadd.f32 %v6576_v36, %v6575_v40  ;;  %v6578_v49 = vpop.f32.mrb[70].mxu0 }
 0x1d6   : > { %v6512_v62 = vpop.f32.mrb[69].mxu1  ;;  %v6579_v19 = vpop.f32.mrb[71].mxu0 }
 0x1d7   : > { %v6513_v54 = vadd.f32 %v6512_v62, %v6511_v10  ;;  %v8324_v24 = vadd.f32 %v6577_v51, %v8207_v56  ;;  %v6514_v5 = vpop.f32.mrb[70].mxu1  ;;  %v6580_v44 = vadd.f32 %v6579_v19, %v6578_v49 }
 0x1d8   : > { %v6515_v22 = vpop.f32.mrb[71].mxu1 }
 0x1d9   : > { %v8327_v42 = vadd.f32 %v6513_v54, %v8952_v16  ;;  %v6516_v34 = vadd.f32 %v6515_v22, %v6514_v5  ;;  %v8330_v33 = vadd.f32 %v6580_v44, %v8210_v21  ;;  %v8956_v54 = vld [vmem:[#allocation19_spill] sm:$0xff]  ;;  %v8957_v22 = vld [vmem:[#allocation4_spill] sm:$0xff] }
 0x1db   : > { %v8333_v46 = vadd.f32 %v6516_v34, %v8953_v52 }
 0x1df   : > { %v6581_v45 = vpop.f32.mrb[72].mxu0 }
 0x1e0   : > { %v6582_v63 = vpop.f32.mrb[73].mxu0 }
 0x1e1   : > { %v6517_v55 = vpop.f32.mrb[72].mxu1  ;;  %v6583_v59 = vadd.f32 %v6582_v63, %v6581_v45  ;;  %v6584_v7 = vpop.f32.mrb[74].mxu0 }
 0x1e2   : > { %v6518_v56 = vpop.f32.mrb[73].mxu1  ;;  %v6585_v28 = vpop.f32.mrb[75].mxu0 }
 0x1e3   : > { %v6519_v47 = vadd.f32 %v6518_v56, %v6517_v55  ;;  %v8336_v58 = vadd.f32 %v6583_v59, %v8225_v48  ;;  %v6520_v17 = vpop.f32.mrb[74].mxu1  ;;  %v6586_v14 = vadd.f32 %v6585_v28, %v6584_v7 }
 0x1e4   : > { %v6521_v35 = vpop.f32.mrb[75].mxu1 }
 0x1e5   : > { %v8339_v21 = vadd.f32 %v6519_v47, %v8954_v11  ;;  %v6522_v27 = vadd.f32 %v6521_v35, %v6520_v17  ;;  %v8342_v60 = vadd.f32 %v6586_v14, %v8236_v26 }
 0x1e7   : > { %v8345_v61 = vadd.f32 %v6522_v27, %v8955_v18 }
 0x1e9   : > { %v6587_v37 = vpop.f32.mrb[76].mxu0 }
 0x1ea   : > { %v6588_v13 = vpop.f32.mrb[77].mxu0 }
 0x1eb   : > { %v6589_v0 = vadd.f32 %v6588_v13, %v6587_v37  ;;  %v6590_v12 = vpop.f32.mrb[78].mxu0 }
 0x1ec   : > { %v6591_v40 = vpop.f32.mrb[79].mxu0 }
 0x1ed   : > { %v6523_v48 = vpop.f32.mrb[76].mxu1  ;;  %v8348_v36 = vadd.f32 %v6589_v0, %v8243_v2  ;;  %v6592_v10 = vadd.f32 %v6591_v40, %v6590_v12 }
 0x1ee   : > { %v6524_v51 = vpop.f32.mrb[77].mxu1 }
 0x1ef   : > { %v6525_v49 = vadd.f32 %v6524_v51, %v6523_v48  ;;  %v6526_v62 = vpop.f32.mrb[78].mxu1  ;;  %v8351_v19 = vadd.f32 %v6592_v10, %v8246_v32 }
 0x1f0   : > { %v6527_v26 = vpop.f32.mrb[79].mxu1 }
 0x1f1   : > { %v8354_v5 = vadd.f32 %v6525_v49, %v8956_v54  ;;  %v6528_v44 = vadd.f32 %v6527_v26, %v6526_v62 }
 0x1f3   : > { %v8357_v16 = vadd.f32 %v6528_v44, %v8957_v22 }
 0x1f4   : > { %v6593_v34 = vpop.f32.mrb[80].mxu0 }
 0x1f5   : > { %v6657_v52 = vpop.f32.mrb[80].mxu1  ;;  %v6594_v45 = vpop.f32.mrb[81].mxu0 }
 0x1f6   : > { %v6595_v2 = vadd.f32 %v6594_v45, %v6593_v34  ;;  %v6658_v63 = vpop.f32.mrb[81].mxu1  ;;  %v6596_v55 = vpop.f32.mrb[82].mxu0 }
 0x1f7   : > { %v6659_v59 = vadd.f32 %v6658_v63, %v6657_v52  ;;  %v6660_v7 = vpop.f32.mrb[82].mxu1  ;;  %v6597_v56 = vpop.f32.mrb[83].mxu0 }
 0x1f8   : > { %v8360_v32 = vadd.f32 %v6595_v2, %v8251_v39  ;;  %v6598_v28 = vadd.f32 %v6597_v56, %v6596_v55  ;;  %v6661_v47 = vpop.f32.mrb[83].mxu1 }
 0x1f9   : > { %v6662_v17 = vadd.f32 %v6661_v47, %v6660_v7  ;;  %v8363_v14 = vadd.f32 %v6659_v59, %v8254_v3 }
 0x1fa   : > { %v8366_v35 = vadd.f32 %v6598_v28, %v8261_v41 }
 0x1fb   : > { %v8369_v11 = vadd.f32 %v6662_v17, %v8270_v9 }
 0x1fc   : > { %v6599_v27 = vpop.f32.mrb[84].mxu0 }
 0x1fd   : > { %v6663_v18 = vpop.f32.mrb[84].mxu1  ;;  %v6600_v37 = vpop.f32.mrb[85].mxu0 }
 0x1fe   : > { %v6601_v13 = vadd.f32 %v6600_v37, %v6599_v27  ;;  %v6664_v0 = vpop.f32.mrb[85].mxu1  ;;  %v6602_v12 = vpop.f32.mrb[86].mxu0 }
 0x1ff   : > { %v6665_v39 = vadd.f32 %v6664_v0, %v6663_v18  ;;  %v6666_v40 = vpop.f32.mrb[86].mxu1  ;;  %v6603_v48 = vpop.f32.mrb[87].mxu0 }
 0x200   : > { %v8372_v10 = vadd.f32 %v6601_v13, %v8272_v20  ;;  %v6604_v3 = vadd.f32 %v6603_v48, %v6602_v12  ;;  %v6667_v51 = vpop.f32.mrb[87].mxu1 }
 0x201   : > { %v6668_v49 = vadd.f32 %v6667_v51, %v6666_v40  ;;  %v8375_v41 = vadd.f32 %v6665_v39, %v8279_v23 }
 0x202   : > { %v8378_v9 = vadd.f32 %v6604_v3, %v8281_v25 }
 0x203   : > { %v8381_v62 = vadd.f32 %v6668_v49, %v8284_v30 }
 0x204   : > { %v6605_v26 = vpop.f32.mrb[88].mxu0 }
 0x205   : > { %v6669_v54 = vpop.f32.mrb[88].mxu1  ;;  %v6606_v44 = vpop.f32.mrb[89].mxu0 }
 0x206   : > { %v6607_v22 = vadd.f32 %v6606_v44, %v6605_v26  ;;  %v6670_v34 = vpop.f32.mrb[89].mxu1  ;;  %v6608_v52 = vpop.f32.mrb[90].mxu0 }
 0x207   : > { %v6671_v20 = vadd.f32 %v6670_v34, %v6669_v54  ;;  %v6672_v45 = vpop.f32.mrb[90].mxu1  ;;  %v6609_v2 = vpop.f32.mrb[91].mxu0 }
 0x208   : > { %v8384_v63 = vadd.f32 %v6607_v22, %v8288_v1  ;;  %v6610_v23 = vadd.f32 %v6609_v2, %v6608_v52  ;;  %v6673_v55 = vpop.f32.mrb[91].mxu1 }
 0x209   : > { %v6674_v59 = vadd.f32 %v6673_v55, %v6672_v45  ;;  %v8387_v25 = vadd.f32 %v6671_v20, %v8291_v6 }
 0x20a   : > { %v8390_v30 = vadd.f32 %v6610_v23, %v8295_v8 }
 0x20b   : > { %v8393_v7 = vadd.f32 %v6674_v59, %v8299_v57 }
 0x20c   : > { %v6611_v56 = vpop.f32.mrb[92].mxu0 }
 0x20d   : > { %v6675_v28 = vpop.f32.mrb[92].mxu1  ;;  %v6612_v47 = vpop.f32.mrb[93].mxu0 }
 0x20e   : > { %v6613_v17 = vadd.f32 %v6612_v47, %v6611_v56  ;;  %v6676_v27 = vpop.f32.mrb[93].mxu1  ;;  %v6614_v18 = vpop.f32.mrb[94].mxu0 }
 0x20f   : > { %v6677_v1 = vadd.f32 %v6676_v27, %v6675_v28  ;;  %v6678_v37 = vpop.f32.mrb[94].mxu1  ;;  %v6615_v13 = vpop.f32.mrb[95].mxu0 }
 0x210   : > { %v8396_v0 = vadd.f32 %v6613_v17, %v8301_v31  ;;  %v6616_v6 = vadd.f32 %v6615_v13, %v6614_v18  ;;  %v6679_v12 = vpop.f32.mrb[95].mxu1 }
 0x211   : > { %v6680_v39 = vadd.f32 %v6679_v12, %v6678_v37  ;;  %v8399_v8 = vadd.f32 %v6677_v1, %v8304_v50 }
 0x212   : > { %v8402_v57 = vadd.f32 %v6616_v6, %v8306_v38 }
 0x213   : > { %v8405_v40 = vadd.f32 %v6680_v39, %v8309_v43 }
 0x214   : > { %v6617_v48 = vpop.f32.mrb[96].mxu0 }
 0x215   : > { %v6681_v3 = vpop.f32.mrb[96].mxu1  ;;  %v6618_v51 = vpop.f32.mrb[97].mxu0 }
 0x216   : > { %v6619_v49 = vadd.f32 %v6618_v51, %v6617_v48  ;;  %v6682_v26 = vpop.f32.mrb[97].mxu1  ;;  %v6620_v54 = vpop.f32.mrb[98].mxu0 }
 0x217   : > { %v6683_v31 = vadd.f32 %v6682_v26, %v6681_v3  ;;  %v6684_v44 = vpop.f32.mrb[98].mxu1  ;;  %v6621_v22 = vpop.f32.mrb[99].mxu0 }
 0x218   : > { %v8408_v34 = vadd.f32 %v6619_v49, %v8318_v4  ;;  %v6622_v50 = vadd.f32 %v6621_v22, %v6620_v54  ;;  %v6685_v52 = vpop.f32.mrb[99].mxu1 }
 0x219   : > { %v6686_v20 = vadd.f32 %v6685_v52, %v6684_v44  ;;  %v8411_v38 = vadd.f32 %v6683_v31, %v8312_v15 }
 0x21a   : > { %v8414_v43 = vadd.f32 %v6622_v50, %v8321_v53 }
 0x21b   : > { %v8417_v45 = vadd.f32 %v6686_v20, %v8315_v29 }
 0x21c   : > { %v6623_v2 = vpop.f32.mrb[100].mxu0 }
 0x21d   : > { %v6687_v23 = vpop.f32.mrb[100].mxu1  ;;  %v6624_v55 = vpop.f32.mrb[101].mxu0 }
 0x21e   : > { %v6625_v59 = vadd.f32 %v6624_v55, %v6623_v2  ;;  %v6688_v56 = vpop.f32.mrb[101].mxu1  ;;  %v6626_v28 = vpop.f32.mrb[102].mxu0 }
 0x21f   : > { %v6689_v4 = vadd.f32 %v6688_v56, %v6687_v23  ;;  %v6690_v47 = vpop.f32.mrb[102].mxu1  ;;  %v6627_v17 = vpop.f32.mrb[103].mxu0 }
 0x220   : > { %v8420_v27 = vadd.f32 %v6625_v59, %v8327_v42  ;;  %v6628_v15 = vadd.f32 %v6627_v17, %v6626_v28  ;;  %v6691_v18 = vpop.f32.mrb[103].mxu1 }
 0x221   : > { %v6692_v1 = vadd.f32 %v6691_v18, %v6690_v47  ;;  %v8423_v53 = vadd.f32 %v6689_v4, %v8324_v24 }
 0x222   : > { %v8426_v29 = vadd.f32 %v6628_v15, %v8333_v46 }
 0x223   : > { %v8429_v37 = vadd.f32 %v6692_v1, %v8330_v33 }
 0x224   : > { %v6629_v13 = vpop.f32.mrb[104].mxu0 }
 0x225   : > { %v6693_v6 = vpop.f32.mrb[104].mxu1  ;;  %v6630_v12 = vpop.f32.mrb[105].mxu0 }
 0x226   : > { %v6631_v39 = vadd.f32 %v6630_v12, %v6629_v13  ;;  %v6694_v48 = vpop.f32.mrb[105].mxu1  ;;  %v6632_v3 = vpop.f32.mrb[106].mxu0 }
 0x227   : > { %v6695_v42 = vadd.f32 %v6694_v48, %v6693_v6  ;;  %v6696_v51 = vpop.f32.mrb[106].mxu1  ;;  %v6633_v49 = vpop.f32.mrb[107].mxu0 }
 0x228   : > { %v8432_v26 = vadd.f32 %v6631_v39, %v8339_v21  ;;  %v6634_v24 = vadd.f32 %v6633_v49, %v6632_v3  ;;  %v6697_v54 = vpop.f32.mrb[107].mxu1 }
 0x229   : > { %v6698_v31 = vadd.f32 %v6697_v54, %v6696_v51  ;;  %v8435_v46 = vadd.f32 %v6695_v42, %v8336_v58 }
 0x22a   : > { %v8438_v33 = vadd.f32 %v6634_v24, %v8345_v61 }
 0x22b   : > { %v8441_v44 = vadd.f32 %v6698_v31, %v8342_v60 }
 0x22c   : > { %v6635_v22 = vpop.f32.mrb[108].mxu0 }
 0x22d   : > { %v6699_v50 = vpop.f32.mrb[108].mxu1  ;;  %v6636_v52 = vpop.f32.mrb[109].mxu0 }
 0x22e   : > { %v6637_v20 = vadd.f32 %v6636_v52, %v6635_v22  ;;  %v6700_v2 = vpop.f32.mrb[109].mxu1  ;;  %v6638_v21 = vpop.f32.mrb[110].mxu0 }
 0x22f   : > { %v6701_v23 = vadd.f32 %v6700_v2, %v6699_v50  ;;  %v6702_v55 = vpop.f32.mrb[110].mxu1  ;;  %v6639_v59 = vpop.f32.mrb[111].mxu0 }
 0x230   : > { %v8444_v56 = vadd.f32 %v6637_v20, %v8354_v5  ;;  %v6640_v58 = vadd.f32 %v6639_v59, %v6638_v21  ;;  %v6703_v28 = vpop.f32.mrb[111].mxu1 }
 0x231   : > { %v6704_v61 = vadd.f32 %v6703_v28, %v6702_v55  ;;  %v8447_v4 = vadd.f32 %v6701_v23, %v8348_v36 }
 0x232   : > { %v8450_v60 = vadd.f32 %v6640_v58, %v8357_v16 }
 0x233   : > { %v8453_v47 = vadd.f32 %v6704_v61, %v8351_v19 }
 0x235   : > { %v6705_v17 = vpop.f32.mrb[112].mxu1 }
 0x236   : > { %v6706_v15 = vpop.f32.mrb[113].mxu1 }
 0x237   : > { %v6707_v18 = vadd.f32 %v6706_v15, %v6705_v17  ;;  %v6708_v1 = vpop.f32.mrb[114].mxu1 }
 0x238   : > { %v6709_v13 = vpop.f32.mrb[115].mxu1 }
 0x239   : > { %v6795_v5 = vpop.f32.mrb[112].mxu0  ;;  %v6710_v6 = vadd.f32 %v6709_v13, %v6708_v1  ;;  %v8457_v12 = vadd.f32 %v6707_v18, %v8360_v32 }
 0x23a   : > { %v8460_v36 = vadd.f32 %v6795_v5, %v8375_v41  ;;  %v5367_v39 = vpop.f32.mrb[113].mxu0 }
 0x23b   : > { %v8468_v19 = vadd.f32 %v5367_v39, %v8363_v14  ;;  %v6796_v16 = vpop.f32.mrb[114].mxu0  ;;  %v8471_v32 = vadd.f32 %v6710_v6, %v8366_v35 }
 0x23c   : > { %v6275_v41 = vpack.c.bf16 %v8460_v36, %v8460_v36  ;;  %v8476_v48 = vadd.f32 %v6796_v16, %v8381_v62  ;;  %v5370_v3 = vpop.f32.mrb[115].mxu0 }
 0x23d   : > { %v6273_v42 = vpack.c.bf16 %v8468_v19, %v8468_v19  ;;  %v8481_v51 = vadd.f32 %v5370_v3, %v8369_v11 }
 0x23e   : > { %5765 = vst.msk [vmem:[%s8465_s8 + $0x8] sm:$0xf] %vm521_vm0, %v6275_v41  ;;  %v6276_v14 = vpack.c.bf16 %v8476_v48, %v8476_v48 }
 0x23f   : > { %5763 = vst.msk [vmem:[%s8465_s8] sm:$0xf] %vm521_vm0, %v6273_v42  ;;  %v5494_v35 = vadd.f32 %v8481_v51, %v8468_v19  ;;  %v6274_v62 = vpack.c.bf16 %v8481_v51, %v8481_v51 }
 0x240   : > { %5766 = vst.msk [vmem:[%s8465_s8 + $0xc] sm:$0xf] %vm521_vm0, %v6276_v14 }
 0x241   : > { %5764 = vst.msk [vmem:[%s8465_s8 + $0x4] sm:$0xf] %vm521_vm0, %v6274_v62  ;;  %v5495_v11 = vadd.f32 %v5494_v35, %v8460_v36 }
 0x242   : > { %v6711_v49 = vpop.f32.mrb[116].mxu1 }
 0x243   : > { %v6712_v24 = vpop.f32.mrb[117].mxu1  ;;  %v5496_v52 = vadd.f32 %v5495_v11, %v8476_v48 }
 0x244   : > { %v6713_v54 = vadd.f32 %v6712_v24, %v6711_v49  ;;  %v6714_v31 = vpop.f32.mrb[118].mxu1 }
 0x245   : > { %v6715_v22 = vpop.f32.mrb[119].mxu1 }
 0x246   : > { %v6799_v50 = vpop.f32.mrb[116].mxu0  ;;  %v6716_v20 = vadd.f32 %v6715_v22, %v6714_v31  ;;  %v8500_v2 = vadd.f32 %v6713_v54, %v8372_v10 }
 0x247   : > { %v8503_v21 = vadd.f32 %v6799_v50, %v8399_v8  ;;  %v5383_v23 = vpop.f32.mrb[117].mxu0 }
 0x248   : > { %v8506_v55 = vadd.f32 %v5383_v23, %v8387_v25  ;;  %v6800_v59 = vpop.f32.mrb[118].mxu0  ;;  %v8509_v58 = vadd.f32 %v6716_v20, %v8378_v9 }
 0x249   : > { %v6279_v28 = vpack.c.bf16 %v8503_v21, %v8503_v21  ;;  %v8514_v61 = vadd.f32 %v6800_v59, %v8405_v40  ;;  %v5386_v10 = vpop.f32.mrb[119].mxu0 }
 0x24a   : > { %v5497_v8 = vadd.f32 %v5496_v52, %v8506_v55  ;;  %v6277_v17 = vpack.c.bf16 %v8506_v55, %v8506_v55  ;;  %v8520_v15 = vadd.f32 %v5386_v10, %v8393_v7 }
 0x24b   : > { %5769 = vst.msk [vmem:[%s8465_s8 + $0x18] sm:$0xf] %vm521_vm0, %v6279_v28  ;;  %v6280_v9 = vpack.c.bf16 %v8514_v61, %v8514_v61 }
 0x24c   : > { %5767 = vst.msk [vmem:[%s8465_s8 + $0x10] sm:$0xf] %vm521_vm0, %v6277_v17  ;;  %v5498_v25 = vadd.f32 %v5497_v8, %v8520_v15  ;;  %v6278_v40 = vpack.c.bf16 %v8520_v15, %v8520_v15 }
 0x24d   : > { %5770 = vst.msk [vmem:[%s8465_s8 + $0x1c] sm:$0xf] %vm521_vm0, %v6280_v9 }
 0x24e   : > { %5768 = vst.msk [vmem:[%s8465_s8 + $0x14] sm:$0xf] %vm521_vm0, %v6278_v40  ;;  %v5499_v18 = vadd.f32 %v5498_v25, %v8503_v21 }
 0x24f   : > { %v6717_v7 = vpop.f32.mrb[120].mxu1 }
 0x250   : > { %v6718_v1 = vpop.f32.mrb[121].mxu1  ;;  %v5500_v16 = vadd.f32 %v5499_v18, %v8514_v61 }
 0x251   : > { %v6719_v13 = vadd.f32 %v6718_v1, %v6717_v7  ;;  %v6720_v5 = vpop.f32.mrb[122].mxu1 }
 0x252   : > { %v6721_v6 = vpop.f32.mrb[123].mxu1 }
 0x253   : > { %v6803_v39 = vpop.f32.mrb[120].mxu0  ;;  %v6722_v41 = vadd.f32 %v6721_v6, %v6720_v5  ;;  %v8538_v3 = vadd.f32 %v6719_v13, %v8384_v63 }
 0x254   : > { %v8541_v42 = vadd.f32 %v6803_v39, %v8423_v53  ;;  %v5399_v14 = vpop.f32.mrb[121].mxu0 }
 0x255   : > { %v8544_v35 = vadd.f32 %v5399_v14, %v8411_v38  ;;  %v6804_v62 = vpop.f32.mrb[122].mxu0  ;;  %v8547_v11 = vadd.f32 %v6722_v41, %v8390_v30 }
 0x256   : > { %v6283_v49 = vpack.c.bf16 %v8541_v42, %v8541_v42  ;;  %v8552_v24 = vadd.f32 %v6804_v62, %v8429_v37  ;;  %v5402_v63 = vpop.f32.mrb[123].mxu0 }
 0x257   : > { %v5501_v54 = vadd.f32 %v5500_v16, %v8544_v35  ;;  %v6281_v53 = vpack.c.bf16 %v8544_v35, %v8544_v35  ;;  %v8558_v31 = vadd.f32 %v5402_v63, %v8417_v45 }
 0x258   : > { %5773 = vst.msk [vmem:[%s8465_s8 + $0x28] sm:$0xf] %vm521_vm0, %v6283_v49  ;;  %v6284_v30 = vpack.c.bf16 %v8552_v24, %v8552_v24 }
 0x259   : > { %5771 = vst.msk [vmem:[%s8465_s8 + $0x20] sm:$0xf] %vm521_vm0, %v6281_v53  ;;  %v6282_v38 = vpack.c.bf16 %v8558_v31, %v8558_v31  ;;  %v5502_v37 = vadd.f32 %v5501_v54, %v8558_v31 }
 0x25a   : > { %5774 = vst.msk [vmem:[%s8465_s8 + $0x2c] sm:$0xf] %vm521_vm0, %v6284_v30 }
 0x25b   : > { %5772 = vst.msk [vmem:[%s8465_s8 + $0x24] sm:$0xf] %vm521_vm0, %v6282_v38  ;;  %v5503_v20 = vadd.f32 %v5502_v37, %v8541_v42 }
 0x25c   : > { %v6723_v22 = vpop.f32.mrb[124].mxu1 }
 0x25d   : > { %v6724_v50 = vpop.f32.mrb[125].mxu1  ;;  %v5504_v17 = vadd.f32 %v5503_v20, %v8552_v24 }
 0x25e   : > { %v6725_v45 = vadd.f32 %v6724_v50, %v6723_v22  ;;  %v6726_v52 = vpop.f32.mrb[126].mxu1 }
 0x25f   : > { %v6727_v23 = vpop.f32.mrb[127].mxu1 }
 0x260   : > { %v6728_v59 = vadd.f32 %v6727_v23, %v6726_v52  ;;  %v5295_v28 = vadd.f32 %v6725_v45, %v8396_v0 }
 0x262   : > { %v8576_v10 = vadd.f32 %v6728_v59, %v8402_v57 }
 0x263   : > { %v6807_v8 = vpop.f32.mrb[124].mxu0 }
 0x264   : > { %v8580_v9 = vadd.f32 %v6807_v8, %v8447_v4  ;;  %v5415_v25 = vpop.f32.mrb[125].mxu0 }
 0x265   : > { %v8583_v40 = vadd.f32 %v5415_v25, %v8435_v46  ;;  %v6808_v18 = vpop.f32.mrb[126].mxu0 }
 0x266   : > { %v6287_v0 = vpack.c.bf16 %v8580_v9, %v8580_v9  ;;  %v8588_v7 = vadd.f32 %v6808_v18, %v8453_v47  ;;  %v5418_v57 = vpop.f32.mrb[127].mxu0 }
 0x267   : > { %v5505_v1 = vadd.f32 %v5504_v17, %v8583_v40  ;;  %v6285_v4 = vpack.c.bf16 %v8583_v40, %v8583_v40  ;;  %v8594_v13 = vadd.f32 %v5418_v57, %v8441_v44 }
 0x268   : > { %5777 = vst.msk [vmem:[%s8465_s8 + $0x38] sm:$0xf] %vm521_vm0, %v6287_v0  ;;  %v6288_v46 = vpack.c.bf16 %v8588_v7, %v8588_v7 }
 0x269   : > { %5775 = vst.msk [vmem:[%s8465_s8 + $0x30] sm:$0xf] %vm521_vm0, %v6285_v4  ;;  %v5506_v5 = vadd.f32 %v5505_v1, %v8594_v13  ;;  %v6286_v47 = vpack.c.bf16 %v8594_v13, %v8594_v13  ;;  %v6729_v6 = vpop.f32.mrb[128].mxu1 }
 0x26a   : > { %5778 = vst.msk [vmem:[%s8465_s8 + $0x3c] sm:$0xf] %vm521_vm0, %v6288_v46  ;;  %v6730_v39 = vpop.f32.mrb[129].mxu1 }
 0x26b   : > { %5776 = vst.msk [vmem:[%s8465_s8 + $0x34] sm:$0xf] %vm521_vm0, %v6286_v47  ;;  %v6731_v44 = vadd.f32 %v6730_v39, %v6729_v6  ;;  %v6732_v16 = vpop.f32.mrb[130].mxu1  ;;  %v5507_v41 = vadd.f32 %v5506_v5, %v8580_v9 }
 0x26c   : > { %v6733_v14 = vpop.f32.mrb[131].mxu1 }
 0x26d   : > { %v6734_v62 = vadd.f32 %v6733_v14, %v6732_v16  ;;  %v5303_v49 = vadd.f32 %v6731_v44, %v8408_v34  ;;  %v5508_v53 = vadd.f32 %v5507_v41, %v8588_v7 }
 0x26f   : > { %v8612_v63 = vadd.f32 %v6734_v62, %v8414_v43 }
 0x270   : > { %v6811_v54 = vpop.f32.mrb[128].mxu0 }
 0x271   : > { %v8616_v30 = vadd.f32 %v6811_v54, %v8500_v2  ;;  %v5431_v38 = vpop.f32.mrb[129].mxu0 }
 0x272   : > { %v8619_v37 = vadd.f32 %v5431_v38, %v8457_v12  ;;  %v6812_v22 = vpop.f32.mrb[130].mxu0 }
 0x273   : > { %v6291_v34 = vpack.c.bf16 %v8616_v30, %v8616_v30  ;;  %v8624_v50 = vadd.f32 %v6812_v22, %v8509_v58  ;;  %v5434_v43 = vpop.f32.mrb[131].mxu0 }
 0x274   : > { %v5509_v45 = vadd.f32 %v5508_v53, %v8619_v37  ;;  %v6289_v52 = vpack.c.bf16 %v8619_v37, %v8619_v37  ;;  %v8630_v2 = vadd.f32 %v5434_v43, %v8471_v32 }
 0x275   : > { %5781 = vst.msk [vmem:[%s8465_s8 + $0x48] sm:$0xf] %vm521_vm0, %v6291_v34  ;;  %v6292_v12 = vpack.c.bf16 %v8624_v50, %v8624_v50 }
 0x276   : > { %5779 = vst.msk [vmem:[%s8465_s8 + $0x40] sm:$0xf] %vm521_vm0, %v6289_v52  ;;  %v5510_v20 = vadd.f32 %v5509_v45, %v8630_v2  ;;  %v6290_v58 = vpack.c.bf16 %v8630_v2, %v8630_v2 }
 0x277   : > { %5782 = vst.msk [vmem:[%s8465_s8 + $0x4c] sm:$0xf] %vm521_vm0, %v6292_v12 }
 0x278   : > { %5780 = vst.msk [vmem:[%s8465_s8 + $0x44] sm:$0xf] %vm521_vm0, %v6290_v58  ;;  %v6735_v23 = vpop.f32.mrb[132].mxu1  ;;  %v5511_v32 = vadd.f32 %v5510_v20, %v8616_v30 }
 0x279   : > { %v6736_v59 = vpop.f32.mrb[133].mxu1 }
 0x27a   : > { %v6737_v8 = vadd.f32 %v6736_v59, %v6735_v23  ;;  %v6738_v17 = vpop.f32.mrb[134].mxu1  ;;  %v5512_v1 = vadd.f32 %v5511_v32, %v8624_v50 }
 0x27b   : > { %v6739_v25 = vpop.f32.mrb[135].mxu1 }
 0x27c   : > { %v6740_v18 = vadd.f32 %v6739_v25, %v6738_v17  ;;  %v5311_v0 = vadd.f32 %v6737_v8, %v8420_v27 }
 0x27d   : > { %v6815_v57 = vpop.f32.mrb[132].mxu0 }
 0x27e   : > { %v8648_v4 = vadd.f32 %v6815_v57, %v5295_v28  ;;  %v5447_v46 = vpop.f32.mrb[133].mxu0  ;;  %v5314_v5 = vadd.f32 %v6740_v18, %v8426_v29 }
 0x27f   : > { %v8652_v47 = vadd.f32 %v5447_v46, %v8538_v3  ;;  %v6816_v6 = vpop.f32.mrb[134].mxu0 }
 0x280   : > { %v6295_v39 = vpack.c.bf16 %v8648_v4, %v8648_v4  ;;  %v8657_v27 = vadd.f32 %v6816_v6, %v8576_v10  ;;  %v5450_v44 = vpop.f32.mrb[135].mxu0 }
 0x281   : > { %v5513_v16 = vadd.f32 %v5512_v1, %v8652_v47  ;;  %v6293_v28 = vpack.c.bf16 %v8652_v47, %v8652_v47  ;;  %v8663_v41 = vadd.f32 %v5450_v44, %v8547_v11 }
 0x282   : > { %5785 = vst.msk [vmem:[%s8465_s8 + $0x58] sm:$0xf] %vm521_vm0, %v6295_v39  ;;  %v6296_v29 = vpack.c.bf16 %v8657_v27, %v8657_v27 }
 0x283   : > { %5783 = vst.msk [vmem:[%s8465_s8 + $0x50] sm:$0xf] %vm521_vm0, %v6293_v28  ;;  %v5514_v3 = vadd.f32 %v5513_v16, %v8663_v41  ;;  %v6294_v10 = vpack.c.bf16 %v8663_v41, %v8663_v41 }
 0x284   : > { %5786 = vst.msk [vmem:[%s8465_s8 + $0x5c] sm:$0xf] %vm521_vm0, %v6296_v29 }
 0x285   : > { %v5515_v14 = vadd.f32 %v5514_v3, %v8648_v4  ;;  %5784 = vst.msk [vmem:[%s8465_s8 + $0x54] sm:$0xf] %vm521_vm0, %v6294_v10 }
 0x286   : > { %v6741_v11 = vpop.f32.mrb[136].mxu1 }
 0x287   : > { %v6742_v62 = vpop.f32.mrb[137].mxu1  ;;  %v5516_v53 = vadd.f32 %v5515_v14, %v8657_v27 }
 0x288   : > { %v6743_v54 = vadd.f32 %v6742_v62, %v6741_v11  ;;  %v6744_v38 = vpop.f32.mrb[138].mxu1 }
 0x289   : > { %v6745_v22 = vpop.f32.mrb[139].mxu1 }
 0x28a   : > { %v6746_v34 = vadd.f32 %v6745_v22, %v6744_v38  ;;  %v5319_v43 = vadd.f32 %v6743_v54, %v8432_v26 }
 0x28b   : > { %v6819_v45 = vpop.f32.mrb[136].mxu0 }
 0x28c   : > { %v5322_v52 = vadd.f32 %v6746_v34, %v8438_v33  ;;  %v8682_v12 = vadd.f32 %v6819_v45, %v5311_v0  ;;  %v5463_v20 = vpop.f32.mrb[137].mxu0 }
 0x28d   : > { %v5464_v58 = vadd.f32 %v5463_v20, %v5303_v49  ;;  %v6820_v23 = vpop.f32.mrb[138].mxu0 }
 0x28e   : > { %v6299_v32 = vpack.c.bf16 %v8682_v12, %v8682_v12  ;;  %v5475_v59 = vadd.f32 %v6820_v23, %v5314_v5  ;;  %v5466_v8 = vpop.f32.mrb[139].mxu0 }
 0x28f   : > { %v5517_v17 = vadd.f32 %v5516_v53, %v5464_v58  ;;  %v6297_v25 = vpack.c.bf16 %v5464_v58, %v5464_v58  ;;  %v5467_v18 = vadd.f32 %v5466_v8, %v8612_v63 }
 0x290   : > { %5789 = vst.msk [vmem:[%s8465_s8 + $0x68] sm:$0xf] %vm521_vm0, %v6299_v32  ;;  %v6300_v26 = vpack.c.bf16 %v5475_v59, %v5475_v59 }
 0x291   : > { %5787 = vst.msk [vmem:[%s8465_s8 + $0x60] sm:$0xf] %vm521_vm0, %v6297_v25  ;;  %v5518_v33 = vadd.f32 %v5517_v17, %v5467_v18  ;;  %v6298_v0 = vpack.c.bf16 %v5467_v18, %v5467_v18 }
 0x292   : > { %5790 = vst.msk [vmem:[%s8465_s8 + $0x6c] sm:$0xf] %vm521_vm0, %v6300_v26 }
 0x293   : > { %v5519_v49 = vadd.f32 %v5518_v33, %v8682_v12  ;;  %5788 = vst.msk [vmem:[%s8465_s8 + $0x64] sm:$0xf] %vm521_vm0, %v6298_v0  ;;  %v6747_v57 = vpop.f32.mrb[140].mxu1 }
 0x294   : > { %v6748_v1 = vpop.f32.mrb[141].mxu1 }
 0x295   : > { %v6749_v46 = vadd.f32 %v6748_v1, %v6747_v57  ;;  %v5520_v5 = vadd.f32 %v5519_v49, %v5475_v59  ;;  %v6750_v6 = vpop.f32.mrb[142].mxu1 }
 0x296   : > { %v6751_v63 = vpop.f32.mrb[143].mxu1 }
 0x297   : > { %v5327_v39 = vadd.f32 %v6749_v46, %v8444_v56  ;;  %v6752_v44 = vadd.f32 %v6751_v63, %v6750_v6 }
 0x299   : > { %v6823_v16 = vpop.f32.mrb[140].mxu0  ;;  %v5330_v3 = vadd.f32 %v6752_v44, %v8450_v60 }
 0x29a   : > { %v5488_v28 = vadd.f32 %v6823_v16, %v5327_v39  ;;  %v5479_v29 = vpop.f32.mrb[141].mxu0 }
 0x29b   : > { %v5480_v10 = vadd.f32 %v5479_v29, %v5319_v43  ;;  %v6824_v14 = vpop.f32.mrb[142].mxu0 }
 0x29c   : > { %v6303_v11 = vpack.c.bf16 %v5488_v28, %v5488_v28  ;;  %v5491_v62 = vadd.f32 %v6824_v14, %v5330_v3  ;;  %v5482_v54 = vpop.f32.mrb[143].mxu0 }
 0x29d   : > { %v5521_v53 = vadd.f32 %v5520_v5, %v5480_v10  ;;  %v6301_v38 = vpack.c.bf16 %v5480_v10, %v5480_v10  ;;  %v5483_v22 = vadd.f32 %v5482_v54, %v5322_v52 }
 0x29e   : > { %5793 = vst.msk [vmem:[%s8465_s8 + $0x78] sm:$0xf] %vm521_vm0, %v6303_v11  ;;  %v6304_v56 = vpack.c.bf16 %v5491_v62, %v5491_v62 }
 0x29f   : > { %5791 = vst.msk [vmem:[%s8465_s8 + $0x70] sm:$0xf] %vm521_vm0, %v6301_v38  ;;  %v5522_v34 = vadd.f32 %v5521_v53, %v5483_v22  ;;  %v6302_v45 = vpack.c.bf16 %v5483_v22, %v5483_v22 }
 0x2a0   : > { %5794 = vst.msk [vmem:[%s8465_s8 + $0x7c] sm:$0xf] %vm521_vm0, %v6304_v56 }
 0x2a1   : > { %v5523_v60 = vadd.f32 %v5522_v34, %v5488_v28  ;;  %5792 = vst.msk [vmem:[%s8465_s8 + $0x74] sm:$0xf] %vm521_vm0, %v6302_v45 }
 0x2a3   : > { %v5524_v43 = vadd.f32 %v5523_v60, %v5491_v62 }
 0x2a5   : > { %v5525_v20 = vrot.slane %v5524_v43, 4 }
 0x2a7   : > { %v5526_v23 = vadd.f32 %v5525_v20, %v5524_v43 }
 0x2a9   : > { %v5527_v32 = vrot.slane %v5526_v23, 2 }
 0x2ab   : > { %v5528_v8 = vadd.f32 %v5527_v32, %v5526_v23 }
 0x2ad   : > { %v5529_v17 = vrot.slane %v5528_v8, 1 }
 0x2af   : > { %v5530_v52 = vadd.f32 %v5529_v17, %v5528_v8 }
 0x2b1   : > { %v8710_v25 = vmul.f32 0.00390625, %v5530_v52 }
 0x2b3   : > { %5634 = vst [vmem:[%s265_s11] sm:$0x1] %v8710_v25  ;;  %v8715_v26 = vsub.f32 %v8630_v2, %v8710_v25  ;;  %v8719_v33 = vsub.f32 %v8652_v47, %v8710_v25  ;;  %v8723_v0 = vsub.f32 %v8663_v41, %v8710_v25  ;;  %v8727_v49 = vsub.f32 %v8648_v4, %v8710_v25 }
 0x2b4   : > { %v8731_v57 = vsub.f32 %v8657_v27, %v8710_v25  ;;  %v8734_v1 = vsub.f32 %v5464_v58, %v8710_v25  ;;  %v8737_v2 = vsub.f32 %v5467_v18, %v8710_v25  ;;  %v8741_v47 = vsub.f32 %v8682_v12, %v8710_v25 }
 0x2b5   : > { %v8744_v41 = vsub.f32 %v5475_v59, %v8710_v25  ;;  %v8747_v4 = vsub.f32 %v5480_v10, %v8710_v25  ;;  %v8750_v46 = vsub.f32 %v5483_v22, %v8710_v25  ;;  %v8753_v27 = vsub.f32 %v5488_v28, %v8710_v25 }
 0x2b6   : > { %v8756_v58 = vsub.f32 %v5491_v62, %v8710_v25  ;;  %v5532_v18 = vsub.f32 %v8468_v19, %v8710_v25  ;;  %v5533_v12 = vsub.f32 %v8481_v51, %v8710_v25  ;;  %v5534_v59 = vsub.f32 %v8460_v36, %v8710_v25 }
 0x2b7   : > { %v5535_v63 = vsub.f32 %v8476_v48, %v8710_v25  ;;  %v5536_v39 = vsub.f32 %v8506_v55, %v8710_v25  ;;  %v5537_v28 = vsub.f32 %v8520_v15, %v8710_v25  ;;  %v5538_v51 = vsub.f32 %v8503_v21, %v8710_v25 }
 0x2b8   : > { %v5564_v5 = vmul.f32 %v5532_v18, %v5532_v18  ;;  %v5565_v6 = vmul.f32 %v5533_v12, %v5533_v12  ;;  %v5566_v44 = vmul.f32 %v5534_v59, %v5534_v59  ;;  %v5539_v10 = vsub.f32 %v8514_v61, %v8710_v25 }
 0x2b9   : > { %v5567_v19 = vmul.f32 %v5535_v63, %v5535_v63  ;;  %v5568_v3 = vmul.f32 %v5536_v39, %v5536_v39  ;;  %v5569_v14 = vmul.f32 %v5537_v28, %v5537_v28  ;;  %v5540_v55 = vsub.f32 %v8544_v35, %v8710_v25 }
 0x2ba   : > { %v5596_v16 = vadd.f32 %v5565_v6, %v5564_v5  ;;  %v5570_v11 = vmul.f32 %v5538_v51, %v5538_v51  ;;  %v5541_v15 = vsub.f32 %v8558_v31, %v8710_v25  ;;  %v5571_v54 = vmul.f32 %v5539_v10, %v5539_v10 }
 0x2bb   : > { %v5542_v21 = vsub.f32 %v8541_v42, %v8710_v25  ;;  %v5572_v38 = vmul.f32 %v5540_v55, %v5540_v55  ;;  %v5543_v61 = vsub.f32 %v8552_v24, %v8710_v25  ;;  %v5544_v35 = vsub.f32 %v8583_v40, %v8710_v25 }
 0x2bc   : > { %v5597_v29 = vadd.f32 %v5596_v16, %v5566_v44  ;;  %v5573_v56 = vmul.f32 %v5541_v15, %v5541_v15  ;;  %v5545_v31 = vsub.f32 %v8594_v13, %v8710_v25  ;;  %v5546_v42 = vsub.f32 %v8580_v9, %v8710_v25 }
 0x2bd   : > { %v5574_v45 = vmul.f32 %v5542_v21, %v5542_v21  ;;  %v5575_v43 = vmul.f32 %v5543_v61, %v5543_v61  ;;  %v5576_v23 = vmul.f32 %v5544_v35, %v5544_v35  ;;  %v5547_v24 = vsub.f32 %v8588_v7, %v8710_v25 }
 0x2be   : > { %v5598_v36 = vadd.f32 %v5597_v29, %v5567_v19  ;;  %v5577_v8 = vmul.f32 %v5545_v31, %v5545_v31  ;;  %v5548_v40 = vsub.f32 %v8619_v37, %v8710_v25  ;;  %v5578_v52 = vmul.f32 %v5546_v42, %v5546_v42 }
 0x2bf   : > { %v5579_v12 = vmul.f32 %v5547_v24, %v5547_v24  ;;  %v5550_v13 = vsub.f32 %v8616_v30, %v8710_v25  ;;  %v5551_v9 = vsub.f32 %v8624_v50, %v8710_v25  ;;  %v5581_v7 = vmul.f32 %v8715_v26, %v8715_v26 }
 0x2c0   : > { %v5599_v48 = vadd.f32 %v5598_v36, %v5568_v3  ;;  %v5580_v5 = vmul.f32 %v5548_v40, %v5548_v40  ;;  %v5584_v28 = vmul.f32 %v8719_v33, %v8719_v33  ;;  %v5585_v30 = vmul.f32 %v8723_v0, %v8723_v0 }
 0x2c1   : > { %v5582_v39 = vmul.f32 %v5550_v13, %v5550_v13  ;;  %v5583_v16 = vmul.f32 %v5551_v9, %v5551_v9  ;;  %v5586_v51 = vmul.f32 %v8727_v49, %v8727_v49  ;;  %v5587_v25 = vmul.f32 %v8731_v57, %v8731_v57 }
 0x2c2   : > { %v5600_v62 = vadd.f32 %v5599_v48, %v5569_v14  ;;  %v5588_v3 = vmul.f32 %v8734_v1, %v8734_v1  ;;  %v5589_v33 = vmul.f32 %v8737_v2, %v8737_v2  ;;  %v5590_v0 = vmul.f32 %v8741_v47, %v8741_v47 }
 0x2c3   : > { %v5591_v49 = vmul.f32 %v8744_v41, %v8744_v41  ;;  %v5592_v57 = vmul.f32 %v8747_v4, %v8747_v4  ;;  %v5593_v1 = vmul.f32 %v8750_v46, %v8750_v46  ;;  %v5594_v2 = vmul.f32 %v8753_v27, %v8753_v27 }
 0x2c4   : > { %v5601_v53 = vadd.f32 %v5600_v62, %v5570_v11  ;;  %v5595_v47 = vmul.f32 %v8756_v58, %v8756_v58 }
 0x2c6   : > { %v5602_v22 = vadd.f32 %v5601_v53, %v5571_v54 }
 0x2c8   : > { %v5603_v34 = vadd.f32 %v5602_v22, %v5572_v38 }
 0x2ca   : > { %v5604_v60 = vadd.f32 %v5603_v34, %v5573_v56 }
 0x2cc   : > { %v5605_v20 = vadd.f32 %v5604_v60, %v5574_v45 }
 0x2ce   : > { %v5606_v32 = vadd.f32 %v5605_v20, %v5575_v43 }
 0x2d0   : > { %v5607_v17 = vadd.f32 %v5606_v32, %v5576_v23 }
 0x2d2   : > { %v5608_v18 = vadd.f32 %v5607_v17, %v5577_v8 }
 0x2d4   : > { %v5609_v59 = vadd.f32 %v5608_v18, %v5578_v52 }
 0x2d6   : > { %v5610_v6 = vadd.f32 %v5609_v59, %v5579_v12 }
 0x2d8   : > { %v5611_v63 = vadd.f32 %v5610_v6, %v5580_v5 }
 0x2da   : > { %v5612_v44 = vadd.f32 %v5611_v63, %v5581_v7 }
 0x2dc   : > { %v5613_v37 = vadd.f32 %v5612_v44, %v5582_v39 }
 0x2de   : > { %v5614_v19 = vadd.f32 %v5613_v37, %v5583_v16 }
 0x2e0   : > { %v5615_v29 = vadd.f32 %v5614_v19, %v5584_v28 }
 0x2e2   : > { %v5616_v50 = vadd.f32 %v5615_v29, %v5585_v30 }
 0x2e4   : > { %v5617_v26 = vadd.f32 %v5616_v50, %v5586_v51 }
 0x2e6   : > { %v5618_v36 = vadd.f32 %v5617_v26, %v5587_v25 }
 0x2e8   : > { %v5619_v10 = vadd.f32 %v5618_v36, %v5588_v3 }
 0x2ea   : > { %v5620_v14 = vadd.f32 %v5619_v10, %v5589_v33 }
 0x2ec   : > { %v5621_v48 = vadd.f32 %v5620_v14, %v5590_v0 }
 0x2ee   : > { %v5622_v55 = vadd.f32 %v5621_v48, %v5591_v49 }
 0x2f0   : > { %v5623_v11 = vadd.f32 %v5622_v55, %v5592_v57 }
 0x2f2   : > { %v5624_v62 = vadd.f32 %v5623_v11, %v5593_v1 }
 0x2f4   : > { %v5625_v15 = vadd.f32 %v5624_v62, %v5594_v2 }
 0x2f6   : > { %v5626_v54 = vadd.f32 %v5625_v15, %v5595_v47 }
 0x2f8   : > { %v5627_v41 = vrot.slane %v5626_v54, 4 }
 0x2fa   : > { %v5628_v53 = vadd.f32 %v5627_v41, %v5626_v54 }
 0x2fc   : > { %v5629_v21 = vrot.slane %v5628_v53, 2 }
 0x2fe   : > { %v5630_v38 = vadd.f32 %v5629_v21, %v5628_v53 }
 0x300   : > { %v5631_v22 = vrot.slane %v5630_v38, 1 }
 0x302   : > { %v5632_v4 = vadd.f32 %v5631_v22, %v5630_v38 }
 0x304   : > { %5633 = vst [vmem:[%s268_s14] sm:$0x1] %v5632_v4 }
 0x305 PF: > { %s17_s21 = sadd.s32 1, %s6976_s21  }
 0x306   : > { %p14_p4 = scmp.ge.s32.totalorder %s17_s21, 4  }
 0x308   :  { %16 = sbr.rel (!%p14_p4) target bundleno = 1 (0x1), region = 92 }

</bundles_post_ra>
